<compile_context>
chip_gen: v6e
topology: v6e:2x2x1
jax: 0.10.0
libtpu: 0.0.40
codegen_flags: <defaults>
</compile_context>

<pallas_src>
from functools import partial

import jax
import jax.numpy as jnp
import numpy as np
from jax.experimental import pallas as pl
from jax.experimental.pallas import tpu as pltpu

P_POINTS = 13     # Conv2d(128, 1024, (13, 1)) + squeeze() forces H == 13
OUT_PAD = 128     # direct_output (11) padded to a full lane width
EPS = 1e-5        # PyTorch BatchNorm default eps


# ---------------------------------------------------------------------------
# Pallas kernel: conv stack + FC stack + direct_output * y for one batch tile.
# ---------------------------------------------------------------------------
def _posenet_kernel(alphas_ref,                        # (4,) PReLU slopes, SMEM
                    x_ref, y_ref,                      # (13*BT, 3) (BT, 128)
                    w1_ref, b1_ref, sc1_ref, sh1_ref,  # conv1 + bn1
                    w2_ref, b2_ref, sc2_ref, sh2_ref,  # conv2 + bn2
                    w3_ref, b3_ref, sc3_ref, sh3_ref,  # conv3 + bn3
                    w4_ref, b4_ref, sc4_ref, sh4_ref,  # fc1   + bn4
                    w5_ref, b5_ref, sc5_ref, sh5_ref,  # fc2   + bn5
                    w6_ref, b6_ref,                    # direct_output (padded)
                    out_ref):
    f32 = jnp.float32
    bf16 = jnp.bfloat16
    bt = out_ref.shape[0]                              # samples in this tile

    a1 = alphas_ref[0]
    a2 = alphas_ref[1]
    a3 = alphas_ref[2]
    a4 = alphas_ref[3]

    def prelu(v, slope):                               # slope is an SMEM scalar
        return jnp.where(v > 0, v, slope * v)

    # conv1: Conv2d(1, 64, (1, 3)) == per-point linear 3 -> 64
    g = jnp.dot(x_ref[...].astype(bf16), w1_ref[...],
                preferred_element_type=f32) + b1_ref[...]
    g = prelu(g, a1) * sc1_ref[...] + sh1_ref[...]                 # (13*BT, 64)

    # conv2: Conv2d(64, 128, (1, 1)) == per-point linear 64 -> 128
    g = jnp.dot(g.astype(bf16), w2_ref[...],
                preferred_element_type=f32) + b2_ref[...]
    g = prelu(g, a2) * sc2_ref[...] + sh2_ref[...]                 # (13*BT, 128)
    g = g.astype(bf16)

    # conv3: Conv2d(128, 1024, (13, 1)) == contraction over 13 points x 128 ch,
    # batched over BT samples.  Point-major layout -> 13 contiguous static
    # slices of shape (BT, 128), each one MXU matmul, accumulated in f32.
    acc = jnp.zeros((bt, 1024), f32)
    for h in range(P_POINTS):                                      # unrolled
        acc = acc + jnp.dot(g[h * bt:(h + 1) * bt, :], w3_ref[h],
                            preferred_element_type=f32)
    g = (acc + b3_ref[...]) * sc3_ref[...] + sh3_ref[...]          # (BT, 1024)

    # fc1: Linear(1024, 512) -> PReLU -> BN -> Dropout(eval: identity)
    g = jnp.dot(g.astype(bf16), w4_ref[...],
                preferred_element_type=f32) + b4_ref[...]
    g = prelu(g, a3) * sc4_ref[...] + sh4_ref[...]                 # (BT, 512)

    # fc2: Linear(512, 256) -> PReLU -> BN -> Dropout(eval: identity)
    g = jnp.dot(g.astype(bf16), w5_ref[...],
                preferred_element_type=f32) + b5_ref[...]
    g = prelu(g, a4) * sc5_ref[...] + sh5_ref[...]                 # (BT, 256)

    # direct_output: Linear(256, 11) padded to 128 lanes, then x_direct * y
    out = jnp.dot(g.astype(bf16), w6_ref[...],
                  preferred_element_type=f32) + b6_ref[...]
    out_ref[...] = out * y_ref[...]                                # (BT, 128)


# ---------------------------------------------------------------------------
# TNet sub-module.
# TODO(synk): the TNet class is not included in the provided source file; a
# standard PointNet-style input transform (shared point MLP -> max-pool ->
# FC -> 3x3 + I) is assumed and kept in plain JAX glue.
# ---------------------------------------------------------------------------
def tnet_init(key):
    k = jax.random.split(key, 6)
    s = 0.05
    return dict(
        w_a=jax.random.normal(k[0], (3, 64), jnp.float32) * s,
        b_a=jax.random.normal(k[1], (64,), jnp.float32) * s,
        w_b=jax.random.normal(k[2], (64, 128), jnp.float32) * s,
        b_b=jax.random.normal(k[3], (128,), jnp.float32) * s,
        w_c=jax.random.normal(k[4], (128, 9), jnp.float32) * s,
        b_c=jax.random.normal(k[5], (9,), jnp.float32) * s,
    )


def tnet_forward(p, x):
    h = jax.nn.relu(x @ p["w_a"] + p["b_a"])           # (B, 13, 64)
    h = jax.nn.relu(h @ p["w_b"] + p["b_b"])           # (B, 13, 128)
    g = jnp.max(h, axis=1)                             # (B, 128)
    m = g @ p["w_c"] + p["b_c"]                        # (B, 9)
    return m.reshape(-1, 3, 3) + jnp.eye(3, dtype=x.dtype)[None]


# ---------------------------------------------------------------------------
# Parameters (deterministic, PyTorch shapes from __init__).
# ---------------------------------------------------------------------------
def init_params(key):
    def nrm(k, shape, scale=0.05):
        return jax.random.normal(k, shape, jnp.float32) * scale

    keys = iter(jax.random.split(key, 40))
    p = {"tnet": tnet_init(next(keys))}
    p["conv1_w"] = nrm(next(keys), (64, 1, 1, 3))
    p["conv1_b"] = nrm(next(keys), (64,))
    p["conv2_w"] = nrm(next(keys), (128, 64, 1, 1))
    p["conv2_b"] = nrm(next(keys), (128,))
    p["conv3_w"] = nrm(next(keys), (1024, 128, 13, 1))
    p["conv3_b"] = nrm(next(keys), (1024,))
    p["fc1_w"] = nrm(next(keys), (512, 1024))
    p["fc1_b"] = nrm(next(keys), (512,))
    p["fc2_w"] = nrm(next(keys), (256, 512))
    p["fc2_b"] = nrm(next(keys), (256,))
    p["out_w"] = nrm(next(keys), (11, 256))
    p["out_b"] = nrm(next(keys), (11,))
    # PReLU slopes (PyTorch default init 0.25, single shared parameter each)
    p["a1"] = jnp.float32(0.25)
    p["a2"] = jnp.float32(0.25)
    p["a3"] = jnp.float32(0.25)
    p["a4"] = jnp.float32(0.25)
    # BatchNorm affine params + running statistics (inference mode)
    for name, c in (("bn1", 64), ("bn2", 128), ("bn3", 1024),
                    ("bn4", 512), ("bn5", 256)):
        p[name + "_g"] = 1.0 + nrm(next(keys), (c,), 0.1)
        p[name + "_b"] = nrm(next(keys), (c,), 0.1)
        p[name + "_m"] = nrm(next(keys), (c,), 0.1)
        p[name + "_v"] = 1.0 + jnp.abs(nrm(next(keys), (c,), 0.1))
    return p


def prepare_operands(p):
    """One-time (hoisted) conversion of PyTorch-layout params into kernel-ready
    tiles: transposed bf16 matmul weights, folded f32 BN scale/shift, padded
    lane-dense output head."""
    f32, bf16 = jnp.float32, jnp.bfloat16

    def bn_affine(g, b, m, v):
        scale = g / jnp.sqrt(v + EPS)
        return (scale.reshape(1, -1).astype(f32),
                (b - m * scale).reshape(1, -1).astype(f32))

    ops = {}
    ops["alphas"] = jnp.stack([p["a1"], p["a2"], p["a3"], p["a4"]]).astype(f32)
    ops["w1"] = p["conv1_w"].reshape(64, 3).T.astype(bf16)           # (3, 64)
    ops["b1"] = p["conv1_b"].reshape(1, 64).astype(f32)
    ops["sc1"], ops["sh1"] = bn_affine(p["bn1_g"], p["bn1_b"],
                                       p["bn1_m"], p["bn1_v"])
    ops["w2"] = p["conv2_w"].reshape(128, 64).T.astype(bf16)         # (64, 128)
    ops["b2"] = p["conv2_b"].reshape(1, 128).astype(f32)
    ops["sc2"], ops["sh2"] = bn_affine(p["bn2_g"], p["bn2_b"],
                                       p["bn2_m"], p["bn2_v"])
    # w3[h, c, o] = conv3_w[o, c, h, 0]
    ops["w3"] = jnp.transpose(p["conv3_w"][:, :, :, 0], (2, 1, 0)).astype(bf16)
    ops["b3"] = p["conv3_b"].reshape(1, 1024).astype(f32)
    ops["sc3"], ops["sh3"] = bn_affine(p["bn3_g"], p["bn3_b"],
                                       p["bn3_m"], p["bn3_v"])
    ops["w4"] = p["fc1_w"].T.astype(bf16)                            # (1024, 512)
    ops["b4"] = p["fc1_b"].reshape(1, 512).astype(f32)
    ops["sc4"], ops["sh4"] = bn_affine(p["bn4_g"], p["bn4_b"],
                                       p["bn4_m"], p["bn4_v"])
    ops["w5"] = p["fc2_w"].T.astype(bf16)                            # (512, 256)
    ops["b5"] = p["fc2_b"].reshape(1, 256).astype(f32)
    ops["sc5"], ops["sh5"] = bn_affine(p["bn5_g"], p["bn5_b"],
                                       p["bn5_m"], p["bn5_v"])
    # direct_output padded to 128 lanes for lane-dense stores
    w6 = p["out_w"].T.astype(f32)                                    # (256, 11)
    b6 = p["out_b"].reshape(1, 11).astype(f32)
    ops["w6"] = jnp.pad(w6, ((0, 0), (0, OUT_PAD - 11))).astype(bf16)
    ops["b6"] = jnp.pad(b6, ((0, 0), (0, OUT_PAD - 11)))
    return ops


_WEIGHT_NAMES = ["w1", "b1", "sc1", "sh1",
                 "w2", "b2", "sc2", "sh2",
                 "w3", "b3", "sc3", "sh3",
                 "w4", "b4", "sc4", "sh4",
                 "w5", "b5", "sc5", "sh5",
                 "w6", "b6"]


def _const_spec(shape):
    zeros = (0,) * len(shape)
    return pl.BlockSpec(shape, lambda b: zeros)


def _round_up(n, m):
    return ((n + m - 1) // m) * m


def _pick_b_tile(b):
    # Up to 128 samples per grid step (MXU M dim); multiple of 8 for sublanes.
    # 128 keeps >= 2 grid tiles sooner for v7x's two TensorCores and is VMEM
    # safe on v7x (64 MiB) as well as v5e/v6e.
    return min(128, _round_up(max(b, 1), 8))


# ---------------------------------------------------------------------------
# Wrapper: TNet + bmm in plain JAX glue, one pallas_call for the PoseNet body.
# ---------------------------------------------------------------------------
@partial(jax.jit, static_argnames=("b_tile",))
def posenet_pallas(ops, tnet_params, x, y, b_tile=None):
    f32 = jnp.float32
    B = x.shape[0]
    bt = b_tile if b_tile is not None else _pick_b_tile(B)
    bp = _round_up(B, bt)
    n_tiles = bp // bt

    # TNet + torch.bmm(x, transform): negligible FLOPs, done outside the kernel.
    transform = tnet_forward(tnet_params, x).astype(f32)             # (B, 3, 3)
    xt = jnp.einsum("bpc,bcd->bpd", x.astype(f32), transform)        # (B, 13, 3)
    xt = jnp.pad(xt, ((0, bp - B), (0, 0), (0, 0)))
    # Point-major layout inside each batch tile so conv3 can take contiguous
    # (bt, 128) slices: (nt, bt, 13, 3) -> (nt, 13, bt, 3) -> (nt*13*bt, 3)
    xt = xt.reshape(n_tiles, bt, P_POINTS, 3).transpose(0, 2, 1, 3)
    xt = xt.reshape(n_tiles * P_POINTS * bt, 3)

    yp = jnp.pad(y.astype(f32), ((0, bp - B), (0, OUT_PAD - y.shape[1])))

    weights = [ops[n] for n in _WEIGHT_NAMES]

    in_specs = [
        pl.BlockSpec(memory_space=pltpu.MemorySpace.SMEM),           # PReLU slopes
        pl.BlockSpec((P_POINTS * bt, 3), lambda b: (b, 0)),          # points
        pl.BlockSpec((bt, OUT_PAD), lambda b: (b, 0)),               # y (padded)
    ] + [_const_spec(w.shape) for w in weights]

    grid_spec = pltpu.PrefetchScalarGridSpec(
        num_scalar_prefetch=0,
        grid=(n_tiles,),
        in_specs=in_specs,
        out_specs=pl.BlockSpec((bt, OUT_PAD), lambda b: (b, 0)),
    )

    out = pl.pallas_call(
        _posenet_kernel,
        grid_spec=grid_spec,
        out_shape=jax.ShapeDtypeStruct((bp, OUT_PAD), f32),
        compiler_params=pltpu.CompilerParams(
            dimension_semantics=("parallel",),
            vmem_limit_bytes=40 * 1024 * 1024),   # sized for v7x's 64 MiB VMEM
    )(ops["alphas"], xt, yp, *weights)

    return out[:B, :y.shape[1]]


# ---------------------------------------------------------------------------
# Pure-JAX reference (same math, batched) for a correctness check.
# ---------------------------------------------------------------------------
def posenet_reference(ops, tnet_params, x, y):
    f32, bf16 = jnp.float32, jnp.bfloat16
    a = ops["alphas"]

    def prelu(v, s):
        return jnp.where(v > 0, v, s * v)

    transform = tnet_forward(tnet_params, x).astype(f32)
    xt = jnp.einsum("bpc,bcd->bpd", x.astype(f32), transform)        # bmm
    g = jnp.einsum("bpc,co->bpo", xt.astype(bf16), ops["w1"],
                   preferred_element_type=f32) + ops["b1"]
    g = prelu(g, a[0]) * ops["sc1"] + ops["sh1"]
    g = jnp.einsum("bpc,co->bpo", g.astype(bf16), ops["w2"],
                   preferred_element_type=f32) + ops["b2"]
    g = prelu(g, a[1]) * ops["sc2"] + ops["sh2"]
    g = jnp.einsum("bpc,pco->bo", g.astype(bf16), ops["w3"],
                   preferred_element_type=f32) + ops["b3"]
    g = g * ops["sc3"] + ops["sh3"]
    g = jnp.dot(g.astype(bf16), ops["w4"],
                preferred_element_type=f32) + ops["b4"]
    g = prelu(g, a[2]) * ops["sc4"] + ops["sh4"]
    g = jnp.dot(g.astype(bf16), ops["w5"],
                preferred_element_type=f32) + ops["b5"]
    g = prelu(g, a[3]) * ops["sc5"] + ops["sh5"]
    out = jnp.dot(g.astype(bf16), ops["w6"],
                  preferred_element_type=f32) + ops["b6"]
    return out[:, :11] * y


if __name__ == "__main__":
    B = 16
    key = jax.random.PRNGKey(0)
    kp, kx, ky = jax.random.split(key, 3)
    params = init_params(kp)
    ops = prepare_operands(params)        # weight-only prep, hoisted out of jit
    x = jax.random.normal(kx, (B, P_POINTS, 3), jnp.float32)   # (B, 13, 3)
    y = jax.random.normal(ky, (B, 11), jnp.float32)            # output scaling

    # b_tile=8 exercises a multi-tile grid at this small test batch.
    out = jax.block_until_ready(posenet_pallas(ops, params["tnet"], x, y,
                                               b_tile=8))
    ref = jax.block_until_ready(posenet_reference(ops, params["tnet"], x, y))

    assert out.shape == (B, 11), out.shape
    if not np.allclose(np.asarray(out), np.asarray(ref), rtol=3e-2, atol=3e-2):
        raise AssertionError("Pallas output does not match JAX reference")
    print("KERNEL_OK")
</pallas_src>

<mosaic_0001>
module attributes {stable_mosaic.version = 11 : i64} {
  func.func @_posenet_kernel(%arg0: i32, %arg1: memref<4xf32, #tpu.memory_space<smem>>, %arg2: memref<104x3xf32, #tpu.memory_space<vmem>>, %arg3: memref<8x128xf32, #tpu.memory_space<vmem>>, %arg4: memref<3x64xbf16, #tpu.memory_space<vmem>>, %arg5: memref<1x64xf32, #tpu.memory_space<vmem>>, %arg6: memref<1x64xf32, #tpu.memory_space<vmem>>, %arg7: memref<1x64xf32, #tpu.memory_space<vmem>>, %arg8: memref<64x128xbf16, #tpu.memory_space<vmem>>, %arg9: memref<1x128xf32, #tpu.memory_space<vmem>>, %arg10: memref<1x128xf32, #tpu.memory_space<vmem>>, %arg11: memref<1x128xf32, #tpu.memory_space<vmem>>, %arg12: memref<13x128x1024xbf16, #tpu.memory_space<vmem>>, %arg13: memref<1x1024xf32, #tpu.memory_space<vmem>>, %arg14: memref<1x1024xf32, #tpu.memory_space<vmem>>, %arg15: memref<1x1024xf32, #tpu.memory_space<vmem>>, %arg16: memref<1024x512xbf16, #tpu.memory_space<vmem>>, %arg17: memref<1x512xf32, #tpu.memory_space<vmem>>, %arg18: memref<1x512xf32, #tpu.memory_space<vmem>>, %arg19: memref<1x512xf32, #tpu.memory_space<vmem>>, %arg20: memref<512x256xbf16, #tpu.memory_space<vmem>>, %arg21: memref<1x256xf32, #tpu.memory_space<vmem>>, %arg22: memref<1x256xf32, #tpu.memory_space<vmem>>, %arg23: memref<1x256xf32, #tpu.memory_space<vmem>>, %arg24: memref<256x128xbf16, #tpu.memory_space<vmem>>, %arg25: memref<1x128xf32, #tpu.memory_space<vmem>>, %arg26: memref<8x128xf32, #tpu.memory_space<vmem>>) attributes {dimension_semantics = [#tpu.dimension_semantics<parallel>], iteration_bounds = array<i64: 2>, scalar_prefetch = 0 : i64, scratch_operands = 0 : i64, tpu.core_type = #tpu.core_type<tc>, window_params = [{transform_indices = @transform_0, window_bounds = array<i64: 4>}, {transform_indices = @transform_1, window_bounds = array<i64: 104, 3>}, {transform_indices = @transform_2, window_bounds = array<i64: 8, 128>}, {pipeline_mode = #tpu.pipeline_mode<synchronous>, transform_indices = @transform_3, window_bounds = array<i64: 3, 64>}, {pipeline_mode = #tpu.pipeline_mode<synchronous>, transform_indices = @transform_4, window_bounds = array<i64: 1, 64>}, {pipeline_mode = #tpu.pipeline_mode<synchronous>, transform_indices = @transform_5, window_bounds = array<i64: 1, 64>}, {pipeline_mode = #tpu.pipeline_mode<synchronous>, transform_indices = @transform_6, window_bounds = array<i64: 1, 64>}, {pipeline_mode = #tpu.pipeline_mode<synchronous>, transform_indices = @transform_7, window_bounds = array<i64: 64, 128>}, {pipeline_mode = #tpu.pipeline_mode<synchronous>, transform_indices = @transform_8, window_bounds = array<i64: 1, 128>}, {pipeline_mode = #tpu.pipeline_mode<synchronous>, transform_indices = @transform_9, window_bounds = array<i64: 1, 128>}, {pipeline_mode = #tpu.pipeline_mode<synchronous>, transform_indices = @transform_10, window_bounds = array<i64: 1, 128>}, {pipeline_mode = #tpu.pipeline_mode<synchronous>, transform_indices = @transform_11, window_bounds = array<i64: 13, 128, 1024>}, {pipeline_mode = #tpu.pipeline_mode<synchronous>, transform_indices = @transform_12, window_bounds = array<i64: 1, 1024>}, {pipeline_mode = #tpu.pipeline_mode<synchronous>, transform_indices = @transform_13, window_bounds = array<i64: 1, 1024>}, {pipeline_mode = #tpu.pipeline_mode<synchronous>, transform_indices = @transform_14, window_bounds = array<i64: 1, 1024>}, {pipeline_mode = #tpu.pipeline_mode<synchronous>, transform_indices = @transform_15, window_bounds = array<i64: 1024, 512>}, {pipeline_mode = #tpu.pipeline_mode<synchronous>, transform_indices = @transform_16, window_bounds = array<i64: 1, 512>}, {pipeline_mode = #tpu.pipeline_mode<synchronous>, transform_indices = @transform_17, window_bounds = array<i64: 1, 512>}, {pipeline_mode = #tpu.pipeline_mode<synchronous>, transform_indices = @transform_18, window_bounds = array<i64: 1, 512>}, {pipeline_mode = #tpu.pipeline_mode<synchronous>, transform_indices = @transform_19, window_bounds = array<i64: 512, 256>}, {pipeline_mode = #tpu.pipeline_mode<synchronous>, transform_indices = @transform_20, window_bounds = array<i64: 1, 256>}, {pipeline_mode = #tpu.pipeline_mode<synchronous>, transform_indices = @transform_21, window_bounds = array<i64: 1, 256>}, {pipeline_mode = #tpu.pipeline_mode<synchronous>, transform_indices = @transform_22, window_bounds = array<i64: 1, 256>}, {pipeline_mode = #tpu.pipeline_mode<synchronous>, transform_indices = @transform_23, window_bounds = array<i64: 256, 128>}, {pipeline_mode = #tpu.pipeline_mode<synchronous>, transform_indices = @transform_24, window_bounds = array<i64: 1, 128>}, {transform_indices = @transform_25, window_bounds = array<i64: 8, 128>}]} {
    %c0 = arith.constant 0 : index
    %0 = memref.load %arg1[%c0] : memref<4xf32, #tpu.memory_space<smem>>
    %c1 = arith.constant 1 : index
    %1 = memref.load %arg1[%c1] : memref<4xf32, #tpu.memory_space<smem>>
    %c2 = arith.constant 2 : index
    %2 = memref.load %arg1[%c2] : memref<4xf32, #tpu.memory_space<smem>>
    %c3 = arith.constant 3 : index
    %3 = memref.load %arg1[%c3] : memref<4xf32, #tpu.memory_space<smem>>
    %c0_0 = arith.constant 0 : index
    %c0_1 = arith.constant 0 : index
    %4 = vector.load %arg2[%c0_0, %c0_1] : memref<104x3xf32, #tpu.memory_space<vmem>>, vector<104x3xf32>
    %5 = arith.truncf %4 : vector<104x3xf32> to vector<104x3xbf16>
    %c0_2 = arith.constant 0 : index
    %c0_3 = arith.constant 0 : index
    %6 = vector.load %arg4[%c0_2, %c0_3] : memref<3x64xbf16, #tpu.memory_space<vmem>>, vector<3x64xbf16>
    %cst = arith.constant dense<0.000000e+00> : vector<104x64xf32>
    %7 = tpu.matmul %5, %6, %cst {dimension_numbers = #tpu.dot_dimension_numbers<[1], [0], [0], [1], [0, 0, 1, 1], [], []>} : vector<104x3xbf16>, vector<3x64xbf16>, vector<104x64xf32> -> vector<104x64xf32>
    %c0_4 = arith.constant 0 : index
    %c0_5 = arith.constant 0 : index
    %8 = vector.load %arg5[%c0_4, %c0_5] : memref<1x64xf32, #tpu.memory_space<vmem>>, vector<1x64xf32>
    %9 = vector.broadcast %8 : vector<1x64xf32> to vector<104x64xf32>
    %10 = arith.addf %7, %9 : vector<104x64xf32>
    %cst_6 = arith.constant 0.000000e+00 : f32
    %11 = vector.broadcast %cst_6 : f32 to vector<104x64xf32>
    %12 = arith.cmpf ogt, %10, %11 : vector<104x64xf32>
    %13 = vector.broadcast %0 : f32 to vector<104x64xf32>
    %14 = arith.mulf %13, %10 : vector<104x64xf32>
    %15 = arith.select %12, %10, %14 : vector<104x64xi1>, vector<104x64xf32>
    %c0_7 = arith.constant 0 : index
    %c0_8 = arith.constant 0 : index
    %16 = vector.load %arg6[%c0_7, %c0_8] : memref<1x64xf32, #tpu.memory_space<vmem>>, vector<1x64xf32>
    %17 = vector.broadcast %16 : vector<1x64xf32> to vector<104x64xf32>
    %18 = arith.mulf %15, %17 : vector<104x64xf32>
    %c0_9 = arith.constant 0 : index
    %c0_10 = arith.constant 0 : index
    %19 = vector.load %arg7[%c0_9, %c0_10] : memref<1x64xf32, #tpu.memory_space<vmem>>, vector<1x64xf32>
    %20 = vector.broadcast %19 : vector<1x64xf32> to vector<104x64xf32>
    %21 = arith.addf %18, %20 : vector<104x64xf32>
    %22 = arith.truncf %21 : vector<104x64xf32> to vector<104x64xbf16>
    %c0_11 = arith.constant 0 : index
    %c0_12 = arith.constant 0 : index
    %23 = vector.load %arg8[%c0_11, %c0_12] : memref<64x128xbf16, #tpu.memory_space<vmem>>, vector<64x128xbf16>
    %cst_13 = arith.constant dense<0.000000e+00> : vector<104x128xf32>
    %24 = tpu.matmul %22, %23, %cst_13 {dimension_numbers = #tpu.dot_dimension_numbers<[1], [0], [0], [1], [0, 0, 1, 1], [], []>} : vector<104x64xbf16>, vector<64x128xbf16>, vector<104x128xf32> -> vector<104x128xf32>
    %c0_14 = arith.constant 0 : index
    %c0_15 = arith.constant 0 : index
    %25 = vector.load %arg9[%c0_14, %c0_15] : memref<1x128xf32, #tpu.memory_space<vmem>>, vector<1x128xf32>
    %26 = vector.broadcast %25 : vector<1x128xf32> to vector<104x128xf32>
    %27 = arith.addf %24, %26 : vector<104x128xf32>
    %cst_16 = arith.constant 0.000000e+00 : f32
    %28 = vector.broadcast %cst_16 : f32 to vector<104x128xf32>
    %29 = arith.cmpf ogt, %27, %28 : vector<104x128xf32>
    %30 = vector.broadcast %1 : f32 to vector<104x128xf32>
    %31 = arith.mulf %30, %27 : vector<104x128xf32>
    %32 = arith.select %29, %27, %31 : vector<104x128xi1>, vector<104x128xf32>
    %c0_17 = arith.constant 0 : index
    %c0_18 = arith.constant 0 : index
    %33 = vector.load %arg10[%c0_17, %c0_18] : memref<1x128xf32, #tpu.memory_space<vmem>>, vector<1x128xf32>
    %34 = vector.broadcast %33 : vector<1x128xf32> to vector<104x128xf32>
    %35 = arith.mulf %32, %34 : vector<104x128xf32>
    %c0_19 = arith.constant 0 : index
    %c0_20 = arith.constant 0 : index
    %36 = vector.load %arg11[%c0_19, %c0_20] : memref<1x128xf32, #tpu.memory_space<vmem>>, vector<1x128xf32>
    %37 = vector.broadcast %36 : vector<1x128xf32> to vector<104x128xf32>
    %38 = arith.addf %35, %37 : vector<104x128xf32>
    %39 = arith.truncf %38 : vector<104x128xf32> to vector<104x128xbf16>
    %cst_21 = arith.constant 0.000000e+00 : f32
    %40 = vector.broadcast %cst_21 : f32 to vector<8x1024xf32>
    %41 = vector.extract_strided_slice %39 {offsets = [0, 0], sizes = [8, 128], strides = [1, 1]} : vector<104x128xbf16> to vector<8x128xbf16>
    %c0_22 = arith.constant 0 : index
    %c0_23 = arith.constant 0 : index
    %c0_24 = arith.constant 0 : index
    %42 = vector.load %arg12[%c0_22, %c0_23, %c0_24] : memref<13x128x1024xbf16, #tpu.memory_space<vmem>>, vector<1x128x1024xbf16>
    %43 = vector.shape_cast %42 : vector<1x128x1024xbf16> to vector<128x1024xbf16>
    %cst_25 = arith.constant dense<0.000000e+00> : vector<8x1024xf32>
    %44 = tpu.matmul %41, %43, %cst_25 {dimension_numbers = #tpu.dot_dimension_numbers<[1], [0], [0], [1], [0, 0, 1, 1], [], []>} : vector<8x128xbf16>, vector<128x1024xbf16>, vector<8x1024xf32> -> vector<8x1024xf32>
    %45 = arith.addf %40, %44 : vector<8x1024xf32>
    %46 = vector.extract_strided_slice %39 {offsets = [8, 0], sizes = [8, 128], strides = [1, 1]} : vector<104x128xbf16> to vector<8x128xbf16>
    %c1_26 = arith.constant 1 : index
    %c0_27 = arith.constant 0 : index
    %c0_28 = arith.constant 0 : index
    %47 = vector.load %arg12[%c1_26, %c0_27, %c0_28] : memref<13x128x1024xbf16, #tpu.memory_space<vmem>>, vector<1x128x1024xbf16>
    %48 = vector.shape_cast %47 : vector<1x128x1024xbf16> to vector<128x1024xbf16>
    %cst_29 = arith.constant dense<0.000000e+00> : vector<8x1024xf32>
    %49 = tpu.matmul %46, %48, %cst_29 {dimension_numbers = #tpu.dot_dimension_numbers<[1], [0], [0], [1], [0, 0, 1, 1], [], []>} : vector<8x128xbf16>, vector<128x1024xbf16>, vector<8x1024xf32> -> vector<8x1024xf32>
    %50 = arith.addf %45, %49 : vector<8x1024xf32>
    %51 = vector.extract_strided_slice %39 {offsets = [16, 0], sizes = [8, 128], strides = [1, 1]} : vector<104x128xbf16> to vector<8x128xbf16>
    %c2_30 = arith.constant 2 : index
    %c0_31 = arith.constant 0 : index
    %c0_32 = arith.constant 0 : index
    %52 = vector.load %arg12[%c2_30, %c0_31, %c0_32] : memref<13x128x1024xbf16, #tpu.memory_space<vmem>>, vector<1x128x1024xbf16>
    %53 = vector.shape_cast %52 : vector<1x128x1024xbf16> to vector<128x1024xbf16>
    %cst_33 = arith.constant dense<0.000000e+00> : vector<8x1024xf32>
    %54 = tpu.matmul %51, %53, %cst_33 {dimension_numbers = #tpu.dot_dimension_numbers<[1], [0], [0], [1], [0, 0, 1, 1], [], []>} : vector<8x128xbf16>, vector<128x1024xbf16>, vector<8x1024xf32> -> vector<8x1024xf32>
    %55 = arith.addf %50, %54 : vector<8x1024xf32>
    %56 = vector.extract_strided_slice %39 {offsets = [24, 0], sizes = [8, 128], strides = [1, 1]} : vector<104x128xbf16> to vector<8x128xbf16>
    %c3_34 = arith.constant 3 : index
    %c0_35 = arith.constant 0 : index
    %c0_36 = arith.constant 0 : index
    %57 = vector.load %arg12[%c3_34, %c0_35, %c0_36] : memref<13x128x1024xbf16, #tpu.memory_space<vmem>>, vector<1x128x1024xbf16>
    %58 = vector.shape_cast %57 : vector<1x128x1024xbf16> to vector<128x1024xbf16>
    %cst_37 = arith.constant dense<0.000000e+00> : vector<8x1024xf32>
    %59 = tpu.matmul %56, %58, %cst_37 {dimension_numbers = #tpu.dot_dimension_numbers<[1], [0], [0], [1], [0, 0, 1, 1], [], []>} : vector<8x128xbf16>, vector<128x1024xbf16>, vector<8x1024xf32> -> vector<8x1024xf32>
    %60 = arith.addf %55, %59 : vector<8x1024xf32>
    %61 = vector.extract_strided_slice %39 {offsets = [32, 0], sizes = [8, 128], strides = [1, 1]} : vector<104x128xbf16> to vector<8x128xbf16>
    %c4 = arith.constant 4 : index
    %c0_38 = arith.constant 0 : index
    %c0_39 = arith.constant 0 : index
    %62 = vector.load %arg12[%c4, %c0_38, %c0_39] : memref<13x128x1024xbf16, #tpu.memory_space<vmem>>, vector<1x128x1024xbf16>
    %63 = vector.shape_cast %62 : vector<1x128x1024xbf16> to vector<128x1024xbf16>
    %cst_40 = arith.constant dense<0.000000e+00> : vector<8x1024xf32>
    %64 = tpu.matmul %61, %63, %cst_40 {dimension_numbers = #tpu.dot_dimension_numbers<[1], [0], [0], [1], [0, 0, 1, 1], [], []>} : vector<8x128xbf16>, vector<128x1024xbf16>, vector<8x1024xf32> -> vector<8x1024xf32>
    %65 = arith.addf %60, %64 : vector<8x1024xf32>
    %66 = vector.extract_strided_slice %39 {offsets = [40, 0], sizes = [8, 128], strides = [1, 1]} : vector<104x128xbf16> to vector<8x128xbf16>
    %c5 = arith.constant 5 : index
    %c0_41 = arith.constant 0 : index
    %c0_42 = arith.constant 0 : index
    %67 = vector.load %arg12[%c5, %c0_41, %c0_42] : memref<13x128x1024xbf16, #tpu.memory_space<vmem>>, vector<1x128x1024xbf16>
    %68 = vector.shape_cast %67 : vector<1x128x1024xbf16> to vector<128x1024xbf16>
    %cst_43 = arith.constant dense<0.000000e+00> : vector<8x1024xf32>
    %69 = tpu.matmul %66, %68, %cst_43 {dimension_numbers = #tpu.dot_dimension_numbers<[1], [0], [0], [1], [0, 0, 1, 1], [], []>} : vector<8x128xbf16>, vector<128x1024xbf16>, vector<8x1024xf32> -> vector<8x1024xf32>
    %70 = arith.addf %65, %69 : vector<8x1024xf32>
    %71 = vector.extract_strided_slice %39 {offsets = [48, 0], sizes = [8, 128], strides = [1, 1]} : vector<104x128xbf16> to vector<8x128xbf16>
    %c6 = arith.constant 6 : index
    %c0_44 = arith.constant 0 : index
    %c0_45 = arith.constant 0 : index
    %72 = vector.load %arg12[%c6, %c0_44, %c0_45] : memref<13x128x1024xbf16, #tpu.memory_space<vmem>>, vector<1x128x1024xbf16>
    %73 = vector.shape_cast %72 : vector<1x128x1024xbf16> to vector<128x1024xbf16>
    %cst_46 = arith.constant dense<0.000000e+00> : vector<8x1024xf32>
    %74 = tpu.matmul %71, %73, %cst_46 {dimension_numbers = #tpu.dot_dimension_numbers<[1], [0], [0], [1], [0, 0, 1, 1], [], []>} : vector<8x128xbf16>, vector<128x1024xbf16>, vector<8x1024xf32> -> vector<8x1024xf32>
    %75 = arith.addf %70, %74 : vector<8x1024xf32>
    %76 = vector.extract_strided_slice %39 {offsets = [56, 0], sizes = [8, 128], strides = [1, 1]} : vector<104x128xbf16> to vector<8x128xbf16>
    %c7 = arith.constant 7 : index
    %c0_47 = arith.constant 0 : index
    %c0_48 = arith.constant 0 : index
    %77 = vector.load %arg12[%c7, %c0_47, %c0_48] : memref<13x128x1024xbf16, #tpu.memory_space<vmem>>, vector<1x128x1024xbf16>
    %78 = vector.shape_cast %77 : vector<1x128x1024xbf16> to vector<128x1024xbf16>
    %cst_49 = arith.constant dense<0.000000e+00> : vector<8x1024xf32>
    %79 = tpu.matmul %76, %78, %cst_49 {dimension_numbers = #tpu.dot_dimension_numbers<[1], [0], [0], [1], [0, 0, 1, 1], [], []>} : vector<8x128xbf16>, vector<128x1024xbf16>, vector<8x1024xf32> -> vector<8x1024xf32>
    %80 = arith.addf %75, %79 : vector<8x1024xf32>
    %81 = vector.extract_strided_slice %39 {offsets = [64, 0], sizes = [8, 128], strides = [1, 1]} : vector<104x128xbf16> to vector<8x128xbf16>
    %c8 = arith.constant 8 : index
    %c0_50 = arith.constant 0 : index
    %c0_51 = arith.constant 0 : index
    %82 = vector.load %arg12[%c8, %c0_50, %c0_51] : memref<13x128x1024xbf16, #tpu.memory_space<vmem>>, vector<1x128x1024xbf16>
    %83 = vector.shape_cast %82 : vector<1x128x1024xbf16> to vector<128x1024xbf16>
    %cst_52 = arith.constant dense<0.000000e+00> : vector<8x1024xf32>
    %84 = tpu.matmul %81, %83, %cst_52 {dimension_numbers = #tpu.dot_dimension_numbers<[1], [0], [0], [1], [0, 0, 1, 1], [], []>} : vector<8x128xbf16>, vector<128x1024xbf16>, vector<8x1024xf32> -> vector<8x1024xf32>
    %85 = arith.addf %80, %84 : vector<8x1024xf32>
    %86 = vector.extract_strided_slice %39 {offsets = [72, 0], sizes = [8, 128], strides = [1, 1]} : vector<104x128xbf16> to vector<8x128xbf16>
    %c9 = arith.constant 9 : index
    %c0_53 = arith.constant 0 : index
    %c0_54 = arith.constant 0 : index
    %87 = vector.load %arg12[%c9, %c0_53, %c0_54] : memref<13x128x1024xbf16, #tpu.memory_space<vmem>>, vector<1x128x1024xbf16>
    %88 = vector.shape_cast %87 : vector<1x128x1024xbf16> to vector<128x1024xbf16>
    %cst_55 = arith.constant dense<0.000000e+00> : vector<8x1024xf32>
    %89 = tpu.matmul %86, %88, %cst_55 {dimension_numbers = #tpu.dot_dimension_numbers<[1], [0], [0], [1], [0, 0, 1, 1], [], []>} : vector<8x128xbf16>, vector<128x1024xbf16>, vector<8x1024xf32> -> vector<8x1024xf32>
    %90 = arith.addf %85, %89 : vector<8x1024xf32>
    %91 = vector.extract_strided_slice %39 {offsets = [80, 0], sizes = [8, 128], strides = [1, 1]} : vector<104x128xbf16> to vector<8x128xbf16>
    %c10 = arith.constant 10 : index
    %c0_56 = arith.constant 0 : index
    %c0_57 = arith.constant 0 : index
    %92 = vector.load %arg12[%c10, %c0_56, %c0_57] : memref<13x128x1024xbf16, #tpu.memory_space<vmem>>, vector<1x128x1024xbf16>
    %93 = vector.shape_cast %92 : vector<1x128x1024xbf16> to vector<128x1024xbf16>
    %cst_58 = arith.constant dense<0.000000e+00> : vector<8x1024xf32>
    %94 = tpu.matmul %91, %93, %cst_58 {dimension_numbers = #tpu.dot_dimension_numbers<[1], [0], [0], [1], [0, 0, 1, 1], [], []>} : vector<8x128xbf16>, vector<128x1024xbf16>, vector<8x1024xf32> -> vector<8x1024xf32>
    %95 = arith.addf %90, %94 : vector<8x1024xf32>
    %96 = vector.extract_strided_slice %39 {offsets = [88, 0], sizes = [8, 128], strides = [1, 1]} : vector<104x128xbf16> to vector<8x128xbf16>
    %c11 = arith.constant 11 : index
    %c0_59 = arith.constant 0 : index
    %c0_60 = arith.constant 0 : index
    %97 = vector.load %arg12[%c11, %c0_59, %c0_60] : memref<13x128x1024xbf16, #tpu.memory_space<vmem>>, vector<1x128x1024xbf16>
    %98 = vector.shape_cast %97 : vector<1x128x1024xbf16> to vector<128x1024xbf16>
    %cst_61 = arith.constant dense<0.000000e+00> : vector<8x1024xf32>
    %99 = tpu.matmul %96, %98, %cst_61 {dimension_numbers = #tpu.dot_dimension_numbers<[1], [0], [0], [1], [0, 0, 1, 1], [], []>} : vector<8x128xbf16>, vector<128x1024xbf16>, vector<8x1024xf32> -> vector<8x1024xf32>
    %100 = arith.addf %95, %99 : vector<8x1024xf32>
    %101 = vector.extract_strided_slice %39 {offsets = [96, 0], sizes = [8, 128], strides = [1, 1]} : vector<104x128xbf16> to vector<8x128xbf16>
    %c12 = arith.constant 12 : index
    %c0_62 = arith.constant 0 : index
    %c0_63 = arith.constant 0 : index
    %102 = vector.load %arg12[%c12, %c0_62, %c0_63] : memref<13x128x1024xbf16, #tpu.memory_space<vmem>>, vector<1x128x1024xbf16>
    %103 = vector.shape_cast %102 : vector<1x128x1024xbf16> to vector<128x1024xbf16>
    %cst_64 = arith.constant dense<0.000000e+00> : vector<8x1024xf32>
    %104 = tpu.matmul %101, %103, %cst_64 {dimension_numbers = #tpu.dot_dimension_numbers<[1], [0], [0], [1], [0, 0, 1, 1], [], []>} : vector<8x128xbf16>, vector<128x1024xbf16>, vector<8x1024xf32> -> vector<8x1024xf32>
    %105 = arith.addf %100, %104 : vector<8x1024xf32>
    %c0_65 = arith.constant 0 : index
    %c0_66 = arith.constant 0 : index
    %106 = vector.load %arg13[%c0_65, %c0_66] : memref<1x1024xf32, #tpu.memory_space<vmem>>, vector<1x1024xf32>
    %107 = vector.broadcast %106 : vector<1x1024xf32> to vector<8x1024xf32>
    %108 = arith.addf %105, %107 : vector<8x1024xf32>
    %c0_67 = arith.constant 0 : index
    %c0_68 = arith.constant 0 : index
    %109 = vector.load %arg14[%c0_67, %c0_68] : memref<1x1024xf32, #tpu.memory_space<vmem>>, vector<1x1024xf32>
    %110 = vector.broadcast %109 : vector<1x1024xf32> to vector<8x1024xf32>
    %111 = arith.mulf %108, %110 : vector<8x1024xf32>
    %c0_69 = arith.constant 0 : index
    %c0_70 = arith.constant 0 : index
    %112 = vector.load %arg15[%c0_69, %c0_70] : memref<1x1024xf32, #tpu.memory_space<vmem>>, vector<1x1024xf32>
    %113 = vector.broadcast %112 : vector<1x1024xf32> to vector<8x1024xf32>
    %114 = arith.addf %111, %113 : vector<8x1024xf32>
    %115 = arith.truncf %114 : vector<8x1024xf32> to vector<8x1024xbf16>
    %c0_71 = arith.constant 0 : index
    %c0_72 = arith.constant 0 : index
    %116 = vector.load %arg16[%c0_71, %c0_72] : memref<1024x512xbf16, #tpu.memory_space<vmem>>, vector<1024x512xbf16>
    %cst_73 = arith.constant dense<0.000000e+00> : vector<8x512xf32>
    %117 = tpu.matmul %115, %116, %cst_73 {dimension_numbers = #tpu.dot_dimension_numbers<[1], [0], [0], [1], [0, 0, 1, 1], [], []>} : vector<8x1024xbf16>, vector<1024x512xbf16>, vector<8x512xf32> -> vector<8x512xf32>
    %c0_74 = arith.constant 0 : index
    %c0_75 = arith.constant 0 : index
    %118 = vector.load %arg17[%c0_74, %c0_75] : memref<1x512xf32, #tpu.memory_space<vmem>>, vector<1x512xf32>
    %119 = vector.broadcast %118 : vector<1x512xf32> to vector<8x512xf32>
    %120 = arith.addf %117, %119 : vector<8x512xf32>
    %cst_76 = arith.constant 0.000000e+00 : f32
    %121 = vector.broadcast %cst_76 : f32 to vector<8x512xf32>
    %122 = arith.cmpf ogt, %120, %121 : vector<8x512xf32>
    %123 = vector.broadcast %2 : f32 to vector<8x512xf32>
    %124 = arith.mulf %123, %120 : vector<8x512xf32>
    %125 = arith.select %122, %120, %124 : vector<8x512xi1>, vector<8x512xf32>
    %c0_77 = arith.constant 0 : index
    %c0_78 = arith.constant 0 : index
    %126 = vector.load %arg18[%c0_77, %c0_78] : memref<1x512xf32, #tpu.memory_space<vmem>>, vector<1x512xf32>
    %127 = vector.broadcast %126 : vector<1x512xf32> to vector<8x512xf32>
    %128 = arith.mulf %125, %127 : vector<8x512xf32>
    %c0_79 = arith.constant 0 : index
    %c0_80 = arith.constant 0 : index
    %129 = vector.load %arg19[%c0_79, %c0_80] : memref<1x512xf32, #tpu.memory_space<vmem>>, vector<1x512xf32>
    %130 = vector.broadcast %129 : vector<1x512xf32> to vector<8x512xf32>
    %131 = arith.addf %128, %130 : vector<8x512xf32>
    %132 = arith.truncf %131 : vector<8x512xf32> to vector<8x512xbf16>
    %c0_81 = arith.constant 0 : index
    %c0_82 = arith.constant 0 : index
    %133 = vector.load %arg20[%c0_81, %c0_82] : memref<512x256xbf16, #tpu.memory_space<vmem>>, vector<512x256xbf16>
    %cst_83 = arith.constant dense<0.000000e+00> : vector<8x256xf32>
    %134 = tpu.matmul %132, %133, %cst_83 {dimension_numbers = #tpu.dot_dimension_numbers<[1], [0], [0], [1], [0, 0, 1, 1], [], []>} : vector<8x512xbf16>, vector<512x256xbf16>, vector<8x256xf32> -> vector<8x256xf32>
    %c0_84 = arith.constant 0 : index
    %c0_85 = arith.constant 0 : index
    %135 = vector.load %arg21[%c0_84, %c0_85] : memref<1x256xf32, #tpu.memory_space<vmem>>, vector<1x256xf32>
    %136 = vector.broadcast %135 : vector<1x256xf32> to vector<8x256xf32>
    %137 = arith.addf %134, %136 : vector<8x256xf32>
    %cst_86 = arith.constant 0.000000e+00 : f32
    %138 = vector.broadcast %cst_86 : f32 to vector<8x256xf32>
    %139 = arith.cmpf ogt, %137, %138 : vector<8x256xf32>
    %140 = vector.broadcast %3 : f32 to vector<8x256xf32>
    %141 = arith.mulf %140, %137 : vector<8x256xf32>
    %142 = arith.select %139, %137, %141 : vector<8x256xi1>, vector<8x256xf32>
    %c0_87 = arith.constant 0 : index
    %c0_88 = arith.constant 0 : index
    %143 = vector.load %arg22[%c0_87, %c0_88] : memref<1x256xf32, #tpu.memory_space<vmem>>, vector<1x256xf32>
    %144 = vector.broadcast %143 : vector<1x256xf32> to vector<8x256xf32>
    %145 = arith.mulf %142, %144 : vector<8x256xf32>
    %c0_89 = arith.constant 0 : index
    %c0_90 = arith.constant 0 : index
    %146 = vector.load %arg23[%c0_89, %c0_90] : memref<1x256xf32, #tpu.memory_space<vmem>>, vector<1x256xf32>
    %147 = vector.broadcast %146 : vector<1x256xf32> to vector<8x256xf32>
    %148 = arith.addf %145, %147 : vector<8x256xf32>
    %149 = arith.truncf %148 : vector<8x256xf32> to vector<8x256xbf16>
    %c0_91 = arith.constant 0 : index
    %c0_92 = arith.constant 0 : index
    %150 = vector.load %arg24[%c0_91, %c0_92] : memref<256x128xbf16, #tpu.memory_space<vmem>>, vector<256x128xbf16>
    %cst_93 = arith.constant dense<0.000000e+00> : vector<8x128xf32>
    %151 = tpu.matmul %149, %150, %cst_93 {dimension_numbers = #tpu.dot_dimension_numbers<[1], [0], [0], [1], [0, 0, 1, 1], [], []>} : vector<8x256xbf16>, vector<256x128xbf16>, vector<8x128xf32> -> vector<8x128xf32>
    %c0_94 = arith.constant 0 : index
    %c0_95 = arith.constant 0 : index
    %152 = vector.load %arg25[%c0_94, %c0_95] : memref<1x128xf32, #tpu.memory_space<vmem>>, vector<1x128xf32>
    %153 = vector.broadcast %152 : vector<1x128xf32> to vector<8x128xf32>
    %154 = arith.addf %151, %153 : vector<8x128xf32>
    %c0_96 = arith.constant 0 : index
    %c0_97 = arith.constant 0 : index
    %155 = vector.load %arg3[%c0_96, %c0_97] : memref<8x128xf32, #tpu.memory_space<vmem>>, vector<8x128xf32>
    %156 = arith.mulf %154, %155 : vector<8x128xf32>
    %c0_98 = arith.constant 0 : index
    %c0_99 = arith.constant 0 : index
    %157 = vector.load %arg26[%c0_98, %c0_99] : memref<8x128xf32, #tpu.memory_space<vmem>>, vector<8x128xf32>
    tpu.vector_store %arg26[%c0_98, %c0_99], %156 {strides = array<i32>} : memref<8x128xf32, #tpu.memory_space<vmem>>, vector<8x128xf32>,
    return
  }
  func.func @transform_0(%arg0: i32) -> i32 {
    %c0_i32 = arith.constant 0 : i32
    %c0_i32_0 = arith.constant 0 : i32
    return %c0_i32 : i32
  }
  func.func @transform_1(%arg0: i32) -> (i32, i32) {
    %c0_i32 = arith.constant 0 : i32
    %c0_i32_0 = arith.constant 0 : i32
    return %arg0, %c0_i32 : i32, i32
  }
  func.func @transform_2(%arg0: i32) -> (i32, i32) {
    %c0_i32 = arith.constant 0 : i32
    %c0_i32_0 = arith.constant 0 : i32
    return %arg0, %c0_i32 : i32, i32
  }
  func.func @transform_3(%arg0: i32) -> (i32, i32) {
    %c0_i32 = arith.constant 0 : i32
    %c0_i32_0 = arith.constant 0 : i32
    %c0_i32_1 = arith.constant 0 : i32
    return %c0_i32, %c0_i32_0 : i32, i32
  }
  func.func @transform_4(%arg0: i32) -> (i32, i32) {
    %c0_i32 = arith.constant 0 : i32
    %c0_i32_0 = arith.constant 0 : i32
    %c0_i32_1 = arith.constant 0 : i32
    return %c0_i32, %c0_i32_0 : i32, i32
  }
  func.func @transform_5(%arg0: i32) -> (i32, i32) {
    %c0_i32 = arith.constant 0 : i32
    %c0_i32_0 = arith.constant 0 : i32
    %c0_i32_1 = arith.constant 0 : i32
    return %c0_i32, %c0_i32_0 : i32, i32
  }
  func.func @transform_6(%arg0: i32) -> (i32, i32) {
    %c0_i32 = arith.constant 0 : i32
    %c0_i32_0 = arith.constant 0 : i32
    %c0_i32_1 = arith.constant 0 : i32
    return %c0_i32, %c0_i32_0 : i32, i32
  }
  func.func @transform_7(%arg0: i32) -> (i32, i32) {
    %c0_i32 = arith.constant 0 : i32
    %c0_i32_0 = arith.constant 0 : i32
    %c0_i32_1 = arith.constant 0 : i32
    return %c0_i32, %c0_i32_0 : i32, i32
  }
  func.func @transform_8(%arg0: i32) -> (i32, i32) {
    %c0_i32 = arith.constant 0 : i32
    %c0_i32_0 = arith.constant 0 : i32
    %c0_i32_1 = arith.constant 0 : i32
    return %c0_i32, %c0_i32_0 : i32, i32
  }
  func.func @transform_9(%arg0: i32) -> (i32, i32) {
    %c0_i32 = arith.constant 0 : i32
    %c0_i32_0 = arith.constant 0 : i32
    %c0_i32_1 = arith.constant 0 : i32
    return %c0_i32, %c0_i32_0 : i32, i32
  }
  func.func @transform_10(%arg0: i32) -> (i32, i32) {
    %c0_i32 = arith.constant 0 : i32
    %c0_i32_0 = arith.constant 0 : i32
    %c0_i32_1 = arith.constant 0 : i32
    return %c0_i32, %c0_i32_0 : i32, i32
  }
  func.func @transform_11(%arg0: i32) -> (i32, i32, i32) {
    %c0_i32 = arith.constant 0 : i32
    %c0_i32_0 = arith.constant 0 : i32
    %c0_i32_1 = arith.constant 0 : i32
    %c0_i32_2 = arith.constant 0 : i32
    return %c0_i32, %c0_i32_0, %c0_i32_1 : i32, i32, i32
  }
  func.func @transform_12(%arg0: i32) -> (i32, i32) {
    %c0_i32 = arith.constant 0 : i32
    %c0_i32_0 = arith.constant 0 : i32
    %c0_i32_1 = arith.constant 0 : i32
    return %c0_i32, %c0_i32_0 : i32, i32
  }
  func.func @transform_13(%arg0: i32) -> (i32, i32) {
    %c0_i32 = arith.constant 0 : i32
    %c0_i32_0 = arith.constant 0 : i32
    %c0_i32_1 = arith.constant 0 : i32
    return %c0_i32, %c0_i32_0 : i32, i32
  }
  func.func @transform_14(%arg0: i32) -> (i32, i32) {
    %c0_i32 = arith.constant 0 : i32
    %c0_i32_0 = arith.constant 0 : i32
    %c0_i32_1 = arith.constant 0 : i32
    return %c0_i32, %c0_i32_0 : i32, i32
  }
  func.func @transform_15(%arg0: i32) -> (i32, i32) {
    %c0_i32 = arith.constant 0 : i32
    %c0_i32_0 = arith.constant 0 : i32
    %c0_i32_1 = arith.constant 0 : i32
    return %c0_i32, %c0_i32_0 : i32, i32
  }
  func.func @transform_16(%arg0: i32) -> (i32, i32) {
    %c0_i32 = arith.constant 0 : i32
    %c0_i32_0 = arith.constant 0 : i32
    %c0_i32_1 = arith.constant 0 : i32
    return %c0_i32, %c0_i32_0 : i32, i32
  }
  func.func @transform_17(%arg0: i32) -> (i32, i32) {
    %c0_i32 = arith.constant 0 : i32
    %c0_i32_0 = arith.constant 0 : i32
    %c0_i32_1 = arith.constant 0 : i32
    return %c0_i32, %c0_i32_0 : i32, i32
  }
  func.func @transform_18(%arg0: i32) -> (i32, i32) {
    %c0_i32 = arith.constant 0 : i32
    %c0_i32_0 = arith.constant 0 : i32
    %c0_i32_1 = arith.constant 0 : i32
    return %c0_i32, %c0_i32_0 : i32, i32
  }
  func.func @transform_19(%arg0: i32) -> (i32, i32) {
    %c0_i32 = arith.constant 0 : i32
    %c0_i32_0 = arith.constant 0 : i32
    %c0_i32_1 = arith.constant 0 : i32
    return %c0_i32, %c0_i32_0 : i32, i32
  }
  func.func @transform_20(%arg0: i32) -> (i32, i32) {
    %c0_i32 = arith.constant 0 : i32
    %c0_i32_0 = arith.constant 0 : i32
    %c0_i32_1 = arith.constant 0 : i32
    return %c0_i32, %c0_i32_0 : i32, i32
  }
  func.func @transform_21(%arg0: i32) -> (i32, i32) {
    %c0_i32 = arith.constant 0 : i32
    %c0_i32_0 = arith.constant 0 : i32
    %c0_i32_1 = arith.constant 0 : i32
    return %c0_i32, %c0_i32_0 : i32, i32
  }
  func.func @transform_22(%arg0: i32) -> (i32, i32) {
    %c0_i32 = arith.constant 0 : i32
    %c0_i32_0 = arith.constant 0 : i32
    %c0_i32_1 = arith.constant 0 : i32
    return %c0_i32, %c0_i32_0 : i32, i32
  }
  func.func @transform_23(%arg0: i32) -> (i32, i32) {
    %c0_i32 = arith.constant 0 : i32
    %c0_i32_0 = arith.constant 0 : i32
    %c0_i32_1 = arith.constant 0 : i32
    return %c0_i32, %c0_i32_0 : i32, i32
  }
  func.func @transform_24(%arg0: i32) -> (i32, i32) {
    %c0_i32 = arith.constant 0 : i32
    %c0_i32_0 = arith.constant 0 : i32
    %c0_i32_1 = arith.constant 0 : i32
    return %c0_i32, %c0_i32_0 : i32, i32
  }
  func.func @transform_25(%arg0: i32) -> (i32, i32) {
    %c0_i32 = arith.constant 0 : i32
    %c0_i32_0 = arith.constant 0 : i32
    return %arg0, %c0_i32 : i32, i32
  }
}

</mosaic_0001>

<bundles_post_ra>
// kernel: posenet_pallas.1
= control target key start
LH: loop header
LB: loop body
LE: loop exit
PB: predicated region body
PF: predicated region fallthrough
CT: control target
= control target key end

     0   :  { %s16058_s0 = inlined_call_operand.hbm [shape: f32[4], index: 0, kind: input, shape index: {}]   ;;  %s16059_s1 = inlined_call_operand.vmem [shape: f32[208,3], index: 1, kind: input, shape index: {}]   ;;  %s16060_s2 = inlined_call_operand.vmem [shape: f32[16,128], index: 2, kind: input, shape index: {}]   ;;  %s16061_s3 = inlined_call_operand.hbm [shape: bf16[3,64], index: 3, kind: input, shape index: {}]   ;;  %s16062_s4 = inlined_call_operand.hbm [shape: f32[1,64], index: 4, kind: input, shape index: {}]   ;;  %s16063_s5 = inlined_call_operand.hbm [shape: f32[1,64], index: 5, kind: input, shape index: {}]   ;;  %s16064_s6 = inlined_call_operand.hbm [shape: f32[1,64], index: 6, kind: input, shape index: {}]   ;;  %s16065_s7 = inlined_call_operand.hbm [shape: bf16[64,128], index: 7, kind: input, shape index: {}]   ;;  %s16066_s8 = inlined_call_operand.hbm [shape: f32[1,128], index: 8, kind: input, shape index: {}]   ;;  %s16067_s9 = inlined_call_operand.hbm [shape: f32[1,128], index: 9, kind: input, shape index: {}]   ;;  %s16068_s10 = inlined_call_operand.hbm [shape: f32[1,128], index: 10, kind: input, shape index: {}]   ;;  %s16069_s11 = inlined_call_operand.hbm [shape: bf16[13,128,1024], index: 11, kind: input, shape index: {}]   ;;  %s16070_s12 = inlined_call_operand.hbm [shape: f32[1,1024], index: 12, kind: input, shape index: {}]   ;;  %s16071_s13 = inlined_call_operand.hbm [shape: f32[1,1024], index: 13, kind: input, shape index: {}]   ;;  %s16072_s14 = inlined_call_operand.hbm [shape: f32[1,1024], index: 14, kind: input, shape index: {}]   ;;  %s16073_s15 = inlined_call_operand.hbm [shape: bf16[1024,512], index: 15, kind: input, shape index: {}]   ;;  %s16074_s16 = inlined_call_operand.hbm [shape: f32[1,512], index: 16, kind: input, shape index: {}]   ;;  %s16075_s17 = inlined_call_operand.hbm [shape: f32[1,512], index: 17, kind: input, shape index: {}]   ;;  %s16076_s18 = inlined_call_operand.hbm [shape: f32[1,512], index: 18, kind: input, shape index: {}]   ;;  %s16077_s19 = inlined_call_operand.hbm [shape: bf16[512,256], index: 19, kind: input, shape index: {}]   ;;  %s16078_s20 = inlined_call_operand.hbm [shape: f32[1,256], index: 20, kind: input, shape index: {}]   ;;  %s16079_s21 = inlined_call_operand.hbm [shape: f32[1,256], index: 21, kind: input, shape index: {}]   ;;  %s16080_s22 = inlined_call_operand.hbm [shape: f32[1,256], index: 22, kind: input, shape index: {}]   ;;  %s16081_s23 = inlined_call_operand.hbm [shape: bf16[256,128], index: 23, kind: input, shape index: {}]   ;;  %s16082_s24 = inlined_call_operand.hbm [shape: f32[1,128], index: 24, kind: input, shape index: {}]   ;;  %s16083_s25 = inlined_call_operand.hbm [shape: f32[16,128], index: 25, kind: output, shape index: {}]  }
   0x1   :  { %16097 = sst [smem:[#allocation61_spill]] %s16058_s0 }
   0x2   :  { %16098 = sst [smem:[#allocation62_spill]] %s16059_s1 }
   0x3   :  { %16099 = sst [smem:[#allocation63_spill]] %s16060_s2 }
   0x4   :  { %16100 = sst [smem:[#allocation64_spill]] %s16061_s3 }
   0x5   :  { %16101 = sst [smem:[#allocation65_spill]] %s16062_s4 }
   0x6   :  { %16102 = sst [smem:[#allocation66_spill]] %s16063_s5 }
   0x7   :  { %16103 = sst [smem:[#allocation67_spill]] %s16064_s6 }
   0x8   :  { %16104 = sst [smem:[#allocation68_spill]] %s16065_s7 }
   0x9   :  { %16105 = sst [smem:[#allocation69_spill]] %s16066_s8 }
   0xa   :  { %16106 = sst [smem:[#allocation70_spill]] %s16067_s9 }
   0xb   :  { %16107 = sst [smem:[#allocation71_spill]] %s16068_s10 }
   0xc   :  { %16108 = sst [smem:[#allocation72_spill]] %s16069_s11 }
   0xd   :  { %16109 = sst [smem:[#allocation73_spill]] %s16083_s25 }
   0xe   :  { %30 = vsyncpa [#allocation5], 0 }
   0xf   :  { %31 = vsyncpa [#allocation3], 0 }
  0x10   :  { %32 = vsyncpa [#allocation8], 0 }
  0x11   :  { %33 = vsyncpa [#allocation11], 0 }
  0x12   :  { %34 = vsyncpa [#allocation14], 0 }
  0x13   :  { %35 = vsyncpa [#allocation17], 0 }
  0x14   :  { %36 = vsyncpa [#allocation20], 0 }
  0x15   :  { %37 = vsyncpa [#allocation23], 0 }
  0x16   :  { %38 = vsyncpa [#allocation26], 0 }
  0x17   :  { %39 = vsyncpa [#allocation29], 0 }
  0x18   :  { %40 = vsyncpa [#allocation32], 0 }
  0x19   :  { %41 = vsyncpa [#allocation35], 0 }
  0x1a   :  { %42 = vsyncpa [#allocation38], 0 }
  0x1b   :  { %43 = vsyncpa [#allocation4], 0 }
  0x1c   :  { %45 = vsyncpa [#allocation4 + $0x1], 0  ;;  %s14917_s29 = smov 0   ;;  %s14919_s2 = smov 0  }
  0x1d   :  { %s14921_s6 = smov 0   ;;  %s14923_s30 = smov 0  }
  0x1e LB: > { %16110 = sst [smem:[#allocation54_spill]] %s14737_s29  ;;  %s14938_s7 = sadd.s32 4294967295, %s14749_s30   ;;  %s14749_s30 = sphi %s14923_s30, %s16169_s30   ;;  %s14745_s6 = sphi %s14921_s6, %s16171_s6   ;;  %s14741_s2 = sphi %s14919_s2, %s16173_s2   ;;  %s14737_s29 = sphi %s14917_s29, %s16172_s29  }
  0x1f   : > { %16111 = sst [smem:[#allocation55_spill]] %s14745_s6  ;;  %s11910_s3 = sadd.s32 4294967294, %s14749_s30  }
  0x20   : > { %16112 = sst [smem:[#allocation56_spill]] %s14749_s30  ;;  %s14942_s26 = sadd.s32 1, %s14749_s30  }
  0x21   : > { %16113 = sst [smem:[#allocation57_spill]] %s14942_s26  ;;  %s593_s1 = sadd.s32 1, %s14745_s6 }
  0x22   : > { %s590_s8 = ssub.s32 %s14749_s30, %s14942_s26  ;;  %p603_p0 = scmp.ne.s32.totalorder %s14745_s6, %s14741_s2 }
  0x23   : > { %p591_p1 = scmp.eq.s32.totalorder %s590_s8, 0  ;;  %p604_p2 = scmp.eq.s32.totalorder %s14938_s7, 1 }
  0x24   : > { %p609_p3 = scmp.ne.s32.totalorder %s14741_s2, %s14737_s29  ;;  %p610_p4 = scmp.eq.s32.totalorder %s11910_s3, 1 }
  0x25   : > { %s14953_s27 = scalar_select %p591_p1, %s14745_s6, %s593_s1  }
  0x26   : > { %p14955_p5 = por %p604_p2, %p603_p0  ;;  %p14959_p6 = por %p610_p4, %p609_p3 }
  0x27   : > { %16114 = sst [smem:[#allocation58_spill]] %s14953_s27  ;;  %p11911_p7 = scmp.ge.s32.totalorder %s14749_s30, 1 }
  0x28   : > { %s16115_s4 = scalar_select %p14955_p5, 1, 0 }
  0x29   : > { %s16117_s28 = scalar_select %p14959_p6, 1, 0 }
  0x2a   : > { %16116 = sst [smem:[#allocation59_spill]] %s16115_s4  ;;  %p617_p8 = scmp.lt.s32.totalorder %s14749_s30, 3 }
  0x2b   : > { %16118 = sst [smem:[#allocation60_spill]] %s16117_s28  ;;  %p16090_p9 = scmp.eq.s32.totalorder %s14938_s7, 0 }
  0x2c   : > { %p14966_p10 = pnand %p11911_p7, %p617_p8  ;;  %s14751_s5 = smov [#allocation7]  }
  0x2d   : > { %s650_s0 = sshll.u32 %s14751_s5, 4  ;;  %s14752_s3 = smov [#allocation10]   ;;  %s651_s0 = int_to_ptr.vmem [resolvable:$true] %s650_s0 }
  0x2e   : > { %s16119_s9 = scalar_select %p14966_p10, 1, 0 }
  0x2f   : > { %p13366_p11 = pneg %p14966_p10  ;;  %s672_s1 = sshll.u32 %s14752_s3, 4  ;;  %s673_s1 = int_to_ptr.vmem [resolvable:$true] %s672_s1 }
  0x30   : > { %s14753_s27 = smov [#allocation13]   ;;  %s14065_s5 = scalar_lea.vmem %s651_s0, 16 }
  0x31   : > { %p14974_p12 = pnand %p16090_p9, %p13366_p11  ;;  %s696_s6 = sshll.u32 %s14753_s27, 4  ;;  %s14978_s6 = int_to_ptr.vmem [resolvable:$true] %s696_s6 }
  0x32   : > { %p14066_p0 = scmp.ne.s32.totalorder %s651_s0, %s14065_s5  ;;  %s14072_s3 = scalar_lea.vmem %s651_s0, 32 }
  0x33   : > { %p14982_p13 = pneg %p14974_p12  ;;  %p14073_p3 = scmp.lt.s32.totalorder %s651_s0, %s651_s0 }
  0x34   : > { %p14074_p4 = scmp.lt.s32.totalorder %s14072_s3, %s14065_s5 }
  0x35   : > { %p14068_p1 = pnand %p14066_p0, %p14982_p13 }
  0x36   : > { %p14075_p7 = por %p14074_p4, %p14073_p3 }
  0x37   : > { %p14069_p2 = pneg %p14068_p1 }
  0x39   : > { %p14076_p8 = pnand %p14075_p7, %p14069_p2 }
  0x3b   : > { %14079 = shalt.err (!%p14076_p8)
}
  0x3c   : > { %s16122_s29 = sld [smem:[#allocation65_spill]]  ;;  %s14091_s30 = scalar_lea.vmem %s673_s1, 16 }
  0x3d   : > { %p14092_p11 = scmp.ne.s32.totalorder %s673_s1, %s14091_s30  ;;  %s14098_s25 = scalar_lea.vmem %s673_s1, 32 }
  0x3e   : > { %p14099_p0 = scmp.lt.s32.totalorder %s673_s1, %s673_s1  ;;  %p14100_p1 = scmp.lt.s32.totalorder %s14098_s25, %s14091_s30 }
  0x3f   : > { %p14094_p9 = pnand %p14092_p11, %p14982_p13 }
  0x40   : > { %p14101_p5 = por %p14100_p1, %p14099_p0 }
  0x41   : > { %p14095_p6 = pneg %p14094_p9 }
  0x42   : > { %13375 = dma.hbm_to_vmem [thread:$0]  (!%p14974_p12), %s16122_s29, 16, %s651_s0, [#allocation8]  }
  0x43   : > { %p14102_p10 = pnand %p14101_p5, %p14095_p6 }
  0x45   : > { %14105 = shalt.err (!%p14102_p10)
}
  0x46   : > { %s16123_s4 = sld [smem:[#allocation67_spill]]  ;;  %s14117_s29 = scalar_lea.vmem %s14978_s6, 16 }
  0x47   : > { %p14118_p2 = scmp.ne.s32.totalorder %s14978_s6, %s14117_s29  ;;  %s14124_s25 = scalar_lea.vmem %s14978_s6, 32 }
  0x48   : > { %p14125_p5 = scmp.lt.s32.totalorder %s14978_s6, %s14978_s6  ;;  %p14126_p6 = scmp.lt.s32.totalorder %s14124_s25, %s14117_s29 }
  0x49   : > { %p14120_p9 = pnand %p14118_p2, %p14982_p13 }
  0x4a   : > { %p14127_p10 = por %p14126_p6, %p14125_p5 }
  0x4b   : > { %p14121_p3 = pneg %p14120_p9 }
  0x4c   : > { %13381 = dma.hbm_to_vmem [thread:$0]  (!%p14974_p12), %s16123_s4, 16, %s673_s1, [#allocation11]  }
  0x4d   : > { %p14128_p4 = pnand %p14127_p10, %p14121_p3 }
  0x4f   : > { %14131 = shalt.err (!%p14128_p4)
}
  0x50   : > { %s16124_s0 = sld [smem:[#allocation69_spill]]  ;;  %s14754_s4 = smov [#allocation16]  }
  0x51   : > { %s718_s1 = sshll.u32 %s14754_s4, 4  ;;  %s14755_s27 = smov [#allocation19]   ;;  %s719_s1 = int_to_ptr.vmem [resolvable:$true] %s718_s1 }
  0x52   : > { %s742_s5 = sshll.u32 %s14755_s27, 4  ;;  %s14143_s3 = scalar_lea.vmem %s719_s1, 16  ;;  %s743_s5 = int_to_ptr.vmem [resolvable:$true] %s742_s5 }
  0x53   : > { %p14144_p7 = scmp.ne.s32.totalorder %s719_s1, %s14143_s3  ;;  %s14150_s29 = scalar_lea.vmem %s719_s1, 32 }
  0x54   : > { %p14151_p0 = scmp.lt.s32.totalorder %s719_s1, %s719_s1  ;;  %p14152_p1 = scmp.lt.s32.totalorder %s14150_s29, %s14143_s3 }
  0x55   : > { %p14146_p8 = pnand %p14144_p7, %p14982_p13 }
  0x56   : > { %13387 = dma.hbm_to_vmem [thread:$0]  (!%p14974_p12), %s16124_s0, 16, %s14978_s6, [#allocation14]  }
  0x57   : > { %p14147_p11 = pneg %p14146_p8  ;;  %p14153_p2 = por %p14152_p1, %p14151_p0 }
  0x59   : > { %p14154_p9 = pnand %p14153_p2, %p14147_p11 }
  0x5b   : > { %14157 = shalt.err (!%p14154_p9)
}
  0x5c   : > { %s16125_s10 = sld [smem:[#allocation71_spill]]  ;;  %s14169_s30 = scalar_lea.vmem %s743_s5, 128 }
  0x5d   : > { %p14170_p3 = scmp.ne.s32.totalorder %s743_s5, %s14169_s30  ;;  %p14177_p10 = scmp.lt.s32.totalorder %s743_s5, %s743_s5 }
  0x5e   : > { %p14178_p4 = scmp.lt.s32.totalorder %s14169_s30, %s14169_s30 }
  0x5f   : > { %p14172_p5 = pnand %p14170_p3, %p14982_p13 }
  0x60   : > { %p14179_p7 = por %p14178_p4, %p14177_p10 }
  0x61   : > { %p14173_p6 = pneg %p14172_p5 }
  0x62   : > { %13393 = dma.hbm_to_vmem [thread:$0]  (!%p14974_p12), %s16125_s10, 16, %s719_s1, [#allocation17]  }
  0x63   : > { %p14180_p8 = pnand %p14179_p7, %p14173_p6 }
  0x65   : > { %14183 = shalt.err (!%p14180_p8)
}
  0x66   : > { %13399 = dma.hbm_to_vmem [thread:$0]  (!%p14974_p12), %s16070_s12, 128, %s743_s5, [#allocation20]  }
  0x67   : > { %s14756_s4 = smov [#allocation22]   ;;  %s14757_s27 = smov [#allocation25]  }
  0x68   : > { %s764_s1 = sshll.u32 %s14756_s4, 4  ;;  %s788_s3 = sshll.u32 %s14757_s27, 4  ;;  %s765_s1 = int_to_ptr.vmem [resolvable:$true] %s764_s1  ;;  %s789_s3 = int_to_ptr.vmem [resolvable:$true] %s788_s3 }
  0x69   : > { %s14195_s29 = scalar_lea.vmem %s765_s1, 128  ;;  %p14203_p2 = scmp.lt.s32.totalorder %s765_s1, %s765_s1 }
  0x6a   : > { %p14196_p11 = scmp.ne.s32.totalorder %s765_s1, %s14195_s29  ;;  %p14204_p9 = scmp.lt.s32.totalorder %s14195_s29, %s14195_s29 }
  0x6c   : > { %p14198_p0 = pnand %p14196_p11, %p14982_p13  ;;  %p14205_p3 = por %p14204_p9, %p14203_p2 }
  0x6e   : > { %p14199_p1 = pneg %p14198_p0 }
  0x70   : > { %p14206_p5 = pnand %p14205_p3, %p14199_p1 }
  0x72   : > { %14209 = shalt.err (!%p14206_p5)
}
  0x73   : > { %13405 = dma.hbm_to_vmem [thread:$0]  (!%p14974_p12), %s16072_s14, 128, %s765_s1, [#allocation23]  }
  0x74   : > { %s14221_s5 = scalar_lea.vmem %s789_s3, 64  ;;  %p14229_p7 = scmp.lt.s32.totalorder %s789_s3, %s789_s3 }
  0x75   : > { %p14222_p6 = scmp.ne.s32.totalorder %s789_s3, %s14221_s5  ;;  %p14230_p8 = scmp.lt.s32.totalorder %s14221_s5, %s14221_s5 }
  0x77   : > { %p14224_p10 = pnand %p14222_p6, %p14982_p13  ;;  %p14231_p11 = por %p14230_p8, %p14229_p7 }
  0x79   : > { %p14225_p4 = pneg %p14224_p10 }
  0x7b   : > { %p14232_p0 = pnand %p14231_p11, %p14225_p4 }
  0x7d   : > { %14235 = shalt.err (!%p14232_p0)
}
  0x7e   : > { %13411 = dma.hbm_to_vmem [thread:$0]  (!%p14974_p12), %s16074_s16, 64, %s789_s3, [#allocation26]  }
  0x7f   : > { %s14758_s0 = smov [#allocation28]   ;;  %s14759_s1 = smov [#allocation31]  }
  0x80   : > { %s810_s4 = sshll.u32 %s14758_s0, 4  ;;  %s834_s27 = sshll.u32 %s14759_s1, 4  ;;  %s811_s4 = int_to_ptr.vmem [resolvable:$true] %s810_s4  ;;  %s835_s27 = int_to_ptr.vmem [resolvable:$true] %s834_s27 }
  0x81   : > { %s14247_s29 = scalar_lea.vmem %s811_s4, 64  ;;  %p14255_p3 = scmp.lt.s32.totalorder %s811_s4, %s811_s4 }
  0x82   : > { %p14248_p1 = scmp.ne.s32.totalorder %s811_s4, %s14247_s29  ;;  %p14256_p5 = scmp.lt.s32.totalorder %s14247_s29, %s14247_s29 }
  0x84   : > { %p14250_p2 = pnand %p14248_p1, %p14982_p13  ;;  %p14257_p6 = por %p14256_p5, %p14255_p3 }
  0x86   : > { %p14251_p9 = pneg %p14250_p2 }
  0x88   : > { %p14258_p10 = pnand %p14257_p6, %p14251_p9 }
  0x8a   : > { %14261 = shalt.err (!%p14258_p10)
}
  0x8b   : > { %13417 = dma.hbm_to_vmem [thread:$0]  (!%p14974_p12), %s16076_s18, 64, %s811_s4, [#allocation29]  }
  0x8c   : > { %s14273_s3 = scalar_lea.vmem %s835_s27, 32  ;;  %p14281_p11 = scmp.lt.s32.totalorder %s835_s27, %s835_s27 }
  0x8d   : > { %p14274_p4 = scmp.ne.s32.totalorder %s835_s27, %s14273_s3  ;;  %p14282_p0 = scmp.lt.s32.totalorder %s14273_s3, %s14273_s3 }
  0x8f   : > { %p14276_p7 = pnand %p14274_p4, %p14982_p13  ;;  %p14283_p1 = por %p14282_p0, %p14281_p11 }
  0x91   : > { %p14277_p8 = pneg %p14276_p7 }
  0x93   : > { %p14284_p2 = pnand %p14283_p1, %p14277_p8 }
  0x95   : > { %14287 = shalt.err (!%p14284_p2)
}
  0x96   : > { %13423 = dma.hbm_to_vmem [thread:$0]  (!%p14974_p12), %s16078_s20, 32, %s835_s27, [#allocation32]  }
  0x97   : > { %s14760_s28 = smov [#allocation34]  }
  0x98   : > { %s856_s0 = sshll.u32 %s14760_s28, 4  ;;  %s857_s0 = int_to_ptr.vmem [resolvable:$true] %s856_s0 }
  0x99   : > { %s14299_s4 = scalar_lea.vmem %s857_s0, 32  ;;  %p14307_p6 = scmp.lt.s32.totalorder %s857_s0, %s857_s0 }
  0x9a   : > { %p14300_p9 = scmp.ne.s32.totalorder %s857_s0, %s14299_s4  ;;  %p14308_p10 = scmp.lt.s32.totalorder %s14299_s4, %s14299_s4 }
  0x9c   : > { %p14302_p3 = pnand %p14300_p9, %p14982_p13  ;;  %p14309_p4 = por %p14308_p10, %p14307_p6 }
  0x9e   : > { %p14303_p5 = pneg %p14302_p3 }
  0xa0   : > { %p14310_p7 = pnand %p14309_p4, %p14303_p5 }
  0xa2   : > { %14313 = shalt.err (!%p14310_p7)
}
  0xa3   : > { %13429 = dma.hbm_to_vmem [thread:$0]  (!%p14974_p12), %s16080_s22, 32, %s857_s0, [#allocation35]  }
  0xa4   : > { %s14761_s27 = smov [#allocation2]   ;;  %s16126_s3 = sld [smem:[#allocation61_spill]] }
  0xa5   : > { %s14762_s5 = smov [#allocation6]   ;;  %s14763_s28 = smov [#allocation9]  }
  0xa6   : > { %s639_s30 = sshll.u32 %s14762_s5, 4  ;;  %s661_s4 = sshll.u32 %s14763_s28, 4  ;;  %s640_s30 = int_to_ptr.vmem [resolvable:$true] %s639_s30  ;;  %s662_s4 = int_to_ptr.vmem [resolvable:$true] %s661_s4 }
  0xa7   : > { %s14336_s10 = scalar_lea.vmem %s640_s30, 32  ;;  %p14344_p1 = scmp.lt.s32.totalorder %s640_s30, %s640_s30 }
  0xa8   : > { %p14337_p8 = scmp.ne.s32.totalorder %s640_s30, %s14336_s10  ;;  %p14345_p2 = scmp.lt.s32.totalorder %s14336_s10, %s14336_s10 }
  0xaa   : > { %13369 = dma.hbm_to_smem (!%p14974_p12), %s16126_s3, 16, %s14761_s27, [#allocation5]  }
  0xab   : > { %p14339_p11 = pnand %p14337_p8, %p14982_p13  ;;  %p14346_p9 = por %p14345_p2, %p14344_p1 }
  0xad   : > { %p14340_p0 = pneg %p14339_p11 }
  0xaf   : > { %p14347_p3 = pnand %p14346_p9, %p14340_p0 }
  0xb1   : > { %14350 = shalt.err (!%p14347_p3)
}
  0xb2   : > { %s16127_s29 = sld [smem:[#allocation64_spill]]  ;;  %s14362_s27 = scalar_lea.vmem %s662_s4, 16 }
  0xb3   : > { %p14363_p5 = scmp.ne.s32.totalorder %s662_s4, %s14362_s27  ;;  %s14369_s25 = scalar_lea.vmem %s662_s4, 32 }
  0xb4   : > { %p14370_p4 = scmp.lt.s32.totalorder %s662_s4, %s662_s4  ;;  %p14371_p7 = scmp.lt.s32.totalorder %s14369_s25, %s14362_s27 }
  0xb5   : > { %p14365_p6 = pnand %p14363_p5, %p14982_p13 }
  0xb6   : > { %p14372_p8 = por %p14371_p7, %p14370_p4 }
  0xb7   : > { %p14366_p10 = pneg %p14365_p6 }
  0xb8   : > { %13372 = dma.hbm_to_vmem [thread:$0]  (!%p14974_p12), %s16127_s29, 32, %s640_s30, [#allocation3]  }
  0xb9   : > { %p14373_p11 = pnand %p14372_p8, %p14366_p10 }
  0xbb   : > { %14376 = shalt.err (!%p14373_p11)
}
  0xbc   : > { %s16128_s3 = sld [smem:[#allocation66_spill]]  ;;  %s14764_s5 = smov [#allocation12]  }
  0xbd   : > { %s682_s30 = sshll.u32 %s14764_s5, 4  ;;  %s683_s30 = int_to_ptr.vmem [resolvable:$true] %s682_s30 }
  0xbe   : > { %s14388_s28 = scalar_lea.vmem %s683_s30, 512  ;;  %p14396_p9 = scmp.lt.s32.totalorder %s683_s30, %s683_s30 }
  0xbf   : > { %p14389_p0 = scmp.ne.s32.totalorder %s683_s30, %s14388_s28  ;;  %p14397_p3 = scmp.lt.s32.totalorder %s14388_s28, %s14388_s28 }
  0xc1   : > { %p14391_p1 = pnand %p14389_p0, %p14982_p13  ;;  %p14398_p5 = por %p14397_p3, %p14396_p9 }
  0xc2   : > { %13378 = dma.hbm_to_vmem [thread:$0]  (!%p14974_p12), %s16128_s3, 16, %s662_s4, [#allocation8]  }
  0xc3   : > { %p14392_p2 = pneg %p14391_p1 }
  0xc5   : > { %p14399_p6 = pnand %p14398_p5, %p14392_p2 }
  0xc7   : > { %14402 = shalt.err (!%p14399_p6)
}
  0xc8   : > { %s16096_s0 = smov 64   ;;  %s14766_s1 = smov 4  }
  0xc9   : > { %s16129_s27 = sld [smem:[#allocation68_spill]]  ;;  %s14767_s25 = smov [#allocation15]  }
  0xca   : > { %s707_s10 = sshll.u32 %s14767_s25, 4  ;;  %s14768_s6 = smov [#allocation18]   ;;  %s708_s10 = int_to_ptr.vmem [resolvable:$true] %s707_s10 }
  0xcb   : > { %s728_s3 = sshll.u32 %s14768_s6, 4  ;;  %s14414_s5 = scalar_lea.vmem %s708_s10, 16  ;;  %s729_s3 = int_to_ptr.vmem [resolvable:$true] %s728_s3 }
  0xcc   : > { %p14415_p10 = scmp.ne.s32.totalorder %s708_s10, %s14414_s5  ;;  %s14421_s28 = scalar_lea.vmem %s708_s10, 32 }
  0xcd   : > { %p14422_p8 = scmp.lt.s32.totalorder %s708_s10, %s708_s10  ;;  %p14423_p11 = scmp.lt.s32.totalorder %s14421_s28, %s14414_s5 }
  0xce   : > { %p14417_p4 = pnand %p14415_p10, %p14982_p13 }
  0xcf   : > { %13384 = dma.hbm_to_vmem [thread:$0]  (!%p14974_p12), %s16129_s27, 512, %s683_s30, [#allocation11], %s16096_s0, %s16096_s0, %s14766_s1  }
  0xd0   : > { %p14418_p7 = pneg %p14417_p4  ;;  %p14424_p0 = por %p14423_p11, %p14422_p8 }
  0xd2   : > { %p14425_p1 = pnand %p14424_p0, %p14418_p7 }
  0xd4   : > { %14428 = shalt.err (!%p14425_p1)
}
  0xd5   : > { %s16130_s29 = sld [smem:[#allocation70_spill]]  ;;  %s14440_s27 = scalar_lea.vmem %s729_s3, 106496 }
  0xd6   : > { %p14441_p2 = scmp.ne.s32.totalorder %s729_s3, %s14440_s27  ;;  %p14448_p5 = scmp.lt.s32.totalorder %s729_s3, %s729_s3 }
  0xd7   : > { %p14449_p6 = scmp.lt.s32.totalorder %s14440_s27, %s14440_s27 }
  0xd8   : > { %p14443_p9 = pnand %p14441_p2, %p14982_p13 }
  0xd9   : > { %p14450_p10 = por %p14449_p6, %p14448_p5 }
  0xda   : > { %p14444_p3 = pneg %p14443_p9 }
  0xdb   : > { %13390 = dma.hbm_to_vmem [thread:$0]  (!%p14974_p12), %s16130_s29, 16, %s708_s10, [#allocation14]  }
  0xdc   : > { %p14451_p4 = pnand %p14450_p10, %p14444_p3 }
  0xde   : > { %14454 = shalt.err (!%p14451_p4)
}
  0xdf   : > { %s14769_s25 = smov 512   ;;  %s14770_s6 = smov 32  }
  0xe0   : > { %s16131_s11 = sld [smem:[#allocation72_spill]]  ;;  %s14771_s10 = smov [#allocation21]  }
  0xe1   : > { %s753_s30 = sshll.u32 %s14771_s10, 4  ;;  %s14772_s4 = smov [#allocation24]   ;;  %s754_s30 = int_to_ptr.vmem [resolvable:$true] %s753_s30 }
  0xe2   : > { %s774_s29 = sshll.u32 %s14772_s4, 4  ;;  %s14466_s0 = scalar_lea.vmem %s754_s30, 128  ;;  %s775_s29 = int_to_ptr.vmem [resolvable:$true] %s774_s29 }
  0xe3   : > { %p14467_p7 = scmp.ne.s32.totalorder %s754_s30, %s14466_s0  ;;  %p14474_p0 = scmp.lt.s32.totalorder %s754_s30, %s754_s30 }
  0xe4   : > { %p14475_p1 = scmp.lt.s32.totalorder %s14466_s0, %s14466_s0 }
  0xe5   : > { %p14469_p8 = pnand %p14467_p7, %p14982_p13 }
  0xe6   : > { %13396 = dma.hbm_to_vmem [thread:$0]  (!%p14974_p12), %s16131_s11, 106496, %s729_s3, [#allocation17], %s14769_s25, %s14769_s25, %s14770_s6  }
  0xe7   : > { %p14470_p11 = pneg %p14469_p8  ;;  %p14476_p2 = por %p14475_p1, %p14474_p0 }
  0xe9   : > { %p14477_p9 = pnand %p14476_p2, %p14470_p11 }
  0xeb   : > { %14480 = shalt.err (!%p14477_p9)
}
  0xec   : > { %13402 = dma.hbm_to_vmem [thread:$0]  (!%p14974_p12), %s16071_s13, 128, %s754_s30, [#allocation20]  }
  0xed   : > { %s14492_s25 = scalar_lea.vmem %s775_s29, 32768  ;;  %p14500_p10 = scmp.lt.s32.totalorder %s775_s29, %s775_s29 }
  0xee   : > { %p14493_p3 = scmp.ne.s32.totalorder %s775_s29, %s14492_s25  ;;  %p14501_p4 = scmp.lt.s32.totalorder %s14492_s25, %s14492_s25 }
  0xf0   : > { %p14495_p5 = pnand %p14493_p3, %p14982_p13  ;;  %p14502_p7 = por %p14501_p4, %p14500_p10 }
  0xf2   : > { %p14496_p6 = pneg %p14495_p5 }
  0xf4   : > { %p14503_p8 = pnand %p14502_p7, %p14496_p6 }
  0xf6   : > { %14506 = shalt.err (!%p14503_p8)
}
  0xf7   : > { %s14773_s0 = smov 256   ;;  %s14774_s6 = smov 16  }
  0xf8   : > { %13408 = dma.hbm_to_vmem [thread:$0]  (!%p14974_p12), %s16073_s15, 32768, %s775_s29, [#allocation23], %s14773_s0, %s14773_s0, %s14774_s6  }
  0xf9   : > { %s14775_s10 = smov [#allocation27]   ;;  %s14776_s4 = smov [#allocation30]  }
  0xfa   : > { %s799_s30 = sshll.u32 %s14775_s10, 4  ;;  %s820_s27 = sshll.u32 %s14776_s4, 4  ;;  %s800_s30 = int_to_ptr.vmem [resolvable:$true] %s799_s30  ;;  %s821_s27 = int_to_ptr.vmem [resolvable:$true] %s820_s27 }
  0xfb   : > { %s14518_s3 = scalar_lea.vmem %s800_s30, 64  ;;  %p14526_p2 = scmp.lt.s32.totalorder %s800_s30, %s800_s30 }
  0xfc   : > { %p14519_p11 = scmp.ne.s32.totalorder %s800_s30, %s14518_s3  ;;  %p14527_p9 = scmp.lt.s32.totalorder %s14518_s3, %s14518_s3 }
  0xfe   : > { %p14521_p0 = pnand %p14519_p11, %p14982_p13  ;;  %p14528_p3 = por %p14527_p9, %p14526_p2 }
 0x100   : > { %p14522_p1 = pneg %p14521_p0 }
 0x102   : > { %p14529_p5 = pnand %p14528_p3, %p14522_p1 }
 0x104   : > { %14532 = shalt.err (!%p14529_p5)
}
 0x105   : > { %13414 = dma.hbm_to_vmem [thread:$0]  (!%p14974_p12), %s16075_s17, 64, %s800_s30, [#allocation26]  }
 0x106   : > { %s14544_s0 = scalar_lea.vmem %s821_s27, 8192  ;;  %p14552_p7 = scmp.lt.s32.totalorder %s821_s27, %s821_s27 }
 0x107   : > { %p14545_p6 = scmp.ne.s32.totalorder %s821_s27, %s14544_s0  ;;  %p14553_p8 = scmp.lt.s32.totalorder %s14544_s0, %s14544_s0 }
 0x109   : > { %p14547_p10 = pnand %p14545_p6, %p14982_p13  ;;  %p14554_p11 = por %p14553_p8, %p14552_p7 }
 0x10b   : > { %p14548_p4 = pneg %p14547_p10 }
 0x10d   : > { %p14555_p0 = pnand %p14554_p11, %p14548_p4 }
 0x10f   : > { %14558 = shalt.err (!%p14555_p0)
}
 0x110   : > { %s14777_s6 = smov 128   ;;  %s14778_s5 = smov 8  }
 0x111   : > { %13420 = dma.hbm_to_vmem [thread:$0]  (!%p14974_p12), %s16077_s19, 8192, %s821_s27, [#allocation29], %s14777_s6, %s14777_s6, %s14778_s5  }
 0x112   : > { %s14779_s30 = smov [#allocation33]   ;;  %s14780_s3 = smov [#allocation36]  }
 0x113   : > { %s845_s4 = sshll.u32 %s14779_s30, 4  ;;  %s866_s25 = sshll.u32 %s14780_s3, 4  ;;  %s846_s4 = int_to_ptr.vmem [resolvable:$true] %s845_s4  ;;  %s867_s25 = int_to_ptr.vmem [resolvable:$true] %s866_s25 }
 0x114   : > { %s14570_s29 = scalar_lea.vmem %s846_s4, 32  ;;  %p14578_p3 = scmp.lt.s32.totalorder %s846_s4, %s846_s4 }
 0x115   : > { %p14571_p1 = scmp.ne.s32.totalorder %s846_s4, %s14570_s29  ;;  %p14579_p5 = scmp.lt.s32.totalorder %s14570_s29, %s14570_s29 }
 0x117   : > { %p14573_p2 = pnand %p14571_p1, %p14982_p13  ;;  %p14580_p6 = por %p14579_p5, %p14578_p3 }
 0x119   : > { %p14574_p9 = pneg %p14573_p2 }
 0x11b   : > { %p14581_p10 = pnand %p14580_p6, %p14574_p9 }
 0x11d   : > { %14584 = shalt.err (!%p14581_p10)
}
 0x11e   : > { %13426 = dma.hbm_to_vmem [thread:$0]  (!%p14974_p12), %s16079_s21, 32, %s846_s4, [#allocation32]  }
 0x11f   : > { %s14596_s6 = scalar_lea.vmem %s867_s25, 2048  ;;  %p14604_p11 = scmp.lt.s32.totalorder %s867_s25, %s867_s25 }
 0x120   : > { %p14597_p4 = scmp.ne.s32.totalorder %s867_s25, %s14596_s6  ;;  %p14605_p0 = scmp.lt.s32.totalorder %s14596_s6, %s14596_s6 }
 0x122   : > { %p14599_p7 = pnand %p14597_p4, %p14982_p13  ;;  %p14606_p1 = por %p14605_p0, %p14604_p11 }
 0x124   : > { %p14600_p8 = pneg %p14599_p7 }
 0x126   : > { %p14607_p2 = pnand %p14606_p1, %p14600_p8 }
 0x128   : > { %14610 = shalt.err (!%p14607_p2)
}
 0x129   : > { %s16132_s5 = smov 64   ;;  %s14781_s30 = smov [#allocation37]  }
 0x12a   : > { %13432 = dma.hbm_to_vmem [thread:$0]  (!%p14974_p12), %s16081_s23, 2048, %s867_s25, [#allocation35], %s16132_s5, %s16132_s5, %s14766_s1  }
 0x12b   : > { %s880_s4 = sshll.u32 %s14781_s30, 4  ;;  %s881_s4 = int_to_ptr.vmem [resolvable:$true] %s880_s4 }
 0x12c   : > { %s14622_s3 = scalar_lea.vmem %s881_s4, 16  ;;  %s14629_s29 = scalar_lea.vmem %s881_s4, 32 }
 0x12d   : > { %p14623_p9 = scmp.ne.s32.totalorder %s881_s4, %s14622_s3  ;;  %p14630_p6 = scmp.lt.s32.totalorder %s881_s4, %s881_s4 }
 0x12e   : > { %p14631_p10 = scmp.lt.s32.totalorder %s14629_s29, %s14622_s3 }
 0x12f   : > { %p14625_p3 = pnand %p14623_p9, %p14982_p13 }
 0x130   : > { %p14632_p4 = por %p14631_p10, %p14630_p6 }
 0x131   : > { %p14626_p5 = pneg %p14625_p3 }
 0x133   : > { %p14633_p7 = pnand %p14632_p4, %p14626_p5 }
 0x135   : > { %14636 = shalt.err (!%p14633_p7)
}
 0x136   : > { %13435 = dma.hbm_to_vmem [thread:$0]  (!%p14974_p12), %s16082_s24, 16, %s881_s4, [#allocation38]  }
 0x137   : > { %p16133_p8 = scmp.ne.s32.totalorder %s16119_s9, 0 }
 0x138   : > { %p16134_p11 = scmp.eq.s32.totalorder (!%p16133_p8), %s14938_s7, 0 }
 0x139   : > { %909 = sbr.rel (%p16133_p8) target bundleno = 2583 (0xa17), region = 120 }
 0x13e   : > { %14680 = dma.done.wait (%p16134_p11), [#allocation5], 16   ;;  %p16135_p13 = pmov %p16134_p11 }
 0x13f   : > { %p16136_p0 = pmov %p16134_p11 }
 0x140   : > { %14682 = vsyncadd (%p16135_p13), [#allocation5], 4294967280 }
 0x141   : > { %14684 = dma.done.wait (%p16136_p0), [#allocation3], 32   ;;  %p16137_p1 = pmov %p16136_p0 }
 0x142   : > { %p16138_p2 = pmov %p16136_p0 }
 0x143   : > { %14686 = vsyncadd (%p16137_p1), [#allocation3], 4294967264 }
 0x144   : > { %14688 = dma.done.wait (%p16138_p2), [#allocation8], 32   ;;  %p16139_p12 = pmov %p16136_p0 }
 0x145   : > { %p16140_p9 = pmov %p16136_p0 }
 0x146   : > { %14690 = vsyncadd (%p16139_p12), [#allocation8], 4294967264 }
 0x147   : > { %14692 = dma.done.wait (%p16140_p9), [#allocation11], 528   ;;  %p16141_p3 = pmov %p16136_p0 }
 0x148   : > { %p16142_p5 = pmov %p16136_p0 }
 0x149   : > { %14694 = vsyncadd (%p16141_p3), [#allocation11], 4294966768 }
 0x14a   : > { %14696 = dma.done.wait (%p16142_p5), [#allocation14], 32   ;;  %p16143_p6 = pmov %p16136_p0 }
 0x14b   : > { %p16144_p10 = pmov %p16136_p0 }
 0x14c   : > { %14698 = vsyncadd (%p16143_p6), [#allocation14], 4294967264 }
 0x14d   : > { %14700 = dma.done.wait (%p16144_p10), [#allocation17], 106512   ;;  %p16145_p4 = pmov %p16136_p0 }
 0x14e   : > { %p16146_p7 = pmov %p16136_p0 }
 0x14f   : > { %14702 = vsyncadd (%p16145_p4), [#allocation17], 4294860784 }
 0x150   : > { %14704 = dma.done.wait (%p16146_p7), [#allocation20], 256   ;;  %p16147_p8 = pmov %p16136_p0 }
 0x151   : > { %p16148_p11 = pmov %p16136_p0 }
 0x152   : > { %14706 = vsyncadd (%p16147_p8), [#allocation20], 4294967040 }
 0x153   : > { %14708 = dma.done.wait (%p16148_p11), [#allocation23], 32896   ;;  %p16149_p13 = pmov %p16136_p0 }
 0x155   : > { %14710 = vsyncadd (%p16149_p13), [#allocation23], 4294934400 }
 0x156   : > { %14712 = dma.done.wait (%p16136_p0), [#allocation26], 128   ;;  %p16150_p1 = pmov %p16136_p0 }
 0x157   : > { %p16151_p2 = pmov %p16136_p0 }
 0x158   : > { %14714 = vsyncadd (%p16150_p1), [#allocation26], 4294967168 }
 0x159   : > { %14716 = dma.done.wait (%p16151_p2), [#allocation29], 8256   ;;  %p16152_p12 = pmov %p16136_p0 }
 0x15a   : > { %p16153_p9 = pmov %p16136_p0 }
 0x15b   : > { %14718 = vsyncadd (%p16152_p12), [#allocation29], 4294959040 }
 0x15c   : > { %14720 = dma.done.wait (%p16153_p9), [#allocation32], 64   ;;  %p16154_p3 = pmov %p16136_p0 }
 0x15d   : > { %p16155_p5 = pmov %p16136_p0 }
 0x15e   : > { %14722 = vsyncadd (%p16154_p3), [#allocation32], 4294967232 }
 0x15f   : > { %14724 = dma.done.wait (%p16155_p5), [#allocation35], 2080   ;;  %p16156_p6 = pmov %p16136_p0 }
 0x160   : > { %p16157_p10 = pmov %p16136_p0 }
 0x161   : > { %14726 = vsyncadd (%p16156_p6), [#allocation35], 4294965216 }
 0x162   : > { %14728 = dma.done.wait (%p16157_p10), [#allocation38], 16   ;;  %p16158_p4 = pmov %p16136_p0 }
 0x164   : > { %14730 = vsyncadd (%p16158_p4), [#allocation38], 4294967280 }
 0x165   : > { %1003 = sfence }
 0x166   : > { %v1105_v0 = vld [vmem:[#allocation6] sm:$0x3]  ;;  %vm1135_vm0 = vcmask 1040384   ;;  %vm1136_vm1 = vcmask 1041408   ;;  %v14782_v1 = vmov 0.0   ;;  %v14783_v2 = vmov 65535  }
 0x167   : > { %13204 = vmatprep.subr.bf16.mxu0 %v14782_v1  ;;  %v1137_v3 = vsel %vm1135_vm0, 4294967295, %v14783_v2  ;;  %s1070_s26 = smul.u32 13, %s14938_s7  ;;  %13270 = vmatprep.subr.bf16.mxu1 %v14782_v1  ;;  %vm14784_vm2 = vmmov 0   ;;  %s16159_s25 = sld [smem:[#allocation62_spill]]  ;;  %vm1113_vm3 = vcmask 23552   ;;  %v13554_v26 = vld [vmem:[#allocation12 + $0x18] sm:$0xff]  }
 0x168   : > { %v1138_v4 = vsel %vm1136_vm1, %v1137_v3, 0  ;;  %13206 = vmatprep.mubr.msk.bf16.mxu0 %vm14784_vm2, %v14782_v1  ;;  %13226 = vmatprep.mubr.msk.bf16.mxu1 %vm14784_vm2, %v14782_v1  ;;  %v13555_v27 = vld [vmem:[#allocation12 + $0x10] sm:$0xff]   ;;  %v13556_v28 = vld [vmem:[#allocation12 + $0x8] sm:$0xff]   ;;  %v13557_v29 = vld [vmem:[#allocation12] sm:$0xff]   ;;  %s1081_s5 = sld [smem:[#allocation2]]  ;;  %vm1356_vm7 = vcmask 523264  }
 0x169   : > { %v1140_v5 = vand.u32 %v1138_v4, %v1105_v0  ;;  %p1071_p7 = scmp.lt.s32.totalorder %s1070_s26, 25  ;;  %v15259_v30 = vld [vmem:[#allocation18 + $0x3c8] sm:$0xff]  ;;  %v1674_v34 = vld [vmem:[#allocation18 + $0x3c0] sm:$0xff]  ;;  %v15267_v54 = vld [vmem:[#allocation7] ss:$0 sm:$0xff]  ;;  %s11963_s28 = sld [smem:[#allocation2 + $0x1]] }
 0x16a   : > { %v15261_v31 = vld [vmem:[#allocation18 + $0x3e8] sm:$0xff]  ;;  %v1678_v35 = vld [vmem:[#allocation18 + $0x3e0] sm:$0xff]  ;;  %v15275_v63 = vld [vmem:[#allocation9] ss:$0 sm:$0xff]  ;;  %s11964_s10 = sld [smem:[#allocation2 + $0x2]]  ;;  %p1076_p8 = scmp.lt.s32.totalorder %s14938_s7, 1 }
 0x16b   : > { %13205 = vmatpush3.bf16.msra.mxu0 %v1140_v5  ;;  %s16175_s26 = smov (!%p1071_p7, %s1070_s26), 25  ;;  %13271 = vmatpush3.bf16.msra.mxu1 %v1140_v5  ;;  %v12048_v32 = vcombine.low %v15259_v30, %v15261_v31  ;;  %v12049_v33 = vcombine.high %v15259_v30, %v15261_v31  ;;  %v12046_v36 = vcombine.low %v1674_v34, %v1678_v35  ;;  %v1666_v38 = vld [vmem:[#allocation18 + $0x380] sm:$0xff]  ;;  %s11965_s30 = sld [smem:[#allocation2 + $0x3]] }
 0x16c   : > { %13234 = vmatprep.subr.bf16.mxu1 %v14782_v1  ;;  %s11961_s9 = sshll.u32 %s16175_s26, 3  ;;  %v12047_v37 = vcombine.high %v1674_v34, %v1678_v35  ;;  %v1670_v39 = vld [vmem:[#allocation18 + $0x3a0] sm:$0xff]  ;;  %s1067_s3 = sand.u32 1, %s14741_s2  }
 0x16d   : > { %s15222_s6 = scalar_lea.vmem %s16159_s25, %s11961_s9  ;;  %v12038_v40 = vcombine.low %v1666_v38, %v1670_v39  ;;  %v12039_v41 = vcombine.high %v1666_v38, %v1670_v39  ;;  %v1658_v42 = vld [vmem:[#allocation18 + $0x340] sm:$0xff]  ;;  %s11960_s0 = sshll.u32 %s1067_s3, 3 }
 0x16e   : > { %v1085_v6 = vld [vmem:[%s15222_s6] sm:$0xff]  ;;  %v1086_v7 = vld [vmem:[%s15222_s6 + $0x8] sm:$0xff]  ;;  %v1087_v9 = vld [vmem:[%s15222_s6 + $0x10] sm:$0xff]  ;;  %2005 = vmatprep.subr.bf16.mxu0 %v12047_v37  ;;  %v15269_v56 = vstv %s1081_s5  ;;  %s1077_s4 = scalar_select %p1076_p8, %s14938_s7, 1 }
 0x16f   : > { %v1098_v8 = vpack.c.bf16 %v1086_v7, %v1085_v6  ;;  %v1088_v10 = vld [vmem:[%s15222_s6 + $0x18] sm:$0xff]  ;;  %v1095_v11 = vld [vmem:[%s15222_s6 + $0x50] sm:$0xff]  ;;  %v1089_v15 = vld [vmem:[%s15222_s6 + $0x20] sm:$0xff]  ;;  %s16160_s9 = sld [smem:[#allocation63_spill]]  ;;  %s13160_s25 = sshll.u32 %s14938_s7, 7 }
 0x170   : > { %v1096_v12 = vld [vmem:[%s15222_s6 + $0x58] sm:$0xff]  ;;  %v1099_v14 = vpack.c.bf16 %v1088_v10, %v1087_v9  ;;  %v1090_v16 = vld [vmem:[%s15222_s6 + $0x28] sm:$0xff]  ;;  %v1091_v18 = vld [vmem:[%s15222_s6 + $0x30] sm:$0xff]  ;;  %s11962_s29 = sshll.u32 %s1077_s4, 3  ;;  %s16161_s1 = sld [smem:[#allocation59_spill]] }
 0x171   : > { %13207 = vmatmul.mubr.msk.bf16.vlgmr.msra.gmra.mxu0 %vm1113_vm3, %v1098_v8  ;;  %v1103_v13 = vpack.c.bf16 %v1096_v12, %v1095_v11  ;;  %v1100_v17 = vpack.c.bf16 %v1090_v16, %v1089_v15  ;;  %v1092_v19 = vld [vmem:[%s15222_s6 + $0x38] sm:$0xff]  ;;  %v1093_v21 = vld [vmem:[%s15222_s6 + $0x40] sm:$0xff]  ;;  %v1094_v22 = vld [vmem:[%s15222_s6 + $0x48] sm:$0xff]  ;;  %s11602_s27 = scalar_lea.sflag [#allocation4], %s1067_s3  ;;  %s14786_s26 = smov [#allocation39]  }
 0x172   : > { %13210 = vmatprep.mubr.msk.bf16.mxu0 %vm14784_vm2, %v14782_v1  ;;  %v1101_v20 = vpack.c.bf16 %v1092_v19, %v1091_v18  ;;  %v1102_v23 = vpack.c.bf16 %v1094_v22, %v1093_v21  ;;  %v1097_v24 = vld [vmem:[%s15222_s6 + $0x60] sm:$0xff]  ;;  %2006 = vmatpush1.bf16.msra.mxu0 %v12046_v36  ;;  %v1662_v43 = vld [vmem:[#allocation18 + $0x360] sm:$0xff]  ;;  %v1667_v15 = vld [vmem:[#allocation18 + $0x388] sm:$0xff]  ;;  %s1069_s6 = scalar_lea.vmem [#allocation39], %s11960_s0 }
 0x173   : > { %13227 = vmatmul.mubr.msk.bf16.vlgmr.msra.gmra.mxu1 %vm1113_vm3, %v1103_v13  ;;  %v1104_v25 = vpack.c.bf16 %v1097_v24, %v1097_v24  ;;  %2007 = vmatprep.subr.bf16.mxu0 %v12039_v41  ;;  %v12030_v44 = vcombine.low %v1658_v42, %v1662_v43  ;;  %v12031_v45 = vcombine.high %v1658_v42, %v1662_v43  ;;  %v1650_v46 = vld [vmem:[#allocation18 + $0x300] sm:$0xff]  ;;  %v15282_v8 = vld [vmem:[#allocation10] ss:$0 sm:$0xff]  ;;  %v1671_v16 = vld [vmem:[#allocation18 + $0x3a8] sm:$0xff]  ;;  %s11615_s5 = sshll.u32 %s1069_s6, 4  ;;  %s11616_s5 = int_to_ptr.vmem [resolvable:$true] %s11615_s5 }
 0x174   : > { %13230 = vmatprep.mubr.msk.bf16.mxu1 %vm14784_vm2, %v14782_v1  ;;  %13235 = vmatpush3.bf16.msra.mxu1 %v13554_v26  ;;  %v1654_v47 = vld [vmem:[#allocation18 + $0x320] sm:$0xff]  ;;  %v12040_v35 = vcombine.low %v1667_v15, %v1671_v16  ;;  %v1651_v41 = vld [vmem:[#allocation18 + $0x308] sm:$0xff] }
 0x175   : > { %13236 = vmatprep.subr.bf16.mxu1 %v14782_v1  ;;  %v12023_v48 = vcombine.high %v1650_v46, %v1654_v47  ;;  %v12022_v49 = vcombine.low %v1650_v46, %v1654_v47  ;;  %v1642_v50 = vld [vmem:[#allocation18 + $0x2c0] sm:$0xff]  ;;  %v1655_v42 = vld [vmem:[#allocation18 + $0x328] sm:$0xff]  ;;  %s1079_s8 = scalar_lea.vmem %s16160_s9, %s11962_s29  ;;  %s14637_s29 = scalar_lea.vmem %s11616_s5, 128 }
 0x176   : > { %2008 = vmatpush1.bf16.msra.mxu0 %v12038_v40  ;;  %v1646_v51 = vld [vmem:[#allocation18 + $0x2e0] sm:$0xff]  ;;  %p14638_p11 = scmp.ne.s32.totalorder %s11616_s5, %s14637_s29  ;;  %p16164_p13 = scmp.ne.s32.totalorder %s16161_s1, 0 }
 0x177   : > { %2009 = vmatprep.subr.bf16.mxu0 %v12031_v45  ;;  %v12015_v52 = vcombine.high %v1642_v50, %v1646_v51  ;;  %v12014_v53 = vcombine.low %v1642_v50, %v1646_v51  ;;  %v1643_v50 = vld [vmem:[#allocation18 + $0x2c8] sm:$0xff]  ;;  %s14641_s9 = sshll.u32 %s14786_s26, 4  ;;  %s14642_s9 = int_to_ptr.vmem [resolvable:$false] %s14641_s9 }
 0x178   : > { %13237 = vmatpush3.bf16.msra.mxu1 %v13555_v27  ;;  %v1659_v27 = vld [vmem:[#allocation18 + $0x348] sm:$0xff]  ;;  %p14639_p0 = pnand %p14638_p11, %p16164_p13  ;;  %s14643_s7 = scalar_lea.vmem %s14642_s9, 256 }
 0x179   : > { %13211 = vmatmul.mubr.msk.bf16.gmra.mxu0 %vm1113_vm3, %v1099_v14  ;;  %13238 = vmatprep.subr.bf16.mxu1 %v14782_v1  ;;  %v1647_v51 = vld [vmem:[#allocation18 + $0x2e8] sm:$0xff]  ;;  %p14644_p2 = scmp.lt.s32.totalorder %s11616_s5, %s14642_s9  ;;  %p14645_p12 = scmp.lt.s32.totalorder %s14643_s7, %s14637_s29 }
 0x17a   : > { %13214 = vmatprep.mubr.msk.bf16.mxu0 %vm14784_vm2, %v14782_v1  ;;  %2010 = vmatpush1.bf16.msra.mxu0 %v12030_v44  ;;  %p14640_p1 = pneg %p14639_p0 }
 0x17b   : > { %13231 = vmatmul.mubr.msk.bf16.gmra.mxu1 %vm1113_vm3, %v1104_v25  ;;  %2011 = vmatprep.subr.bf16.mxu0 %v12023_v48  ;;  %v12041_v25 = vcombine.high %v1667_v15, %v1671_v16  ;;  %v12025_v48 = vcombine.high %v1651_v41, %v1655_v42  ;;  %p14646_p9 = por %p14645_p12, %p14644_p2 }
 0x17c   : > { %13242 = vmatprep.mubr.msk.bf16.mxu1 %vm14784_vm2, %v14782_v1  ;;  %13239 = vmatpush3.bf16.msra.mxu1 %v13556_v28  ;;  %v1663_v28 = vld [vmem:[#allocation18 + $0x368] sm:$0xff] }
 0x17d   : > { %13240 = vmatprep.subr.bf16.mxu1 %v14782_v1  ;;  %v12033_v39 = vcombine.high %v1659_v27, %v1663_v28  ;;  %v12032_v31 = vcombine.low %v1659_v27, %v1663_v28  ;;  %p14647_p3 = pnand %p14646_p9, %p14640_p1 }
 0x17e   : > { %2012 = vmatpush1.bf16.msra.mxu0 %v12022_v49 }
 0x17f   : > { %2013 = vmatprep.subr.bf16.mxu0 %v12015_v52 }
 0x180   : > { %13241 = vmatpush3.bf16.msra.mxu1 %v13557_v29 }
 0x181   : > { %13215 = vmatmul.mubr.msk.bf16.gmra.mxu0 %vm1113_vm3, %v1100_v17  ;;  %2046 = vmatprep.subr.bf16.mxu1 %v12049_v33 }
 0x182   : > { %13218 = vmatprep.mubr.msk.bf16.mxu0 %vm14784_vm2, %v14782_v1  ;;  %2014 = vmatpush1.bf16.msra.mxu0 %v12014_v53 }
 0x189   : > { %13219 = vmatmul.mubr.msk.bf16.gmra.mxu0 %vm1113_vm3, %v1101_v20 }
 0x18a   : > { %13222 = vmatprep.mubr.msk.bf16.mxu0 %vm14784_vm2, %v14782_v1 }
 0x191   : > { %13223 = vmatmul.mubr.msk.bf16.gmra.mxu0 %vm1113_vm3, %v1102_v23 }
 0x231   : > { %v1176_v55 = vpop.f32.mrf.mxu0 }
 0x232   : > { %v1177_v57 = vadd.f32 %v15267_v54, %v1176_v55 }
 0x233   : > { %v13208_v58 = vpop.f32.mrf.mxu0  ;;  %v15273_v60 = vpop.f32.mrf.mxu1 }
 0x234   : > { %vm1230_vm4 = vcmp.gt.f32.partialorder %v1177_v57, 0.0  ;;  %v1244_v59 = vmul.f32 %v15269_v56, %v1177_v57 }
 0x235   : > { %v1179_v61 = vpop.f32.mrf.mxu0  ;;  %v13228_v2 = vpop.f32.mrf.mxu1 }
 0x236   : > { %v1257_v62 = vsel %vm1230_vm4, %v1177_v57, %v1244_v59  ;;  %v1180_v0 = vadd.f32 %v15267_v54, %v1179_v61  ;;  %v12024_v57 = vcombine.low %v1651_v41, %v1655_v42  ;;  %v1635_v2 = vld [vmem:[#allocation18 + $0x288] sm:$0xff] }
 0x237   : > { %v13209_v3 = vpop.f32.mrf.mxu0  ;;  %v15279_v5 = vpop.f32.mrf.mxu1  ;;  %v1277_v6 = vmul.f32 %v15275_v63, %v1257_v62  ;;  %v12017_v62 = vcombine.high %v1643_v50, %v1647_v51 }
 0x238   : > { %vm1231_vm5 = vcmp.gt.f32.partialorder %v1180_v0, 0.0  ;;  %v1245_v4 = vmul.f32 %v15269_v56, %v1180_v0  ;;  %v1639_v3 = vld [vmem:[#allocation18 + $0x2a8] sm:$0xff] }
 0x239   : > { %v1184_v7 = vpop.f32.mrf.mxu0  ;;  %v13229_v11 = vpop.f32.mrf.mxu1  ;;  %v1297_v17 = vadd.f32 %v15282_v8, %v1277_v6 }
 0x23a   : > { %v1258_v9 = vsel %vm1231_vm5, %v1180_v0, %v1245_v4  ;;  %v1185_v10 = vadd.f32 %v15267_v54, %v1184_v7 }
 0x23b   : > { %v1278_v12 = vmul.f32 %v15275_v63, %v1258_v9  ;;  %v13212_v13 = vpop.f32.mrf.mxu0 }
 0x23c   : > { %vm1232_vm6 = vcmp.gt.f32.partialorder %v1185_v10, 0.0  ;;  %v1246_v14 = vmul.f32 %v15269_v56, %v1185_v10 }
 0x23d   : > { %v1298_v18 = vadd.f32 %v15282_v8, %v1278_v12  ;;  %v1187_v19 = vpop.f32.mrf.mxu0 }
 0x23e   : > { %v1259_v20 = vsel %vm1232_vm6, %v1185_v10, %v1246_v14  ;;  %v1188_v21 = vadd.f32 %v15267_v54, %v1187_v19  ;;  %v12016_v10 = vcombine.low %v1643_v50, %v1647_v51  ;;  %v12009_v14 = vcombine.high %v1635_v2, %v1639_v3 }
 0x23f   : > { %v1310_v22 = vpack.c.bf16 %v1298_v18, %v1297_v17  ;;  %v1279_v23 = vmul.f32 %v15275_v63, %v1259_v20  ;;  %v13213_v24 = vpop.f32.mrf.mxu0  ;;  %v1217_v17 = vadd.f32 %v15267_v54, %v15273_v60  ;;  %v12008_v18 = vcombine.low %v1635_v2, %v1639_v3  ;;  %v1630_v2 = vld [vmem:[#allocation18 + $0x260] sm:$0xff] }
 0x240   : > { %vm1233_vm8 = vcmp.gt.f32.partialorder %v1188_v21, 0.0  ;;  %v1247_v26 = vmul.f32 %v15269_v56, %v1188_v21 }
 0x241   : > { %13243 = vmatmul.mubr.msk.bf16.vlgmr.msra.gmra.mxu1 %vm1356_vm7, %v1310_v22  ;;  %v1192_v29 = vpop.f32.mrf.mxu0  ;;  %v1299_v36 = vadd.f32 %v15282_v8, %v1279_v23  ;;  %vm1240_vm14 = vcmp.gt.f32.partialorder %v1217_v17, 0.0 }
 0x242   : > { %v1260_v33 = vsel %vm1233_vm8, %v1188_v21, %v1247_v26  ;;  %13246 = vmatprep.mubr.msk.bf16.mxu1 %vm14784_vm2, %v14782_v1  ;;  %v1193_v34 = vadd.f32 %v15267_v54, %v1192_v29  ;;  %2047 = vmatpush1.bf16.msra.mxu1 %v12048_v32  ;;  %v1220_v21 = vadd.f32 %v15267_v54, %v15279_v5 }
 0x243   : > { %v1280_v37 = vmul.f32 %v15275_v63, %v1260_v33  ;;  %v13216_v38 = vpop.f32.mrf.mxu0  ;;  %2048 = vmatprep.subr.bf16.mxu1 %v12041_v25  ;;  %v1254_v29 = vmul.f32 %v15269_v56, %v1217_v17 }
 0x244   : > { %vm1234_vm9 = vcmp.gt.f32.partialorder %v1193_v34, 0.0  ;;  %v1248_v40 = vmul.f32 %v15269_v56, %v1193_v34  ;;  %v1255_v5 = vmul.f32 %v15269_v56, %v1220_v21  ;;  %vm1241_vm15 = vcmp.gt.f32.partialorder %v1220_v21, 0.0 }
 0x245   : > { %v1300_v43 = vadd.f32 %v15282_v8, %v1280_v37  ;;  %v1195_v44 = vpop.f32.mrf.mxu0  ;;  %v1267_v38 = vsel %vm1240_vm14, %v1217_v17, %v1254_v29 }
 0x246   : > { %v1261_v45 = vsel %vm1234_vm9, %v1193_v34, %v1248_v40  ;;  %v1196_v30 = vadd.f32 %v15267_v54, %v1195_v44  ;;  %2049 = vmatpush1.bf16.msra.mxu1 %v12040_v35 }
 0x247   : > { %v1311_v32 = vpack.c.bf16 %v1300_v43, %v1299_v36  ;;  %v1281_v46 = vmul.f32 %v15275_v63, %v1261_v45  ;;  %v13217_v47 = vpop.f32.mrf.mxu0  ;;  %2050 = vmatprep.subr.bf16.mxu1 %v12033_v39  ;;  %v1268_v39 = vsel %vm1241_vm15, %v1220_v21, %v1255_v5  ;;  %v1287_v43 = vmul.f32 %v15275_v63, %v1267_v38  ;;  %v15375_v5 = vld [vmem:[#allocation15] ss:$0 sm:$0xff]  ;;  %v15380_v38 = vld [vmem:[#allocation16] ss:$0 sm:$0xff] }
 0x248   : > { %vm1235_vm10 = vcmp.gt.f32.partialorder %v1196_v30, 0.0  ;;  %v1249_v49 = vmul.f32 %v15269_v56, %v1196_v30  ;;  %v1288_v44 = vmul.f32 %v15275_v63, %v1268_v39 }
 0x249   : > { %13247 = vmatmul.mubr.msk.bf16.gmra.mxu1 %vm1356_vm7, %v1311_v32  ;;  %v1200_v52 = vpop.f32.mrf.mxu0  ;;  %v1301_v58 = vadd.f32 %v15282_v8, %v1281_v46  ;;  %v1224_v46 = vpop.f32.mrf.mxu1 }
 0x24a   : > { %v1262_v53 = vsel %vm1235_vm10, %v1196_v30, %v1249_v49  ;;  %v1201_v55 = vadd.f32 %v15267_v54, %v1200_v52  ;;  %13250 = vmatprep.mubr.msk.bf16.mxu1 %vm14784_vm2, %v14782_v1  ;;  %2051 = vmatpush1.bf16.msra.mxu1 %v12032_v31  ;;  %v1307_v30 = vadd.f32 %v15282_v8, %v1287_v43 }
 0x24b   : > { %v1282_v59 = vmul.f32 %v15275_v63, %v1262_v53  ;;  %v13220_v61 = vpop.f32.mrf.mxu0  ;;  %2052 = vmatprep.subr.bf16.mxu1 %v12025_v48  ;;  %v1308_v31 = vadd.f32 %v15282_v8, %v1288_v44  ;;  %v1225_v47 = vadd.f32 %v15267_v54, %v1224_v46  ;;  %v13232_v48 = vpop.f32.mrf.mxu1  ;;  %v1669_v46 = vld [vmem:[#allocation18 + $0x398] sm:$0xff] }
 0x24c   : > { %vm1236_vm11 = vcmp.gt.f32.partialorder %v1201_v55, 0.0  ;;  %v1250_v0 = vmul.f32 %v15269_v56, %v1201_v55 }
 0x24d   : > { %v1302_v4 = vadd.f32 %v15282_v8, %v1282_v59  ;;  %v1203_v6 = vpop.f32.mrf.mxu0  ;;  %v1315_v32 = vpack.c.bf16 %v1308_v31, %v1307_v30  ;;  %vm1242_vm1 = vcmp.gt.f32.partialorder %v1225_v47, 0.0  ;;  %v1256_v49 = vmul.f32 %v15269_v56, %v1225_v47  ;;  %v1227_v50 = vpop.f32.mrf.mxu1  ;;  %v1638_v59 = vld [vmem:[#allocation18 + $0x2a0] sm:$0xff]  ;;  %v1668_v30 = vld [vmem:[#allocation18 + $0x390] sm:$0xff] }
 0x24e   : > { %v1263_v7 = vsel %vm1236_vm11, %v1201_v55, %v1250_v0  ;;  %v1204_v9 = vadd.f32 %v15267_v54, %v1203_v6  ;;  %2053 = vmatpush1.bf16.msra.mxu1 %v12024_v57  ;;  %v1622_v6 = vld [vmem:[#allocation18 + $0x220] sm:$0xff] }
 0x24f   : > { %v1283_v11 = vmul.f32 %v15275_v63, %v1263_v7  ;;  %v13221_v12 = vpop.f32.mrf.mxu0  ;;  %v1312_v13 = vpack.c.bf16 %v1302_v4, %v1301_v58  ;;  %2054 = vmatprep.subr.bf16.mxu1 %v12017_v62  ;;  %v1269_v51 = vsel %vm1242_vm1, %v1225_v47, %v1256_v49  ;;  %v13233_v53 = vpop.f32.mrf.mxu1  ;;  %v1634_v58 = vld [vmem:[#allocation18 + $0x280] sm:$0xff]  ;;  %v1631_v62 = vld [vmem:[#allocation18 + $0x268] sm:$0xff]  ;;  %v1673_v47 = vld [vmem:[#allocation18 + $0x3b8] sm:$0xff] }
 0x250   : > { %vm1237_vm12 = vcmp.gt.f32.partialorder %v1204_v9, 0.0  ;;  %v1251_v15 = vmul.f32 %v15269_v56, %v1204_v9  ;;  %v1289_v52 = vmul.f32 %v15275_v63, %v1269_v51  ;;  %v12006_v61 = vcombine.low %v1634_v58, %v1638_v59  ;;  %v1619_v7 = vld [vmem:[#allocation18 + $0x208] sm:$0xff] }
 0x251   : > { %v1208_v16 = vpop.f32.mrf.mxu0  ;;  %13251 = vmatmul.mubr.msk.bf16.gmra.mxu1 %vm1356_vm7, %v1312_v13  ;;  %v1303_v22 = vadd.f32 %v15282_v8, %v1283_v11 }
 0x252   : > { %v1264_v19 = vsel %vm1237_vm12, %v1204_v9, %v1251_v15  ;;  %v1209_v20 = vadd.f32 %v15267_v54, %v1208_v16  ;;  %13254 = vmatprep.mubr.msk.bf16.mxu1 %vm14784_vm2, %v14782_v1  ;;  %2055 = vmatpush1.bf16.msra.mxu1 %v12016_v10  ;;  %v1309_v55 = vadd.f32 %v15282_v8, %v1289_v52  ;;  %v1623_v10 = vld [vmem:[#allocation18 + $0x228] sm:$0xff]  ;;  %v15357_v15 = vld [vmem:[#allocation18 + $0x3f0] sm:$0xff]  ;;  %v15359_v16 = vld [vmem:[#allocation18 + $0x3d8] sm:$0xff] }
 0x253   : > { %v1284_v23 = vmul.f32 %v15275_v63, %v1264_v19  ;;  %v13224_v24 = vpop.f32.mrf.mxu0  ;;  %2056 = vmatprep.subr.bf16.mxu1 %v12009_v14  ;;  %v11992_v12 = vcombine.low %v1619_v7, %v1623_v10  ;;  %v11993_v13 = vcombine.high %v1619_v7, %v1623_v10  ;;  %v15355_v14 = vld [vmem:[#allocation18 + $0x3d0] sm:$0xff]  ;;  %v1681_v19 = vld [vmem:[#allocation18 + $0x3f8] sm:$0xff] }
 0x254   : > { %vm1238_vm13 = vcmp.gt.f32.partialorder %v1209_v20, 0.0  ;;  %v1252_v60 = vmul.f32 %v15269_v56, %v1209_v20  ;;  %v1316_v57 = vpack.c.bf16 %v1309_v55, %v1309_v55  ;;  %v12050_v17 = vcombine.low %v15355_v14, %v15357_v15  ;;  %v1656_v7 = vld [vmem:[#allocation18 + $0x330] sm:$0xff]  ;;  %v1657_v10 = vld [vmem:[#allocation18 + $0x338] sm:$0xff] }
 0x255   : > { %v1304_v25 = vadd.f32 %v15282_v8, %v1284_v23  ;;  %v1211_v26 = vpop.f32.mrf.mxu0  ;;  %v12052_v21 = vcombine.low %v15359_v16, %v1681_v19  ;;  %v15369_v23 = vld [vmem:[#allocation13] ss:$0 sm:$0xff] }
 0x256   : > { %v1265_v27 = vsel %vm1238_vm13, %v1209_v20, %v1252_v60  ;;  %v1212_v28 = vadd.f32 %v15267_v54, %v1211_v26  ;;  %2057 = vmatpush1.bf16.msra.mxu1 %v12008_v18  ;;  %v1627_v54 = vld [vmem:[#allocation18 + $0x248] sm:$0xff]  ;;  %v12051_v18 = vcombine.high %v15355_v14, %v15357_v15  ;;  %v14785_v20 = vmov 0  }
 0x257   : > { %v1285_v33 = vmul.f32 %v15275_v63, %v1265_v27  ;;  %v1313_v34 = vpack.c.bf16 %v1304_v25, %v1303_v22  ;;  %v13225_v35 = vpop.f32.mrf.mxu0  ;;  %v12001_v0 = vcombine.high %v1627_v54, %v1631_v62  ;;  %v12000_v3 = vcombine.low %v1627_v54, %v1631_v62  ;;  %2037 = vmatprep.mubr.bf16.mxu0 %v14785_v20  ;;  %v1661_v54 = vld [vmem:[#allocation18 + $0x358] sm:$0xff] }
 0x258   : > { %vm1239_vm0 = vcmp.gt.f32.partialorder %v1212_v28, 0.0  ;;  %v1253_v36 = vmul.f32 %v15269_v56, %v1212_v28  ;;  %v1626_v56 = vld [vmem:[#allocation18 + $0x240] sm:$0xff]  ;;  %v12053_v22 = vcombine.high %v15359_v16, %v1681_v19  ;;  %v15371_v60 = vstv %s11963_s28  ;;  %v1665_v62 = vld [vmem:[#allocation18 + $0x378] sm:$0xff]  ;;  %v1644_v16 = vld [vmem:[#allocation18 + $0x2d0] sm:$0xff] }
 0x259   : > { %13255 = vmatmul.mubr.msk.bf16.gmra.mxu1 %vm1356_vm7, %v1313_v34  ;;  %v1305_v40 = vadd.f32 %v15282_v8, %v1285_v33  ;;  %v11998_v4 = vcombine.low %v1626_v56, %v1630_v2  ;;  %2058 = vmatprep.subr.bf16.mxu1 %v12001_v0  ;;  %v1649_v19 = vld [vmem:[#allocation18 + $0x2f8] sm:$0xff] }
 0x25a   : > { %v1266_v37 = vsel %vm1239_vm0, %v1212_v28, %v1253_v36  ;;  %13258 = vmatprep.mubr.msk.bf16.mxu1 %vm14784_vm2, %v14782_v1  ;;  %2059 = vmatpush1.bf16.msra.mxu1 %v12000_v3  ;;  %v12044_v3 = vcombine.low %v1669_v46, %v1673_v47 }
 0x25b   : > { %v1286_v41 = vmul.f32 %v15275_v63, %v1266_v37  ;;  %v11999_v63 = vcombine.high %v1626_v56, %v1630_v2  ;;  %2060 = vmatprep.subr.bf16.mxu1 %v11993_v13  ;;  %v12036_v13 = vcombine.low %v1661_v54, %v1665_v62 }
 0x25d   : > { %v1306_v42 = vadd.f32 %v15282_v8, %v1286_v41  ;;  %v1618_v8 = vld [vmem:[#allocation18 + $0x200] sm:$0xff] }
 0x25e   : > { %v11991_v9 = vcombine.high %v1618_v8, %v1622_v6  ;;  %v11990_v11 = vcombine.low %v1618_v8, %v1622_v6  ;;  %2061 = vmatpush1.bf16.msra.mxu1 %v11992_v12  ;;  %v1652_v8 = vld [vmem:[#allocation18 + $0x310] sm:$0xff] }
 0x25f   : > { %v1314_v45 = vpack.c.bf16 %v1306_v42, %v1305_v40  ;;  %2128 = vmatprep.subr.bf16.mxu1 %v12053_v22  ;;  %v12027_v14 = vcombine.high %v1652_v8, %v1656_v7 }
 0x261   : > { %13259 = vmatmul.mubr.msk.bf16.gmra.mxu1 %vm1356_vm7, %v1314_v45 }
 0x262   : > { %13262 = vmatprep.mubr.msk.bf16.mxu1 %vm14784_vm2, %v14782_v1 }
 0x269   : > { %13263 = vmatmul.mubr.msk.bf16.gmra.mxu1 %vm1356_vm7, %v1315_v32  ;;  %v1672_v32 = vld [vmem:[#allocation18 + $0x3b0] sm:$0xff] }
 0x26a   : > { %13266 = vmatprep.mubr.msk.bf16.mxu1 %vm14784_vm2, %v14782_v1  ;;  %v12007_v1 = vcombine.high %v1634_v58, %v1638_v59  ;;  %v12045_v58 = vcombine.high %v1669_v46, %v1673_v47  ;;  %v1660_v59 = vld [vmem:[#allocation18 + $0x350] sm:$0xff]  ;;  %v12042_v2 = vcombine.low %v1668_v30, %v1672_v32 }
 0x26c   : > { %2015 = vmatprep.subr.bf16.mxu0 %v12007_v1 }
 0x26d   : > { %2016 = vmatpush1.bf16.msra.mxu0 %v12006_v61  ;;  %v1664_v61 = vld [vmem:[#allocation18 + $0x370] sm:$0xff] }
 0x26e   : > { %2017 = vmatprep.subr.bf16.mxu0 %v11999_v63  ;;  %v12037_v63 = vcombine.high %v1661_v54, %v1665_v62  ;;  %v12034_v12 = vcombine.low %v1660_v59, %v1664_v61  ;;  %v1621_v62 = vld [vmem:[#allocation18 + $0x218] sm:$0xff] }
 0x271   : > { %13267 = vmatmul.mubr.msk.bf16.gmra.mxu1 %vm1356_vm7, %v1316_v57  ;;  %2018 = vmatpush1.bf16.msra.mxu0 %v11998_v4  ;;  %v12043_v57 = vcombine.high %v1668_v30, %v1672_v32  ;;  %v12035_v4 = vcombine.high %v1660_v59, %v1664_v61  ;;  %v1633_v32 = vld [vmem:[#allocation18 + $0x278] sm:$0xff]  ;;  %v1620_v59 = vld [vmem:[#allocation18 + $0x210] sm:$0xff] }
 0x272   : > { %2019 = vmatprep.subr.bf16.mxu0 %v11991_v9  ;;  %2078 = vmatprep.mubr.bf16.mxu1 %v14785_v20  ;;  %v1653_v9 = vld [vmem:[#allocation18 + $0x318] sm:$0xff] }
 0x273   : > { %v12029_v15 = vcombine.high %v1653_v9, %v1657_v10  ;;  %v12028_v22 = vcombine.low %v1653_v9, %v1657_v10  ;;  %v1609_v10 = vld [vmem:[#allocation18 + $0x1c0] sm:$0xff] }
 0x275   : > { %2020 = vmatpush1.bf16.msra.mxu0 %v11990_v11 }
 0x276   : > { %2087 = vmatprep.subr.bf16.mxu0 %v12051_v18  ;;  %v1645_v18 = vld [vmem:[#allocation18 + $0x2d8] sm:$0xff] }
 0x301   : > { %v1412_v24 = vpop.f32.mrf.mxu1 }
 0x302   : > { %v1413_v25 = vadd.f32 %v15369_v23, %v1412_v24 }
 0x303   : > { %v13244_v26 = vpop.f32.mrf.mxu1 }
 0x304   : > { %vm1466_vm2 = vcmp.gt.f32.partialorder %v1413_v25, 0.0  ;;  %v1480_v27 = vmul.f32 %v15371_v60, %v1413_v25  ;;  %v12021_v26 = vcombine.high %v1645_v18, %v1649_v19 }
 0x305   : > { %v1415_v28 = vpop.f32.mrf.mxu1 }
 0x306   : > { %v1493_v29 = vsel %vm1466_vm2, %v1413_v25, %v1480_v27  ;;  %v1416_v33 = vadd.f32 %v15369_v23, %v1415_v28  ;;  %v1636_v27 = vld [vmem:[#allocation18 + $0x290] sm:$0xff] }
 0x307   : > { %v13245_v34 = vpop.f32.mrf.mxu1  ;;  %v1513_v36 = vmul.f32 %v15375_v5, %v1493_v29  ;;  %v1640_v28 = vld [vmem:[#allocation18 + $0x2b0] sm:$0xff] }
 0x308   : > { %vm1467_vm3 = vcmp.gt.f32.partialorder %v1416_v33, 0.0  ;;  %v1481_v35 = vmul.f32 %v15371_v60, %v1416_v33  ;;  %v1641_v34 = vld [vmem:[#allocation18 + $0x2b8] sm:$0xff] }
 0x309   : > { %v1420_v37 = vpop.f32.mrf.mxu1  ;;  %v1533_v44 = vadd.f32 %v15380_v38, %v1513_v36 }
 0x30a   : > { %v1494_v39 = vsel %vm1467_vm3, %v1416_v33, %v1481_v35  ;;  %v1421_v40 = vadd.f32 %v15369_v23, %v1420_v37  ;;  %v1637_v33 = vld [vmem:[#allocation18 + $0x298] sm:$0xff] }
 0x30b   : > { %v1514_v41 = vmul.f32 %v15375_v5, %v1494_v39  ;;  %v13248_v42 = vpop.f32.mrf.mxu1  ;;  %v12020_v39 = vcombine.low %v1645_v18, %v1649_v19 }
 0x30c   : > { %vm1468_vm4 = vcmp.gt.f32.partialorder %v1421_v40, 0.0  ;;  %v1482_v43 = vmul.f32 %v15371_v60, %v1421_v40  ;;  %v12013_v42 = vcombine.high %v1637_v33, %v1641_v34 }
 0x30d   : > { %v1534_v45 = vadd.f32 %v15380_v38, %v1514_v41  ;;  %v1423_v31 = vpop.f32.mrf.mxu1 }
 0x30e   : > { %v1495_v48 = vsel %vm1468_vm4, %v1421_v40, %v1482_v43  ;;  %v1424_v49 = vadd.f32 %v15369_v23, %v1423_v31  ;;  %v12011_v40 = vcombine.high %v1636_v27, %v1640_v28  ;;  %v1628_v43 = vld [vmem:[#allocation18 + $0x250] sm:$0xff]  ;;  %v1629_v31 = vld [vmem:[#allocation18 + $0x258] sm:$0xff] }
 0x30f   : > { %v15388_v50 = vpack.c.bf16 %v1534_v45, %v1533_v44  ;;  %v1515_v51 = vmul.f32 %v15375_v5, %v1495_v48  ;;  %v13249_v52 = vpop.f32.mrf.mxu1  ;;  %v1632_v44 = vld [vmem:[#allocation18 + $0x270] sm:$0xff]  ;;  %v12010_v48 = vcombine.low %v1636_v27, %v1640_v28 }
 0x310   : > { %vm1469_vm5 = vcmp.gt.f32.partialorder %v1424_v49, 0.0  ;;  %v1483_v53 = vmul.f32 %v15371_v60, %v1424_v49  ;;  %v12003_v52 = vcombine.high %v1628_v43, %v1632_v44 }
 0x311   : > { %v15393_v55 = vrot.slane %v15388_v50, 4  ;;  %v1535_v1 = vadd.f32 %v15380_v38, %v1515_v51  ;;  %v1428_v24 = vpop.f32.mrf.mxu1  ;;  %v12012_v51 = vcombine.low %v1637_v33, %v1641_v34  ;;  %v1605_v33 = vld [vmem:[#allocation18 + $0x1a0] sm:$0xff] }
 0x312   : > { %v1496_v0 = vsel %vm1469_vm5, %v1424_v49, %v1483_v53  ;;  %v1429_v29 = vadd.f32 %v15369_v23, %v1428_v24 }
 0x313   : > { %2038 = vmatmul.mubr.bf16.vlgmr.msra.gmra.mxu0 %v15393_v55  ;;  %2079 = vmatmul.mubr.bf16.vlgmr.msra.gmra.mxu1 %v15393_v55  ;;  %v1516_v56 = vmul.f32 %v15375_v5, %v1496_v0  ;;  %v13252_v35 = vpop.f32.mrf.mxu1  ;;  %v1625_v0 = vld [vmem:[#allocation18 + $0x238] sm:$0xff] }
 0x314   : > { %2088 = vmatpush1.bf16.msra.mxu0 %v12050_v17  ;;  %2129 = vmatpush1.bf16.msra.mxu1 %v12052_v21  ;;  %v1648_v17 = vld [vmem:[#allocation18 + $0x2f0] sm:$0xff]  ;;  %v12026_v21 = vcombine.low %v1652_v8, %v1656_v7  ;;  %vm1470_vm6 = vcmp.gt.f32.partialorder %v1429_v29, 0.0  ;;  %v1484_v36 = vmul.f32 %v15371_v60, %v1429_v29  ;;  %v11997_v9 = vcombine.high %v1621_v62, %v1625_v0 }
 0x315   : > { %2089 = vmatprep.subr.bf16.mxu0 %v12043_v57  ;;  %2130 = vmatprep.subr.bf16.mxu1 %v12045_v58  ;;  %v1536_v6 = vadd.f32 %v15380_v38, %v1516_v56  ;;  %v12019_v25 = vcombine.high %v1644_v16, %v1648_v17  ;;  %v12018_v37 = vcombine.low %v1644_v16, %v1648_v17  ;;  %v1431_v41 = vpop.f32.mrf.mxu1  ;;  %v1614_v16 = vld [vmem:[#allocation18 + $0x1e8] sm:$0xff] }
 0x316   : > { %2119 = vmatprep.mubr.bf16.mxu0 %v14785_v20  ;;  %2160 = vmatprep.mubr.bf16.mxu1 %v14785_v20  ;;  %v1497_v45 = vsel %vm1470_vm6, %v1429_v29, %v1484_v36  ;;  %v1432_v30 = vadd.f32 %v15369_v23, %v1431_v41  ;;  %v12005_v58 = vcombine.high %v1629_v31, %v1633_v32  ;;  %v1601_v29 = vld [vmem:[#allocation18 + $0x180] sm:$0xff]  ;;  %v1602_v36 = vld [vmem:[#allocation18 + $0x188] sm:$0xff] }
 0x317   : > { %v15402_v11 = vpack.c.bf16 %v1536_v6, %v1535_v1  ;;  %v1517_v46 = vmul.f32 %v15375_v5, %v1497_v45  ;;  %v13253_v47 = vpop.f32.mrf.mxu1  ;;  %v1624_v1 = vld [vmem:[#allocation18 + $0x230] sm:$0xff]  ;;  %v11996_v24 = vcombine.low %v1621_v62, %v1625_v0 }
 0x318   : > { %2090 = vmatpush1.bf16.msra.mxu0 %v12042_v2  ;;  %2131 = vmatpush1.bf16.msra.mxu1 %v12044_v3  ;;  %vm1471_vm7 = vcmp.gt.f32.partialorder %v1432_v30, 0.0  ;;  %v1485_v49 = vmul.f32 %v15371_v60, %v1432_v30  ;;  %v12002_v3 = vcombine.low %v1628_v43, %v1632_v44  ;;  %v11995_v8 = vcombine.high %v1620_v59, %v1624_v1 }
 0x319   : > { %2091 = vmatprep.subr.bf16.mxu0 %v12035_v4  ;;  %2132 = vmatprep.subr.bf16.mxu1 %v12037_v63  ;;  %v1537_v53 = vadd.f32 %v15380_v38, %v1517_v46  ;;  %v1436_v57 = vpop.f32.mrf.mxu1  ;;  %v12004_v63 = vcombine.low %v1629_v31, %v1633_v32  ;;  %v12103_v44 = vcombine.high %v1601_v29, %v1605_v33  ;;  %v1593_v32 = vld [vmem:[#allocation18 + $0x140] sm:$0xff] }
 0x31a   : > { %v1498_v61 = vsel %vm1471_vm7, %v1432_v30, %v1485_v49  ;;  %v1437_v54 = vadd.f32 %v15369_v23, %v1436_v57  ;;  %v1597_v46 = vld [vmem:[#allocation18 + $0x160] sm:$0xff]  ;;  %v1594_v49 = vld [vmem:[#allocation18 + $0x148] sm:$0xff] }
 0x31b   : > { %v1518_v56 = vmul.f32 %v15375_v5, %v1498_v61  ;;  %v13256_v2 = vpop.f32.mrf.mxu1  ;;  %v12095_v61 = vcombine.high %v1593_v32, %v1597_v46 }
 0x31c   : > { %2092 = vmatpush1.bf16.msra.mxu0 %v12034_v12  ;;  %2133 = vmatpush1.bf16.msra.mxu1 %v12036_v13  ;;  %vm1472_vm8 = vcmp.gt.f32.partialorder %v1437_v54, 0.0  ;;  %v1486_v4 = vmul.f32 %v15371_v60, %v1437_v54  ;;  %v1613_v12 = vld [vmem:[#allocation18 + $0x1e0] sm:$0xff] }
 0x31d   : > { %2093 = vmatprep.subr.bf16.mxu0 %v12027_v14  ;;  %2134 = vmatprep.subr.bf16.mxu1 %v12029_v15  ;;  %v1538_v6 = vadd.f32 %v15380_v38, %v1518_v56  ;;  %v1439_v7 = vpop.f32.mrf.mxu1  ;;  %v1610_v15 = vld [vmem:[#allocation18 + $0x1c8] sm:$0xff]  ;;  %v12110_v41 = vcombine.low %v1609_v10, %v1613_v12  ;;  %v1585_v56 = vld [vmem:[#allocation18 + $0x100] sm:$0xff] }
 0x31e   : > { %v1499_v13 = vsel %vm1472_vm8, %v1437_v54, %v1486_v4  ;;  %v1440_v14 = vadd.f32 %v15369_v23, %v1439_v7  ;;  %v12113_v28 = vcombine.high %v1610_v15, %v1614_v16  ;;  %v12112_v43 = vcombine.low %v1610_v15, %v1614_v16  ;;  %v1589_v2 = vld [vmem:[#allocation18 + $0x120] sm:$0xff] }
 0x31f   : > { %v15415_v17 = vpack.c.bf16 %v1538_v6, %v1537_v53  ;;  %v1519_v18 = vmul.f32 %v15375_v5, %v1499_v13  ;;  %v13257_v19 = vpop.f32.mrf.mxu1  ;;  %v12094_v7 = vcombine.low %v1593_v32, %v1597_v46  ;;  %v1577_v16 = vld [vmem:[#allocation18 + $0xc0] sm:$0xff] }
 0x320   : > { %2094 = vmatpush1.bf16.msra.mxu0 %v12026_v21  ;;  %2135 = vmatpush1.bf16.msra.mxu1 %v12028_v22  ;;  %v11994_v21 = vcombine.low %v1620_v59, %v1624_v1  ;;  %vm1473_vm9 = vcmp.gt.f32.partialorder %v1440_v14, 0.0  ;;  %v1487_v22 = vmul.f32 %v15371_v60, %v1440_v14 }
 0x321   : > { %2095 = vmatprep.subr.bf16.mxu0 %v12019_v25  ;;  %2136 = vmatprep.subr.bf16.mxu1 %v12021_v26  ;;  %v12111_v25 = vcombine.high %v1609_v10, %v1613_v12  ;;  %v1539_v26 = vadd.f32 %v15380_v38, %v1519_v18  ;;  %v1444_v27 = vpop.f32.mrf.mxu1  ;;  %v12087_v12 = vcombine.high %v1585_v56, %v1589_v2 }
 0x322   : > { %v1500_v34 = vsel %vm1473_vm9, %v1440_v14, %v1487_v22  ;;  %v1445_v35 = vadd.f32 %v15369_v23, %v1444_v27  ;;  %v1578_v22 = vld [vmem:[#allocation18 + $0xc8] sm:$0xff] }
 0x324   : > { %2096 = vmatpush1.bf16.msra.mxu0 %v12018_v37  ;;  %2137 = vmatpush1.bf16.msra.mxu1 %v12020_v39  ;;  %v1606_v37 = vld [vmem:[#allocation18 + $0x1a8] sm:$0xff]  ;;  %v1520_v39 = vmul.f32 %v15375_v5, %v1500_v34  ;;  %vm1474_vm10 = vcmp.gt.f32.partialorder %v1445_v35, 0.0 }
 0x325   : > { %2097 = vmatprep.subr.bf16.mxu0 %v12011_v40  ;;  %2138 = vmatprep.subr.bf16.mxu1 %v12013_v42  ;;  %v13260_v40 = vpop.f32.mrf.mxu1  ;;  %v1488_v42 = vmul.f32 %v15371_v60, %v1445_v35  ;;  %v12105_v31 = vcombine.high %v1602_v36, %v1606_v37  ;;  %v12104_v1 = vcombine.low %v1602_v36, %v1606_v37  ;;  %v1569_v37 = vld [vmem:[#allocation18 + $0x80] sm:$0xff] }
 0x326   : > { %v1540_v45 = vadd.f32 %v15380_v38, %v1520_v39 }
 0x327   : > { %v1447_v30 = vpop.f32.mrf.mxu1  ;;  %v1501_v47 = vsel %vm1474_vm10, %v1445_v35, %v1488_v42  ;;  %v1570_v42 = vld [vmem:[#allocation18 + $0x88] sm:$0xff] }
 0x328   : > { %2098 = vmatpush1.bf16.msra.mxu0 %v12010_v48  ;;  %2139 = vmatpush1.bf16.msra.mxu1 %v12012_v51  ;;  %v1448_v48 = vadd.f32 %v15369_v23, %v1447_v30  ;;  %v1598_v51 = vld [vmem:[#allocation18 + $0x168] sm:$0xff]  ;;  %v1521_v53 = vmul.f32 %v15375_v5, %v1501_v47 }
 0x329   : > { %2099 = vmatprep.subr.bf16.mxu0 %v12003_v52  ;;  %2140 = vmatprep.subr.bf16.mxu1 %v12005_v58  ;;  %v15425_v52 = vpack.c.bf16 %v1540_v45, %v1539_v26  ;;  %v13261_v57 = vpop.f32.mrf.mxu1  ;;  %v12102_v58 = vcombine.low %v1601_v29, %v1605_v33  ;;  %v12097_v0 = vcombine.high %v1594_v49, %v1598_v51 }
 0x32a   : > { %vm1475_vm11 = vcmp.gt.f32.partialorder %v1448_v48, 0.0  ;;  %v1489_v59 = vmul.f32 %v15371_v60, %v1448_v48  ;;  %v1541_v54 = vadd.f32 %v15380_v38, %v1521_v53  ;;  %v12096_v10 = vcombine.low %v1594_v49, %v1598_v51  ;;  %v1561_v51 = vld [vmem:[#allocation18 + $0x40] sm:$0xff] }
 0x32b   : > { %v1452_v62 = vpop.f32.mrf.mxu1  ;;  %v12086_v29 = vcombine.low %v1585_v56, %v1589_v2  ;;  %v1565_v57 = vld [vmem:[#allocation18 + $0x60] sm:$0xff] }
 0x32c   : > { %2100 = vmatpush1.bf16.msra.mxu0 %v12002_v3  ;;  %2141 = vmatpush1.bf16.msra.mxu1 %v12004_v63  ;;  %v1502_v3 = vsel %vm1475_vm11, %v1448_v48, %v1489_v59  ;;  %v1453_v4 = vadd.f32 %v15369_v23, %v1452_v62  ;;  %v1590_v63 = vld [vmem:[#allocation18 + $0x128] sm:$0xff]  ;;  %v1553_v2 = vld [vmem:[#allocation18] sm:$0xff] }
 0x32d   : > { %2101 = vmatprep.subr.bf16.mxu0 %v11995_v8  ;;  %2142 = vmatprep.subr.bf16.mxu1 %v11997_v9  ;;  %v1522_v8 = vmul.f32 %v15375_v5, %v1502_v3  ;;  %v13264_v6 = vpop.f32.mrf.mxu1  ;;  %v1566_v59 = vld [vmem:[#allocation18 + $0x68] sm:$0xff] }
 0x32e   : > { %vm1476_vm12 = vcmp.gt.f32.partialorder %v1453_v4, 0.0  ;;  %v1490_v9 = vmul.f32 %v15371_v60, %v1453_v4 }
 0x32f   : > { %v1542_v13 = vadd.f32 %v15380_v38, %v1522_v8  ;;  %v1455_v14 = vpop.f32.mrf.mxu1  ;;  %v12062_v8 = vcombine.low %v1561_v51, %v1565_v57 }
 0x330   : > { %2102 = vmatpush1.bf16.msra.mxu0 %v11994_v21  ;;  %2143 = vmatpush1.bf16.msra.mxu1 %v11996_v24  ;;  %v1503_v18 = vsel %vm1476_vm12, %v1453_v4, %v1490_v9  ;;  %v1456_v19 = vadd.f32 %v15369_v23, %v1455_v14  ;;  %v1581_v21 = vld [vmem:[#allocation18 + $0xe0] sm:$0xff]  ;;  %v1582_v24 = vld [vmem:[#allocation18 + $0xe8] sm:$0xff]  ;;  %v1611_v9 = vld [vmem:[#allocation18 + $0x1d0] sm:$0xff] }
 0x331   : > { %2489 = vmatprep.subr.bf16.mxu0 %v12111_v25  ;;  %2530 = vmatprep.subr.bf16.mxu1 %v12113_v28  ;;  %v15439_v25 = vpack.c.bf16 %v1542_v13, %v1541_v54  ;;  %v1523_v26 = vmul.f32 %v15375_v5, %v1503_v18  ;;  %v13265_v27 = vpop.f32.mrf.mxu1  ;;  %v12079_v35 = vcombine.high %v1577_v16, %v1581_v21  ;;  %v1557_v4 = vld [vmem:[#allocation18 + $0x20] sm:$0xff]  ;;  %v1616_v13 = vld [vmem:[#allocation18 + $0x1f8] sm:$0xff]  ;;  %v1603_v18 = vld [vmem:[#allocation18 + $0x190] sm:$0xff] }
 0x332   : > { %vm1477_vm13 = vcmp.gt.f32.partialorder %v1456_v19, 0.0  ;;  %v1491_v28 = vmul.f32 %v15371_v60, %v1456_v19  ;;  %v12081_v36 = vcombine.high %v1578_v22, %v1582_v24  ;;  %v12078_v30 = vcombine.low %v1577_v16, %v1581_v21  ;;  %v1604_v21 = vld [vmem:[#allocation18 + $0x198] sm:$0xff] }
 0x333   : > { %2120 = vmatmul.mubr.bf16.vlgmr.msra.gmra.mxu0 %v15393_v55  ;;  %2161 = vmatmul.mubr.bf16.vlgmr.msra.gmra.mxu1 %v15393_v55  ;;  %v1586_v55 = vld [vmem:[#allocation18 + $0x108] sm:$0xff]  ;;  %v1543_v34 = vadd.f32 %v15380_v38, %v1523_v26  ;;  %v1460_v40 = vpop.f32.mrf.mxu1  ;;  %v12080_v32 = vcombine.low %v1578_v22, %v1582_v24  ;;  %v12055_v6 = vcombine.high %v1553_v2, %v1557_v4  ;;  %v1608_v22 = vld [vmem:[#allocation18 + $0x1b8] sm:$0xff] }
 0x334   : > { %2490 = vmatpush1.bf16.msra.mxu0 %v12110_v41  ;;  %2531 = vmatpush1.bf16.msra.mxu1 %v12112_v43  ;;  %v12089_v15 = vcombine.high %v1586_v55, %v1590_v63  ;;  %v12088_v33 = vcombine.low %v1586_v55, %v1590_v63  ;;  %v1504_v39 = vsel %vm1477_vm13, %v1456_v19, %v1491_v28  ;;  %v1573_v41 = vld [vmem:[#allocation18 + $0xa0] sm:$0xff]  ;;  %v1574_v43 = vld [vmem:[#allocation18 + $0xa8] sm:$0xff]  ;;  %v1607_v19 = vld [vmem:[#allocation18 + $0x1b0] sm:$0xff] }
 0x335   : > { %2491 = vmatprep.subr.bf16.mxu0 %v12103_v44  ;;  %2532 = vmatprep.subr.bf16.mxu1 %v12105_v31  ;;  %v1524_v44 = vmul.f32 %v15375_v5, %v1504_v39  ;;  %v1461_v45 = vadd.f32 %v15369_v23, %v1460_v40  ;;  %v13268_v31 = vpop.f32.mrf.mxu1  ;;  %v12071_v48 = vcombine.high %v1569_v37, %v1573_v41  ;;  %v1554_v55 = vld [vmem:[#allocation18 + $0x8] sm:$0xff] }
 0x336   : > { %2521 = vmatprep.mubr.bf16.mxu0 %v14785_v20  ;;  %2562 = vmatprep.mubr.bf16.mxu1 %v14785_v20  ;;  %v12073_v49 = vcombine.high %v1570_v42, %v1574_v43  ;;  %v12070_v62 = vcombine.low %v1569_v37, %v1573_v41  ;;  %v1558_v63 = vld [vmem:[#allocation18 + $0x28] sm:$0xff]  ;;  %v12054_v14 = vcombine.low %v1553_v2, %v1557_v4  ;;  %v1587_v41 = vld [vmem:[#allocation18 + $0x110] sm:$0xff] }
 0x337   : > { %v1544_v46 = vadd.f32 %v15380_v38, %v1524_v44  ;;  %vm1478_vm14 = vcmp.gt.f32.partialorder %v1461_v45, 0.0  ;;  %v1492_v47 = vmul.f32 %v15371_v60, %v1461_v45  ;;  %v1463_v53 = vpop.f32.mrf.mxu1  ;;  %v12063_v60 = vcombine.high %v1561_v51, %v1565_v57  ;;  %v1592_v44 = vld [vmem:[#allocation18 + $0x138] sm:$0xff]  ;;  %v1563_v2 = vld [vmem:[#allocation18 + $0x50] sm:$0xff] }
 0x338   : > { %2492 = vmatpush1.bf16.msra.mxu0 %v12102_v58  ;;  %2533 = vmatpush1.bf16.msra.mxu1 %v12104_v1  ;;  %v1562_v58 = vld [vmem:[#allocation18 + $0x48] sm:$0xff]  ;;  %v12107_v27 = vcombine.high %v1603_v18, %v1607_v19  ;;  %v12109_v28 = vcombine.high %v1604_v21, %v1608_v22  ;;  %v12108_v37 = vcombine.low %v1604_v21, %v1608_v22  ;;  %v1567_v4 = vld [vmem:[#allocation18 + $0x70] sm:$0xff] }
 0x339   : > { %2493 = vmatprep.subr.bf16.mxu0 %v12095_v61  ;;  %2534 = vmatprep.subr.bf16.mxu1 %v12097_v0  ;;  %v15448_v23 = vpack.c.bf16 %v1544_v46, %v1543_v34  ;;  %v1505_v1 = vsel %vm1478_vm14, %v1461_v45, %v1492_v47  ;;  %v13269_v54 = vpop.f32.mrf.mxu1  ;;  %v12072_v0 = vcombine.low %v1570_v42, %v1574_v43  ;;  %v1596_v34 = vld [vmem:[#allocation18 + $0x158] sm:$0xff]  ;;  %v1591_v42 = vld [vmem:[#allocation18 + $0x130] sm:$0xff]  ;;  %v2711_v21 = vld [vmem:[#allocation18 + $0x5c8] sm:$0xff] }
 0x33a   : > { %v1525_v61 = vmul.f32 %v15375_v5, %v1505_v1  ;;  %v12065_v56 = vcombine.high %v1562_v58, %v1566_v59  ;;  %v12064_v5 = vcombine.low %v1562_v58, %v1566_v59  ;;  %v1588_v43 = vld [vmem:[#allocation18 + $0x118] sm:$0xff]  ;;  %v12091_v31 = vcombine.high %v1587_v41, %v1591_v42  ;;  %v1579_v46 = vld [vmem:[#allocation18 + $0xd0] sm:$0xff]  ;;  %v2715_v22 = vld [vmem:[#allocation18 + $0x5e8] sm:$0xff] }
 0x33b   : > { %v1583_v47 = vld [vmem:[#allocation18 + $0xf0] sm:$0xff]  ;;  %v12090_v51 = vcombine.low %v1587_v41, %v1591_v42  ;;  %v12092_v53 = vcombine.low %v1588_v43, %v1592_v44  ;;  %v1576_v54 = vld [vmem:[#allocation18 + $0xb8] sm:$0xff]  ;;  %v2694_v41 = vld [vmem:[#allocation18 + $0x540] sm:$0xff] }
 0x33c   : > { %2494 = vmatpush1.bf16.msra.mxu0 %v12094_v7  ;;  %2535 = vmatpush1.bf16.msra.mxu1 %v12096_v10  ;;  %v15452_v3 = vadd.f32 %v15380_v38, %v1525_v61  ;;  %v12057_v7 = vcombine.high %v1554_v55, %v1558_v63  ;;  %v1615_v10 = vld [vmem:[#allocation18 + $0x1f0] sm:$0xff]  ;;  %v12056_v38 = vcombine.low %v1554_v55, %v1558_v63  ;;  %v1572_v61 = vld [vmem:[#allocation18 + $0x98] sm:$0xff]  ;;  %v2698_v42 = vld [vmem:[#allocation18 + $0x560] sm:$0xff] }
 0x33d   : > { %2495 = vmatprep.subr.bf16.mxu0 %v12087_v12  ;;  %2536 = vmatprep.subr.bf16.mxu1 %v12089_v15  ;;  %v1612_v12 = vld [vmem:[#allocation18 + $0x1d8] sm:$0xff]  ;;  %v12115_v15 = vcombine.high %v1611_v9, %v1615_v10  ;;  %v12114_v24 = vcombine.low %v1611_v9, %v1615_v10  ;;  %v12083_v57 = vcombine.high %v1579_v46, %v1583_v47  ;;  %v1571_v59 = vld [vmem:[#allocation18 + $0x90] sm:$0xff] }
 0x33e   : > { %v12117_v16 = vcombine.high %v1612_v12, %v1616_v13  ;;  %v12116_v26 = vcombine.low %v1612_v12, %v1616_v13  ;;  %v1575_v1 = vld [vmem:[#allocation18 + $0xb0] sm:$0xff]  ;;  %v1564_v55 = vld [vmem:[#allocation18 + $0x58] sm:$0xff] }
 0x33f   : > { %v1568_v63 = vld [vmem:[#allocation18 + $0x78] sm:$0xff]  ;;  %v1555_v9 = vld [vmem:[#allocation18 + $0x10] sm:$0xff] }
 0x340   : > { %2496 = vmatpush1.bf16.msra.mxu0 %v12086_v29  ;;  %2537 = vmatpush1.bf16.msra.mxu1 %v12088_v33  ;;  %v1595_v29 = vld [vmem:[#allocation18 + $0x150] sm:$0xff]  ;;  %v1556_v12 = vld [vmem:[#allocation18 + $0x18] sm:$0xff] }
 0x341   : > { %2497 = vmatprep.subr.bf16.mxu0 %v12079_v35  ;;  %2538 = vmatprep.subr.bf16.mxu1 %v12081_v36  ;;  %v1599_v33 = vld [vmem:[#allocation18 + $0x170] sm:$0xff]  ;;  %v1600_v35 = vld [vmem:[#allocation18 + $0x178] sm:$0xff]  ;;  %v12106_v36 = vcombine.low %v1603_v18, %v1607_v19  ;;  %v2710_v18 = vld [vmem:[#allocation18 + $0x5c0] sm:$0xff] }
 0x342   : > { %v12099_v39 = vcombine.high %v1595_v29, %v1599_v33  ;;  %v12101_v40 = vcombine.high %v1596_v34, %v1600_v35  ;;  %v12098_v45 = vcombine.low %v1595_v29, %v1599_v33  ;;  %v1559_v10 = vld [vmem:[#allocation18 + $0x30] sm:$0xff]  ;;  %v1560_v13 = vld [vmem:[#allocation18 + $0x38] sm:$0xff]  ;;  %v2714_v19 = vld [vmem:[#allocation18 + $0x5e0] sm:$0xff] }
 0x343   : > { %v2702_v29 = vld [vmem:[#allocation18 + $0x580] sm:$0xff] }
 0x344   : > { %2498 = vmatpush1.bf16.msra.mxu0 %v12078_v30  ;;  %2539 = vmatpush1.bf16.msra.mxu1 %v12080_v32  ;;  %v12100_v30 = vcombine.low %v1596_v34, %v1600_v35  ;;  %v12093_v32 = vcombine.high %v1588_v43, %v1592_v44  ;;  %v2706_v33 = vld [vmem:[#allocation18 + $0x5a0] sm:$0xff]  ;;  %v2703_v34 = vld [vmem:[#allocation18 + $0x588] sm:$0xff] }
 0x345   : > { %2499 = vmatprep.subr.bf16.mxu0 %v12071_v48  ;;  %2540 = vmatprep.subr.bf16.mxu1 %v12073_v49  ;;  %v1580_v48 = vld [vmem:[#allocation18 + $0xd8] sm:$0xff]  ;;  %v2707_v35 = vld [vmem:[#allocation18 + $0x5a8] sm:$0xff] }
 0x346   : > { %v1584_v49 = vld [vmem:[#allocation18 + $0xf8] sm:$0xff]  ;;  %v2695_v43 = vld [vmem:[#allocation18 + $0x548] sm:$0xff] }
 0x347   : > { %v12085_v58 = vcombine.high %v1580_v48, %v1584_v49  ;;  %v2699_v44 = vld [vmem:[#allocation18 + $0x568] sm:$0xff] }
 0x348   : > { %2500 = vmatpush1.bf16.msra.mxu0 %v12070_v62  ;;  %2541 = vmatpush1.bf16.msra.mxu1 %v12072_v0  ;;  %v12082_v62 = vcombine.low %v1579_v46, %v1583_v47  ;;  %v12084_v0 = vcombine.low %v1580_v48, %v1584_v49  ;;  %v2686_v46 = vld [vmem:[#allocation18 + $0x500] sm:$0xff]  ;;  %v2687_v48 = vld [vmem:[#allocation18 + $0x508] sm:$0xff] }
 0x349   : > { %2501 = vmatprep.subr.bf16.mxu0 %v12063_v60  ;;  %2542 = vmatprep.subr.bf16.mxu1 %v12065_v56  ;;  %v12075_v60 = vcombine.high %v1571_v59, %v1575_v1  ;;  %v12077_v56 = vcombine.high %v1572_v61, %v1576_v54  ;;  %v2690_v47 = vld [vmem:[#allocation18 + $0x520] sm:$0xff]  ;;  %v2691_v49 = vld [vmem:[#allocation18 + $0x528] sm:$0xff] }
 0x34c   : > { %2502 = vmatpush1.bf16.msra.mxu0 %v12062_v8  ;;  %2543 = vmatpush1.bf16.msra.mxu1 %v12064_v5  ;;  %v12074_v8 = vcombine.low %v1571_v59, %v1575_v1  ;;  %v12076_v5 = vcombine.low %v1572_v61, %v1576_v54  ;;  %v2682_v59 = vld [vmem:[#allocation18 + $0x4e0] sm:$0xff]  ;;  %v2679_v1 = vld [vmem:[#allocation18 + $0x4c8] sm:$0xff]  ;;  %v12150_v54 = vcombine.low %v2686_v46, %v2690_v47 }
 0x34d   : > { %2503 = vmatprep.subr.bf16.mxu0 %v12055_v6  ;;  %2544 = vmatprep.subr.bf16.mxu1 %v12057_v7  ;;  %v12067_v6 = vcombine.high %v1563_v2, %v1567_v4  ;;  %v12069_v7 = vcombine.high %v1564_v55, %v1568_v63  ;;  %v2683_v61 = vld [vmem:[#allocation18 + $0x4e8] sm:$0xff] }
 0x350   : > { %2504 = vmatpush1.bf16.msra.mxu0 %v12054_v14  ;;  %2545 = vmatpush1.bf16.msra.mxu1 %v12056_v38  ;;  %v12066_v14 = vcombine.low %v1563_v2, %v1567_v4  ;;  %v12068_v38 = vcombine.low %v1564_v55, %v1568_v63  ;;  %v2674_v2 = vld [vmem:[#allocation18 + $0x4a0] sm:$0xff]  ;;  %v2671_v4 = vld [vmem:[#allocation18 + $0x488] sm:$0xff] }
 0x351   : > { %2571 = vmatprep.subr.bf16.mxu0 %v12115_v15  ;;  %2612 = vmatprep.subr.bf16.mxu1 %v12117_v16  ;;  %v12059_v15 = vcombine.high %v1555_v9, %v1559_v10  ;;  %v12061_v16 = vcombine.high %v1556_v12, %v1560_v13  ;;  %v2675_v55 = vld [vmem:[#allocation18 + $0x4a8] sm:$0xff] }
 0x353   : > { %2522 = vmatmul.mubr.bf16.vlgmr.msra.gmra.mxu0 %v15388_v50  ;;  %2563 = vmatmul.mubr.bf16.vlgmr.msra.gmra.mxu1 %v15388_v50 }
 0x354   : > { %2572 = vmatpush1.bf16.msra.mxu0 %v12114_v24  ;;  %2613 = vmatpush1.bf16.msra.mxu1 %v12116_v26  ;;  %v12058_v24 = vcombine.low %v1555_v9, %v1559_v10  ;;  %v12060_v26 = vcombine.low %v1556_v12, %v1560_v13  ;;  %v2666_v9 = vld [vmem:[#allocation18 + $0x460] sm:$0xff]  ;;  %v2663_v10 = vld [vmem:[#allocation18 + $0x448] sm:$0xff] }
 0x355   : > { %2573 = vmatprep.subr.bf16.mxu0 %v12107_v27  ;;  %2614 = vmatprep.subr.bf16.mxu1 %v12109_v28  ;;  %v12175_v27 = vcombine.high %v2710_v18, %v2714_v19  ;;  %v12177_v28 = vcombine.high %v2711_v21, %v2715_v22  ;;  %v2667_v12 = vld [vmem:[#allocation18 + $0x468] sm:$0xff] }
 0x356   : > { %2603 = vmatprep.mubr.bf16.mxu0 %v14785_v20  ;;  %2644 = vmatprep.mubr.bf16.mxu1 %v14785_v20 }
 0x358   : > { %2574 = vmatpush1.bf16.msra.mxu0 %v12106_v36  ;;  %2615 = vmatpush1.bf16.msra.mxu1 %v12108_v37  ;;  %v12174_v36 = vcombine.low %v2710_v18, %v2714_v19  ;;  %v12176_v37 = vcombine.low %v2711_v21, %v2715_v22  ;;  %v2658_v18 = vld [vmem:[#allocation18 + $0x420] sm:$0xff]  ;;  %v2655_v19 = vld [vmem:[#allocation18 + $0x408] sm:$0xff] }
 0x359   : > { %2575 = vmatprep.subr.bf16.mxu0 %v12099_v39  ;;  %2616 = vmatprep.subr.bf16.mxu1 %v12101_v40  ;;  %v12167_v39 = vcombine.high %v2702_v29, %v2706_v33  ;;  %v12169_v40 = vcombine.high %v2703_v34, %v2707_v35  ;;  %v2659_v21 = vld [vmem:[#allocation18 + $0x428] sm:$0xff] }
 0x35c   : > { %2576 = vmatpush1.bf16.msra.mxu0 %v12098_v45  ;;  %2617 = vmatpush1.bf16.msra.mxu1 %v12100_v30  ;;  %v12166_v45 = vcombine.low %v2702_v29, %v2706_v33  ;;  %v12168_v30 = vcombine.low %v2703_v34, %v2707_v35  ;;  %v2716_v29 = vld [vmem:[#allocation18 + $0x5f0] sm:$0xff]  ;;  %v2713_v33 = vld [vmem:[#allocation18 + $0x5d8] sm:$0xff] }
 0x35d   : > { %2577 = vmatprep.subr.bf16.mxu0 %v12091_v31  ;;  %2618 = vmatprep.subr.bf16.mxu1 %v12093_v32  ;;  %v12159_v31 = vcombine.high %v2694_v41, %v2698_v42  ;;  %v12161_v32 = vcombine.high %v2695_v43, %v2699_v44  ;;  %v2717_v34 = vld [vmem:[#allocation18 + $0x5f8] sm:$0xff] }
 0x360   : > { %2578 = vmatpush1.bf16.msra.mxu0 %v12090_v51  ;;  %2619 = vmatpush1.bf16.msra.mxu1 %v12092_v53  ;;  %v12158_v51 = vcombine.low %v2694_v41, %v2698_v42  ;;  %v12151_v53 = vcombine.high %v2686_v46, %v2690_v47  ;;  %v2708_v41 = vld [vmem:[#allocation18 + $0x5b0] sm:$0xff]  ;;  %v2705_v42 = vld [vmem:[#allocation18 + $0x598] sm:$0xff] }
 0x361   : > { %2579 = vmatprep.subr.bf16.mxu0 %v12083_v57  ;;  %2620 = vmatprep.subr.bf16.mxu1 %v12085_v58  ;;  %v12153_v57 = vcombine.high %v2687_v48, %v2691_v49  ;;  %v2678_v58 = vld [vmem:[#allocation18 + $0x4c0] sm:$0xff]  ;;  %v2700_v46 = vld [vmem:[#allocation18 + $0x570] sm:$0xff]  ;;  %v2697_v47 = vld [vmem:[#allocation18 + $0x558] sm:$0xff] }
 0x362   : > { %v12142_v63 = vcombine.low %v2678_v58, %v2682_v59 }
 0x364   : > { %2580 = vmatpush1.bf16.msra.mxu0 %v12082_v62  ;;  %2621 = vmatpush1.bf16.msra.mxu1 %v12084_v0  ;;  %v12152_v62 = vcombine.low %v2687_v48, %v2691_v49  ;;  %v12143_v0 = vcombine.high %v2678_v58, %v2682_v59  ;;  %v2701_v48 = vld [vmem:[#allocation18 + $0x578] sm:$0xff]  ;;  %v2692_v58 = vld [vmem:[#allocation18 + $0x530] sm:$0xff] }
 0x365   : > { %2581 = vmatprep.subr.bf16.mxu0 %v12075_v60  ;;  %2622 = vmatprep.subr.bf16.mxu1 %v12077_v56  ;;  %v12145_v60 = vcombine.high %v2679_v1, %v2683_v61  ;;  %v2670_v56 = vld [vmem:[#allocation18 + $0x480] sm:$0xff]  ;;  %v2689_v59 = vld [vmem:[#allocation18 + $0x518] sm:$0xff] }
 0x366   : > { %v12134_v13 = vcombine.low %v2670_v56, %v2674_v2 }
 0x368   : > { %2582 = vmatpush1.bf16.msra.mxu0 %v12074_v8  ;;  %2623 = vmatpush1.bf16.msra.mxu1 %v12076_v5  ;;  %v12144_v8 = vcombine.low %v2679_v1, %v2683_v61  ;;  %v12135_v5 = vcombine.high %v2670_v56, %v2674_v2  ;;  %v2693_v1 = vld [vmem:[#allocation18 + $0x538] sm:$0xff]  ;;  %v2684_v56 = vld [vmem:[#allocation18 + $0x4f0] sm:$0xff] }
 0x369   : > { %2583 = vmatprep.subr.bf16.mxu0 %v12067_v6  ;;  %2624 = vmatprep.subr.bf16.mxu1 %v12069_v7  ;;  %v12137_v6 = vcombine.high %v2671_v4, %v2675_v55  ;;  %v2662_v7 = vld [vmem:[#allocation18 + $0x440] sm:$0xff]  ;;  %v2681_v2 = vld [vmem:[#allocation18 + $0x4d8] sm:$0xff] }
 0x36a   : > { %v12126_v22 = vcombine.low %v2662_v7, %v2666_v9 }
 0x36c   : > { %2584 = vmatpush1.bf16.msra.mxu0 %v12066_v14  ;;  %2625 = vmatpush1.bf16.msra.mxu1 %v12068_v38  ;;  %v12136_v14 = vcombine.low %v2671_v4, %v2675_v55  ;;  %v12127_v38 = vcombine.high %v2662_v7, %v2666_v9  ;;  %v2685_v4 = vld [vmem:[#allocation18 + $0x4f8] sm:$0xff]  ;;  %v2676_v7 = vld [vmem:[#allocation18 + $0x4b0] sm:$0xff] }
 0x36d   : > { %2585 = vmatprep.subr.bf16.mxu0 %v12059_v15  ;;  %2626 = vmatprep.subr.bf16.mxu1 %v12061_v16  ;;  %v12129_v15 = vcombine.high %v2663_v10, %v2667_v12  ;;  %v2654_v16 = vld [vmem:[#allocation18 + $0x400] sm:$0xff]  ;;  %v2673_v9 = vld [vmem:[#allocation18 + $0x498] sm:$0xff] }
 0x36e   : > { %v12118_v35 = vcombine.low %v2654_v16, %v2658_v18 }
 0x370   : > { %2586 = vmatpush1.bf16.msra.mxu0 %v12058_v24  ;;  %2627 = vmatpush1.bf16.msra.mxu1 %v12060_v26  ;;  %v12128_v24 = vcombine.low %v2663_v10, %v2667_v12  ;;  %v12119_v26 = vcombine.high %v2654_v16, %v2658_v18  ;;  %v2677_v10 = vld [vmem:[#allocation18 + $0x4b8] sm:$0xff]  ;;  %v2668_v16 = vld [vmem:[#allocation18 + $0x470] sm:$0xff] }
 0x371   : > { %3038 = vmatprep.subr.bf16.mxu0 %v12175_v27  ;;  %3079 = vmatprep.subr.bf16.mxu1 %v12177_v28  ;;  %v12121_v27 = vcombine.high %v2655_v19, %v2659_v21  ;;  %v2712_v28 = vld [vmem:[#allocation18 + $0x5d0] sm:$0xff]  ;;  %v2665_v18 = vld [vmem:[#allocation18 + $0x458] sm:$0xff] }
 0x373   : > { %2604 = vmatmul.mubr.bf16.vlgmr.msra.gmra.mxu0 %v15388_v50  ;;  %2645 = vmatmul.mubr.bf16.vlgmr.msra.gmra.mxu1 %v15388_v50  ;;  %v12160_v50 = vcombine.low %v2695_v43, %v2699_v44  ;;  %v2709_v43 = vld [vmem:[#allocation18 + $0x5b8] sm:$0xff]  ;;  %v12178_v44 = vcombine.low %v2712_v28, %v2716_v29 }
 0x374   : > { %3039 = vmatpush1.bf16.msra.mxu0 %v12174_v36  ;;  %3080 = vmatpush1.bf16.msra.mxu1 %v12176_v37  ;;  %v12120_v36 = vcombine.low %v2655_v19, %v2659_v21  ;;  %v12179_v37 = vcombine.high %v2712_v28, %v2716_v29  ;;  %v2669_v19 = vld [vmem:[#allocation18 + $0x478] sm:$0xff]  ;;  %v2660_v28 = vld [vmem:[#allocation18 + $0x430] sm:$0xff] }
 0x375   : > { %3040 = vmatprep.subr.bf16.mxu0 %v12167_v39  ;;  %3081 = vmatprep.subr.bf16.mxu1 %v12169_v40  ;;  %v12181_v39 = vcombine.high %v2713_v33, %v2717_v34  ;;  %v2704_v40 = vld [vmem:[#allocation18 + $0x590] sm:$0xff]  ;;  %v2657_v29 = vld [vmem:[#allocation18 + $0x418] sm:$0xff] }
 0x376   : > { %3070 = vmatprep.mubr.bf16.mxu0 %v14785_v20  ;;  %3111 = vmatprep.mubr.bf16.mxu1 %v14785_v20  ;;  %v12170_v49 = vcombine.low %v2704_v40, %v2708_v41 }
 0x378   : > { %3041 = vmatpush1.bf16.msra.mxu0 %v12166_v45  ;;  %3082 = vmatpush1.bf16.msra.mxu1 %v12168_v30  ;;  %v12180_v45 = vcombine.low %v2713_v33, %v2717_v34  ;;  %v12171_v30 = vcombine.high %v2704_v40, %v2708_v41  ;;  %v2661_v33 = vld [vmem:[#allocation18 + $0x438] sm:$0xff]  ;;  %v3271_v40 = vld [vmem:[#allocation18 + $0x7e0] sm:$0xff]  ;;  %v3268_v41 = vld [vmem:[#allocation18 + $0x7c8] sm:$0xff] }
 0x379   : > { %3042 = vmatprep.subr.bf16.mxu0 %v12159_v31  ;;  %3083 = vmatprep.subr.bf16.mxu1 %v12161_v32  ;;  %v12173_v31 = vcombine.high %v2705_v42, %v2709_v43  ;;  %v2696_v32 = vld [vmem:[#allocation18 + $0x550] sm:$0xff] }
 0x37a   : > { %v12162_v61 = vcombine.low %v2696_v32, %v2700_v46 }
 0x37c   : > { %3043 = vmatpush1.bf16.msra.mxu0 %v12158_v51  ;;  %3084 = vmatpush1.bf16.msra.mxu1 %v12160_v50  ;;  %v12172_v51 = vcombine.low %v2705_v42, %v2709_v43  ;;  %v12163_v50 = vcombine.high %v2696_v32, %v2700_v46  ;;  %v3272_v42 = vld [vmem:[#allocation18 + $0x7e8] sm:$0xff]  ;;  %v3263_v32 = vld [vmem:[#allocation18 + $0x7a0] sm:$0xff] }
 0x37d   : > { %3044 = vmatprep.subr.bf16.mxu0 %v12151_v53  ;;  %3085 = vmatprep.subr.bf16.mxu1 %v12153_v57  ;;  %v12165_v53 = vcombine.high %v2697_v47, %v2701_v48  ;;  %v2688_v57 = vld [vmem:[#allocation18 + $0x510] sm:$0xff]  ;;  %v3260_v46 = vld [vmem:[#allocation18 + $0x788] sm:$0xff] }
 0x37e   : > { %v12154_v55 = vcombine.low %v2688_v57, %v2692_v58 }
 0x380   : > { %3045 = vmatpush1.bf16.msra.mxu0 %v12150_v54  ;;  %3086 = vmatpush1.bf16.msra.mxu1 %v12152_v62  ;;  %v12164_v54 = vcombine.low %v2697_v47, %v2701_v48  ;;  %v12155_v62 = vcombine.high %v2688_v57, %v2692_v58  ;;  %v3264_v47 = vld [vmem:[#allocation18 + $0x7a8] sm:$0xff]  ;;  %v3255_v57 = vld [vmem:[#allocation18 + $0x760] sm:$0xff] }
 0x381   : > { %3046 = vmatprep.subr.bf16.mxu0 %v12143_v0  ;;  %3087 = vmatprep.subr.bf16.mxu1 %v12145_v60  ;;  %v12157_v0 = vcombine.high %v2689_v59, %v2693_v1  ;;  %v2680_v60 = vld [vmem:[#allocation18 + $0x4d0] sm:$0xff]  ;;  %v3252_v58 = vld [vmem:[#allocation18 + $0x748] sm:$0xff] }
 0x382   : > { %v12146_v12 = vcombine.low %v2680_v60, %v2684_v56 }
 0x384   : > { %3047 = vmatpush1.bf16.msra.mxu0 %v12142_v63  ;;  %3088 = vmatpush1.bf16.msra.mxu1 %v12144_v8  ;;  %v12156_v63 = vcombine.low %v2689_v59, %v2693_v1  ;;  %v12147_v8 = vcombine.high %v2680_v60, %v2684_v56  ;;  %v3256_v59 = vld [vmem:[#allocation18 + $0x768] sm:$0xff]  ;;  %v3247_v60 = vld [vmem:[#allocation18 + $0x720] sm:$0xff] }
 0x385   : > { %3048 = vmatprep.subr.bf16.mxu0 %v12135_v5  ;;  %3089 = vmatprep.subr.bf16.mxu1 %v12137_v6  ;;  %v12149_v5 = vcombine.high %v2681_v2, %v2685_v4  ;;  %v2672_v6 = vld [vmem:[#allocation18 + $0x490] sm:$0xff]  ;;  %v3244_v56 = vld [vmem:[#allocation18 + $0x708] sm:$0xff] }
 0x386   : > { %v12138_v21 = vcombine.low %v2672_v6, %v2676_v7 }
 0x388   : > { %3049 = vmatpush1.bf16.msra.mxu0 %v12134_v13  ;;  %3090 = vmatpush1.bf16.msra.mxu1 %v12136_v14  ;;  %v12148_v13 = vcombine.low %v2681_v2, %v2685_v4  ;;  %v12139_v14 = vcombine.high %v2672_v6, %v2676_v7  ;;  %v3248_v2 = vld [vmem:[#allocation18 + $0x728] sm:$0xff]  ;;  %v3239_v6 = vld [vmem:[#allocation18 + $0x6e0] sm:$0xff] }
 0x389   : > { %3050 = vmatprep.subr.bf16.mxu0 %v12127_v38  ;;  %3091 = vmatprep.subr.bf16.mxu1 %v12129_v15  ;;  %v12141_v38 = vcombine.high %v2673_v9, %v2677_v10  ;;  %v2664_v15 = vld [vmem:[#allocation18 + $0x450] sm:$0xff]  ;;  %v3236_v7 = vld [vmem:[#allocation18 + $0x6c8] sm:$0xff] }
 0x38a   : > { %v12130_v34 = vcombine.low %v2664_v15, %v2668_v16 }
 0x38c   : > { %3051 = vmatpush1.bf16.msra.mxu0 %v12126_v22  ;;  %3092 = vmatpush1.bf16.msra.mxu1 %v12128_v24  ;;  %v12140_v22 = vcombine.low %v2673_v9, %v2677_v10  ;;  %v12131_v24 = vcombine.high %v2664_v15, %v2668_v16  ;;  %v3240_v9 = vld [vmem:[#allocation18 + $0x6e8] sm:$0xff]  ;;  %v3231_v15 = vld [vmem:[#allocation18 + $0x6a0] sm:$0xff] }
 0x38d   : > { %3052 = vmatprep.subr.bf16.mxu0 %v12119_v26  ;;  %3093 = vmatprep.subr.bf16.mxu1 %v12121_v27  ;;  %v12133_v26 = vcombine.high %v2665_v18, %v2669_v19  ;;  %v2656_v27 = vld [vmem:[#allocation18 + $0x410] sm:$0xff]  ;;  %v3228_v16 = vld [vmem:[#allocation18 + $0x688] sm:$0xff] }
 0x38e   : > { %v12122_v43 = vcombine.low %v2656_v27, %v2660_v28 }
 0x390   : > { %3053 = vmatpush1.bf16.msra.mxu0 %v12118_v35  ;;  %3094 = vmatpush1.bf16.msra.mxu1 %v12120_v36  ;;  %v12132_v35 = vcombine.low %v2665_v18, %v2669_v19  ;;  %v12123_v36 = vcombine.high %v2656_v27, %v2660_v28  ;;  %v3232_v18 = vld [vmem:[#allocation18 + $0x6a8] sm:$0xff]  ;;  %v3223_v27 = vld [vmem:[#allocation18 + $0x660] sm:$0xff] }
 0x391   : > { %3120 = vmatprep.subr.bf16.mxu0 %v12179_v37  ;;  %3161 = vmatprep.subr.bf16.mxu1 %v12181_v39  ;;  %v12125_v37 = vcombine.high %v2657_v29, %v2661_v33  ;;  %v3267_v39 = vld [vmem:[#allocation18 + $0x7c0] sm:$0xff]  ;;  %v3220_v28 = vld [vmem:[#allocation18 + $0x648] sm:$0xff] }
 0x392   : > { %v12238_v48 = vcombine.low %v3267_v39, %v3271_v40 }
 0x393   : > { %3071 = vmatmul.mubr.bf16.vlgmr.msra.gmra.mxu0 %v15402_v11  ;;  %3112 = vmatmul.mubr.bf16.vlgmr.msra.gmra.mxu1 %v15402_v11 }
 0x394   : > { %3121 = vmatpush1.bf16.msra.mxu0 %v12178_v44  ;;  %3162 = vmatpush1.bf16.msra.mxu1 %v12180_v45  ;;  %v12124_v44 = vcombine.low %v2657_v29, %v2661_v33  ;;  %v12239_v45 = vcombine.high %v3267_v39, %v3271_v40  ;;  %v3224_v29 = vld [vmem:[#allocation18 + $0x668] sm:$0xff]  ;;  %v3215_v39 = vld [vmem:[#allocation18 + $0x620] sm:$0xff] }
 0x395   : > { %3122 = vmatprep.subr.bf16.mxu0 %v12171_v30  ;;  %3163 = vmatprep.subr.bf16.mxu1 %v12173_v31  ;;  %v12241_v30 = vcombine.high %v3268_v41, %v3272_v42  ;;  %v3259_v31 = vld [vmem:[#allocation18 + $0x780] sm:$0xff]  ;;  %v3212_v40 = vld [vmem:[#allocation18 + $0x608] sm:$0xff] }
 0x396   : > { %3152 = vmatprep.mubr.bf16.mxu0 %v14785_v20  ;;  %3193 = vmatprep.mubr.bf16.mxu1 %v14785_v20  ;;  %v12230_v1 = vcombine.low %v3259_v31, %v3263_v32 }
 0x398   : > { %3123 = vmatpush1.bf16.msra.mxu0 %v12170_v49  ;;  %3164 = vmatpush1.bf16.msra.mxu1 %v12172_v51  ;;  %v12240_v49 = vcombine.low %v3268_v41, %v3272_v42  ;;  %v12231_v51 = vcombine.high %v3259_v31, %v3263_v32  ;;  %v3216_v41 = vld [vmem:[#allocation18 + $0x628] sm:$0xff]  ;;  %v3273_v31 = vld [vmem:[#allocation18 + $0x7f0] sm:$0xff]  ;;  %v3270_v32 = vld [vmem:[#allocation18 + $0x7d8] sm:$0xff] }
 0x399   : > { %3124 = vmatprep.subr.bf16.mxu0 %v12163_v50  ;;  %3165 = vmatprep.subr.bf16.mxu1 %v12165_v53  ;;  %v12233_v50 = vcombine.high %v3260_v46, %v3264_v47  ;;  %v3251_v53 = vld [vmem:[#allocation18 + $0x740] sm:$0xff] }
 0x39a   : > { %v12222_v4 = vcombine.low %v3251_v53, %v3255_v57 }
 0x39c   : > { %3125 = vmatpush1.bf16.msra.mxu0 %v12162_v61  ;;  %3166 = vmatpush1.bf16.msra.mxu1 %v12164_v54  ;;  %v12232_v61 = vcombine.low %v3260_v46, %v3264_v47  ;;  %v12223_v54 = vcombine.high %v3251_v53, %v3255_v57  ;;  %v3274_v46 = vld [vmem:[#allocation18 + $0x7f8] sm:$0xff]  ;;  %v3265_v53 = vld [vmem:[#allocation18 + $0x7b0] sm:$0xff] }
 0x39d   : > { %3126 = vmatprep.subr.bf16.mxu0 %v12155_v62  ;;  %3167 = vmatprep.subr.bf16.mxu1 %v12157_v0  ;;  %v12225_v62 = vcombine.high %v3252_v58, %v3256_v59  ;;  %v3243_v0 = vld [vmem:[#allocation18 + $0x700] sm:$0xff]  ;;  %v3262_v57 = vld [vmem:[#allocation18 + $0x798] sm:$0xff] }
 0x39e   : > { %v12214_v10 = vcombine.low %v3243_v0, %v3247_v60 }
 0x3a0   : > { %3127 = vmatpush1.bf16.msra.mxu0 %v12154_v55  ;;  %3168 = vmatpush1.bf16.msra.mxu1 %v12156_v63  ;;  %v12224_v55 = vcombine.low %v3252_v58, %v3256_v59  ;;  %v12215_v63 = vcombine.high %v3243_v0, %v3247_v60  ;;  %v3266_v58 = vld [vmem:[#allocation18 + $0x7b8] sm:$0xff]  ;;  %v3253_v0 = vld [vmem:[#allocation18 + $0x750] sm:$0xff] }
 0x3a1   : > { %3128 = vmatprep.subr.bf16.mxu0 %v12147_v8  ;;  %3169 = vmatprep.subr.bf16.mxu1 %v12149_v5  ;;  %v12217_v8 = vcombine.high %v3244_v56, %v3248_v2  ;;  %v3235_v5 = vld [vmem:[#allocation18 + $0x6c0] sm:$0xff]  ;;  %v3257_v60 = vld [vmem:[#allocation18 + $0x770] sm:$0xff] }
 0x3a2   : > { %v12206_v19 = vcombine.low %v3235_v5, %v3239_v6 }
 0x3a4   : > { %3129 = vmatpush1.bf16.msra.mxu0 %v12146_v12  ;;  %3170 = vmatpush1.bf16.msra.mxu1 %v12148_v13  ;;  %v12216_v12 = vcombine.low %v3244_v56, %v3248_v2  ;;  %v12207_v13 = vcombine.high %v3235_v5, %v3239_v6  ;;  %v3254_v56 = vld [vmem:[#allocation18 + $0x758] sm:$0xff]  ;;  %v12227_v6 = vcombine.high %v3253_v0, %v3257_v60 }
 0x3a5   : > { %3130 = vmatprep.subr.bf16.mxu0 %v12139_v14  ;;  %3171 = vmatprep.subr.bf16.mxu1 %v12141_v38  ;;  %v12209_v14 = vcombine.high %v3236_v7, %v3240_v9  ;;  %v3227_v38 = vld [vmem:[#allocation18 + $0x680] sm:$0xff]  ;;  %v3258_v2 = vld [vmem:[#allocation18 + $0x778] sm:$0xff] }
 0x3a6   : > { %v12198_v33 = vcombine.low %v3227_v38, %v3231_v15 }
 0x3a8   : > { %3131 = vmatpush1.bf16.msra.mxu0 %v12138_v21  ;;  %3172 = vmatpush1.bf16.msra.mxu1 %v12140_v22  ;;  %v12208_v21 = vcombine.low %v3236_v7, %v3240_v9  ;;  %v12199_v22 = vcombine.high %v3227_v38, %v3231_v15  ;;  %v12229_v7 = vcombine.high %v3254_v56, %v3258_v2  ;;  %v3245_v9 = vld [vmem:[#allocation18 + $0x710] sm:$0xff] }
 0x3a9   : > { %3132 = vmatprep.subr.bf16.mxu0 %v12131_v24  ;;  %3173 = vmatprep.subr.bf16.mxu1 %v12133_v26  ;;  %v12201_v24 = vcombine.high %v3228_v16, %v3232_v18  ;;  %v3219_v26 = vld [vmem:[#allocation18 + $0x640] sm:$0xff]  ;;  %v12226_v15 = vcombine.low %v3253_v0, %v3257_v60  ;;  %v3828_v60 = vld [vmem:[#allocation18 + $0x9c8] sm:$0xff] }
 0x3aa   : > { %v12190_v42 = vcombine.low %v3219_v26, %v3223_v27  ;;  %v3831_v0 = vld [vmem:[#allocation18 + $0x9e0] sm:$0xff] }
 0x3ac   : > { %3133 = vmatpush1.bf16.msra.mxu0 %v12130_v34  ;;  %3174 = vmatpush1.bf16.msra.mxu1 %v12132_v35  ;;  %v12200_v34 = vcombine.low %v3228_v16, %v3232_v18  ;;  %v12191_v35 = vcombine.high %v3219_v26, %v3223_v27  ;;  %v12228_v16 = vcombine.low %v3254_v56, %v3258_v2  ;;  %v3241_v26 = vld [vmem:[#allocation18 + $0x6f0] sm:$0xff]  ;;  %v3238_v27 = vld [vmem:[#allocation18 + $0x6d8] sm:$0xff]  ;;  %v3832_v56 = vld [vmem:[#allocation18 + $0x9e8] sm:$0xff] }
 0x3ad   : > { %3134 = vmatprep.subr.bf16.mxu0 %v12123_v36  ;;  %3175 = vmatprep.subr.bf16.mxu1 %v12125_v37  ;;  %v12193_v36 = vcombine.high %v3220_v28, %v3224_v29  ;;  %v3211_v37 = vld [vmem:[#allocation18 + $0x600] sm:$0xff] }
 0x3ae   : > { %v12182_v47 = vcombine.low %v3211_v37, %v3215_v39 }
 0x3b0   : > { %3135 = vmatpush1.bf16.msra.mxu0 %v12122_v43  ;;  %3176 = vmatpush1.bf16.msra.mxu1 %v12124_v44  ;;  %v12192_v43 = vcombine.low %v3220_v28, %v3224_v29  ;;  %v12183_v44 = vcombine.high %v3211_v37, %v3215_v39  ;;  %v3242_v28 = vld [vmem:[#allocation18 + $0x6f8] sm:$0xff]  ;;  %v3233_v37 = vld [vmem:[#allocation18 + $0x6b0] sm:$0xff] }
 0x3b1   : > { %3598 = vmatprep.subr.bf16.mxu0 %v12239_v45  ;;  %3639 = vmatprep.subr.bf16.mxu1 %v12241_v30  ;;  %v12185_v45 = vcombine.high %v3212_v40, %v3216_v41  ;;  %v3269_v30 = vld [vmem:[#allocation18 + $0x7d0] sm:$0xff]  ;;  %v3230_v39 = vld [vmem:[#allocation18 + $0x698] sm:$0xff] }
 0x3b2   : > { %v12242_v59 = vcombine.low %v3269_v30, %v3273_v31 }
 0x3b3   : > { %3153 = vmatmul.mubr.bf16.vlgmr.msra.gmra.mxu0 %v15402_v11  ;;  %3194 = vmatmul.mubr.bf16.vlgmr.msra.gmra.mxu1 %v15402_v11 }
 0x3b4   : > { %3599 = vmatpush1.bf16.msra.mxu0 %v12238_v48  ;;  %3640 = vmatpush1.bf16.msra.mxu1 %v12240_v49  ;;  %v12184_v48 = vcombine.low %v3212_v40, %v3216_v41  ;;  %v12243_v49 = vcombine.high %v3269_v30, %v3273_v31  ;;  %v3234_v40 = vld [vmem:[#allocation18 + $0x6b8] sm:$0xff]  ;;  %v3225_v30 = vld [vmem:[#allocation18 + $0x670] sm:$0xff] }
 0x3b5   : > { %3600 = vmatprep.subr.bf16.mxu0 %v12231_v51  ;;  %3641 = vmatprep.subr.bf16.mxu1 %v12233_v50  ;;  %v12245_v51 = vcombine.high %v3270_v32, %v3274_v46  ;;  %v3261_v50 = vld [vmem:[#allocation18 + $0x790] sm:$0xff]  ;;  %v3222_v31 = vld [vmem:[#allocation18 + $0x658] sm:$0xff] }
 0x3b6   : > { %3630 = vmatprep.mubr.bf16.mxu0 %v14785_v20  ;;  %3671 = vmatprep.mubr.bf16.mxu1 %v14785_v20 }
 0x3b8   : > { %3601 = vmatpush1.bf16.msra.mxu0 %v12230_v1  ;;  %3642 = vmatpush1.bf16.msra.mxu1 %v12232_v61  ;;  %v12244_v1 = vcombine.low %v3270_v32, %v3274_v46  ;;  %v15471_v61 = vrot.slane %v15402_v11, 4  ;;  %v12234_v11 = vcombine.low %v3261_v50, %v3265_v53  ;;  %v3226_v32 = vld [vmem:[#allocation18 + $0x678] sm:$0xff] }
 0x3b9   : > { %3602 = vmatprep.subr.bf16.mxu0 %v12223_v54  ;;  %3643 = vmatprep.subr.bf16.mxu1 %v12225_v62  ;;  %v12235_v54 = vcombine.high %v3261_v50, %v3265_v53  ;;  %v12237_v62 = vcombine.high %v3262_v57, %v3266_v58  ;;  %v3217_v50 = vld [vmem:[#allocation18 + $0x630] sm:$0xff]  ;;  %v3214_v53 = vld [vmem:[#allocation18 + $0x618] sm:$0xff] }
 0x3bc   : > { %3603 = vmatpush1.bf16.msra.mxu0 %v12222_v4  ;;  %3644 = vmatpush1.bf16.msra.mxu1 %v12224_v55 }
 0x3bd   : > { %3604 = vmatprep.subr.bf16.mxu0 %v12215_v63  ;;  %3645 = vmatprep.subr.bf16.mxu1 %v12217_v8  ;;  %v12236_v63 = vcombine.low %v3262_v57, %v3266_v58  ;;  %v3218_v57 = vld [vmem:[#allocation18 + $0x638] sm:$0xff] }
 0x3c0   : > { %3605 = vmatpush1.bf16.msra.mxu0 %v12214_v10  ;;  %3646 = vmatpush1.bf16.msra.mxu1 %v12216_v12  ;;  %v3249_v10 = vld [vmem:[#allocation18 + $0x730] sm:$0xff]  ;;  %v3246_v12 = vld [vmem:[#allocation18 + $0x718] sm:$0xff] }
 0x3c1   : > { %3606 = vmatprep.subr.bf16.mxu0 %v12207_v13  ;;  %3647 = vmatprep.subr.bf16.mxu1 %v12209_v14  ;;  %v3250_v13 = vld [vmem:[#allocation18 + $0x738] sm:$0xff]  ;;  %v12218_v29 = vcombine.low %v3245_v9, %v3249_v10 }
 0x3c4   : > { %3607 = vmatpush1.bf16.msra.mxu0 %v12206_v19  ;;  %3648 = vmatpush1.bf16.msra.mxu1 %v12208_v21  ;;  %v12219_v21 = vcombine.high %v3245_v9, %v3249_v10  ;;  %v3823_v9 = vld [vmem:[#allocation18 + $0x9a0] sm:$0xff]  ;;  %v3820_v10 = vld [vmem:[#allocation18 + $0x988] sm:$0xff] }
 0x3c5   : > { %3608 = vmatprep.subr.bf16.mxu0 %v12199_v22  ;;  %3649 = vmatprep.subr.bf16.mxu1 %v12201_v24  ;;  %v12221_v22 = vcombine.high %v3246_v12, %v3250_v13  ;;  %v3237_v24 = vld [vmem:[#allocation18 + $0x6d0] sm:$0xff] }
 0x3c6   : > { %v12210_v41 = vcombine.low %v3237_v24, %v3241_v26 }
 0x3c8   : > { %3609 = vmatpush1.bf16.msra.mxu0 %v12198_v33  ;;  %3650 = vmatpush1.bf16.msra.mxu1 %v12200_v34  ;;  %v12220_v33 = vcombine.low %v3246_v12, %v3250_v13  ;;  %v12211_v34 = vcombine.high %v3237_v24, %v3241_v26  ;;  %v3824_v12 = vld [vmem:[#allocation18 + $0x9a8] sm:$0xff] }
 0x3c9   : > { %3610 = vmatprep.subr.bf16.mxu0 %v12191_v35  ;;  %3651 = vmatprep.subr.bf16.mxu1 %v12193_v36  ;;  %v12213_v35 = vcombine.high %v3238_v27, %v3242_v28  ;;  %v3229_v36 = vld [vmem:[#allocation18 + $0x690] sm:$0xff] }
 0x3ca   : > { %v12202_v46 = vcombine.low %v3229_v36, %v3233_v37 }
 0x3cc   : > { %3611 = vmatpush1.bf16.msra.mxu0 %v12190_v42  ;;  %3652 = vmatpush1.bf16.msra.mxu1 %v12192_v43  ;;  %v12212_v42 = vcombine.low %v3238_v27, %v3242_v28  ;;  %v12203_v43 = vcombine.high %v3229_v36, %v3233_v37  ;;  %v12296_v27 = vcombine.low %v3820_v10, %v3824_v12  ;;  %v3807_v36 = vld [vmem:[#allocation18 + $0x920] sm:$0xff]  ;;  %v3804_v37 = vld [vmem:[#allocation18 + $0x908] sm:$0xff] }
 0x3cd   : > { %3612 = vmatprep.subr.bf16.mxu0 %v12183_v44  ;;  %3653 = vmatprep.subr.bf16.mxu1 %v12185_v45  ;;  %v12205_v44 = vcombine.high %v3230_v39, %v3234_v40  ;;  %v3221_v45 = vld [vmem:[#allocation18 + $0x650] sm:$0xff] }
 0x3ce   : > { %v12194_v58 = vcombine.low %v3221_v45, %v3225_v30 }
 0x3d0   : > { %3613 = vmatpush1.bf16.msra.mxu0 %v12182_v47  ;;  %3654 = vmatpush1.bf16.msra.mxu1 %v12184_v48  ;;  %v12204_v47 = vcombine.low %v3230_v39, %v3234_v40  ;;  %v12195_v48 = vcombine.high %v3221_v45, %v3225_v30  ;;  %v3808_v39 = vld [vmem:[#allocation18 + $0x928] sm:$0xff] }
 0x3d1   : > { %3680 = vmatprep.subr.bf16.mxu0 %v12243_v49  ;;  %3721 = vmatprep.subr.bf16.mxu1 %v12245_v51  ;;  %v12197_v49 = vcombine.high %v3222_v31, %v3226_v32  ;;  %v3213_v51 = vld [vmem:[#allocation18 + $0x610] sm:$0xff]  ;;  %v12281_v30 = vcombine.high %v3804_v37, %v3808_v39 }
 0x3d2   : > { %v12186_v2 = vcombine.low %v3213_v51, %v3217_v50 }
 0x3d3   : > { %3631 = vmatmul.mubr.bf16.vlgmr.msra.gmra.mxu0 %v15471_v61  ;;  %3672 = vmatmul.mubr.bf16.vlgmr.msra.gmra.mxu1 %v15471_v61  ;;  %v15475_v4 = vpop.f32.mrf.mxu0  ;;  %v15477_v55 = vpop.f32.mrf.mxu1 }
 0x3d4   : > { %3681 = vmatpush1.bf16.msra.mxu0 %v12242_v59  ;;  %3722 = vmatpush1.bf16.msra.mxu1 %v12244_v1  ;;  %v12196_v59 = vcombine.low %v3222_v31, %v3226_v32  ;;  %v12187_v1 = vcombine.high %v3213_v51, %v3217_v50  ;;  %v3795_v31 = vld [vmem:[#allocation18 + $0x8c0] sm:$0xff] }
 0x3d5   : > { %v15479_v8 = vpop.f32.mrf.mxu0  ;;  %v15481_v5 = vpop.f32.mrf.mxu1  ;;  %3682 = vmatprep.subr.bf16.mxu0 %v12235_v54  ;;  %3723 = vmatprep.subr.bf16.mxu1 %v12237_v62  ;;  %v12189_v54 = vcombine.high %v3214_v53, %v3218_v57  ;;  %v3827_v62 = vld [vmem:[#allocation18 + $0x9c0] sm:$0xff] }
 0x3d6   : > { %3712 = vmatprep.mubr.bf16.mxu0 %v14785_v20  ;;  %3753 = vmatprep.mubr.bf16.mxu1 %v14785_v20  ;;  %v12302_v13 = vcombine.low %v3827_v62, %v3831_v0  ;;  %v3799_v32 = vld [vmem:[#allocation18 + $0x8e0] sm:$0xff] }
 0x3d7   : > { %v2043_v14 = vpop.f32.mrf.mxu0  ;;  %v2084_v38 = vpop.f32.mrf.mxu1  ;;  %v12271_v51 = vcombine.high %v3795_v31, %v3799_v32 }
 0x3d8   : > { %3683 = vmatpush1.bf16.msra.mxu0 %v12234_v11  ;;  %3724 = vmatpush1.bf16.msra.mxu1 %v12236_v63  ;;  %v12188_v11 = vcombine.low %v3214_v53, %v3218_v57  ;;  %v12303_v63 = vcombine.high %v3827_v62, %v3831_v0  ;;  %v12304_v14 = vcombine.low %v3828_v60, %v3832_v56  ;;  %v3787_v53 = vld [vmem:[#allocation18 + $0x880] sm:$0xff] }
 0x3d9   : > { %v2044_v18 = vpop.f32.mrf.mxu0  ;;  %v2085_v19 = vpop.f32.mrf.mxu1  ;;  %3684 = vmatprep.subr.bf16.mxu0 %v12227_v6  ;;  %3725 = vmatprep.subr.bf16.mxu1 %v12229_v7  ;;  %v12305_v6 = vcombine.high %v3828_v60, %v3832_v56  ;;  %v3819_v7 = vld [vmem:[#allocation18 + $0x980] sm:$0xff] }
 0x3da   : > { %v12295_v38 = vcombine.high %v3819_v7, %v3823_v9  ;;  %v3815_v18 = vld [vmem:[#allocation18 + $0x960] sm:$0xff]  ;;  %v3812_v19 = vld [vmem:[#allocation18 + $0x948] sm:$0xff]  ;;  %v12294_v26 = vcombine.low %v3819_v7, %v3823_v9 }
 0x3db   : > { %v3791_v57 = vld [vmem:[#allocation18 + $0x8a0] sm:$0xff] }
 0x3dc   : > { %3685 = vmatpush1.bf16.msra.mxu0 %v12226_v15  ;;  %3726 = vmatpush1.bf16.msra.mxu1 %v12228_v16  ;;  %v12297_v15 = vcombine.high %v3820_v10, %v3824_v12  ;;  %v3811_v16 = vld [vmem:[#allocation18 + $0x940] sm:$0xff]  ;;  %v12263_v62 = vcombine.high %v3787_v53, %v3791_v57 }
 0x3dd   : > { %3686 = vmatprep.subr.bf16.mxu0 %v12219_v21  ;;  %3727 = vmatprep.subr.bf16.mxu1 %v12221_v22  ;;  %v3816_v21 = vld [vmem:[#allocation18 + $0x968] sm:$0xff]  ;;  %v3779_v60 = vld [vmem:[#allocation18 + $0x840] sm:$0xff] }
 0x3de   : > { %v3783_v56 = vld [vmem:[#allocation18 + $0x860] sm:$0xff] }
 0x3df   : > { %v12255_v7 = vcombine.high %v3779_v60, %v3783_v56  ;;  %v3771_v10 = vld [vmem:[#allocation18 + $0x800] sm:$0xff] }
 0x3e0   : > { %3687 = vmatpush1.bf16.msra.mxu0 %v12218_v29  ;;  %3728 = vmatpush1.bf16.msra.mxu1 %v12220_v33  ;;  %v12287_v33 = vcombine.high %v3811_v16, %v3815_v18  ;;  %v3775_v12 = vld [vmem:[#allocation18 + $0x820] sm:$0xff] }
 0x3e1   : > { %3688 = vmatprep.subr.bf16.mxu0 %v12211_v34  ;;  %3729 = vmatprep.subr.bf16.mxu1 %v12213_v35  ;;  %v12289_v34 = vcombine.high %v3812_v19, %v3816_v21  ;;  %v3803_v35 = vld [vmem:[#allocation18 + $0x900] sm:$0xff] }
 0x3e2   : > { %v12279_v45 = vcombine.high %v3803_v35, %v3807_v36 }
 0x3e4   : > { %3689 = vmatpush1.bf16.msra.mxu0 %v12210_v41  ;;  %3730 = vmatpush1.bf16.msra.mxu1 %v12212_v42  ;;  %v12286_v41 = vcombine.low %v3811_v16, %v3815_v18  ;;  %v12288_v42 = vcombine.low %v3812_v19, %v3816_v21  ;;  %v12247_v16 = vcombine.high %v3771_v10, %v3775_v12  ;;  %v3829_v19 = vld [vmem:[#allocation18 + $0x9d0] sm:$0xff] }
 0x3e5   : > { %3690 = vmatprep.subr.bf16.mxu0 %v12203_v43  ;;  %3731 = vmatprep.subr.bf16.mxu1 %v12205_v44  ;;  %v3833_v21 = vld [vmem:[#allocation18 + $0x9f0] sm:$0xff] }
 0x3e8   : > { %3691 = vmatpush1.bf16.msra.mxu0 %v12202_v46  ;;  %3732 = vmatpush1.bf16.msra.mxu1 %v12204_v47  ;;  %v3796_v46 = vld [vmem:[#allocation18 + $0x8c8] sm:$0xff] }
 0x3e9   : > { %3692 = vmatprep.subr.bf16.mxu0 %v12195_v48  ;;  %3733 = vmatprep.subr.bf16.mxu1 %v12197_v49  ;;  %v3800_v47 = vld [vmem:[#allocation18 + $0x8e8] sm:$0xff]  ;;  %v12278_v48 = vcombine.low %v3803_v35, %v3807_v36  ;;  %v12280_v49 = vcombine.low %v3804_v37, %v3808_v39  ;;  %v12307_v35 = vcombine.high %v3829_v19, %v3833_v21  ;;  %v3821_v37 = vld [vmem:[#allocation18 + $0x990] sm:$0xff] }
 0x3ea   : > { %v12273_v50 = vcombine.high %v3796_v46, %v3800_v47  ;;  %v3825_v39 = vld [vmem:[#allocation18 + $0x9b0] sm:$0xff] }
 0x3ec   : > { %3693 = vmatpush1.bf16.msra.mxu0 %v12194_v58  ;;  %3734 = vmatpush1.bf16.msra.mxu1 %v12196_v59  ;;  %v3788_v58 = vld [vmem:[#allocation18 + $0x888] sm:$0xff] }
 0x3ed   : > { %3694 = vmatprep.subr.bf16.mxu0 %v12187_v1  ;;  %3735 = vmatprep.subr.bf16.mxu1 %v12189_v54  ;;  %v3792_v59 = vld [vmem:[#allocation18 + $0x8a8] sm:$0xff]  ;;  %v12270_v1 = vcombine.low %v3795_v31, %v3799_v32  ;;  %v12272_v54 = vcombine.low %v3796_v46, %v3800_v47  ;;  %v3814_v31 = vld [vmem:[#allocation18 + $0x958] sm:$0xff] }
 0x3ee   : > { %v12265_v0 = vcombine.high %v3788_v58, %v3792_v59  ;;  %v3818_v32 = vld [vmem:[#allocation18 + $0x978] sm:$0xff] }
 0x3f0   : > { %3695 = vmatpush1.bf16.msra.mxu0 %v12186_v2  ;;  %3736 = vmatpush1.bf16.msra.mxu1 %v12188_v11  ;;  %v3780_v2 = vld [vmem:[#allocation18 + $0x848] sm:$0xff] }
 0x3f1   : > { %4155 = vmatprep.subr.bf16.mxu0 %v12303_v63  ;;  %4196 = vmatprep.subr.bf16.mxu1 %v12305_v6  ;;  %v3784_v11 = vld [vmem:[#allocation18 + $0x868] sm:$0xff]  ;;  %v12262_v63 = vcombine.low %v3787_v53, %v3791_v57  ;;  %v12264_v6 = vcombine.low %v3788_v58, %v3792_v59  ;;  %v12293_v59 = vcombine.high %v3814_v31, %v3818_v32 }
 0x3f2   : > { %v12257_v9 = vcombine.high %v3780_v2, %v3784_v11 }
 0x3f3   : > { %v15485_v22 = vpop.f32.mrf.mxu0  ;;  %v15487_v24 = vpop.f32.mrf.mxu1  ;;  %3713 = vmatmul.mubr.bf16.vlgmr.msra.gmra.mxu0 %v15471_v61  ;;  %3754 = vmatmul.mubr.bf16.vlgmr.msra.gmra.mxu1 %v15471_v61 }
 0x3f4   : > { %4156 = vmatpush1.bf16.msra.mxu0 %v12302_v13  ;;  %4197 = vmatpush1.bf16.msra.mxu1 %v12304_v14  ;;  %v3772_v13 = vld [vmem:[#allocation18 + $0x808] sm:$0xff] }
 0x3f5   : > { %v15491_v28 = vpop.f32.mrf.mxu0  ;;  %v15493_v29 = vpop.f32.mrf.mxu1  ;;  %4157 = vmatprep.subr.bf16.mxu0 %v12295_v38  ;;  %4198 = vmatprep.subr.bf16.mxu1 %v12297_v15  ;;  %v3776_v14 = vld [vmem:[#allocation18 + $0x828] sm:$0xff]  ;;  %v12254_v38 = vcombine.low %v3779_v60, %v3783_v56  ;;  %v12256_v15 = vcombine.low %v3780_v2, %v3784_v11  ;;  %v12292_v11 = vcombine.low %v3814_v31, %v3818_v32 }
 0x3f6   : > { %4187 = vmatprep.mubr.bf16.mxu0 %v14785_v20  ;;  %4228 = vmatprep.mubr.bf16.mxu1 %v14785_v20  ;;  %v12249_v18 = vcombine.high %v3772_v13, %v3776_v14 }
 0x3f7   : > { %v2125_v61 = vpop.f32.mrf.mxu0  ;;  %v2166_v40 = vpop.f32.mrf.mxu1 }
 0x3f8   : > { %4158 = vmatpush1.bf16.msra.mxu0 %v12294_v26  ;;  %4199 = vmatpush1.bf16.msra.mxu1 %v12296_v27  ;;  %v3830_v26 = vld [vmem:[#allocation18 + $0x9d8] sm:$0xff] }
 0x3f9   : > { %v2126_v43 = vpop.f32.mrf.mxu0  ;;  %v2167_v44 = vpop.f32.mrf.mxu1  ;;  %4159 = vmatprep.subr.bf16.mxu0 %v12287_v33  ;;  %4200 = vmatprep.subr.bf16.mxu1 %v12289_v34  ;;  %v3834_v27 = vld [vmem:[#allocation18 + $0x9f8] sm:$0xff]  ;;  %v12246_v33 = vcombine.low %v3771_v10, %v3775_v12  ;;  %v12248_v34 = vcombine.low %v3772_v13, %v3776_v14 }
 0x3fa   : > { %v12309_v36 = vcombine.high %v3830_v26, %v3834_v27  ;;  %v3822_v61 = vld [vmem:[#allocation18 + $0x998] sm:$0xff]  ;;  %v12299_v43 = vcombine.high %v3821_v37, %v3825_v39 }
 0x3fb   : > { %v3826_v40 = vld [vmem:[#allocation18 + $0x9b8] sm:$0xff] }
 0x3fc   : > { %4160 = vmatpush1.bf16.msra.mxu0 %v12286_v41  ;;  %4201 = vmatpush1.bf16.msra.mxu1 %v12288_v42  ;;  %v12306_v41 = vcombine.low %v3829_v19, %v3833_v21  ;;  %v12308_v42 = vcombine.low %v3830_v26, %v3834_v27  ;;  %v12301_v44 = vcombine.high %v3822_v61, %v3826_v40  ;;  %v3798_v10 = vld [vmem:[#allocation18 + $0x8d8] sm:$0xff] }
 0x3fd   : > { %4161 = vmatprep.subr.bf16.mxu0 %v12279_v45  ;;  %4202 = vmatprep.subr.bf16.mxu1 %v12281_v30  ;;  %v3813_v45 = vld [vmem:[#allocation18 + $0x950] sm:$0xff]  ;;  %v3802_v12 = vld [vmem:[#allocation18 + $0x8f8] sm:$0xff] }
 0x3fe   : > { %v3817_v30 = vld [vmem:[#allocation18 + $0x970] sm:$0xff]  ;;  %v3790_v19 = vld [vmem:[#allocation18 + $0x898] sm:$0xff]  ;;  %v12276_v27 = vcombine.low %v3798_v10, %v3802_v12 }
 0x3ff   : > { %v12291_v58 = vcombine.high %v3813_v45, %v3817_v30  ;;  %v12290_v2 = vcombine.low %v3813_v45, %v3817_v30  ;;  %v3794_v21 = vld [vmem:[#allocation18 + $0x8b8] sm:$0xff] }
 0x400   : > { %4162 = vmatpush1.bf16.msra.mxu0 %v12278_v48  ;;  %4203 = vmatpush1.bf16.msra.mxu1 %v12280_v49  ;;  %v12298_v48 = vcombine.low %v3821_v37, %v3825_v39  ;;  %v3782_v37 = vld [vmem:[#allocation18 + $0x858] sm:$0xff] }
 0x401   : > { %4163 = vmatprep.subr.bf16.mxu0 %v12271_v51  ;;  %4204 = vmatprep.subr.bf16.mxu1 %v12273_v50  ;;  %v12300_v50 = vcombine.low %v3822_v61, %v3826_v40  ;;  %v3786_v39 = vld [vmem:[#allocation18 + $0x878] sm:$0xff]  ;;  %v12268_v40 = vcombine.low %v3790_v19, %v3794_v21 }
 0x402   : > { %v3774_v45 = vld [vmem:[#allocation18 + $0x818] sm:$0xff]  ;;  %v12260_v32 = vcombine.low %v3782_v37, %v3786_v39 }
 0x403   : > { %v3778_v30 = vld [vmem:[#allocation18 + $0x838] sm:$0xff] }
 0x404   : > { %4164 = vmatpush1.bf16.msra.mxu0 %v12270_v1  ;;  %4205 = vmatpush1.bf16.msra.mxu1 %v12272_v54  ;;  %v3805_v1 = vld [vmem:[#allocation18 + $0x910] sm:$0xff] }
 0x405   : > { %4165 = vmatprep.subr.bf16.mxu0 %v12263_v62  ;;  %4206 = vmatprep.subr.bf16.mxu1 %v12265_v0  ;;  %v3806_v0 = vld [vmem:[#allocation18 + $0x918] sm:$0xff] }
 0x408   : > { %4166 = vmatpush1.bf16.msra.mxu0 %v12262_v63  ;;  %4207 = vmatpush1.bf16.msra.mxu1 %v12264_v6 }
 0x409   : > { %4167 = vmatprep.subr.bf16.mxu0 %v12255_v7  ;;  %4208 = vmatprep.subr.bf16.mxu1 %v12257_v9  ;;  %v3797_v7 = vld [vmem:[#allocation18 + $0x8d0] sm:$0xff] }
 0x40a   : > { %v3801_v9 = vld [vmem:[#allocation18 + $0x8f0] sm:$0xff] }
 0x40b   : > { %v12274_v26 = vcombine.low %v3797_v7, %v3801_v9 }
 0x40c   : > { %4168 = vmatpush1.bf16.msra.mxu0 %v12254_v38  ;;  %4209 = vmatpush1.bf16.msra.mxu1 %v12256_v15  ;;  %v12275_v38 = vcombine.high %v3797_v7, %v3801_v9  ;;  %v12277_v15 = vcombine.high %v3798_v10, %v3802_v12  ;;  %v4369_v7 = vld [vmem:[#allocation18 + $0xb48] sm:$0xff] }
 0x40d   : > { %4169 = vmatprep.subr.bf16.mxu0 %v12247_v16  ;;  %4210 = vmatprep.subr.bf16.mxu1 %v12249_v18  ;;  %v3789_v16 = vld [vmem:[#allocation18 + $0x890] sm:$0xff]  ;;  %v4373_v9 = vld [vmem:[#allocation18 + $0xb68] sm:$0xff] }
 0x40e   : > { %v3793_v18 = vld [vmem:[#allocation18 + $0x8b0] sm:$0xff] }
 0x40f   : > { %v12266_v61 = vcombine.low %v3789_v16, %v3793_v18 }
 0x410   : > { %4170 = vmatpush1.bf16.msra.mxu0 %v12246_v33  ;;  %4211 = vmatpush1.bf16.msra.mxu1 %v12248_v34  ;;  %v12267_v33 = vcombine.high %v3789_v16, %v3793_v18  ;;  %v12269_v34 = vcombine.high %v3790_v19, %v3794_v21  ;;  %v12353_v21 = vcombine.high %v4369_v7, %v4373_v9 }
 0x411   : > { %4237 = vmatprep.subr.bf16.mxu0 %v12307_v35  ;;  %4278 = vmatprep.subr.bf16.mxu1 %v12309_v36  ;;  %v3781_v35 = vld [vmem:[#allocation18 + $0x850] sm:$0xff] }
 0x412   : > { %v3785_v36 = vld [vmem:[#allocation18 + $0x870] sm:$0xff] }
 0x413   : > { %v2523_v46 = vpop.f32.mrf.mxu0  ;;  %v2564_v47 = vpop.f32.mrf.mxu1  ;;  %4188 = vmatmul.mubr.bf16.vlgmr.msra.gmra.mxu0 %v15415_v17  ;;  %4229 = vmatmul.mubr.bf16.vlgmr.msra.gmra.mxu1 %v15415_v17  ;;  %v12258_v31 = vcombine.low %v3781_v35, %v3785_v36 }
 0x414   : > { %v15500_v49 = vadd.f32 %v2523_v46, %v15475_v4  ;;  %v15503_v51 = vadd.f32 %v2564_v47, %v15477_v55  ;;  %4238 = vmatpush1.bf16.msra.mxu0 %v12306_v41  ;;  %4279 = vmatpush1.bf16.msra.mxu1 %v12308_v42  ;;  %v3809_v4 = vld [vmem:[#allocation18 + $0x930] sm:$0xff]  ;;  %v3810_v55 = vld [vmem:[#allocation18 + $0x938] sm:$0xff]  ;;  %v12259_v41 = vcombine.high %v3781_v35, %v3785_v36 }
 0x415   : > { %v2525_v53 = vpop.f32.mrf.mxu0  ;;  %v2566_v57 = vpop.f32.mrf.mxu1  ;;  %4239 = vmatprep.subr.bf16.mxu0 %v12299_v43  ;;  %4280 = vmatprep.subr.bf16.mxu1 %v12301_v44  ;;  %v12282_v13 = vcombine.low %v3805_v1, %v3809_v4  ;;  %v12284_v14 = vcombine.low %v3806_v0, %v3810_v55  ;;  %v12261_v42 = vcombine.high %v3782_v37, %v3786_v39  ;;  %v3773_v43 = vld [vmem:[#allocation18 + $0x810] sm:$0xff] }
 0x416   : > { %v15506_v54 = vadd.f32 %v2525_v53, %v15479_v8  ;;  %v15509_v62 = vadd.f32 %v2566_v57, %v15481_v5  ;;  %4269 = vmatprep.mubr.bf16.mxu0 %v14785_v20  ;;  %4310 = vmatprep.mubr.bf16.mxu1 %v14785_v20  ;;  %v12283_v8 = vcombine.high %v3805_v1, %v3809_v4  ;;  %v3777_v44 = vld [vmem:[#allocation18 + $0x830] sm:$0xff]  ;;  %v4385_v53 = vld [vmem:[#allocation18 + $0xbc8] sm:$0xff] }
 0x417   : > { %v2527_v60 = vpop.f32.mrf.mxu0  ;;  %v2568_v56 = vpop.f32.mrf.mxu1  ;;  %v12285_v5 = vcombine.high %v3806_v0, %v3810_v55  ;;  %v12251_v46 = vcombine.high %v3773_v43, %v3777_v44  ;;  %v12253_v47 = vcombine.high %v3774_v45, %v3778_v30  ;;  %v4389_v57 = vld [vmem:[#allocation18 + $0xbe8] sm:$0xff]  ;;  %v4376_v0 = vld [vmem:[#allocation18 + $0xb80] sm:$0xff]  ;;  %v12352_v39 = vcombine.low %v4369_v7, %v4373_v9 }
 0x418   : > { %4240 = vmatpush1.bf16.msra.mxu0 %v12298_v48  ;;  %4281 = vmatpush1.bf16.msra.mxu1 %v12300_v50  ;;  %v4384_v48 = vld [vmem:[#allocation18 + $0xbc0] sm:$0xff]  ;;  %v12369_v4 = vcombine.high %v4385_v53, %v4389_v57  ;;  %v4377_v60 = vld [vmem:[#allocation18 + $0xb88] sm:$0xff] }
 0x419   : > { %v2528_v63 = vpop.f32.mrf.mxu0  ;;  %v2569_v6 = vpop.f32.mrf.mxu1  ;;  %4241 = vmatprep.subr.bf16.mxu0 %v12291_v58  ;;  %4282 = vmatprep.subr.bf16.mxu1 %v12293_v59  ;;  %v4388_v50 = vld [vmem:[#allocation18 + $0xbe0] sm:$0xff]  ;;  %v12250_v58 = vcombine.low %v3773_v43, %v3777_v44  ;;  %v12252_v59 = vcombine.low %v3774_v45, %v3778_v30  ;;  %v4381_v56 = vld [vmem:[#allocation18 + $0xba8] sm:$0xff] }
 0x41a   : > { %v12367_v1 = vcombine.high %v4384_v48, %v4388_v50  ;;  %v4380_v55 = vld [vmem:[#allocation18 + $0xba0] sm:$0xff]  ;;  %v12361_v6 = vcombine.high %v4377_v60, %v4381_v56  ;;  %v4353_v43 = vld [vmem:[#allocation18 + $0xac8] sm:$0xff] }
 0x41b   : > { %v12359_v63 = vcombine.high %v4376_v0, %v4380_v55  ;;  %v4357_v44 = vld [vmem:[#allocation18 + $0xae8] sm:$0xff] }
 0x41c   : > { %4242 = vmatpush1.bf16.msra.mxu0 %v12290_v2  ;;  %4283 = vmatpush1.bf16.msra.mxu1 %v12292_v11  ;;  %v12366_v2 = vcombine.low %v4384_v48, %v4388_v50  ;;  %v12368_v11 = vcombine.low %v4385_v53, %v4389_v57  ;;  %v4345_v48 = vld [vmem:[#allocation18 + $0xa88] sm:$0xff]  ;;  %v12336_v57 = vcombine.low %v4353_v43, %v4357_v44 }
 0x41d   : > { %4243 = vmatprep.subr.bf16.mxu0 %v12283_v8  ;;  %4284 = vmatprep.subr.bf16.mxu1 %v12285_v5  ;;  %v4368_v8 = vld [vmem:[#allocation18 + $0xb40] sm:$0xff]  ;;  %v4349_v50 = vld [vmem:[#allocation18 + $0xaa8] sm:$0xff] }
 0x41e   : > { %v4372_v5 = vld [vmem:[#allocation18 + $0xb60] sm:$0xff] }
 0x41f   : > { %v12351_v19 = vcombine.high %v4368_v8, %v4372_v5  ;;  %v12350_v37 = vcombine.low %v4368_v8, %v4372_v5  ;;  %v4329_v8 = vld [vmem:[#allocation18 + $0xa08] sm:$0xff] }
 0x420   : > { %4244 = vmatpush1.bf16.msra.mxu0 %v12282_v13  ;;  %4285 = vmatpush1.bf16.msra.mxu1 %v12284_v14  ;;  %v12358_v13 = vcombine.low %v4376_v0, %v4380_v55  ;;  %v4337_v0 = vld [vmem:[#allocation18 + $0xa48] sm:$0xff] }
 0x421   : > { %4245 = vmatprep.subr.bf16.mxu0 %v12275_v38  ;;  %4286 = vmatprep.subr.bf16.mxu1 %v12277_v15  ;;  %v12360_v15 = vcombine.low %v4377_v60, %v4381_v56  ;;  %v4341_v55 = vld [vmem:[#allocation18 + $0xa68] sm:$0xff]  ;;  %v12328_v56 = vcombine.low %v4345_v48, %v4349_v50 }
 0x422   : > { %v4333_v5 = vld [vmem:[#allocation18 + $0xa28] sm:$0xff]  ;;  %v12320_v9 = vcombine.low %v4337_v0, %v4341_v55 }
 0x424   : > { %4246 = vmatpush1.bf16.msra.mxu0 %v12274_v26  ;;  %4287 = vmatpush1.bf16.msra.mxu1 %v12276_v27  ;;  %v4360_v26 = vld [vmem:[#allocation18 + $0xb00] sm:$0xff] }
 0x425   : > { %4247 = vmatprep.subr.bf16.mxu0 %v12267_v33  ;;  %4288 = vmatprep.subr.bf16.mxu1 %v12269_v34  ;;  %v4361_v34 = vld [vmem:[#allocation18 + $0xb08] sm:$0xff] }
 0x428   : > { %4248 = vmatpush1.bf16.msra.mxu0 %v12266_v61  ;;  %4289 = vmatpush1.bf16.msra.mxu1 %v12268_v40 }
 0x429   : > { %4249 = vmatprep.subr.bf16.mxu0 %v12259_v41  ;;  %4290 = vmatprep.subr.bf16.mxu1 %v12261_v42  ;;  %v4352_v41 = vld [vmem:[#allocation18 + $0xac0] sm:$0xff] }
 0x42a   : > { %v4356_v42 = vld [vmem:[#allocation18 + $0xae0] sm:$0xff] }
 0x42b   : > { %v12334_v53 = vcombine.low %v4352_v41, %v4356_v42 }
 0x42c   : > { %4250 = vmatpush1.bf16.msra.mxu0 %v12258_v31  ;;  %4291 = vmatpush1.bf16.msra.mxu1 %v12260_v32  ;;  %v12335_v31 = vcombine.high %v4352_v41, %v4356_v42  ;;  %v12337_v32 = vcombine.high %v4353_v43, %v4357_v44  ;;  %v4374_v41 = vld [vmem:[#allocation18 + $0xb70] sm:$0xff]  ;;  %v4371_v42 = vld [vmem:[#allocation18 + $0xb58] sm:$0xff] }
 0x42d   : > { %4251 = vmatprep.subr.bf16.mxu0 %v12251_v46  ;;  %4292 = vmatprep.subr.bf16.mxu1 %v12253_v47  ;;  %v4344_v46 = vld [vmem:[#allocation18 + $0xa80] sm:$0xff]  ;;  %v4375_v43 = vld [vmem:[#allocation18 + $0xb78] sm:$0xff] }
 0x42e   : > { %v4348_v47 = vld [vmem:[#allocation18 + $0xaa0] sm:$0xff] }
 0x42f   : > { %v12326_v60 = vcombine.low %v4344_v46, %v4348_v47 }
 0x430   : > { %4252 = vmatpush1.bf16.msra.mxu0 %v12250_v58  ;;  %4293 = vmatpush1.bf16.msra.mxu1 %v12252_v59  ;;  %v12327_v58 = vcombine.high %v4344_v46, %v4348_v47  ;;  %v12329_v59 = vcombine.high %v4345_v48, %v4349_v50  ;;  %v12357_v50 = vcombine.high %v4371_v42, %v4375_v43 }
 0x431   : > { %4715 = vmatprep.subr.bf16.mxu0 %v12367_v1  ;;  %4756 = vmatprep.subr.bf16.mxu1 %v12369_v4  ;;  %v4336_v1 = vld [vmem:[#allocation18 + $0xa40] sm:$0xff] }
 0x432   : > { %v4340_v4 = vld [vmem:[#allocation18 + $0xa60] sm:$0xff] }
 0x433   : > { %v2605_v10 = vpop.f32.mrf.mxu0  ;;  %v2646_v12 = vpop.f32.mrf.mxu1  ;;  %4270 = vmatmul.mubr.bf16.vlgmr.msra.gmra.mxu0 %v15415_v17  ;;  %4311 = vmatmul.mubr.bf16.vlgmr.msra.gmra.mxu1 %v15415_v17  ;;  %v12318_v7 = vcombine.low %v4336_v1, %v4340_v4 }
 0x434   : > { %v15516_v14 = vadd.f32 %v2605_v10, %v15485_v22  ;;  %v15519_v38 = vadd.f32 %v2646_v12, %v15487_v24  ;;  %4716 = vmatpush1.bf16.msra.mxu0 %v12366_v2  ;;  %4757 = vmatpush1.bf16.msra.mxu1 %v12368_v11  ;;  %v4364_v22 = vld [vmem:[#allocation18 + $0xb20] sm:$0xff]  ;;  %v4365_v24 = vld [vmem:[#allocation18 + $0xb28] sm:$0xff]  ;;  %v12319_v2 = vcombine.high %v4336_v1, %v4340_v4 }
 0x435   : > { %v2607_v16 = vpop.f32.mrf.mxu0  ;;  %v2648_v18 = vpop.f32.mrf.mxu1  ;;  %4717 = vmatprep.subr.bf16.mxu0 %v12359_v63  ;;  %4758 = vmatprep.subr.bf16.mxu1 %v12361_v6  ;;  %v12342_v45 = vcombine.low %v4360_v26, %v4364_v22  ;;  %v12344_v30 = vcombine.low %v4361_v34, %v4365_v24  ;;  %v12321_v11 = vcombine.high %v4337_v0, %v4341_v55  ;;  %v4328_v63 = vld [vmem:[#allocation18 + $0xa00] sm:$0xff] }
 0x436   : > { %v15522_v27 = vadd.f32 %v2607_v16, %v15491_v28  ;;  %v15525_v33 = vadd.f32 %v2648_v18, %v15493_v29  ;;  %4747 = vmatprep.mubr.bf16.mxu0 %v14785_v20  ;;  %4788 = vmatprep.mubr.bf16.mxu1 %v14785_v20  ;;  %v12343_v28 = vcombine.high %v4360_v26, %v4364_v22  ;;  %v4332_v6 = vld [vmem:[#allocation18 + $0xa20] sm:$0xff]  ;;  %v4387_v16 = vld [vmem:[#allocation18 + $0xbd8] sm:$0xff] }
 0x437   : > { %v2609_v35 = vpop.f32.mrf.mxu0  ;;  %v2650_v36 = vpop.f32.mrf.mxu1  ;;  %v12345_v29 = vcombine.high %v4361_v34, %v4365_v24  ;;  %v12311_v10 = vcombine.high %v4328_v63, %v4332_v6  ;;  %v12313_v12 = vcombine.high %v4329_v8, %v4333_v5  ;;  %v4391_v18 = vld [vmem:[#allocation18 + $0xbf8] sm:$0xff]  ;;  %v4378_v34 = vld [vmem:[#allocation18 + $0xb90] sm:$0xff]  ;;  %v12356_v55 = vcombine.low %v4371_v42, %v4375_v43 }
 0x438   : > { %4718 = vmatpush1.bf16.msra.mxu0 %v12358_v13  ;;  %4759 = vmatpush1.bf16.msra.mxu1 %v12360_v15  ;;  %v4386_v13 = vld [vmem:[#allocation18 + $0xbd0] sm:$0xff]  ;;  %v12373_v22 = vcombine.high %v4387_v16, %v4391_v18  ;;  %v4379_v35 = vld [vmem:[#allocation18 + $0xb98] sm:$0xff] }
 0x439   : > { %v2610_v61 = vpop.f32.mrf.mxu0  ;;  %v2651_v40 = vpop.f32.mrf.mxu1  ;;  %4719 = vmatprep.subr.bf16.mxu0 %v12351_v19  ;;  %4760 = vmatprep.subr.bf16.mxu1 %v12353_v21  ;;  %v4390_v15 = vld [vmem:[#allocation18 + $0xbf0] sm:$0xff]  ;;  %v12310_v19 = vcombine.low %v4328_v63, %v4332_v6  ;;  %v12312_v21 = vcombine.low %v4329_v8, %v4333_v5  ;;  %v4383_v36 = vld [vmem:[#allocation18 + $0xbb8] sm:$0xff] }
 0x43a   : > { %v12371_v26 = vcombine.high %v4386_v13, %v4390_v15  ;;  %v4382_v24 = vld [vmem:[#allocation18 + $0xbb0] sm:$0xff]  ;;  %v15530_v61 = vrot.slane %v15415_v17, 4  ;;  %v4355_v63 = vld [vmem:[#allocation18 + $0xad8] sm:$0xff] }
 0x43b   : > { %v12363_v40 = vcombine.high %v4378_v34, %v4382_v24  ;;  %v4359_v6 = vld [vmem:[#allocation18 + $0xaf8] sm:$0xff] }
 0x43c   : > { %4720 = vmatpush1.bf16.msra.mxu0 %v12350_v37  ;;  %4761 = vmatpush1.bf16.msra.mxu1 %v12352_v39  ;;  %v12370_v37 = vcombine.low %v4386_v13, %v4390_v15  ;;  %v12372_v39 = vcombine.low %v4387_v16, %v4391_v18  ;;  %v4347_v13 = vld [vmem:[#allocation18 + $0xa98] sm:$0xff]  ;;  %v12340_v18 = vcombine.low %v4355_v63, %v4359_v6 }
 0x43d   : > { %4721 = vmatprep.subr.bf16.mxu0 %v12343_v28  ;;  %4762 = vmatprep.subr.bf16.mxu1 %v12345_v29  ;;  %v12365_v28 = vcombine.high %v4379_v35, %v4383_v36  ;;  %v4370_v29 = vld [vmem:[#allocation18 + $0xb50] sm:$0xff]  ;;  %v4351_v15 = vld [vmem:[#allocation18 + $0xab8] sm:$0xff] }
 0x43e   : > { %v12355_v48 = vcombine.high %v4370_v29, %v4374_v41  ;;  %v12354_v0 = vcombine.low %v4370_v29, %v4374_v41  ;;  %v4331_v29 = vld [vmem:[#allocation18 + $0xa18] sm:$0xff] }
 0x43f   : > { %v4335_v41 = vld [vmem:[#allocation18 + $0xa38] sm:$0xff] }
 0x440   : > { %4722 = vmatpush1.bf16.msra.mxu0 %v12342_v45  ;;  %4763 = vmatpush1.bf16.msra.mxu1 %v12344_v30  ;;  %v12362_v30 = vcombine.low %v4378_v34, %v4382_v24  ;;  %v4339_v34 = vld [vmem:[#allocation18 + $0xa58] sm:$0xff] }
 0x441   : > { %4723 = vmatprep.subr.bf16.mxu0 %v12335_v31  ;;  %4764 = vmatprep.subr.bf16.mxu1 %v12337_v32  ;;  %v12364_v32 = vcombine.low %v4379_v35, %v4383_v36  ;;  %v4343_v24 = vld [vmem:[#allocation18 + $0xa78] sm:$0xff]  ;;  %v12332_v36 = vcombine.low %v4347_v13, %v4351_v15 }
 0x442   : > { %v12324_v43 = vcombine.low %v4339_v34, %v4343_v24 }
 0x444   : > { %4724 = vmatpush1.bf16.msra.mxu0 %v12334_v53  ;;  %4765 = vmatpush1.bf16.msra.mxu1 %v12336_v57  ;;  %v4362_v53 = vld [vmem:[#allocation18 + $0xb10] sm:$0xff] }
 0x445   : > { %4725 = vmatprep.subr.bf16.mxu0 %v12327_v58  ;;  %4766 = vmatprep.subr.bf16.mxu1 %v12329_v59  ;;  %v4363_v59 = vld [vmem:[#allocation18 + $0xb18] sm:$0xff] }
 0x448   : > { %4726 = vmatpush1.bf16.msra.mxu0 %v12326_v60  ;;  %4767 = vmatpush1.bf16.msra.mxu1 %v12328_v56 }
 0x449   : > { %4727 = vmatprep.subr.bf16.mxu0 %v12319_v2  ;;  %4768 = vmatprep.subr.bf16.mxu1 %v12321_v11  ;;  %v4354_v2 = vld [vmem:[#allocation18 + $0xad0] sm:$0xff] }
 0x44a   : > { %v4358_v11 = vld [vmem:[#allocation18 + $0xaf0] sm:$0xff] }
 0x44b   : > { %v12338_v16 = vcombine.low %v4354_v2, %v4358_v11 }
 0x44c   : > { %4728 = vmatpush1.bf16.msra.mxu0 %v12318_v7  ;;  %4769 = vmatpush1.bf16.msra.mxu1 %v12320_v9  ;;  %v12339_v7 = vcombine.high %v4354_v2, %v4358_v11  ;;  %v12341_v9 = vcombine.high %v4355_v63, %v4359_v6  ;;  %v4929_v2 = vld [vmem:[#allocation18 + $0xd48] sm:$0xff] }
 0x44d   : > { %4729 = vmatprep.subr.bf16.mxu0 %v12311_v10  ;;  %4770 = vmatprep.subr.bf16.mxu1 %v12313_v12  ;;  %v4346_v10 = vld [vmem:[#allocation18 + $0xa90] sm:$0xff]  ;;  %v4933_v11 = vld [vmem:[#allocation18 + $0xd68] sm:$0xff] }
 0x44e   : > { %v4350_v12 = vld [vmem:[#allocation18 + $0xab0] sm:$0xff] }
 0x44f   : > { %v12330_v35 = vcombine.low %v4346_v10, %v4350_v12 }
 0x450   : > { %4730 = vmatpush1.bf16.msra.mxu0 %v12310_v19  ;;  %4771 = vmatpush1.bf16.msra.mxu1 %v12312_v21  ;;  %v12331_v19 = vcombine.high %v4346_v10, %v4350_v12  ;;  %v12333_v21 = vcombine.high %v4347_v13, %v4351_v15  ;;  %v12417_v15 = vcombine.high %v4929_v2, %v4933_v11 }
 0x451   : > { %4797 = vmatprep.subr.bf16.mxu0 %v12371_v26  ;;  %4838 = vmatprep.subr.bf16.mxu1 %v12373_v22  ;;  %v4338_v26 = vld [vmem:[#allocation18 + $0xa50] sm:$0xff] }
 0x452   : > { %v4342_v22 = vld [vmem:[#allocation18 + $0xa70] sm:$0xff] }
 0x453   : > { %v3072_v44 = vpop.f32.mrf.mxu0  ;;  %v3113_v45 = vpop.f32.mrf.mxu1  ;;  %4748 = vmatmul.mubr.bf16.vlgmr.msra.gmra.mxu0 %v15530_v61  ;;  %4789 = vmatmul.mubr.bf16.vlgmr.msra.gmra.mxu1 %v15530_v61  ;;  %v12322_v42 = vcombine.low %v4338_v26, %v4342_v22 }
 0x454   : > { %v15535_v31 = vadd.f32 %v3072_v44, %v15500_v49  ;;  %v15538_v17 = vadd.f32 %v3113_v45, %v15503_v51  ;;  %4798 = vmatpush1.bf16.msra.mxu0 %v12370_v37  ;;  %4839 = vmatpush1.bf16.msra.mxu1 %v12372_v39  ;;  %v4366_v49 = vld [vmem:[#allocation18 + $0xb30] sm:$0xff]  ;;  %v4367_v51 = vld [vmem:[#allocation18 + $0xb38] sm:$0xff]  ;;  %v12323_v37 = vcombine.high %v4338_v26, %v4342_v22 }
 0x455   : > { %v3074_v46 = vpop.f32.mrf.mxu0  ;;  %v3115_v47 = vpop.f32.mrf.mxu1  ;;  %4799 = vmatprep.subr.bf16.mxu0 %v12363_v40  ;;  %4840 = vmatprep.subr.bf16.mxu1 %v12365_v28  ;;  %v12346_v8 = vcombine.low %v4362_v53, %v4366_v49  ;;  %v12348_v5 = vcombine.low %v4363_v59, %v4367_v51  ;;  %v12325_v39 = vcombine.high %v4339_v34, %v4343_v24  ;;  %v4330_v40 = vld [vmem:[#allocation18 + $0xa10] sm:$0xff] }
 0x456   : > { %v15541_v57 = vadd.f32 %v3074_v46, %v15506_v54  ;;  %v15544_v58 = vadd.f32 %v3115_v47, %v15509_v62  ;;  %4829 = vmatprep.mubr.bf16.mxu0 %v14785_v20  ;;  %4870 = vmatprep.mubr.bf16.mxu1 %v14785_v20  ;;  %v12347_v54 = vcombine.high %v4362_v53, %v4366_v49  ;;  %v4334_v28 = vld [vmem:[#allocation18 + $0xa30] sm:$0xff]  ;;  %v4945_v46 = vld [vmem:[#allocation18 + $0xdc8] sm:$0xff] }
 0x457   : > { %v3076_v1 = vpop.f32.mrf.mxu0  ;;  %v3117_v4 = vpop.f32.mrf.mxu1  ;;  %v12349_v62 = vcombine.high %v4363_v59, %v4367_v51  ;;  %v12315_v44 = vcombine.high %v4330_v40, %v4334_v28  ;;  %v12317_v45 = vcombine.high %v4331_v29, %v4335_v41  ;;  %v4949_v47 = vld [vmem:[#allocation18 + $0xde8] sm:$0xff]  ;;  %v4936_v59 = vld [vmem:[#allocation18 + $0xd80] sm:$0xff]  ;;  %v12416_v34 = vcombine.low %v4929_v2, %v4933_v11 }
 0x458   : > { %4800 = vmatpush1.bf16.msra.mxu0 %v12362_v30  ;;  %4841 = vmatpush1.bf16.msra.mxu1 %v12364_v32  ;;  %v4944_v30 = vld [vmem:[#allocation18 + $0xdc0] sm:$0xff]  ;;  %v12433_v49 = vcombine.high %v4945_v46, %v4949_v47  ;;  %v4937_v1 = vld [vmem:[#allocation18 + $0xd88] sm:$0xff] }
 0x459   : > { %v3077_v60 = vpop.f32.mrf.mxu0  ;;  %v3118_v56 = vpop.f32.mrf.mxu1  ;;  %4801 = vmatprep.subr.bf16.mxu0 %v12355_v48  ;;  %4842 = vmatprep.subr.bf16.mxu1 %v12357_v50  ;;  %v4948_v32 = vld [vmem:[#allocation18 + $0xde0] sm:$0xff]  ;;  %v12314_v48 = vcombine.low %v4330_v40, %v4334_v28  ;;  %v12316_v50 = vcombine.low %v4331_v29, %v4335_v41  ;;  %v4941_v4 = vld [vmem:[#allocation18 + $0xda8] sm:$0xff] }
 0x45a   : > { %v12431_v53 = vcombine.high %v4944_v30, %v4948_v32  ;;  %v4940_v51 = vld [vmem:[#allocation18 + $0xda0] sm:$0xff]  ;;  %v12425_v56 = vcombine.high %v4937_v1, %v4941_v4  ;;  %v4917_v40 = vld [vmem:[#allocation18 + $0xce8] sm:$0xff] }
 0x45b   : > { %v12423_v60 = vcombine.high %v4936_v59, %v4940_v51 }
 0x45c   : > { %4802 = vmatpush1.bf16.msra.mxu0 %v12354_v0  ;;  %4843 = vmatpush1.bf16.msra.mxu1 %v12356_v55  ;;  %v12430_v0 = vcombine.low %v4944_v30, %v4948_v32  ;;  %v12432_v55 = vcombine.low %v4945_v46, %v4949_v47  ;;  %v4909_v30 = vld [vmem:[#allocation18 + $0xca8] sm:$0xff] }
 0x45d   : > { %4803 = vmatprep.subr.bf16.mxu0 %v12347_v54  ;;  %4844 = vmatprep.subr.bf16.mxu1 %v12349_v62  ;;  %v4928_v54 = vld [vmem:[#allocation18 + $0xd40] sm:$0xff] }
 0x45e   : > { %v4932_v62 = vld [vmem:[#allocation18 + $0xd60] sm:$0xff] }
 0x45f   : > { %v12415_v13 = vcombine.high %v4928_v54, %v4932_v62  ;;  %v12414_v22 = vcombine.low %v4928_v54, %v4932_v62  ;;  %v4893_v54 = vld [vmem:[#allocation18 + $0xc28] sm:$0xff] }
 0x460   : > { %4804 = vmatpush1.bf16.msra.mxu0 %v12346_v8  ;;  %4845 = vmatpush1.bf16.msra.mxu1 %v12348_v5  ;;  %v12422_v8 = vcombine.low %v4936_v59, %v4940_v51  ;;  %v4901_v59 = vld [vmem:[#allocation18 + $0xc68] sm:$0xff] }
 0x461   : > { %4805 = vmatprep.subr.bf16.mxu0 %v12339_v7  ;;  %4846 = vmatprep.subr.bf16.mxu1 %v12341_v9  ;;  %v12424_v9 = vcombine.low %v4937_v1, %v4941_v4 }
 0x464   : > { %4806 = vmatpush1.bf16.msra.mxu0 %v12338_v16  ;;  %4847 = vmatpush1.bf16.msra.mxu1 %v12340_v18  ;;  %v4920_v16 = vld [vmem:[#allocation18 + $0xd00] sm:$0xff] }
 0x465   : > { %4807 = vmatprep.subr.bf16.mxu0 %v12331_v19  ;;  %4848 = vmatprep.subr.bf16.mxu1 %v12333_v21  ;;  %v4921_v19 = vld [vmem:[#allocation18 + $0xd08] sm:$0xff] }
 0x468   : > { %4808 = vmatpush1.bf16.msra.mxu0 %v12330_v35  ;;  %4849 = vmatpush1.bf16.msra.mxu1 %v12332_v36  ;;  %v4912_v36 = vld [vmem:[#allocation18 + $0xcc0] sm:$0xff] }
 0x469   : > { %4809 = vmatprep.subr.bf16.mxu0 %v12323_v37  ;;  %4850 = vmatprep.subr.bf16.mxu1 %v12325_v39  ;;  %v4916_v37 = vld [vmem:[#allocation18 + $0xce0] sm:$0xff]  ;;  %v4913_v39 = vld [vmem:[#allocation18 + $0xcc8] sm:$0xff] }
 0x46a   : > { %v12399_v41 = vcombine.high %v4912_v36, %v4916_v37  ;;  %v12398_v32 = vcombine.low %v4912_v36, %v4916_v37  ;;  %v12400_v46 = vcombine.low %v4913_v39, %v4917_v40  ;;  %v4935_v36 = vld [vmem:[#allocation18 + $0xd78] sm:$0xff] }
 0x46c   : > { %4810 = vmatpush1.bf16.msra.mxu0 %v12322_v42  ;;  %4851 = vmatpush1.bf16.msra.mxu1 %v12324_v43  ;;  %v12401_v42 = vcombine.high %v4913_v39, %v4917_v40  ;;  %v4904_v43 = vld [vmem:[#allocation18 + $0xc80] sm:$0xff] }
 0x46d   : > { %4811 = vmatprep.subr.bf16.mxu0 %v12315_v44  ;;  %4852 = vmatprep.subr.bf16.mxu1 %v12317_v45  ;;  %v4908_v44 = vld [vmem:[#allocation18 + $0xca0] sm:$0xff]  ;;  %v4905_v45 = vld [vmem:[#allocation18 + $0xc88] sm:$0xff] }
 0x46e   : > { %v12391_v47 = vcombine.high %v4904_v43, %v4908_v44  ;;  %v12390_v51 = vcombine.low %v4904_v43, %v4908_v44  ;;  %v12392_v1 = vcombine.low %v4905_v45, %v4909_v30 }
 0x470   : > { %4812 = vmatpush1.bf16.msra.mxu0 %v12314_v48  ;;  %4853 = vmatpush1.bf16.msra.mxu1 %v12316_v50  ;;  %v12393_v48 = vcombine.high %v4905_v45, %v4909_v30  ;;  %v4896_v50 = vld [vmem:[#allocation18 + $0xc40] sm:$0xff]  ;;  %v4922_v30 = vld [vmem:[#allocation18 + $0xd10] sm:$0xff] }
 0x471   : > { %5272 = vmatprep.subr.bf16.mxu0 %v12431_v53  ;;  %5313 = vmatprep.subr.bf16.mxu1 %v12433_v49  ;;  %v4900_v53 = vld [vmem:[#allocation18 + $0xc60] sm:$0xff]  ;;  %v4897_v49 = vld [vmem:[#allocation18 + $0xc48] sm:$0xff] }
 0x472   : > { %v12383_v4 = vcombine.high %v4896_v50, %v4900_v53  ;;  %v12382_v62 = vcombine.low %v4896_v50, %v4900_v53  ;;  %v12384_v2 = vcombine.low %v4897_v49, %v4901_v59 }
 0x473   : > { %v3154_v63 = vpop.f32.mrf.mxu0  ;;  %v3195_v6 = vpop.f32.mrf.mxu1  ;;  %4830 = vmatmul.mubr.bf16.vlgmr.msra.gmra.mxu0 %v15530_v61  ;;  %4871 = vmatmul.mubr.bf16.vlgmr.msra.gmra.mxu1 %v15530_v61 }
 0x474   : > { %v15551_v5 = vadd.f32 %v3154_v63, %v15516_v14  ;;  %v15554_v7 = vadd.f32 %v3195_v6, %v15519_v38  ;;  %5273 = vmatpush1.bf16.msra.mxu0 %v12430_v0  ;;  %5314 = vmatpush1.bf16.msra.mxu1 %v12432_v55  ;;  %v4924_v14 = vld [vmem:[#allocation18 + $0xd20] sm:$0xff]  ;;  %v4925_v38 = vld [vmem:[#allocation18 + $0xd28] sm:$0xff]  ;;  %v12385_v0 = vcombine.high %v4897_v49, %v4901_v59  ;;  %v4946_v6 = vld [vmem:[#allocation18 + $0xdd0] sm:$0xff] }
 0x475   : > { %v3156_v10 = vpop.f32.mrf.mxu0  ;;  %v3197_v12 = vpop.f32.mrf.mxu1  ;;  %5274 = vmatprep.subr.bf16.mxu0 %v12423_v60  ;;  %5315 = vmatprep.subr.bf16.mxu1 %v12425_v56  ;;  %v12406_v28 = vcombine.low %v4920_v16, %v4924_v14  ;;  %v12408_v29 = vcombine.low %v4921_v19, %v4925_v38  ;;  %v4888_v55 = vld [vmem:[#allocation18 + $0xc00] sm:$0xff]  ;;  %v4889_v56 = vld [vmem:[#allocation18 + $0xc08] sm:$0xff] }
 0x476   : > { %v15557_v18 = vadd.f32 %v3156_v10, %v15522_v27  ;;  %v15560_v61 = vadd.f32 %v3197_v12, %v15525_v33  ;;  %5304 = vmatprep.mubr.bf16.mxu0 %v14785_v20  ;;  %5345 = vmatprep.mubr.bf16.mxu1 %v14785_v20  ;;  %v12407_v27 = vcombine.high %v4920_v16, %v4924_v14  ;;  %v4892_v60 = vld [vmem:[#allocation18 + $0xc20] sm:$0xff]  ;;  %v4951_v10 = vld [vmem:[#allocation18 + $0xdf8] sm:$0xff]  ;;  %v4938_v14 = vld [vmem:[#allocation18 + $0xd90] sm:$0xff] }
 0x477   : > { %v3158_v21 = vpop.f32.mrf.mxu0  ;;  %v3199_v26 = vpop.f32.mrf.mxu1  ;;  %v12409_v33 = vcombine.high %v4921_v19, %v4925_v38  ;;  %v12375_v11 = vcombine.high %v4888_v55, %v4892_v60  ;;  %v12377_v63 = vcombine.high %v4889_v56, %v4893_v54  ;;  %v12374_v12 = vcombine.low %v4888_v55, %v4892_v60  ;;  %v4942_v19 = vld [vmem:[#allocation18 + $0xdb0] sm:$0xff]  ;;  %v4939_v38 = vld [vmem:[#allocation18 + $0xd98] sm:$0xff] }
 0x478   : > { %5275 = vmatpush1.bf16.msra.mxu0 %v12422_v8  ;;  %5316 = vmatpush1.bf16.msra.mxu1 %v12424_v9  ;;  %v4950_v8 = vld [vmem:[#allocation18 + $0xdf0] sm:$0xff]  ;;  %v4947_v9 = vld [vmem:[#allocation18 + $0xdd8] sm:$0xff]  ;;  %v12426_v40 = vcombine.low %v4938_v14, %v4942_v19 }
 0x479   : > { %v3159_v24 = vpop.f32.mrf.mxu0  ;;  %v3200_v35 = vpop.f32.mrf.mxu1  ;;  %5276 = vmatprep.subr.bf16.mxu0 %v12415_v13  ;;  %5317 = vmatprep.subr.bf16.mxu1 %v12417_v15  ;;  %v12376_v13 = vcombine.low %v4889_v56, %v4893_v54  ;;  %v12435_v15 = vcombine.high %v4946_v6, %v4950_v8  ;;  %v12437_v16 = vcombine.high %v4947_v9, %v4951_v10  ;;  %v4943_v21 = vld [vmem:[#allocation18 + $0xdb8] sm:$0xff] }
 0x47a   : > { %v12434_v26 = vcombine.low %v4946_v6, %v4950_v8  ;;  %v12429_v24 = vcombine.high %v4939_v38, %v4943_v21  ;;  %v4930_v35 = vld [vmem:[#allocation18 + $0xd50] sm:$0xff]  ;;  %v4919_v55 = vld [vmem:[#allocation18 + $0xcf8] sm:$0xff] }
 0x47b   : > { %v4911_v6 = vld [vmem:[#allocation18 + $0xcb8] sm:$0xff] }
 0x47c   : > { %5277 = vmatpush1.bf16.msra.mxu0 %v12414_v22  ;;  %5318 = vmatpush1.bf16.msra.mxu1 %v12416_v34  ;;  %v12436_v22 = vcombine.low %v4947_v9, %v4951_v10  ;;  %v12427_v34 = vcombine.high %v4938_v14, %v4942_v19  ;;  %v4903_v14 = vld [vmem:[#allocation18 + $0xc78] sm:$0xff] }
 0x47d   : > { %5278 = vmatprep.subr.bf16.mxu0 %v12407_v27  ;;  %5319 = vmatprep.subr.bf16.mxu1 %v12409_v33  ;;  %v4934_v27 = vld [vmem:[#allocation18 + $0xd70] sm:$0xff]  ;;  %v4931_v33 = vld [vmem:[#allocation18 + $0xd58] sm:$0xff] }
 0x47e   : > { %v12419_v44 = vcombine.high %v4930_v35, %v4934_v27  ;;  %v12421_v45 = vcombine.high %v4931_v33, %v4935_v36  ;;  %v12418_v53 = vcombine.low %v4930_v35, %v4934_v27  ;;  %v12420_v49 = vcombine.low %v4931_v33, %v4935_v36  ;;  %v4895_v35 = vld [vmem:[#allocation18 + $0xc38] sm:$0xff] }
 0x480   : > { %5279 = vmatpush1.bf16.msra.mxu0 %v12406_v28  ;;  %5320 = vmatpush1.bf16.msra.mxu1 %v12408_v29 }
 0x481   : > { %5280 = vmatprep.subr.bf16.mxu0 %v12399_v41  ;;  %5321 = vmatprep.subr.bf16.mxu1 %v12401_v42  ;;  %v12428_v41 = vcombine.low %v4939_v38, %v4943_v21 }
 0x484   : > { %5281 = vmatpush1.bf16.msra.mxu0 %v12398_v32  ;;  %5322 = vmatpush1.bf16.msra.mxu1 %v12400_v46 }
 0x485   : > { %5282 = vmatprep.subr.bf16.mxu0 %v12391_v47  ;;  %5323 = vmatprep.subr.bf16.mxu1 %v12393_v48  ;;  %v4923_v47 = vld [vmem:[#allocation18 + $0xd18] sm:$0xff] }
 0x488   : > { %5283 = vmatpush1.bf16.msra.mxu0 %v12390_v51  ;;  %5324 = vmatpush1.bf16.msra.mxu1 %v12392_v1  ;;  %v4914_v1 = vld [vmem:[#allocation18 + $0xcd0] sm:$0xff] }
 0x489   : > { %5284 = vmatprep.subr.bf16.mxu0 %v12383_v4  ;;  %5325 = vmatprep.subr.bf16.mxu1 %v12385_v0  ;;  %v4918_v4 = vld [vmem:[#allocation18 + $0xcf0] sm:$0xff]  ;;  %v4915_v0 = vld [vmem:[#allocation18 + $0xcd8] sm:$0xff] }
 0x48a   : > { %v12403_v54 = vcombine.high %v4914_v1, %v4918_v4  ;;  %v12402_v8 = vcombine.low %v4914_v1, %v4918_v4  ;;  %v12404_v9 = vcombine.low %v4915_v0, %v4919_v55  ;;  %v5490_v1 = vld [vmem:[#allocation18 + $0xf68] sm:$0xff] }
 0x48c   : > { %5285 = vmatpush1.bf16.msra.mxu0 %v12382_v62  ;;  %5326 = vmatpush1.bf16.msra.mxu1 %v12384_v2  ;;  %v12405_v62 = vcombine.high %v4915_v0, %v4919_v55  ;;  %v4906_v2 = vld [vmem:[#allocation18 + $0xc90] sm:$0xff] }
 0x48d   : > { %5286 = vmatprep.subr.bf16.mxu0 %v12375_v11  ;;  %5327 = vmatprep.subr.bf16.mxu1 %v12377_v63  ;;  %v4910_v11 = vld [vmem:[#allocation18 + $0xcb0] sm:$0xff]  ;;  %v4907_v63 = vld [vmem:[#allocation18 + $0xc98] sm:$0xff] }
 0x48e   : > { %v12395_v10 = vcombine.high %v4906_v2, %v4910_v11  ;;  %v12394_v19 = vcombine.low %v4906_v2, %v4910_v11  ;;  %v12396_v38 = vcombine.low %v4907_v63, %v4911_v6 }
 0x490   : > { %5287 = vmatpush1.bf16.msra.mxu0 %v12374_v12  ;;  %5328 = vmatpush1.bf16.msra.mxu1 %v12376_v13  ;;  %v12397_v12 = vcombine.high %v4907_v63, %v4911_v6  ;;  %v4898_v13 = vld [vmem:[#allocation18 + $0xc50] sm:$0xff]  ;;  %v5477_v6 = vld [vmem:[#allocation18 + $0xf00] sm:$0xff] }
 0x491   : > { %5354 = vmatprep.subr.bf16.mxu0 %v12435_v15  ;;  %5395 = vmatprep.subr.bf16.mxu1 %v12437_v16  ;;  %v4902_v15 = vld [vmem:[#allocation18 + $0xc70] sm:$0xff]  ;;  %v4899_v16 = vld [vmem:[#allocation18 + $0xc58] sm:$0xff] }
 0x492   : > { %v12387_v21 = vcombine.high %v4898_v13, %v4902_v15  ;;  %v12386_v27 = vcombine.low %v4898_v13, %v4902_v15  ;;  %v12388_v33 = vcombine.low %v4899_v16, %v4903_v14 }
 0x493   : > { %v3632_v37 = vpop.f32.mrf.mxu0  ;;  %v3673_v39 = vpop.f32.mrf.mxu1  ;;  %5305 = vmatmul.mubr.bf16.vlgmr.msra.gmra.mxu0 %v15425_v52  ;;  %5346 = vmatmul.mubr.bf16.vlgmr.msra.gmra.mxu1 %v15425_v52 }
 0x494   : > { %v15567_v28 = vadd.f32 %v3632_v37, %v15535_v31  ;;  %v15570_v29 = vadd.f32 %v3673_v39, %v15538_v17  ;;  %5355 = vmatpush1.bf16.msra.mxu0 %v12434_v26  ;;  %5396 = vmatpush1.bf16.msra.mxu1 %v12436_v22  ;;  %v4926_v31 = vld [vmem:[#allocation18 + $0xd30] sm:$0xff]  ;;  %v4927_v17 = vld [vmem:[#allocation18 + $0xd38] sm:$0xff]  ;;  %v12389_v26 = vcombine.high %v4899_v16, %v4903_v14  ;;  %v5501_v39 = vld [vmem:[#allocation18 + $0xfc0] sm:$0xff] }
 0x495   : > { %v3634_v42 = vpop.f32.mrf.mxu0  ;;  %v3675_v43 = vpop.f32.mrf.mxu1  ;;  %5356 = vmatprep.subr.bf16.mxu0 %v12427_v34  ;;  %5397 = vmatprep.subr.bf16.mxu1 %v12429_v24  ;;  %v12410_v60 = vcombine.low %v4922_v30, %v4926_v31  ;;  %v12412_v56 = vcombine.low %v4923_v47, %v4927_v17  ;;  %v4890_v22 = vld [vmem:[#allocation18 + $0xc10] sm:$0xff]  ;;  %v4891_v24 = vld [vmem:[#allocation18 + $0xc18] sm:$0xff] }
 0x496   : > { %v15573_v32 = vadd.f32 %v3634_v42, %v15541_v57  ;;  %v15576_v46 = vadd.f32 %v3675_v43, %v15544_v58  ;;  %5386 = vmatprep.mubr.bf16.mxu0 %v14785_v20  ;;  %5427 = vmatprep.mubr.bf16.mxu1 %v14785_v20  ;;  %v12411_v57 = vcombine.high %v4922_v30, %v4926_v31  ;;  %v4894_v34 = vld [vmem:[#allocation18 + $0xc30] sm:$0xff]  ;;  %v5506_v42 = vld [vmem:[#allocation18 + $0xfe8] sm:$0xff]  ;;  %v5493_v31 = vld [vmem:[#allocation18 + $0xf80] sm:$0xff] }
 0x497   : > { %v3636_v48 = vpop.f32.mrf.mxu0  ;;  %v3677_v50 = vpop.f32.mrf.mxu1  ;;  %v12413_v58 = vcombine.high %v4923_v47, %v4927_v17  ;;  %v12379_v36 = vcombine.high %v4890_v22, %v4894_v34  ;;  %v12381_v37 = vcombine.high %v4891_v24, %v4895_v35  ;;  %v12378_v43 = vcombine.low %v4890_v22, %v4894_v34  ;;  %v5497_v47 = vld [vmem:[#allocation18 + $0xfa0] sm:$0xff]  ;;  %v5494_v17 = vld [vmem:[#allocation18 + $0xf88] sm:$0xff] }
 0x498   : > { %5357 = vmatpush1.bf16.msra.mxu0 %v12426_v40  ;;  %5398 = vmatpush1.bf16.msra.mxu1 %v12428_v41  ;;  %v5505_v40 = vld [vmem:[#allocation18 + $0xfe0] sm:$0xff]  ;;  %v5502_v41 = vld [vmem:[#allocation18 + $0xfc8] sm:$0xff]  ;;  %v12486_v55 = vcombine.low %v5493_v31, %v5497_v47 }
 0x499   : > { %v3637_v59 = vpop.f32.mrf.mxu0  ;;  %v3678_v51 = vpop.f32.mrf.mxu1  ;;  %5358 = vmatprep.subr.bf16.mxu0 %v12419_v44  ;;  %5399 = vmatprep.subr.bf16.mxu1 %v12421_v45  ;;  %v12380_v44 = vcombine.low %v4891_v24, %v4895_v35  ;;  %v12495_v45 = vcombine.high %v5501_v39, %v5505_v40  ;;  %v12497_v30 = vcombine.high %v5502_v41, %v5506_v42  ;;  %v5498_v48 = vld [vmem:[#allocation18 + $0xfa8] sm:$0xff] }
 0x49a   : > { %v12494_v50 = vcombine.low %v5501_v39, %v5505_v40  ;;  %v12489_v59 = vcombine.high %v5494_v17, %v5498_v48  ;;  %v5485_v51 = vld [vmem:[#allocation18 + $0xf40] sm:$0xff]  ;;  %v5474_v22 = vld [vmem:[#allocation18 + $0xee8] sm:$0xff] }
 0x49b   : > { %v5466_v39 = vld [vmem:[#allocation18 + $0xea8] sm:$0xff] }
 0x49c   : > { %5359 = vmatpush1.bf16.msra.mxu0 %v12418_v53  ;;  %5400 = vmatpush1.bf16.msra.mxu1 %v12420_v49  ;;  %v12496_v53 = vcombine.low %v5502_v41, %v5506_v42  ;;  %v12487_v49 = vcombine.high %v5493_v31, %v5497_v47  ;;  %v5458_v31 = vld [vmem:[#allocation18 + $0xe68] sm:$0xff] }
 0x49d   : > { %5360 = vmatprep.subr.bf16.mxu0 %v12411_v57  ;;  %5401 = vmatprep.subr.bf16.mxu1 %v12413_v58  ;;  %v5489_v57 = vld [vmem:[#allocation18 + $0xf60] sm:$0xff]  ;;  %v5486_v58 = vld [vmem:[#allocation18 + $0xf48] sm:$0xff] }
 0x49e   : > { %v12479_v11 = vcombine.high %v5485_v51, %v5489_v57  ;;  %v12481_v63 = vcombine.high %v5486_v58, %v5490_v1  ;;  %v12478_v15 = vcombine.low %v5485_v51, %v5489_v57  ;;  %v12480_v16 = vcombine.low %v5486_v58, %v5490_v1  ;;  %v5450_v51 = vld [vmem:[#allocation18 + $0xe28] sm:$0xff] }
 0x4a0   : > { %5361 = vmatpush1.bf16.msra.mxu0 %v12410_v60  ;;  %5402 = vmatpush1.bf16.msra.mxu1 %v12412_v56 }
 0x4a1   : > { %5362 = vmatprep.subr.bf16.mxu0 %v12403_v54  ;;  %5403 = vmatprep.subr.bf16.mxu1 %v12405_v62  ;;  %v12488_v54 = vcombine.low %v5494_v17, %v5498_v48 }
 0x4a4   : > { %5363 = vmatpush1.bf16.msra.mxu0 %v12402_v8  ;;  %5404 = vmatpush1.bf16.msra.mxu1 %v12404_v9 }
 0x4a5   : > { %5364 = vmatprep.subr.bf16.mxu0 %v12395_v10  ;;  %5405 = vmatprep.subr.bf16.mxu1 %v12397_v12  ;;  %v5478_v10 = vld [vmem:[#allocation18 + $0xf08] sm:$0xff] }
 0x4a8   : > { %5365 = vmatpush1.bf16.msra.mxu0 %v12394_v19  ;;  %5406 = vmatpush1.bf16.msra.mxu1 %v12396_v38  ;;  %v5469_v38 = vld [vmem:[#allocation18 + $0xec0] sm:$0xff] }
 0x4a9   : > { %5366 = vmatprep.subr.bf16.mxu0 %v12387_v21  ;;  %5407 = vmatprep.subr.bf16.mxu1 %v12389_v26  ;;  %v5473_v21 = vld [vmem:[#allocation18 + $0xee0] sm:$0xff]  ;;  %v5470_v26 = vld [vmem:[#allocation18 + $0xec8] sm:$0xff] }
 0x4aa   : > { %v12463_v35 = vcombine.high %v5469_v38, %v5473_v21  ;;  %v12462_v40 = vcombine.low %v5469_v38, %v5473_v21  ;;  %v12464_v41 = vcombine.low %v5470_v26, %v5474_v22  ;;  %v5488_v38 = vld [vmem:[#allocation18 + $0xf58] sm:$0xff] }
 0x4ab   : > { %v5492_v21 = vld [vmem:[#allocation18 + $0xf78] sm:$0xff] }
 0x4ac   : > { %5367 = vmatpush1.bf16.msra.mxu0 %v12386_v27  ;;  %5408 = vmatpush1.bf16.msra.mxu1 %v12388_v33  ;;  %v12465_v27 = vcombine.high %v5470_v26, %v5474_v22  ;;  %v5461_v33 = vld [vmem:[#allocation18 + $0xe80] sm:$0xff] }
 0x4ad   : > { %5368 = vmatprep.subr.bf16.mxu0 %v12379_v36  ;;  %5409 = vmatprep.subr.bf16.mxu1 %v12381_v37  ;;  %v5465_v36 = vld [vmem:[#allocation18 + $0xea0] sm:$0xff]  ;;  %v5462_v37 = vld [vmem:[#allocation18 + $0xe88] sm:$0xff] }
 0x4ae   : > { %v12455_v42 = vcombine.high %v5461_v33, %v5465_v36  ;;  %v12454_v47 = vcombine.low %v5461_v33, %v5465_v36  ;;  %v12456_v17 = vcombine.low %v5462_v37, %v5466_v39 }
 0x4b0   : > { %5369 = vmatpush1.bf16.msra.mxu0 %v12378_v43  ;;  %5410 = vmatpush1.bf16.msra.mxu1 %v12380_v44  ;;  %v12457_v43 = vcombine.high %v5462_v37, %v5466_v39  ;;  %v5453_v44 = vld [vmem:[#allocation18 + $0xe40] sm:$0xff]  ;;  %v12485_v37 = vcombine.high %v5488_v38, %v5492_v21  ;;  %v5479_v39 = vld [vmem:[#allocation18 + $0xf10] sm:$0xff] }
 0x4b1   : > { %5832 = vmatprep.subr.bf16.mxu0 %v12495_v45  ;;  %5873 = vmatprep.subr.bf16.mxu1 %v12497_v30  ;;  %v5457_v45 = vld [vmem:[#allocation18 + $0xe60] sm:$0xff]  ;;  %v5454_v30 = vld [vmem:[#allocation18 + $0xe48] sm:$0xff] }
 0x4b2   : > { %v12447_v48 = vcombine.high %v5453_v44, %v5457_v45  ;;  %v12446_v57 = vcombine.low %v5453_v44, %v5457_v45  ;;  %v12448_v58 = vcombine.low %v5454_v30, %v5458_v31 }
 0x4b3   : > { %v3714_v4 = vpop.f32.mrf.mxu0  ;;  %v3755_v0 = vpop.f32.mrf.mxu1  ;;  %5387 = vmatmul.mubr.bf16.vlgmr.msra.gmra.mxu0 %v15425_v52  ;;  %5428 = vmatmul.mubr.bf16.vlgmr.msra.gmra.mxu1 %v15425_v52 }
 0x4b4   : > { %v15583_v60 = vadd.f32 %v3714_v4, %v15551_v5  ;;  %v15586_v56 = vadd.f32 %v3755_v0, %v15554_v7  ;;  %5833 = vmatpush1.bf16.msra.mxu0 %v12494_v50  ;;  %5874 = vmatpush1.bf16.msra.mxu1 %v12496_v53  ;;  %v5481_v5 = vld [vmem:[#allocation18 + $0xf20] sm:$0xff]  ;;  %v5482_v7 = vld [vmem:[#allocation18 + $0xf28] sm:$0xff]  ;;  %v12449_v50 = vcombine.high %v5454_v30, %v5458_v31  ;;  %v5503_v0 = vld [vmem:[#allocation18 + $0xfd0] sm:$0xff] }
 0x4b5   : > { %v3716_v62 = vpop.f32.mrf.mxu0  ;;  %v3757_v2 = vpop.f32.mrf.mxu1  ;;  %5834 = vmatprep.subr.bf16.mxu0 %v12487_v49  ;;  %5875 = vmatprep.subr.bf16.mxu1 %v12489_v59  ;;  %v12470_v34 = vcombine.low %v5477_v6, %v5481_v5  ;;  %v12472_v24 = vcombine.low %v5478_v10, %v5482_v7  ;;  %v5445_v53 = vld [vmem:[#allocation18 + $0xe00] sm:$0xff]  ;;  %v5446_v59 = vld [vmem:[#allocation18 + $0xe08] sm:$0xff]  ;;  %v12484_v30 = vcombine.low %v5488_v38, %v5492_v21 }
 0x4b6   : > { %v15589_v8 = vadd.f32 %v3716_v62, %v15557_v18  ;;  %v15592_v9 = vadd.f32 %v3757_v2, %v15560_v61  ;;  %5864 = vmatprep.mubr.bf16.mxu0 %v14785_v20  ;;  %5905 = vmatprep.mubr.bf16.mxu1 %v14785_v20  ;;  %v12471_v18 = vcombine.high %v5477_v6, %v5481_v5  ;;  %v5449_v49 = vld [vmem:[#allocation18 + $0xe20] sm:$0xff]  ;;  %v5508_v62 = vld [vmem:[#allocation18 + $0xff8] sm:$0xff]  ;;  %v5495_v5 = vld [vmem:[#allocation18 + $0xf90] sm:$0xff] }
 0x4b7   : > { %v3718_v12 = vpop.f32.mrf.mxu0  ;;  %v3759_v13 = vpop.f32.mrf.mxu1  ;;  %v12473_v61 = vcombine.high %v5478_v10, %v5482_v7  ;;  %v12439_v1 = vcombine.high %v5445_v53, %v5449_v49  ;;  %v12441_v4 = vcombine.high %v5446_v59, %v5450_v51  ;;  %v12438_v2 = vcombine.low %v5445_v53, %v5449_v49  ;;  %v5499_v10 = vld [vmem:[#allocation18 + $0xfb0] sm:$0xff]  ;;  %v5496_v7 = vld [vmem:[#allocation18 + $0xf98] sm:$0xff] }
 0x4b8   : > { %5835 = vmatpush1.bf16.msra.mxu0 %v12486_v55  ;;  %5876 = vmatpush1.bf16.msra.mxu1 %v12488_v54  ;;  %v5507_v55 = vld [vmem:[#allocation18 + $0xff0] sm:$0xff]  ;;  %v5504_v54 = vld [vmem:[#allocation18 + $0xfd8] sm:$0xff] }
 0x4b9   : > { %v3719_v14 = vpop.f32.mrf.mxu0  ;;  %v3760_v19 = vpop.f32.mrf.mxu1  ;;  %5836 = vmatprep.subr.bf16.mxu0 %v12479_v11  ;;  %5877 = vmatprep.subr.bf16.mxu1 %v12481_v63  ;;  %v12440_v11 = vcombine.low %v5446_v59, %v5450_v51  ;;  %v12499_v63 = vcombine.high %v5503_v0, %v5507_v55  ;;  %v12501_v6 = vcombine.high %v5504_v54, %v5508_v62  ;;  %v5500_v12 = vld [vmem:[#allocation18 + $0xfb8] sm:$0xff] }
 0x4ba   : > { %v12498_v13 = vcombine.low %v5503_v0, %v5507_v55  ;;  %v12491_v14 = vcombine.high %v5495_v5, %v5499_v10  ;;  %v12493_v19 = vcombine.high %v5496_v7, %v5500_v12  ;;  %v5476_v53 = vld [vmem:[#allocation18 + $0xef8] sm:$0xff] }
 0x4bb   : > { %v5468_v0 = vld [vmem:[#allocation18 + $0xeb8] sm:$0xff] }
 0x4bc   : > { %5837 = vmatpush1.bf16.msra.mxu0 %v12478_v15  ;;  %5878 = vmatpush1.bf16.msra.mxu1 %v12480_v16  ;;  %v12500_v15 = vcombine.low %v5504_v54, %v5508_v62  ;;  %v15597_v16 = vrot.slane %v15425_v52, 4 }
 0x4bd   : > { %5838 = vmatprep.subr.bf16.mxu0 %v12471_v18  ;;  %5879 = vmatprep.subr.bf16.mxu1 %v12473_v61  ;;  %v5487_v18 = vld [vmem:[#allocation18 + $0xf50] sm:$0xff] }
 0x4be   : > { %v5491_v61 = vld [vmem:[#allocation18 + $0xf70] sm:$0xff] }
 0x4bf   : > { %v12483_v36 = vcombine.high %v5487_v18, %v5491_v61  ;;  %v12482_v45 = vcombine.low %v5487_v18, %v5491_v61  ;;  %v5452_v18 = vld [vmem:[#allocation18 + $0xe38] sm:$0xff] }
 0x4c0   : > { %5839 = vmatpush1.bf16.msra.mxu0 %v12470_v34  ;;  %5880 = vmatpush1.bf16.msra.mxu1 %v12472_v24  ;;  %v12490_v34 = vcombine.low %v5495_v5, %v5499_v10  ;;  %v5460_v5 = vld [vmem:[#allocation18 + $0xe78] sm:$0xff] }
 0x4c1   : > { %5840 = vmatprep.subr.bf16.mxu0 %v12463_v35  ;;  %5881 = vmatprep.subr.bf16.mxu1 %v12465_v27  ;;  %v12492_v35 = vcombine.low %v5496_v7, %v5500_v12 }
 0x4c4   : > { %5841 = vmatpush1.bf16.msra.mxu0 %v12462_v40  ;;  %5882 = vmatpush1.bf16.msra.mxu1 %v12464_v41 }
 0x4c5   : > { %5842 = vmatprep.subr.bf16.mxu0 %v12455_v42  ;;  %5883 = vmatprep.subr.bf16.mxu1 %v12457_v43  ;;  %v5480_v42 = vld [vmem:[#allocation18 + $0xf18] sm:$0xff] }
 0x4c8   : > { %5843 = vmatpush1.bf16.msra.mxu0 %v12454_v47  ;;  %5884 = vmatpush1.bf16.msra.mxu1 %v12456_v17  ;;  %v5471_v17 = vld [vmem:[#allocation18 + $0xed0] sm:$0xff] }
 0x4c9   : > { %5844 = vmatprep.subr.bf16.mxu0 %v12447_v48  ;;  %5885 = vmatprep.subr.bf16.mxu1 %v12449_v50  ;;  %v5475_v48 = vld [vmem:[#allocation18 + $0xef0] sm:$0xff]  ;;  %v5472_v50 = vld [vmem:[#allocation18 + $0xed8] sm:$0xff] }
 0x4ca   : > { %v12467_v51 = vcombine.high %v5471_v17, %v5475_v48  ;;  %v12466_v55 = vcombine.low %v5471_v17, %v5475_v48  ;;  %v12468_v54 = vcombine.low %v5472_v50, %v5476_v53  ;;  %v6050_v17 = vld [vmem:[#allocation18 + $0x1168] sm:$0xff] }
 0x4cc   : > { %5845 = vmatpush1.bf16.msra.mxu0 %v12446_v57  ;;  %5886 = vmatpush1.bf16.msra.mxu1 %v12448_v58  ;;  %v12469_v57 = vcombine.high %v5472_v50, %v5476_v53  ;;  %v5463_v58 = vld [vmem:[#allocation18 + $0xe90] sm:$0xff] }
 0x4cd   : > { %5846 = vmatprep.subr.bf16.mxu0 %v12439_v1  ;;  %5887 = vmatprep.subr.bf16.mxu1 %v12441_v4  ;;  %v5467_v1 = vld [vmem:[#allocation18 + $0xeb0] sm:$0xff]  ;;  %v5464_v4 = vld [vmem:[#allocation18 + $0xe98] sm:$0xff] }
 0x4ce   : > { %v12459_v62 = vcombine.high %v5463_v58, %v5467_v1  ;;  %v12458_v10 = vcombine.low %v5463_v58, %v5467_v1  ;;  %v12460_v7 = vcombine.low %v5464_v4, %v5468_v0 }
 0x4d0   : > { %5847 = vmatpush1.bf16.msra.mxu0 %v12438_v2  ;;  %5888 = vmatpush1.bf16.msra.mxu1 %v12440_v11  ;;  %v12461_v2 = vcombine.high %v5464_v4, %v5468_v0  ;;  %v5455_v11 = vld [vmem:[#allocation18 + $0xe50] sm:$0xff]  ;;  %v6037_v0 = vld [vmem:[#allocation18 + $0x1100] sm:$0xff] }
 0x4d1   : > { %5914 = vmatprep.subr.bf16.mxu0 %v12499_v63  ;;  %5955 = vmatprep.subr.bf16.mxu1 %v12501_v6  ;;  %v5459_v63 = vld [vmem:[#allocation18 + $0xe70] sm:$0xff]  ;;  %v5456_v6 = vld [vmem:[#allocation18 + $0xe58] sm:$0xff] }
 0x4d2   : > { %v12451_v12 = vcombine.high %v5455_v11, %v5459_v63  ;;  %v12450_v61 = vcombine.low %v5455_v11, %v5459_v63  ;;  %v12452_v38 = vcombine.low %v5456_v6, %v5460_v5 }
 0x4d3   : > { %v4189_v26 = vpop.f32.mrf.mxu0  ;;  %v4230_v22 = vpop.f32.mrf.mxu1  ;;  %5865 = vmatmul.mubr.bf16.vlgmr.msra.gmra.mxu0 %v15597_v16  ;;  %5906 = vmatmul.mubr.bf16.vlgmr.msra.gmra.mxu1 %v15597_v16 }
 0x4d4   : > { %v15602_v24 = vadd.f32 %v4189_v26, %v15567_v28  ;;  %v15605_v52 = vadd.f32 %v4230_v22, %v15570_v29  ;;  %5915 = vmatpush1.bf16.msra.mxu0 %v12498_v13  ;;  %5956 = vmatpush1.bf16.msra.mxu1 %v12500_v15  ;;  %v5483_v28 = vld [vmem:[#allocation18 + $0xf30] sm:$0xff]  ;;  %v5484_v29 = vld [vmem:[#allocation18 + $0xf38] sm:$0xff]  ;;  %v12453_v13 = vcombine.high %v5456_v6, %v5460_v5  ;;  %v6061_v22 = vld [vmem:[#allocation18 + $0x11c0] sm:$0xff] }
 0x4d5   : > { %v4191_v27 = vpop.f32.mrf.mxu0  ;;  %v4232_v33 = vpop.f32.mrf.mxu1  ;;  %5916 = vmatprep.subr.bf16.mxu0 %v12491_v14  ;;  %5957 = vmatprep.subr.bf16.mxu1 %v12493_v19  ;;  %v12474_v49 = vcombine.low %v5479_v39, %v5483_v28  ;;  %v12476_v59 = vcombine.low %v5480_v42, %v5484_v29  ;;  %v5447_v15 = vld [vmem:[#allocation18 + $0xe10] sm:$0xff]  ;;  %v5448_v19 = vld [vmem:[#allocation18 + $0xe18] sm:$0xff] }
 0x4d6   : > { %v15608_v40 = vadd.f32 %v4191_v27, %v15573_v32  ;;  %v15611_v41 = vadd.f32 %v4232_v33, %v15576_v46  ;;  %5946 = vmatprep.mubr.bf16.mxu0 %v14785_v20  ;;  %5987 = vmatprep.mubr.bf16.mxu1 %v14785_v20  ;;  %v12475_v32 = vcombine.high %v5479_v39, %v5483_v28  ;;  %v5451_v14 = vld [vmem:[#allocation18 + $0xe30] sm:$0xff]  ;;  %v6066_v27 = vld [vmem:[#allocation18 + $0x11e8] sm:$0xff]  ;;  %v6053_v28 = vld [vmem:[#allocation18 + $0x1180] sm:$0xff] }
 0x4d7   : > { %v4193_v43 = vpop.f32.mrf.mxu0  ;;  %v4234_v44 = vpop.f32.mrf.mxu1  ;;  %v12477_v46 = vcombine.high %v5480_v42, %v5484_v29  ;;  %v12443_v21 = vcombine.high %v5447_v15, %v5451_v14  ;;  %v12445_v26 = vcombine.high %v5448_v19, %v5452_v18  ;;  %v12442_v33 = vcombine.low %v5447_v15, %v5451_v14  ;;  %v6057_v42 = vld [vmem:[#allocation18 + $0x11a0] sm:$0xff]  ;;  %v6054_v29 = vld [vmem:[#allocation18 + $0x1188] sm:$0xff] }
 0x4d8   : > { %5917 = vmatpush1.bf16.msra.mxu0 %v12490_v34  ;;  %5958 = vmatpush1.bf16.msra.mxu1 %v12492_v35  ;;  %v6065_v34 = vld [vmem:[#allocation18 + $0x11e0] sm:$0xff]  ;;  %v6062_v35 = vld [vmem:[#allocation18 + $0x11c8] sm:$0xff]  ;;  %v12550_v53 = vcombine.low %v6053_v28, %v6057_v42 }
 0x4d9   : > { %v4194_v31 = vpop.f32.mrf.mxu0  ;;  %v4235_v47 = vpop.f32.mrf.mxu1  ;;  %5918 = vmatprep.subr.bf16.mxu0 %v12483_v36  ;;  %5959 = vmatprep.subr.bf16.mxu1 %v12485_v37  ;;  %v12444_v36 = vcombine.low %v5448_v19, %v5452_v18  ;;  %v12559_v37 = vcombine.high %v6061_v22, %v6065_v34  ;;  %v12561_v39 = vcombine.high %v6062_v35, %v6066_v27  ;;  %v6058_v43 = vld [vmem:[#allocation18 + $0x11a8] sm:$0xff] }
 0x4da   : > { %v12558_v44 = vcombine.low %v6061_v22, %v6065_v34  ;;  %v12553_v31 = vcombine.high %v6054_v29, %v6058_v43  ;;  %v6045_v47 = vld [vmem:[#allocation18 + $0x1140] sm:$0xff] }
 0x4dc   : > { %5919 = vmatpush1.bf16.msra.mxu0 %v12482_v45  ;;  %5960 = vmatpush1.bf16.msra.mxu1 %v12484_v30  ;;  %v12560_v45 = vcombine.low %v6062_v35, %v6066_v27  ;;  %v12551_v30 = vcombine.high %v6053_v28, %v6057_v42 }
 0x4dd   : > { %5920 = vmatprep.subr.bf16.mxu0 %v12475_v32  ;;  %5961 = vmatprep.subr.bf16.mxu1 %v12477_v46  ;;  %v6049_v32 = vld [vmem:[#allocation18 + $0x1160] sm:$0xff]  ;;  %v6046_v46 = vld [vmem:[#allocation18 + $0x1148] sm:$0xff] }
 0x4de   : > { %v12543_v1 = vcombine.high %v6045_v47, %v6049_v32  ;;  %v12545_v4 = vcombine.high %v6046_v46, %v6050_v17  ;;  %v12542_v11 = vcombine.low %v6045_v47, %v6049_v32  ;;  %v12544_v63 = vcombine.low %v6046_v46, %v6050_v17 }
 0x4e0   : > { %5921 = vmatpush1.bf16.msra.mxu0 %v12474_v49  ;;  %5962 = vmatpush1.bf16.msra.mxu1 %v12476_v59 }
 0x4e1   : > { %5922 = vmatprep.subr.bf16.mxu0 %v12467_v51  ;;  %5963 = vmatprep.subr.bf16.mxu1 %v12469_v57  ;;  %v12552_v51 = vcombine.low %v6054_v29, %v6058_v43 }
 0x4e4   : > { %5923 = vmatpush1.bf16.msra.mxu0 %v12466_v55  ;;  %5964 = vmatpush1.bf16.msra.mxu1 %v12468_v54  ;;  %v6038_v54 = vld [vmem:[#allocation18 + $0x1108] sm:$0xff] }
 0x4e5   : > { %5924 = vmatprep.subr.bf16.mxu0 %v12459_v62  ;;  %5965 = vmatprep.subr.bf16.mxu1 %v12461_v2 }
 0x4e8   : > { %5925 = vmatpush1.bf16.msra.mxu0 %v12458_v10  ;;  %5966 = vmatpush1.bf16.msra.mxu1 %v12460_v7  ;;  %v6029_v10 = vld [vmem:[#allocation18 + $0x10c0] sm:$0xff] }
 0x4e9   : > { %5926 = vmatprep.subr.bf16.mxu0 %v12451_v12  ;;  %5967 = vmatprep.subr.bf16.mxu1 %v12453_v13  ;;  %v6033_v7 = vld [vmem:[#allocation18 + $0x10e0] sm:$0xff]  ;;  %v6030_v12 = vld [vmem:[#allocation18 + $0x10c8] sm:$0xff] }
 0x4ea   : > { %v6034_v13 = vld [vmem:[#allocation18 + $0x10e8] sm:$0xff]  ;;  %v12527_v19 = vcombine.high %v6029_v10, %v6033_v7  ;;  %v12526_v22 = vcombine.low %v6029_v10, %v6033_v7 }
 0x4eb   : > { %v12529_v18 = vcombine.high %v6030_v12, %v6034_v13  ;;  %v12528_v34 = vcombine.low %v6030_v12, %v6034_v13 }
 0x4ec   : > { %5927 = vmatpush1.bf16.msra.mxu0 %v12450_v61  ;;  %5968 = vmatpush1.bf16.msra.mxu1 %v12452_v38  ;;  %v6021_v61 = vld [vmem:[#allocation18 + $0x1080] sm:$0xff] }
 0x4ed   : > { %5928 = vmatprep.subr.bf16.mxu0 %v12443_v21  ;;  %5969 = vmatprep.subr.bf16.mxu1 %v12445_v26  ;;  %v6025_v38 = vld [vmem:[#allocation18 + $0x10a0] sm:$0xff]  ;;  %v6022_v21 = vld [vmem:[#allocation18 + $0x1088] sm:$0xff] }
 0x4ee   : > { %v6026_v26 = vld [vmem:[#allocation18 + $0x10a8] sm:$0xff]  ;;  %v12519_v35 = vcombine.high %v6021_v61, %v6025_v38  ;;  %v12518_v28 = vcombine.low %v6021_v61, %v6025_v38 }
 0x4ef   : > { %v12521_v27 = vcombine.high %v6022_v21, %v6026_v26  ;;  %v12520_v42 = vcombine.low %v6022_v21, %v6026_v26  ;;  %v6039_v21 = vld [vmem:[#allocation18 + $0x1110] sm:$0xff] }
 0x4f0   : > { %5929 = vmatpush1.bf16.msra.mxu0 %v12442_v33  ;;  %5970 = vmatpush1.bf16.msra.mxu1 %v12444_v36  ;;  %v6013_v33 = vld [vmem:[#allocation18 + $0x1040] sm:$0xff] }
 0x4f1   : > { %6389 = vmatprep.subr.bf16.mxu0 %v12559_v37  ;;  %6430 = vmatprep.subr.bf16.mxu1 %v12561_v39  ;;  %v6017_v36 = vld [vmem:[#allocation18 + $0x1060] sm:$0xff]  ;;  %v6014_v37 = vld [vmem:[#allocation18 + $0x1048] sm:$0xff] }
 0x4f2   : > { %v6018_v39 = vld [vmem:[#allocation18 + $0x1068] sm:$0xff]  ;;  %v12511_v29 = vcombine.high %v6013_v33, %v6017_v36  ;;  %v12510_v47 = vcombine.low %v6013_v33, %v6017_v36 }
 0x4f3   : > { %v4271_v48 = vpop.f32.mrf.mxu0  ;;  %v4312_v50 = vpop.f32.mrf.mxu1  ;;  %5947 = vmatmul.mubr.bf16.vlgmr.msra.gmra.mxu0 %v15597_v16  ;;  %5988 = vmatmul.mubr.bf16.vlgmr.msra.gmra.mxu1 %v15597_v16  ;;  %v12513_v43 = vcombine.high %v6014_v37, %v6018_v39  ;;  %v12512_v32 = vcombine.low %v6014_v37, %v6018_v39 }
 0x4f4   : > { %v15618_v49 = vadd.f32 %v4271_v48, %v15583_v60  ;;  %v15621_v59 = vadd.f32 %v4312_v50, %v15586_v56  ;;  %6390 = vmatpush1.bf16.msra.mxu0 %v12558_v44  ;;  %6431 = vmatpush1.bf16.msra.mxu1 %v12560_v45  ;;  %v6041_v60 = vld [vmem:[#allocation18 + $0x1120] sm:$0xff]  ;;  %v6042_v56 = vld [vmem:[#allocation18 + $0x1128] sm:$0xff]  ;;  %v6063_v48 = vld [vmem:[#allocation18 + $0x11d0] sm:$0xff] }
 0x4f5   : > { %v4273_v57 = vpop.f32.mrf.mxu0  ;;  %v4314_v58 = vpop.f32.mrf.mxu1  ;;  %6391 = vmatprep.subr.bf16.mxu0 %v12551_v30  ;;  %6432 = vmatprep.subr.bf16.mxu1 %v12553_v31  ;;  %v12534_v15 = vcombine.low %v6037_v0, %v6041_v60  ;;  %v12536_v14 = vcombine.low %v6038_v54, %v6042_v56  ;;  %v6005_v44 = vld [vmem:[#allocation18 + $0x1000] sm:$0xff]  ;;  %v6006_v30 = vld [vmem:[#allocation18 + $0x1008] sm:$0xff]  ;;  %v6067_v50 = vld [vmem:[#allocation18 + $0x11f0] sm:$0xff] }
 0x4f6   : > { %v15624_v55 = vadd.f32 %v4273_v57, %v15589_v8  ;;  %v15627_v16 = vadd.f32 %v4314_v58, %v15592_v9  ;;  %6421 = vmatprep.mubr.bf16.mxu0 %v14785_v20  ;;  %6462 = vmatprep.mubr.bf16.mxu1 %v14785_v20  ;;  %v12535_v8 = vcombine.high %v6037_v0, %v6041_v60  ;;  %v6009_v45 = vld [vmem:[#allocation18 + $0x1020] sm:$0xff]  ;;  %v6010_v31 = vld [vmem:[#allocation18 + $0x1028] sm:$0xff]  ;;  %v6055_v0 = vld [vmem:[#allocation18 + $0x1190] sm:$0xff] }
 0x4f7   : > { %v4275_v62 = vpop.f32.mrf.mxu0  ;;  %v4316_v2 = vpop.f32.mrf.mxu1  ;;  %v12537_v9 = vcombine.high %v6038_v54, %v6042_v56  ;;  %v12503_v46 = vcombine.high %v6005_v44, %v6009_v45  ;;  %v12505_v17 = vcombine.high %v6006_v30, %v6010_v31  ;;  %v12502_v57 = vcombine.low %v6005_v44, %v6009_v45  ;;  %v6059_v60 = vld [vmem:[#allocation18 + $0x11b0] sm:$0xff]  ;;  %v6056_v54 = vld [vmem:[#allocation18 + $0x1198] sm:$0xff] }
 0x4f8   : > { %6392 = vmatpush1.bf16.msra.mxu0 %v12550_v53  ;;  %6433 = vmatpush1.bf16.msra.mxu1 %v12552_v51  ;;  %v6064_v53 = vld [vmem:[#allocation18 + $0x11d8] sm:$0xff]  ;;  %v12504_v58 = vcombine.low %v6006_v30, %v6010_v31  ;;  %v12562_v62 = vcombine.low %v6063_v48, %v6067_v50  ;;  %v12554_v12 = vcombine.low %v6055_v0, %v6059_v60 }
 0x4f9   : > { %v4276_v6 = vpop.f32.mrf.mxu0  ;;  %v4317_v5 = vpop.f32.mrf.mxu1  ;;  %6393 = vmatprep.subr.bf16.mxu0 %v12543_v1  ;;  %6434 = vmatprep.subr.bf16.mxu1 %v12545_v4  ;;  %v6068_v51 = vld [vmem:[#allocation18 + $0x11f8] sm:$0xff]  ;;  %v12563_v1 = vcombine.high %v6063_v48, %v6067_v50 }
 0x4fa   : > { %v12565_v4 = vcombine.high %v6064_v53, %v6068_v51  ;;  %v6060_v56 = vld [vmem:[#allocation18 + $0x11b8] sm:$0xff]  ;;  %v12564_v2 = vcombine.low %v6064_v53, %v6068_v51  ;;  %v6047_v6 = vld [vmem:[#allocation18 + $0x1150] sm:$0xff] }
 0x4fb   : > { %v6051_v5 = vld [vmem:[#allocation18 + $0x1170] sm:$0xff] }
 0x4fc   : > { %6394 = vmatpush1.bf16.msra.mxu0 %v12542_v11  ;;  %6435 = vmatpush1.bf16.msra.mxu1 %v12544_v63  ;;  %v12555_v11 = vcombine.high %v6055_v0, %v6059_v60  ;;  %v12557_v63 = vcombine.high %v6056_v54, %v6060_v56  ;;  %v12547_v61 = vcombine.high %v6047_v6, %v6051_v5 }
 0x4fd   : > { %6395 = vmatprep.subr.bf16.mxu0 %v12535_v8  ;;  %6436 = vmatprep.subr.bf16.mxu1 %v12537_v9  ;;  %v6048_v8 = vld [vmem:[#allocation18 + $0x1158] sm:$0xff]  ;;  %v12546_v33 = vcombine.low %v6047_v6, %v6051_v5 }
 0x4fe   : > { %v6052_v9 = vld [vmem:[#allocation18 + $0x1178] sm:$0xff] }
 0x4ff   : > { %v12549_v38 = vcombine.high %v6048_v8, %v6052_v9  ;;  %v12548_v36 = vcombine.low %v6048_v8, %v6052_v9 }
 0x500   : > { %6396 = vmatpush1.bf16.msra.mxu0 %v12534_v15  ;;  %6437 = vmatpush1.bf16.msra.mxu1 %v12536_v14  ;;  %v12556_v14 = vcombine.low %v6056_v54, %v6060_v56 }
 0x501   : > { %6397 = vmatprep.subr.bf16.mxu0 %v12527_v19  ;;  %6438 = vmatprep.subr.bf16.mxu1 %v12529_v18 }
 0x504   : > { %6398 = vmatpush1.bf16.msra.mxu0 %v12526_v22  ;;  %6439 = vmatpush1.bf16.msra.mxu1 %v12528_v34  ;;  %v6040_v34 = vld [vmem:[#allocation18 + $0x1118] sm:$0xff] }
 0x505   : > { %6399 = vmatprep.subr.bf16.mxu0 %v12519_v35  ;;  %6440 = vmatprep.subr.bf16.mxu1 %v12521_v27 }
 0x508   : > { %6400 = vmatpush1.bf16.msra.mxu0 %v12518_v28  ;;  %6441 = vmatpush1.bf16.msra.mxu1 %v12520_v42  ;;  %v6031_v28 = vld [vmem:[#allocation18 + $0x10d0] sm:$0xff] }
 0x509   : > { %6401 = vmatprep.subr.bf16.mxu0 %v12511_v29  ;;  %6442 = vmatprep.subr.bf16.mxu1 %v12513_v43  ;;  %v6035_v42 = vld [vmem:[#allocation18 + $0x10f0] sm:$0xff]  ;;  %v6032_v29 = vld [vmem:[#allocation18 + $0x10d8] sm:$0xff] }
 0x50a   : > { %v6036_v43 = vld [vmem:[#allocation18 + $0x10f8] sm:$0xff]  ;;  %v12531_v30 = vcombine.high %v6031_v28, %v6035_v42  ;;  %v12530_v48 = vcombine.low %v6031_v28, %v6035_v42 }
 0x50b   : > { %v12533_v31 = vcombine.high %v6032_v29, %v6036_v43  ;;  %v12532_v50 = vcombine.low %v6032_v29, %v6036_v43 }
 0x50c   : > { %6402 = vmatpush1.bf16.msra.mxu0 %v12510_v47  ;;  %6443 = vmatpush1.bf16.msra.mxu1 %v12512_v32  ;;  %v6023_v47 = vld [vmem:[#allocation18 + $0x1090] sm:$0xff] }
 0x50d   : > { %6403 = vmatprep.subr.bf16.mxu0 %v12503_v46  ;;  %6444 = vmatprep.subr.bf16.mxu1 %v12505_v17  ;;  %v6027_v32 = vld [vmem:[#allocation18 + $0x10b0] sm:$0xff]  ;;  %v6024_v46 = vld [vmem:[#allocation18 + $0x1098] sm:$0xff] }
 0x50e   : > { %v6028_v17 = vld [vmem:[#allocation18 + $0x10b8] sm:$0xff]  ;;  %v12523_v53 = vcombine.high %v6023_v47, %v6027_v32  ;;  %v12522_v0 = vcombine.low %v6023_v47, %v6027_v32 }
 0x50f   : > { %v12525_v51 = vcombine.high %v6024_v46, %v6028_v17  ;;  %v12524_v60 = vcombine.low %v6024_v46, %v6028_v17  ;;  %v6594_v46 = vld [vmem:[#allocation18 + $0x1300] sm:$0xff] }
 0x510   : > { %6404 = vmatpush1.bf16.msra.mxu0 %v12502_v57  ;;  %6445 = vmatpush1.bf16.msra.mxu1 %v12504_v58  ;;  %v6015_v57 = vld [vmem:[#allocation18 + $0x1050] sm:$0xff] }
 0x511   : > { %6471 = vmatprep.subr.bf16.mxu0 %v12563_v1  ;;  %6512 = vmatprep.subr.bf16.mxu1 %v12565_v4  ;;  %v6019_v58 = vld [vmem:[#allocation18 + $0x1070] sm:$0xff]  ;;  %v6016_v1 = vld [vmem:[#allocation18 + $0x1058] sm:$0xff] }
 0x512   : > { %v6020_v4 = vld [vmem:[#allocation18 + $0x1078] sm:$0xff]  ;;  %v12515_v54 = vcombine.high %v6015_v57, %v6019_v58  ;;  %v12514_v6 = vcombine.low %v6015_v57, %v6019_v58 }
 0x513   : > { %v4749_v10 = vpop.f32.mrf.mxu0  ;;  %v4790_v7 = vpop.f32.mrf.mxu1  ;;  %6422 = vmatmul.mubr.bf16.vlgmr.msra.gmra.mxu0 %v15439_v25  ;;  %6463 = vmatmul.mubr.bf16.vlgmr.msra.gmra.mxu1 %v15439_v25  ;;  %v12517_v56 = vcombine.high %v6016_v1, %v6020_v4  ;;  %v12516_v5 = vcombine.low %v6016_v1, %v6020_v4 }
 0x514   : > { %v15634_v13 = vadd.f32 %v4749_v10, %v15602_v24  ;;  %v15637_v15 = vadd.f32 %v4790_v7, %v15605_v52  ;;  %6472 = vmatpush1.bf16.msra.mxu0 %v12562_v62  ;;  %6513 = vmatpush1.bf16.msra.mxu1 %v12564_v2  ;;  %v6043_v24 = vld [vmem:[#allocation18 + $0x1130] sm:$0xff]  ;;  %v6044_v52 = vld [vmem:[#allocation18 + $0x1138] sm:$0xff]  ;;  %v6618_v10 = vld [vmem:[#allocation18 + $0x13c0] sm:$0xff] }
 0x515   : > { %v4751_v19 = vpop.f32.mrf.mxu0  ;;  %v4792_v18 = vpop.f32.mrf.mxu1  ;;  %6473 = vmatprep.subr.bf16.mxu0 %v12555_v11  ;;  %6514 = vmatprep.subr.bf16.mxu1 %v12557_v63  ;;  %v12538_v44 = vcombine.low %v6039_v21, %v6043_v24  ;;  %v12540_v45 = vcombine.low %v6040_v34, %v6044_v52  ;;  %v6007_v62 = vld [vmem:[#allocation18 + $0x1010] sm:$0xff]  ;;  %v6008_v11 = vld [vmem:[#allocation18 + $0x1018] sm:$0xff]  ;;  %v6622_v7 = vld [vmem:[#allocation18 + $0x13e0] sm:$0xff] }
 0x516   : > { %v15640_v26 = vadd.f32 %v4751_v19, %v15608_v40  ;;  %v15643_v22 = vadd.f32 %v4792_v18, %v15611_v41  ;;  %6503 = vmatprep.mubr.bf16.mxu0 %v14785_v20  ;;  %6544 = vmatprep.mubr.bf16.mxu1 %v14785_v20  ;;  %v12539_v40 = vcombine.high %v6039_v21, %v6043_v24  ;;  %v6011_v2 = vld [vmem:[#allocation18 + $0x1030] sm:$0xff]  ;;  %v6012_v63 = vld [vmem:[#allocation18 + $0x1038] sm:$0xff]  ;;  %v6610_v21 = vld [vmem:[#allocation18 + $0x1380] sm:$0xff] }
 0x517   : > { %v4753_v35 = vpop.f32.mrf.mxu0  ;;  %v4794_v27 = vpop.f32.mrf.mxu1  ;;  %v12541_v41 = vcombine.high %v6040_v34, %v6044_v52  ;;  %v12507_v8 = vcombine.high %v6007_v62, %v6011_v2  ;;  %v12509_v9 = vcombine.high %v6008_v11, %v6012_v63  ;;  %v12506_v19 = vcombine.low %v6007_v62, %v6011_v2  ;;  %v6614_v24 = vld [vmem:[#allocation18 + $0x13a0] sm:$0xff]  ;;  %v6611_v34 = vld [vmem:[#allocation18 + $0x1388] sm:$0xff] }
 0x518   : > { %6474 = vmatpush1.bf16.msra.mxu0 %v12554_v12  ;;  %6515 = vmatpush1.bf16.msra.mxu1 %v12556_v14  ;;  %v6619_v12 = vld [vmem:[#allocation18 + $0x13c8] sm:$0xff]  ;;  %v12508_v18 = vcombine.low %v6008_v11, %v6012_v63  ;;  %v12622_v35 = vcombine.low %v6618_v10, %v6622_v7  ;;  %v12614_v29 = vcombine.low %v6610_v21, %v6614_v24 }
 0x519   : > { %v4754_v37 = vpop.f32.mrf.mxu0  ;;  %v4795_v39 = vpop.f32.mrf.mxu1  ;;  %6475 = vmatprep.subr.bf16.mxu0 %v12547_v61  ;;  %6516 = vmatprep.subr.bf16.mxu1 %v12549_v38  ;;  %v6623_v14 = vld [vmem:[#allocation18 + $0x13e8] sm:$0xff]  ;;  %v12623_v61 = vcombine.high %v6618_v10, %v6622_v7 }
 0x51a   : > { %v12625_v38 = vcombine.high %v6619_v12, %v6623_v14  ;;  %v6615_v52 = vld [vmem:[#allocation18 + $0x13a8] sm:$0xff]  ;;  %v12624_v27 = vcombine.low %v6619_v12, %v6623_v14  ;;  %v6602_v37 = vld [vmem:[#allocation18 + $0x1340] sm:$0xff] }
 0x51b   : > { %v6606_v39 = vld [vmem:[#allocation18 + $0x1360] sm:$0xff] }
 0x51c   : > { %6476 = vmatpush1.bf16.msra.mxu0 %v12546_v33  ;;  %6517 = vmatpush1.bf16.msra.mxu1 %v12548_v36  ;;  %v12615_v33 = vcombine.high %v6610_v21, %v6614_v24  ;;  %v12617_v36 = vcombine.high %v6611_v34, %v6615_v52  ;;  %v12607_v47 = vcombine.high %v6602_v37, %v6606_v39 }
 0x51d   : > { %6477 = vmatprep.subr.bf16.mxu0 %v12539_v40  ;;  %6518 = vmatprep.subr.bf16.mxu1 %v12541_v41  ;;  %v6603_v40 = vld [vmem:[#allocation18 + $0x1348] sm:$0xff]  ;;  %v12606_v57 = vcombine.low %v6602_v37, %v6606_v39 }
 0x51e   : > { %v6607_v41 = vld [vmem:[#allocation18 + $0x1368] sm:$0xff] }
 0x51f   : > { %v12609_v32 = vcombine.high %v6603_v40, %v6607_v41  ;;  %v12608_v58 = vcombine.low %v6603_v40, %v6607_v41 }
 0x520   : > { %6478 = vmatpush1.bf16.msra.mxu0 %v12538_v44  ;;  %6519 = vmatpush1.bf16.msra.mxu1 %v12540_v45  ;;  %v12616_v45 = vcombine.low %v6611_v34, %v6615_v52 }
 0x521   : > { %6479 = vmatprep.subr.bf16.mxu0 %v12531_v30  ;;  %6520 = vmatprep.subr.bf16.mxu1 %v12533_v31 }
 0x524   : > { %6480 = vmatpush1.bf16.msra.mxu0 %v12530_v48  ;;  %6521 = vmatpush1.bf16.msra.mxu1 %v12532_v50  ;;  %v6595_v50 = vld [vmem:[#allocation18 + $0x1308] sm:$0xff] }
 0x525   : > { %6481 = vmatprep.subr.bf16.mxu0 %v12523_v53  ;;  %6522 = vmatprep.subr.bf16.mxu1 %v12525_v51 }
 0x528   : > { %6482 = vmatpush1.bf16.msra.mxu0 %v12522_v0  ;;  %6523 = vmatpush1.bf16.msra.mxu1 %v12524_v60  ;;  %v6586_v0 = vld [vmem:[#allocation18 + $0x12c0] sm:$0xff] }
 0x529   : > { %6483 = vmatprep.subr.bf16.mxu0 %v12515_v54  ;;  %6524 = vmatprep.subr.bf16.mxu1 %v12517_v56  ;;  %v6590_v60 = vld [vmem:[#allocation18 + $0x12e0] sm:$0xff]  ;;  %v6587_v54 = vld [vmem:[#allocation18 + $0x12c8] sm:$0xff] }
 0x52a   : > { %v6591_v56 = vld [vmem:[#allocation18 + $0x12e8] sm:$0xff]  ;;  %v12591_v11 = vcombine.high %v6586_v0, %v6590_v60  ;;  %v12590_v10 = vcombine.low %v6586_v0, %v6590_v60  ;;  %v6609_v0 = vld [vmem:[#allocation18 + $0x1378] sm:$0xff] }
 0x52b   : > { %v12593_v63 = vcombine.high %v6587_v54, %v6591_v56  ;;  %v12592_v7 = vcombine.low %v6587_v54, %v6591_v56 }
 0x52c   : > { %6484 = vmatpush1.bf16.msra.mxu0 %v12514_v6  ;;  %6525 = vmatpush1.bf16.msra.mxu1 %v12516_v5  ;;  %v6578_v6 = vld [vmem:[#allocation18 + $0x1280] sm:$0xff] }
 0x52d   : > { %6485 = vmatprep.subr.bf16.mxu0 %v12507_v8  ;;  %6526 = vmatprep.subr.bf16.mxu1 %v12509_v9  ;;  %v6582_v5 = vld [vmem:[#allocation18 + $0x12a0] sm:$0xff]  ;;  %v6579_v8 = vld [vmem:[#allocation18 + $0x1288] sm:$0xff] }
 0x52e   : > { %v6583_v9 = vld [vmem:[#allocation18 + $0x12a8] sm:$0xff]  ;;  %v12583_v12 = vcombine.high %v6578_v6, %v6582_v5  ;;  %v12582_v21 = vcombine.low %v6578_v6, %v6582_v5 }
 0x52f   : > { %v12585_v14 = vcombine.high %v6579_v8, %v6583_v9  ;;  %v12584_v24 = vcombine.low %v6579_v8, %v6583_v9  ;;  %v6596_v8 = vld [vmem:[#allocation18 + $0x1310] sm:$0xff] }
 0x530   : > { %6486 = vmatpush1.bf16.msra.mxu0 %v12506_v19  ;;  %6527 = vmatpush1.bf16.msra.mxu1 %v12508_v18  ;;  %v6570_v19 = vld [vmem:[#allocation18 + $0x1240] sm:$0xff] }
 0x531   : > { %6949 = vmatprep.subr.bf16.mxu0 %v12623_v61  ;;  %6990 = vmatprep.subr.bf16.mxu1 %v12625_v38  ;;  %v6574_v18 = vld [vmem:[#allocation18 + $0x1260] sm:$0xff]  ;;  %v6571_v61 = vld [vmem:[#allocation18 + $0x1248] sm:$0xff] }
 0x532   : > { %v6575_v38 = vld [vmem:[#allocation18 + $0x1268] sm:$0xff]  ;;  %v12575_v34 = vcombine.high %v6570_v19, %v6574_v18  ;;  %v12574_v37 = vcombine.low %v6570_v19, %v6574_v18 }
 0x533   : > { %v4831_v28 = vpop.f32.mrf.mxu0  ;;  %v4872_v42 = vpop.f32.mrf.mxu1  ;;  %6504 = vmatmul.mubr.bf16.vlgmr.msra.gmra.mxu0 %v15439_v25  ;;  %6545 = vmatmul.mubr.bf16.vlgmr.msra.gmra.mxu1 %v15439_v25  ;;  %v12577_v52 = vcombine.high %v6571_v61, %v6575_v38  ;;  %v12576_v39 = vcombine.low %v6571_v61, %v6575_v38 }
 0x534   : > { %v15650_v43 = vadd.f32 %v4831_v28, %v15618_v49  ;;  %v15653_v44 = vadd.f32 %v4872_v42, %v15621_v59  ;;  %6950 = vmatpush1.bf16.msra.mxu0 %v12622_v35  ;;  %6991 = vmatpush1.bf16.msra.mxu1 %v12624_v27  ;;  %v6598_v49 = vld [vmem:[#allocation18 + $0x1320] sm:$0xff]  ;;  %v6599_v59 = vld [vmem:[#allocation18 + $0x1328] sm:$0xff]  ;;  %v6620_v28 = vld [vmem:[#allocation18 + $0x13d0] sm:$0xff] }
 0x535   : > { %v4833_v30 = vpop.f32.mrf.mxu0  ;;  %v4874_v31 = vpop.f32.mrf.mxu1  ;;  %6951 = vmatprep.subr.bf16.mxu0 %v12615_v33  ;;  %6992 = vmatprep.subr.bf16.mxu1 %v12617_v36  ;;  %v12598_v62 = vcombine.low %v6594_v46, %v6598_v49  ;;  %v12600_v2 = vcombine.low %v6595_v50, %v6599_v59  ;;  %v6562_v35 = vld [vmem:[#allocation18 + $0x1200] sm:$0xff]  ;;  %v6563_v33 = vld [vmem:[#allocation18 + $0x1208] sm:$0xff]  ;;  %v6624_v42 = vld [vmem:[#allocation18 + $0x13f0] sm:$0xff] }
 0x536   : > { %v15656_v17 = vadd.f32 %v4833_v30, %v15624_v55  ;;  %v15659_v48 = vadd.f32 %v4874_v31, %v15627_v16  ;;  %6981 = vmatprep.mubr.bf16.mxu0 %v14785_v20  ;;  %7022 = vmatprep.mubr.bf16.mxu1 %v14785_v20  ;;  %v12599_v55 = vcombine.high %v6594_v46, %v6598_v49  ;;  %v6566_v27 = vld [vmem:[#allocation18 + $0x1220] sm:$0xff]  ;;  %v6567_v36 = vld [vmem:[#allocation18 + $0x1228] sm:$0xff]  ;;  %v6612_v46 = vld [vmem:[#allocation18 + $0x1390] sm:$0xff] }
 0x537   : > { %v4835_v53 = vpop.f32.mrf.mxu0  ;;  %v4876_v51 = vpop.f32.mrf.mxu1  ;;  %v12601_v16 = vcombine.high %v6595_v50, %v6599_v59  ;;  %v12567_v40 = vcombine.high %v6562_v35, %v6566_v27  ;;  %v12569_v41 = vcombine.high %v6563_v33, %v6567_v36  ;;  %v12566_v30 = vcombine.low %v6562_v35, %v6566_v27  ;;  %v6616_v49 = vld [vmem:[#allocation18 + $0x13b0] sm:$0xff]  ;;  %v6613_v50 = vld [vmem:[#allocation18 + $0x1398] sm:$0xff] }
 0x538   : > { %6952 = vmatpush1.bf16.msra.mxu0 %v12614_v29  ;;  %6993 = vmatpush1.bf16.msra.mxu1 %v12616_v45  ;;  %v6621_v29 = vld [vmem:[#allocation18 + $0x13d8] sm:$0xff]  ;;  %v12568_v31 = vcombine.low %v6563_v33, %v6567_v36  ;;  %v12626_v53 = vcombine.low %v6620_v28, %v6624_v42  ;;  %v12618_v56 = vcombine.low %v6612_v46, %v6616_v49 }
 0x539   : > { %v4836_v1 = vpop.f32.mrf.mxu0  ;;  %v4877_v4 = vpop.f32.mrf.mxu1  ;;  %6953 = vmatprep.subr.bf16.mxu0 %v12607_v47  ;;  %6994 = vmatprep.subr.bf16.mxu1 %v12609_v32  ;;  %v6625_v45 = vld [vmem:[#allocation18 + $0x13f8] sm:$0xff]  ;;  %v12627_v47 = vcombine.high %v6620_v28, %v6624_v42 }
 0x53a   : > { %v12629_v32 = vcombine.high %v6621_v29, %v6625_v45  ;;  %v6617_v59 = vld [vmem:[#allocation18 + $0x13b8] sm:$0xff]  ;;  %v12628_v51 = vcombine.low %v6621_v29, %v6625_v45  ;;  %v6604_v4 = vld [vmem:[#allocation18 + $0x1350] sm:$0xff] }
 0x53b   : > { %v12621_v1 = vcombine.high %v6613_v50, %v6617_v59 }
 0x53c   : > { %6954 = vmatpush1.bf16.msra.mxu0 %v12606_v57  ;;  %6995 = vmatpush1.bf16.msra.mxu1 %v12608_v58  ;;  %v15664_v57 = vrot.slane %v15439_v25, 4  ;;  %v12619_v58 = vcombine.high %v6612_v46, %v6616_v49 }
 0x53d   : > { %6955 = vmatprep.subr.bf16.mxu0 %v12599_v55  ;;  %6996 = vmatprep.subr.bf16.mxu1 %v12601_v16  ;;  %v6608_v55 = vld [vmem:[#allocation18 + $0x1370] sm:$0xff]  ;;  %v6605_v16 = vld [vmem:[#allocation18 + $0x1358] sm:$0xff] }
 0x53e   : > { %v12611_v6 = vcombine.high %v6604_v4, %v6608_v55  ;;  %v12613_v5 = vcombine.high %v6605_v16, %v6609_v0  ;;  %v12610_v19 = vcombine.low %v6604_v4, %v6608_v55  ;;  %v12612_v18 = vcombine.low %v6605_v16, %v6609_v0 }
 0x540   : > { %6956 = vmatpush1.bf16.msra.mxu0 %v12598_v62  ;;  %6997 = vmatpush1.bf16.msra.mxu1 %v12600_v2  ;;  %v12620_v2 = vcombine.low %v6613_v50, %v6617_v59 }
 0x541   : > { %6957 = vmatprep.subr.bf16.mxu0 %v12591_v11  ;;  %6998 = vmatprep.subr.bf16.mxu1 %v12593_v63 }
 0x544   : > { %6958 = vmatpush1.bf16.msra.mxu0 %v12590_v10  ;;  %6999 = vmatpush1.bf16.msra.mxu1 %v12592_v7  ;;  %v6597_v7 = vld [vmem:[#allocation18 + $0x1318] sm:$0xff] }
 0x545   : > { %6959 = vmatprep.subr.bf16.mxu0 %v12583_v12  ;;  %7000 = vmatprep.subr.bf16.mxu1 %v12585_v14 }
 0x548   : > { %6960 = vmatpush1.bf16.msra.mxu0 %v12582_v21  ;;  %7001 = vmatpush1.bf16.msra.mxu1 %v12584_v24  ;;  %v6588_v21 = vld [vmem:[#allocation18 + $0x12d0] sm:$0xff] }
 0x549   : > { %6961 = vmatprep.subr.bf16.mxu0 %v12575_v34  ;;  %7002 = vmatprep.subr.bf16.mxu1 %v12577_v52  ;;  %v6592_v24 = vld [vmem:[#allocation18 + $0x12f0] sm:$0xff]  ;;  %v6589_v34 = vld [vmem:[#allocation18 + $0x12d8] sm:$0xff] }
 0x54a   : > { %v6593_v52 = vld [vmem:[#allocation18 + $0x12f8] sm:$0xff]  ;;  %v12595_v33 = vcombine.high %v6588_v21, %v6592_v24  ;;  %v12594_v28 = vcombine.low %v6588_v21, %v6592_v24 }
 0x54b   : > { %v12597_v36 = vcombine.high %v6589_v34, %v6593_v52  ;;  %v12596_v42 = vcombine.low %v6589_v34, %v6593_v52 }
 0x54c   : > { %6962 = vmatpush1.bf16.msra.mxu0 %v12574_v37  ;;  %7003 = vmatpush1.bf16.msra.mxu1 %v12576_v39  ;;  %v6580_v37 = vld [vmem:[#allocation18 + $0x1290] sm:$0xff] }
 0x54d   : > { %6963 = vmatprep.subr.bf16.mxu0 %v12567_v40  ;;  %7004 = vmatprep.subr.bf16.mxu1 %v12569_v41  ;;  %v6584_v39 = vld [vmem:[#allocation18 + $0x12b0] sm:$0xff]  ;;  %v6581_v40 = vld [vmem:[#allocation18 + $0x1298] sm:$0xff] }
 0x54e   : > { %v6585_v41 = vld [vmem:[#allocation18 + $0x12b8] sm:$0xff]  ;;  %v12587_v29 = vcombine.high %v6580_v37, %v6584_v39  ;;  %v12586_v46 = vcombine.low %v6580_v37, %v6584_v39 }
 0x54f   : > { %v12589_v45 = vcombine.high %v6581_v40, %v6585_v41  ;;  %v12588_v49 = vcombine.low %v6581_v40, %v6585_v41  ;;  %v7154_v40 = vld [vmem:[#allocation18 + $0x1500] sm:$0xff] }
 0x550   : > { %6964 = vmatpush1.bf16.msra.mxu0 %v12566_v30  ;;  %7005 = vmatpush1.bf16.msra.mxu1 %v12568_v31  ;;  %v6572_v30 = vld [vmem:[#allocation18 + $0x1250] sm:$0xff] }
 0x551   : > { %7031 = vmatprep.subr.bf16.mxu0 %v12627_v47  ;;  %7072 = vmatprep.subr.bf16.mxu1 %v12629_v32  ;;  %v6576_v31 = vld [vmem:[#allocation18 + $0x1270] sm:$0xff]  ;;  %v6573_v47 = vld [vmem:[#allocation18 + $0x1258] sm:$0xff] }
 0x552   : > { %v6577_v32 = vld [vmem:[#allocation18 + $0x1278] sm:$0xff]  ;;  %v12579_v50 = vcombine.high %v6572_v30, %v6576_v31  ;;  %v12578_v4 = vcombine.low %v6572_v30, %v6576_v31 }
 0x553   : > { %v5306_v60 = vpop.f32.mrf.mxu0  ;;  %v5347_v54 = vpop.f32.mrf.mxu1  ;;  %6982 = vmatmul.mubr.bf16.vlgmr.msra.gmra.mxu0 %v15664_v57  ;;  %7023 = vmatmul.mubr.bf16.vlgmr.msra.gmra.mxu1 %v15664_v57  ;;  %v12581_v59 = vcombine.high %v6573_v47, %v6577_v32  ;;  %v12580_v55 = vcombine.low %v6573_v47, %v6577_v32  ;;  %v7146_v32 = vld [vmem:[#allocation18 + $0x14c0] sm:$0xff] }
 0x554   : > { %v15669_v62 = vadd.f32 %v5306_v60, %v15634_v13  ;;  %v15672_v25 = vadd.f32 %v5347_v54, %v15637_v15  ;;  %7032 = vmatpush1.bf16.msra.mxu0 %v12626_v53  ;;  %7073 = vmatpush1.bf16.msra.mxu1 %v12628_v51  ;;  %v6600_v13 = vld [vmem:[#allocation18 + $0x1330] sm:$0xff]  ;;  %v6601_v15 = vld [vmem:[#allocation18 + $0x1338] sm:$0xff]  ;;  %v7178_v60 = vld [vmem:[#allocation18 + $0x15c0] sm:$0xff] }
 0x555   : > { %v5308_v11 = vpop.f32.mrf.mxu0  ;;  %v5349_v63 = vpop.f32.mrf.mxu1  ;;  %7033 = vmatprep.subr.bf16.mxu0 %v12619_v58  ;;  %7074 = vmatprep.subr.bf16.mxu1 %v12621_v1  ;;  %v12602_v35 = vcombine.low %v6596_v8, %v6600_v13  ;;  %v12604_v27 = vcombine.low %v6597_v7, %v6601_v15  ;;  %v6564_v53 = vld [vmem:[#allocation18 + $0x1210] sm:$0xff]  ;;  %v6565_v58 = vld [vmem:[#allocation18 + $0x1218] sm:$0xff]  ;;  %v7182_v54 = vld [vmem:[#allocation18 + $0x15e0] sm:$0xff] }
 0x556   : > { %v15675_v9 = vadd.f32 %v5308_v11, %v15640_v26  ;;  %v15678_v10 = vadd.f32 %v5349_v63, %v15643_v22  ;;  %7063 = vmatprep.mubr.bf16.mxu0 %v14785_v20  ;;  %7104 = vmatprep.mubr.bf16.mxu1 %v14785_v20  ;;  %v12603_v26 = vcombine.high %v6596_v8, %v6600_v13  ;;  %v6568_v51 = vld [vmem:[#allocation18 + $0x1230] sm:$0xff]  ;;  %v6569_v1 = vld [vmem:[#allocation18 + $0x1238] sm:$0xff]  ;;  %v7170_v8 = vld [vmem:[#allocation18 + $0x1580] sm:$0xff] }
 0x557   : > { %v5310_v12 = vpop.f32.mrf.mxu0  ;;  %v5351_v14 = vpop.f32.mrf.mxu1  ;;  %v12605_v22 = vcombine.high %v6597_v7, %v6601_v15  ;;  %v12571_v16 = vcombine.high %v6564_v53, %v6568_v51  ;;  %v12573_v0 = vcombine.high %v6565_v58, %v6569_v1  ;;  %v12570_v11 = vcombine.low %v6564_v53, %v6568_v51  ;;  %v7174_v13 = vld [vmem:[#allocation18 + $0x15a0] sm:$0xff]  ;;  %v7171_v7 = vld [vmem:[#allocation18 + $0x1588] sm:$0xff] }
 0x558   : > { %7034 = vmatpush1.bf16.msra.mxu0 %v12618_v56  ;;  %7075 = vmatpush1.bf16.msra.mxu1 %v12620_v2  ;;  %v7179_v56 = vld [vmem:[#allocation18 + $0x15c8] sm:$0xff]  ;;  %v12572_v63 = vcombine.low %v6565_v58, %v6569_v1  ;;  %v12686_v12 = vcombine.low %v7178_v60, %v7182_v54  ;;  %v12678_v34 = vcombine.low %v7170_v8, %v7174_v13  ;;  %v7138_v1 = vld [vmem:[#allocation18 + $0x1480] sm:$0xff] }
 0x559   : > { %v5311_v61 = vpop.f32.mrf.mxu0  ;;  %v5352_v38 = vpop.f32.mrf.mxu1  ;;  %7035 = vmatprep.subr.bf16.mxu0 %v12611_v6  ;;  %7076 = vmatprep.subr.bf16.mxu1 %v12613_v5  ;;  %v7183_v2 = vld [vmem:[#allocation18 + $0x15e8] sm:$0xff]  ;;  %v12687_v6 = vcombine.high %v7178_v60, %v7182_v54 }
 0x55a   : > { %v12689_v5 = vcombine.high %v7179_v56, %v7183_v2  ;;  %v7175_v15 = vld [vmem:[#allocation18 + $0x15a8] sm:$0xff]  ;;  %v12688_v14 = vcombine.low %v7179_v56, %v7183_v2  ;;  %v7162_v61 = vld [vmem:[#allocation18 + $0x1540] sm:$0xff] }
 0x55b   : > { %v7166_v38 = vld [vmem:[#allocation18 + $0x1560] sm:$0xff] }
 0x55c   : > { %7036 = vmatpush1.bf16.msra.mxu0 %v12610_v19  ;;  %7077 = vmatpush1.bf16.msra.mxu1 %v12612_v18  ;;  %v12679_v19 = vcombine.high %v7170_v8, %v7174_v13  ;;  %v12681_v18 = vcombine.high %v7171_v7, %v7175_v15  ;;  %v12671_v37 = vcombine.high %v7162_v61, %v7166_v38  ;;  %v7130_v2 = vld [vmem:[#allocation18 + $0x1440] sm:$0xff] }
 0x55d   : > { %7037 = vmatprep.subr.bf16.mxu0 %v12603_v26  ;;  %7078 = vmatprep.subr.bf16.mxu1 %v12605_v22  ;;  %v7163_v26 = vld [vmem:[#allocation18 + $0x1548] sm:$0xff] }
 0x55e   : > { %v7167_v22 = vld [vmem:[#allocation18 + $0x1568] sm:$0xff] }
 0x55f   : > { %v12673_v39 = vcombine.high %v7163_v26, %v7167_v22  ;;  %v12672_v30 = vcombine.low %v7163_v26, %v7167_v22  ;;  %v7180_v22 = vld [vmem:[#allocation18 + $0x15d0] sm:$0xff] }
 0x560   : > { %7038 = vmatpush1.bf16.msra.mxu0 %v12602_v35  ;;  %7079 = vmatpush1.bf16.msra.mxu1 %v12604_v27  ;;  %v12680_v27 = vcombine.low %v7171_v7, %v7175_v15  ;;  %v7122_v15 = vld [vmem:[#allocation18 + $0x1400] sm:$0xff] }
 0x561   : > { %7039 = vmatprep.subr.bf16.mxu0 %v12595_v33  ;;  %7080 = vmatprep.subr.bf16.mxu1 %v12597_v36 }
 0x564   : > { %7040 = vmatpush1.bf16.msra.mxu0 %v12594_v28  ;;  %7081 = vmatpush1.bf16.msra.mxu1 %v12596_v42  ;;  %v7155_v28 = vld [vmem:[#allocation18 + $0x1508] sm:$0xff] }
 0x565   : > { %7041 = vmatprep.subr.bf16.mxu0 %v12587_v29  ;;  %7082 = vmatprep.subr.bf16.mxu1 %v12589_v45  ;;  %v12670_v45 = vcombine.low %v7162_v61, %v7166_v38 }
 0x568   : > { %7042 = vmatpush1.bf16.msra.mxu0 %v12586_v46  ;;  %7083 = vmatpush1.bf16.msra.mxu1 %v12588_v49  ;;  %v7150_v46 = vld [vmem:[#allocation18 + $0x14e0] sm:$0xff]  ;;  %v7147_v49 = vld [vmem:[#allocation18 + $0x14c8] sm:$0xff] }
 0x569   : > { %7043 = vmatprep.subr.bf16.mxu0 %v12579_v50  ;;  %7084 = vmatprep.subr.bf16.mxu1 %v12581_v59  ;;  %v7151_v50 = vld [vmem:[#allocation18 + $0x14e8] sm:$0xff]  ;;  %v12655_v51 = vcombine.high %v7146_v32, %v7150_v46 }
 0x56a   : > { %v12657_v58 = vcombine.high %v7147_v49, %v7151_v50  ;;  %v12656_v60 = vcombine.low %v7147_v49, %v7151_v50 }
 0x56c   : > { %7044 = vmatpush1.bf16.msra.mxu0 %v12578_v4  ;;  %7085 = vmatpush1.bf16.msra.mxu1 %v12580_v55  ;;  %v7142_v4 = vld [vmem:[#allocation18 + $0x14a0] sm:$0xff]  ;;  %v7139_v55 = vld [vmem:[#allocation18 + $0x1488] sm:$0xff] }
 0x56d   : > { %7045 = vmatprep.subr.bf16.mxu0 %v12571_v16  ;;  %7086 = vmatprep.subr.bf16.mxu1 %v12573_v0  ;;  %v7143_v16 = vld [vmem:[#allocation18 + $0x14a8] sm:$0xff]  ;;  %v12654_v0 = vcombine.low %v7146_v32, %v7150_v46  ;;  %v12647_v54 = vcombine.high %v7138_v1, %v7142_v4 }
 0x56e   : > { %v12649_v56 = vcombine.high %v7139_v55, %v7143_v16  ;;  %v12648_v8 = vcombine.low %v7139_v55, %v7143_v16 }
 0x570   : > { %7046 = vmatpush1.bf16.msra.mxu0 %v12570_v11  ;;  %7087 = vmatpush1.bf16.msra.mxu1 %v12572_v63  ;;  %v7134_v11 = vld [vmem:[#allocation18 + $0x1460] sm:$0xff]  ;;  %v7131_v63 = vld [vmem:[#allocation18 + $0x1448] sm:$0xff] }
 0x571   : > { %7506 = vmatprep.subr.bf16.mxu0 %v12687_v6  ;;  %7547 = vmatprep.subr.bf16.mxu1 %v12689_v5  ;;  %v7135_v6 = vld [vmem:[#allocation18 + $0x1468] sm:$0xff]  ;;  %v12646_v5 = vcombine.low %v7138_v1, %v7142_v4  ;;  %v12639_v13 = vcombine.high %v7130_v2, %v7134_v11  ;;  %v7156_v4 = vld [vmem:[#allocation18 + $0x1510] sm:$0xff] }
 0x572   : > { %v12641_v7 = vcombine.high %v7131_v63, %v7135_v6  ;;  %v12640_v61 = vcombine.low %v7131_v63, %v7135_v6  ;;  %v7148_v6 = vld [vmem:[#allocation18 + $0x14d0] sm:$0xff] }
 0x573   : > { %v5388_v21 = vpop.f32.mrf.mxu0  ;;  %v5429_v24 = vpop.f32.mrf.mxu1  ;;  %7064 = vmatmul.mubr.bf16.vlgmr.msra.gmra.mxu0 %v15664_v57  ;;  %7105 = vmatmul.mubr.bf16.vlgmr.msra.gmra.mxu1 %v15664_v57 }
 0x574   : > { %v15685_v52 = vadd.f32 %v5388_v21, %v15650_v43  ;;  %v15688_v35 = vadd.f32 %v5429_v24, %v15653_v44  ;;  %7507 = vmatpush1.bf16.msra.mxu0 %v12686_v12  ;;  %7548 = vmatpush1.bf16.msra.mxu1 %v12688_v14  ;;  %v7158_v43 = vld [vmem:[#allocation18 + $0x1520] sm:$0xff]  ;;  %v7159_v44 = vld [vmem:[#allocation18 + $0x1528] sm:$0xff]  ;;  %v7184_v21 = vld [vmem:[#allocation18 + $0x15f0] sm:$0xff] }
 0x575   : > { %v5390_v33 = vpop.f32.mrf.mxu0  ;;  %v5431_v36 = vpop.f32.mrf.mxu1  ;;  %7508 = vmatprep.subr.bf16.mxu0 %v12679_v19  ;;  %7549 = vmatprep.subr.bf16.mxu1 %v12681_v18  ;;  %v12662_v59 = vcombine.low %v7154_v40, %v7158_v43  ;;  %v12664_v53 = vcombine.low %v7155_v28, %v7159_v44  ;;  %v7126_v12 = vld [vmem:[#allocation18 + $0x1420] sm:$0xff]  ;;  %v7123_v14 = vld [vmem:[#allocation18 + $0x1408] sm:$0xff]  ;;  %v12638_v18 = vcombine.low %v7130_v2, %v7134_v11  ;;  %v7181_v24 = vld [vmem:[#allocation18 + $0x15d8] sm:$0xff] }
 0x576   : > { %v15691_v41 = vadd.f32 %v5390_v33, %v15656_v17  ;;  %v15694_v57 = vadd.f32 %v5431_v36, %v15659_v48  ;;  %7538 = vmatprep.mubr.bf16.mxu0 %v14785_v20  ;;  %7579 = vmatprep.mubr.bf16.mxu1 %v14785_v20  ;;  %v12663_v17 = vcombine.high %v7154_v40, %v7158_v43  ;;  %v7127_v19 = vld [vmem:[#allocation18 + $0x1428] sm:$0xff]  ;;  %v7176_v40 = vld [vmem:[#allocation18 + $0x15b0] sm:$0xff]  ;;  %v7173_v43 = vld [vmem:[#allocation18 + $0x1598] sm:$0xff] }
 0x577   : > { %v5392_v42 = vpop.f32.mrf.mxu0  ;;  %v5433_v29 = vpop.f32.mrf.mxu1  ;;  %v12665_v48 = vcombine.high %v7155_v28, %v7159_v44  ;;  %v12631_v38 = vcombine.high %v7122_v15, %v7126_v12  ;;  %v12633_v26 = vcombine.high %v7123_v14, %v7127_v19  ;;  %v12632_v33 = vcombine.low %v7123_v14, %v7127_v19  ;;  %v7177_v28 = vld [vmem:[#allocation18 + $0x15b8] sm:$0xff]  ;;  %v7140_v19 = vld [vmem:[#allocation18 + $0x1490] sm:$0xff] }
 0x578   : > { %7509 = vmatpush1.bf16.msra.mxu0 %v12678_v34  ;;  %7550 = vmatpush1.bf16.msra.mxu1 %v12680_v27  ;;  %v7185_v34 = vld [vmem:[#allocation18 + $0x15f8] sm:$0xff]  ;;  %v12630_v27 = vcombine.low %v7122_v15, %v7126_v12  ;;  %v12691_v36 = vcombine.high %v7180_v22, %v7184_v21  ;;  %v12690_v44 = vcombine.low %v7180_v22, %v7184_v21 }
 0x579   : > { %v5393_v31 = vpop.f32.mrf.mxu0  ;;  %v5434_v47 = vpop.f32.mrf.mxu1  ;;  %7510 = vmatprep.subr.bf16.mxu0 %v12671_v37  ;;  %7551 = vmatprep.subr.bf16.mxu1 %v12673_v39  ;;  %v12693_v37 = vcombine.high %v7181_v24, %v7185_v34  ;;  %v7172_v39 = vld [vmem:[#allocation18 + $0x1590] sm:$0xff]  ;;  %v12692_v42 = vcombine.low %v7181_v24, %v7185_v34 }
 0x57a   : > { %v12683_v29 = vcombine.high %v7172_v39, %v7176_v40  ;;  %v7168_v31 = vld [vmem:[#allocation18 + $0x1570] sm:$0xff]  ;;  %v7165_v47 = vld [vmem:[#allocation18 + $0x1558] sm:$0xff]  ;;  %v12682_v46 = vcombine.low %v7172_v39, %v7176_v40 }
 0x57b   : > { %v7132_v34 = vld [vmem:[#allocation18 + $0x1450] sm:$0xff] }
 0x57c   : > { %7511 = vmatpush1.bf16.msra.mxu0 %v12670_v45  ;;  %7552 = vmatpush1.bf16.msra.mxu1 %v12672_v30  ;;  %v12685_v45 = vcombine.high %v7173_v43, %v7177_v28  ;;  %v7164_v30 = vld [vmem:[#allocation18 + $0x1550] sm:$0xff] }
 0x57d   : > { %7512 = vmatprep.subr.bf16.mxu0 %v12663_v17  ;;  %7553 = vmatprep.subr.bf16.mxu1 %v12665_v48  ;;  %v7169_v17 = vld [vmem:[#allocation18 + $0x1578] sm:$0xff] }
 0x57e   : > { %v12677_v1 = vcombine.high %v7165_v47, %v7169_v17  ;;  %v12676_v2 = vcombine.low %v7165_v47, %v7169_v17  ;;  %v7735_v17 = vld [vmem:[#allocation18 + $0x17c0] sm:$0xff] }
 0x580   : > { %7513 = vmatpush1.bf16.msra.mxu0 %v12662_v59  ;;  %7554 = vmatpush1.bf16.msra.mxu1 %v12664_v53  ;;  %v12684_v59 = vcombine.low %v7173_v43, %v7177_v28  ;;  %v7124_v28 = vld [vmem:[#allocation18 + $0x1410] sm:$0xff] }
 0x581   : > { %7514 = vmatprep.subr.bf16.mxu0 %v12655_v51  ;;  %7555 = vmatprep.subr.bf16.mxu1 %v12657_v58  ;;  %v12675_v58 = vcombine.high %v7164_v30, %v7168_v31 }
 0x584   : > { %7515 = vmatpush1.bf16.msra.mxu0 %v12654_v0  ;;  %7556 = vmatpush1.bf16.msra.mxu1 %v12656_v60  ;;  %v7157_v0 = vld [vmem:[#allocation18 + $0x1518] sm:$0xff] }
 0x585   : > { %7516 = vmatprep.subr.bf16.mxu0 %v12647_v54  ;;  %7557 = vmatprep.subr.bf16.mxu1 %v12649_v56  ;;  %v12674_v56 = vcombine.low %v7164_v30, %v7168_v31 }
 0x588   : > { %7517 = vmatpush1.bf16.msra.mxu0 %v12646_v5  ;;  %7558 = vmatpush1.bf16.msra.mxu1 %v12648_v8  ;;  %v7152_v5 = vld [vmem:[#allocation18 + $0x14f0] sm:$0xff]  ;;  %v7149_v8 = vld [vmem:[#allocation18 + $0x14d8] sm:$0xff] }
 0x589   : > { %7518 = vmatprep.subr.bf16.mxu0 %v12639_v13  ;;  %7559 = vmatprep.subr.bf16.mxu1 %v12641_v7  ;;  %v7153_v13 = vld [vmem:[#allocation18 + $0x14f8] sm:$0xff]  ;;  %v12659_v12 = vcombine.high %v7148_v6, %v7152_v5 }
 0x58a   : > { %v12661_v14 = vcombine.high %v7149_v8, %v7153_v13  ;;  %v12660_v22 = vcombine.low %v7149_v8, %v7153_v13 }
 0x58c   : > { %7519 = vmatpush1.bf16.msra.mxu0 %v12638_v18  ;;  %7560 = vmatpush1.bf16.msra.mxu1 %v12640_v61  ;;  %v7144_v18 = vld [vmem:[#allocation18 + $0x14b0] sm:$0xff]  ;;  %v7141_v61 = vld [vmem:[#allocation18 + $0x1498] sm:$0xff] }
 0x58d   : > { %7520 = vmatprep.subr.bf16.mxu0 %v12631_v38  ;;  %7561 = vmatprep.subr.bf16.mxu1 %v12633_v26  ;;  %v7145_v38 = vld [vmem:[#allocation18 + $0x14b8] sm:$0xff]  ;;  %v12658_v26 = vcombine.low %v7148_v6, %v7152_v5  ;;  %v12651_v21 = vcombine.high %v7140_v19, %v7144_v18 }
 0x58e   : > { %v12653_v24 = vcombine.high %v7141_v61, %v7145_v38  ;;  %v12652_v39 = vcombine.low %v7141_v61, %v7145_v38 }
 0x590   : > { %7521 = vmatpush1.bf16.msra.mxu0 %v12630_v27  ;;  %7562 = vmatpush1.bf16.msra.mxu1 %v12632_v33  ;;  %v7136_v27 = vld [vmem:[#allocation18 + $0x1470] sm:$0xff]  ;;  %v7133_v33 = vld [vmem:[#allocation18 + $0x1458] sm:$0xff] }
 0x591   : > { %7588 = vmatprep.subr.bf16.mxu0 %v12691_v36  ;;  %7629 = vmatprep.subr.bf16.mxu1 %v12693_v37  ;;  %v7137_v36 = vld [vmem:[#allocation18 + $0x1478] sm:$0xff]  ;;  %v12650_v37 = vcombine.low %v7140_v19, %v7144_v18  ;;  %v12643_v40 = vcombine.high %v7132_v34, %v7136_v27  ;;  %v7711_v18 = vld [vmem:[#allocation18 + $0x1700] sm:$0xff] }
 0x592   : > { %v12645_v43 = vcombine.high %v7133_v33, %v7137_v36  ;;  %v12644_v30 = vcombine.low %v7133_v33, %v7137_v36  ;;  %v7703_v36 = vld [vmem:[#allocation18 + $0x16c0] sm:$0xff] }
 0x593   : > { %v5866_v48 = vpop.f32.mrf.mxu0  ;;  %v5907_v32 = vpop.f32.mrf.mxu1  ;;  %7539 = vmatmul.mubr.bf16.vlgmr.msra.gmra.mxu0 %v15448_v23  ;;  %7580 = vmatmul.mubr.bf16.vlgmr.msra.gmra.mxu1 %v15448_v23 }
 0x594   : > { %v15701_v49 = vadd.f32 %v5866_v48, %v15669_v62  ;;  %v15704_v50 = vadd.f32 %v5907_v32, %v15672_v25  ;;  %7589 = vmatpush1.bf16.msra.mxu0 %v12690_v44  ;;  %7630 = vmatpush1.bf16.msra.mxu1 %v12692_v42  ;;  %v7160_v62 = vld [vmem:[#allocation18 + $0x1530] sm:$0xff]  ;;  %v7161_v25 = vld [vmem:[#allocation18 + $0x1538] sm:$0xff]  ;;  %v7739_v48 = vld [vmem:[#allocation18 + $0x17e0] sm:$0xff] }
 0x595   : > { %v5868_v53 = vpop.f32.mrf.mxu0  ;;  %v5909_v51 = vpop.f32.mrf.mxu1  ;;  %7590 = vmatprep.subr.bf16.mxu0 %v12683_v29  ;;  %7631 = vmatprep.subr.bf16.mxu1 %v12685_v45  ;;  %v12666_v7 = vcombine.low %v7156_v4, %v7160_v62  ;;  %v12668_v15 = vcombine.low %v7157_v0, %v7161_v25  ;;  %v7128_v44 = vld [vmem:[#allocation18 + $0x1430] sm:$0xff]  ;;  %v7125_v42 = vld [vmem:[#allocation18 + $0x1418] sm:$0xff]  ;;  %v12642_v45 = vcombine.low %v7132_v34, %v7136_v27  ;;  %v7736_v32 = vld [vmem:[#allocation18 + $0x17c8] sm:$0xff] }
 0x596   : > { %v15707_v55 = vadd.f32 %v5868_v53, %v15675_v9  ;;  %v15710_v16 = vadd.f32 %v5909_v51, %v15678_v10  ;;  %7620 = vmatprep.mubr.bf16.mxu0 %v14785_v20  ;;  %7661 = vmatprep.mubr.bf16.mxu1 %v14785_v20  ;;  %v12667_v9 = vcombine.high %v7156_v4, %v7160_v62  ;;  %v7129_v29 = vld [vmem:[#allocation18 + $0x1438] sm:$0xff]  ;;  %v7731_v4 = vld [vmem:[#allocation18 + $0x17a0] sm:$0xff]  ;;  %v7728_v62 = vld [vmem:[#allocation18 + $0x1788] sm:$0xff] }
 0x597   : > { %v5870_v60 = vpop.f32.mrf.mxu0  ;;  %v5911_v54 = vpop.f32.mrf.mxu1  ;;  %v12669_v10 = vcombine.high %v7157_v0, %v7161_v25  ;;  %v12635_v31 = vcombine.high %v7124_v28, %v7128_v44  ;;  %v12637_v47 = vcombine.high %v7125_v42, %v7129_v29  ;;  %v12636_v53 = vcombine.low %v7125_v42, %v7129_v29  ;;  %v7732_v0 = vld [vmem:[#allocation18 + $0x17a8] sm:$0xff]  ;;  %v7695_v29 = vld [vmem:[#allocation18 + $0x1680] sm:$0xff] }
 0x598   : > { %7591 = vmatpush1.bf16.msra.mxu0 %v12682_v46  ;;  %7632 = vmatpush1.bf16.msra.mxu1 %v12684_v59  ;;  %v7740_v46 = vld [vmem:[#allocation18 + $0x17e8] sm:$0xff]  ;;  %v12634_v59 = vcombine.low %v7124_v28, %v7128_v44  ;;  %v12751_v51 = vcombine.high %v7735_v17, %v7739_v48  ;;  %v12750_v25 = vcombine.low %v7735_v17, %v7739_v48 }
 0x599   : > { %v5871_v11 = vpop.f32.mrf.mxu0  ;;  %v5912_v63 = vpop.f32.mrf.mxu1  ;;  %7592 = vmatprep.subr.bf16.mxu0 %v12675_v58  ;;  %7633 = vmatprep.subr.bf16.mxu1 %v12677_v1  ;;  %v12753_v58 = vcombine.high %v7736_v32, %v7740_v46  ;;  %v7727_v1 = vld [vmem:[#allocation18 + $0x1780] sm:$0xff]  ;;  %v12752_v60 = vcombine.low %v7736_v32, %v7740_v46 }
 0x59a   : > { %v12743_v54 = vcombine.high %v7727_v1, %v7731_v4  ;;  %v7723_v11 = vld [vmem:[#allocation18 + $0x1760] sm:$0xff]  ;;  %v7720_v63 = vld [vmem:[#allocation18 + $0x1748] sm:$0xff]  ;;  %v12742_v5 = vcombine.low %v7727_v1, %v7731_v4 }
 0x59b   : > { %v7687_v46 = vld [vmem:[#allocation18 + $0x1640] sm:$0xff] }
 0x59c   : > { %7593 = vmatpush1.bf16.msra.mxu0 %v12674_v56  ;;  %7634 = vmatpush1.bf16.msra.mxu1 %v12676_v2  ;;  %v12745_v56 = vcombine.high %v7728_v62, %v7732_v0  ;;  %v7719_v2 = vld [vmem:[#allocation18 + $0x1740] sm:$0xff] }
 0x59d   : > { %7594 = vmatprep.subr.bf16.mxu0 %v12667_v9  ;;  %7635 = vmatprep.subr.bf16.mxu1 %v12669_v10  ;;  %v7724_v9 = vld [vmem:[#allocation18 + $0x1768] sm:$0xff] }
 0x59e   : > { %v12737_v19 = vcombine.high %v7720_v63, %v7724_v9  ;;  %v12736_v34 = vcombine.low %v7720_v63, %v7724_v9  ;;  %v7737_v9 = vld [vmem:[#allocation18 + $0x17d0] sm:$0xff] }
 0x5a0   : > { %7595 = vmatpush1.bf16.msra.mxu0 %v12666_v7  ;;  %7636 = vmatpush1.bf16.msra.mxu1 %v12668_v15  ;;  %v12744_v7 = vcombine.low %v7728_v62, %v7732_v0  ;;  %v7679_v0 = vld [vmem:[#allocation18 + $0x1600] sm:$0xff] }
 0x5a1   : > { %7596 = vmatprep.subr.bf16.mxu0 %v12659_v12  ;;  %7637 = vmatprep.subr.bf16.mxu1 %v12661_v14  ;;  %v12735_v14 = vcombine.high %v7719_v2, %v7723_v11 }
 0x5a4   : > { %7597 = vmatpush1.bf16.msra.mxu0 %v12658_v26  ;;  %7638 = vmatpush1.bf16.msra.mxu1 %v12660_v22  ;;  %v7712_v26 = vld [vmem:[#allocation18 + $0x1708] sm:$0xff] }
 0x5a5   : > { %7598 = vmatprep.subr.bf16.mxu0 %v12651_v21  ;;  %7639 = vmatprep.subr.bf16.mxu1 %v12653_v24  ;;  %v12734_v24 = vcombine.low %v7719_v2, %v7723_v11 }
 0x5a8   : > { %7599 = vmatpush1.bf16.msra.mxu0 %v12650_v37  ;;  %7640 = vmatpush1.bf16.msra.mxu1 %v12652_v39  ;;  %v7707_v37 = vld [vmem:[#allocation18 + $0x16e0] sm:$0xff]  ;;  %v7704_v39 = vld [vmem:[#allocation18 + $0x16c8] sm:$0xff] }
 0x5a9   : > { %7600 = vmatprep.subr.bf16.mxu0 %v12643_v40  ;;  %7641 = vmatprep.subr.bf16.mxu1 %v12645_v43  ;;  %v7708_v40 = vld [vmem:[#allocation18 + $0x16e8] sm:$0xff]  ;;  %v12719_v44 = vcombine.high %v7703_v36, %v7707_v37 }
 0x5aa   : > { %v12721_v42 = vcombine.high %v7704_v39, %v7708_v40  ;;  %v12720_v17 = vcombine.low %v7704_v39, %v7708_v40 }
 0x5ac   : > { %7601 = vmatpush1.bf16.msra.mxu0 %v12642_v45  ;;  %7642 = vmatpush1.bf16.msra.mxu1 %v12644_v30  ;;  %v7699_v45 = vld [vmem:[#allocation18 + $0x16a0] sm:$0xff]  ;;  %v7696_v30 = vld [vmem:[#allocation18 + $0x1688] sm:$0xff] }
 0x5ad   : > { %7602 = vmatprep.subr.bf16.mxu0 %v12635_v31  ;;  %7643 = vmatprep.subr.bf16.mxu1 %v12637_v47  ;;  %v7700_v31 = vld [vmem:[#allocation18 + $0x16a8] sm:$0xff]  ;;  %v12718_v47 = vcombine.low %v7703_v36, %v7707_v37  ;;  %v12711_v48 = vcombine.high %v7695_v29, %v7699_v45 }
 0x5ae   : > { %v12713_v32 = vcombine.high %v7696_v30, %v7700_v31  ;;  %v12712_v1 = vcombine.low %v7696_v30, %v7700_v31 }
 0x5b0   : > { %7603 = vmatpush1.bf16.msra.mxu0 %v12634_v59  ;;  %7644 = vmatpush1.bf16.msra.mxu1 %v12636_v53  ;;  %v7691_v59 = vld [vmem:[#allocation18 + $0x1660] sm:$0xff]  ;;  %v7688_v53 = vld [vmem:[#allocation18 + $0x1648] sm:$0xff] }
 0x5b1   : > { %8066 = vmatprep.subr.bf16.mxu0 %v12751_v51  ;;  %8107 = vmatprep.subr.bf16.mxu1 %v12753_v58  ;;  %v7692_v51 = vld [vmem:[#allocation18 + $0x1668] sm:$0xff]  ;;  %v12710_v58 = vcombine.low %v7695_v29, %v7699_v45  ;;  %v12703_v4 = vcombine.high %v7687_v46, %v7691_v59  ;;  %v7713_v45 = vld [vmem:[#allocation18 + $0x1710] sm:$0xff] }
 0x5b2   : > { %v12705_v62 = vcombine.high %v7688_v53, %v7692_v51  ;;  %v12704_v2 = vcombine.low %v7688_v53, %v7692_v51  ;;  %v7705_v51 = vld [vmem:[#allocation18 + $0x16d0] sm:$0xff] }
 0x5b3   : > { %v5948_v10 = vpop.f32.mrf.mxu0  ;;  %v5989_v6 = vpop.f32.mrf.mxu1  ;;  %7621 = vmatmul.mubr.bf16.vlgmr.msra.gmra.mxu0 %v15448_v23  ;;  %7662 = vmatmul.mubr.bf16.vlgmr.msra.gmra.mxu1 %v15448_v23 }
 0x5b4   : > { %v15717_v8 = vadd.f32 %v5948_v10, %v15685_v52  ;;  %v15720_v13 = vadd.f32 %v5989_v6, %v15688_v35  ;;  %8067 = vmatpush1.bf16.msra.mxu0 %v12750_v25  ;;  %8108 = vmatpush1.bf16.msra.mxu1 %v12752_v60  ;;  %v7715_v52 = vld [vmem:[#allocation18 + $0x1720] sm:$0xff]  ;;  %v7716_v35 = vld [vmem:[#allocation18 + $0x1728] sm:$0xff]  ;;  %v7741_v10 = vld [vmem:[#allocation18 + $0x17f0] sm:$0xff] }
 0x5b5   : > { %v5950_v15 = vpop.f32.mrf.mxu0  ;;  %v5991_v12 = vpop.f32.mrf.mxu1  ;;  %8068 = vmatprep.subr.bf16.mxu0 %v12743_v54  ;;  %8109 = vmatprep.subr.bf16.mxu1 %v12745_v56  ;;  %v12726_v43 = vcombine.low %v7711_v18, %v7715_v52  ;;  %v12728_v28 = vcombine.low %v7712_v26, %v7716_v35  ;;  %v7683_v25 = vld [vmem:[#allocation18 + $0x1620] sm:$0xff]  ;;  %v7680_v60 = vld [vmem:[#allocation18 + $0x1608] sm:$0xff]  ;;  %v12702_v56 = vcombine.low %v7687_v46, %v7691_v59  ;;  %v7738_v6 = vld [vmem:[#allocation18 + $0x17d8] sm:$0xff] }
 0x5b6   : > { %v15723_v61 = vadd.f32 %v5950_v15, %v15691_v41  ;;  %v15726_v38 = vadd.f32 %v5991_v12, %v15694_v57  ;;  %8098 = vmatprep.mubr.bf16.mxu0 %v14785_v20  ;;  %8139 = vmatprep.mubr.bf16.mxu1 %v14785_v20  ;;  %v12727_v41 = vcombine.high %v7711_v18, %v7715_v52  ;;  %v7684_v54 = vld [vmem:[#allocation18 + $0x1628] sm:$0xff]  ;;  %v7733_v18 = vld [vmem:[#allocation18 + $0x17b0] sm:$0xff]  ;;  %v7730_v52 = vld [vmem:[#allocation18 + $0x1798] sm:$0xff] }
 0x5b7   : > { %v5952_v22 = vpop.f32.mrf.mxu0  ;;  %v5993_v21 = vpop.f32.mrf.mxu1  ;;  %v12729_v57 = vcombine.high %v7712_v26, %v7716_v35  ;;  %v12695_v11 = vcombine.high %v7679_v0, %v7683_v25  ;;  %v12697_v63 = vcombine.high %v7680_v60, %v7684_v54  ;;  %v12696_v15 = vcombine.low %v7680_v60, %v7684_v54  ;;  %v7734_v26 = vld [vmem:[#allocation18 + $0x17b8] sm:$0xff]  ;;  %v7697_v54 = vld [vmem:[#allocation18 + $0x1690] sm:$0xff] }
 0x5b8   : > { %8069 = vmatpush1.bf16.msra.mxu0 %v12742_v5  ;;  %8110 = vmatpush1.bf16.msra.mxu1 %v12744_v7  ;;  %v7742_v5 = vld [vmem:[#allocation18 + $0x17f8] sm:$0xff]  ;;  %v12694_v7 = vcombine.low %v7679_v0, %v7683_v25  ;;  %v12755_v12 = vcombine.high %v7737_v9, %v7741_v10  ;;  %v12754_v35 = vcombine.low %v7737_v9, %v7741_v10  ;;  %v15731_v21 = vrot.slane %v15448_v23, 4 }
 0x5b9   : > { %v5953_v27 = vpop.f32.mrf.mxu0  ;;  %v5994_v33 = vpop.f32.mrf.mxu1  ;;  %8070 = vmatprep.subr.bf16.mxu0 %v12735_v14  ;;  %8111 = vmatprep.subr.bf16.mxu1 %v12737_v19  ;;  %v12757_v14 = vcombine.high %v7738_v6, %v7742_v5  ;;  %v7729_v19 = vld [vmem:[#allocation18 + $0x1790] sm:$0xff]  ;;  %v12756_v22 = vcombine.low %v7738_v6, %v7742_v5 }
 0x5ba   : > { %v7721_v27 = vld [vmem:[#allocation18 + $0x1750] sm:$0xff]  ;;  %v12746_v39 = vcombine.low %v7729_v19, %v7733_v18 }
 0x5bb   : > { %v7725_v33 = vld [vmem:[#allocation18 + $0x1770] sm:$0xff] }
 0x5bc   : > { %8071 = vmatpush1.bf16.msra.mxu0 %v12734_v24  ;;  %8112 = vmatpush1.bf16.msra.mxu1 %v12736_v34  ;;  %v12747_v24 = vcombine.high %v7729_v19, %v7733_v18  ;;  %v12749_v34 = vcombine.high %v7730_v52, %v7734_v26  ;;  %v7689_v5 = vld [vmem:[#allocation18 + $0x1650] sm:$0xff] }
 0x5bd   : > { %8072 = vmatprep.subr.bf16.mxu0 %v12727_v41  ;;  %8113 = vmatprep.subr.bf16.mxu1 %v12729_v57  ;;  %v7722_v41 = vld [vmem:[#allocation18 + $0x1758] sm:$0xff] }
 0x5be   : > { %v7726_v57 = vld [vmem:[#allocation18 + $0x1778] sm:$0xff] }
 0x5bf   : > { %v12741_v29 = vcombine.high %v7722_v41, %v7726_v57  ;;  %v12740_v46 = vcombine.low %v7722_v41, %v7726_v57  ;;  %v8295_v57 = vld [vmem:[#allocation18 + $0x19c0] sm:$0xff] }
 0x5c0   : > { %8073 = vmatpush1.bf16.msra.mxu0 %v12726_v43  ;;  %8114 = vmatpush1.bf16.msra.mxu1 %v12728_v28  ;;  %v12748_v43 = vcombine.low %v7730_v52, %v7734_v26  ;;  %v7681_v26 = vld [vmem:[#allocation18 + $0x1610] sm:$0xff] }
 0x5c1   : > { %8074 = vmatprep.subr.bf16.mxu0 %v12719_v44  ;;  %8115 = vmatprep.subr.bf16.mxu1 %v12721_v42  ;;  %v12739_v42 = vcombine.high %v7721_v27, %v7725_v33 }
 0x5c4   : > { %8075 = vmatpush1.bf16.msra.mxu0 %v12718_v47  ;;  %8116 = vmatpush1.bf16.msra.mxu1 %v12720_v17  ;;  %v7714_v47 = vld [vmem:[#allocation18 + $0x1718] sm:$0xff] }
 0x5c5   : > { %8076 = vmatprep.subr.bf16.mxu0 %v12711_v48  ;;  %8117 = vmatprep.subr.bf16.mxu1 %v12713_v32  ;;  %v12738_v32 = vcombine.low %v7721_v27, %v7725_v33 }
 0x5c8   : > { %8077 = vmatpush1.bf16.msra.mxu0 %v12710_v58  ;;  %8118 = vmatpush1.bf16.msra.mxu1 %v12712_v1  ;;  %v7709_v58 = vld [vmem:[#allocation18 + $0x16f0] sm:$0xff]  ;;  %v7706_v1 = vld [vmem:[#allocation18 + $0x16d8] sm:$0xff] }
 0x5c9   : > { %8078 = vmatprep.subr.bf16.mxu0 %v12703_v4  ;;  %8119 = vmatprep.subr.bf16.mxu1 %v12705_v62  ;;  %v7710_v4 = vld [vmem:[#allocation18 + $0x16f8] sm:$0xff]  ;;  %v12723_v25 = vcombine.high %v7705_v51, %v7709_v58 }
 0x5ca   : > { %v12725_v60 = vcombine.high %v7706_v1, %v7710_v4  ;;  %v12724_v9 = vcombine.low %v7706_v1, %v7710_v4 }
 0x5cc   : > { %8079 = vmatpush1.bf16.msra.mxu0 %v12702_v56  ;;  %8120 = vmatpush1.bf16.msra.mxu1 %v12704_v2  ;;  %v7701_v56 = vld [vmem:[#allocation18 + $0x16b0] sm:$0xff]  ;;  %v7698_v2 = vld [vmem:[#allocation18 + $0x1698] sm:$0xff] }
 0x5cd   : > { %8080 = vmatprep.subr.bf16.mxu0 %v12695_v11  ;;  %8121 = vmatprep.subr.bf16.mxu1 %v12697_v63  ;;  %v7702_v11 = vld [vmem:[#allocation18 + $0x16b8] sm:$0xff]  ;;  %v12722_v63 = vcombine.low %v7705_v51, %v7709_v58  ;;  %v12715_v10 = vcombine.high %v7697_v54, %v7701_v56 }
 0x5ce   : > { %v12717_v6 = vcombine.high %v7698_v2, %v7702_v11  ;;  %v12716_v19 = vcombine.low %v7698_v2, %v7702_v11  ;;  %v8272_v11 = vld [vmem:[#allocation18 + $0x1908] sm:$0xff] }
 0x5d0   : > { %8081 = vmatpush1.bf16.msra.mxu0 %v12694_v7  ;;  %8122 = vmatpush1.bf16.msra.mxu1 %v12696_v15  ;;  %v7693_v7 = vld [vmem:[#allocation18 + $0x1670] sm:$0xff]  ;;  %v7690_v15 = vld [vmem:[#allocation18 + $0x1658] sm:$0xff] }
 0x5d1   : > { %8148 = vmatprep.subr.bf16.mxu0 %v12755_v12  ;;  %8189 = vmatprep.subr.bf16.mxu1 %v12757_v14  ;;  %v7694_v12 = vld [vmem:[#allocation18 + $0x1678] sm:$0xff]  ;;  %v12714_v14 = vcombine.low %v7697_v54, %v7701_v56  ;;  %v12707_v18 = vcombine.high %v7689_v5, %v7693_v7  ;;  %v8271_v56 = vld [vmem:[#allocation18 + $0x1900] sm:$0xff] }
 0x5d2   : > { %v12709_v52 = vcombine.high %v7690_v15, %v7694_v12  ;;  %v12708_v27 = vcombine.low %v7690_v15, %v7694_v12  ;;  %v8263_v15 = vld [vmem:[#allocation18 + $0x18c0] sm:$0xff] }
 0x5d3   : > { %v6423_v36 = vpop.f32.mrf.mxu0  ;;  %v6464_v37 = vpop.f32.mrf.mxu1  ;;  %8099 = vmatmul.mubr.bf16.vlgmr.msra.gmra.mxu0 %v15731_v21  ;;  %8140 = vmatmul.mubr.bf16.vlgmr.msra.gmra.mxu1 %v15731_v21  ;;  %v8267_v12 = vld [vmem:[#allocation18 + $0x18e0] sm:$0xff] }
 0x5d4   : > { %v15736_v40 = vadd.f32 %v6423_v36, %v15701_v49  ;;  %v15739_v23 = vadd.f32 %v6464_v37, %v15704_v50  ;;  %8149 = vmatpush1.bf16.msra.mxu0 %v12754_v35  ;;  %8190 = vmatpush1.bf16.msra.mxu1 %v12756_v22  ;;  %v7717_v49 = vld [vmem:[#allocation18 + $0x1730] sm:$0xff]  ;;  %v7718_v50 = vld [vmem:[#allocation18 + $0x1738] sm:$0xff]  ;;  %v8299_v36 = vld [vmem:[#allocation18 + $0x19e0] sm:$0xff] }
 0x5d5   : > { %v6425_v28 = vpop.f32.mrf.mxu0  ;;  %v6466_v44 = vpop.f32.mrf.mxu1  ;;  %8150 = vmatprep.subr.bf16.mxu0 %v12747_v24  ;;  %8191 = vmatprep.subr.bf16.mxu1 %v12749_v34  ;;  %v12730_v62 = vcombine.low %v7713_v45, %v7717_v49  ;;  %v12732_v0 = vcombine.low %v7714_v47, %v7718_v50  ;;  %v7685_v35 = vld [vmem:[#allocation18 + $0x1630] sm:$0xff]  ;;  %v7682_v22 = vld [vmem:[#allocation18 + $0x1618] sm:$0xff]  ;;  %v12706_v34 = vcombine.low %v7689_v5, %v7693_v7  ;;  %v8296_v37 = vld [vmem:[#allocation18 + $0x19c8] sm:$0xff] }
 0x5d6   : > { %v15742_v30 = vadd.f32 %v6425_v28, %v15707_v55  ;;  %v15745_v31 = vadd.f32 %v6466_v44, %v15710_v16  ;;  %8180 = vmatprep.mubr.bf16.mxu0 %v14785_v20  ;;  %8221 = vmatprep.mubr.bf16.mxu1 %v14785_v20  ;;  %v12731_v55 = vcombine.high %v7713_v45, %v7717_v49  ;;  %v7686_v24 = vld [vmem:[#allocation18 + $0x1638] sm:$0xff]  ;;  %v8291_v45 = vld [vmem:[#allocation18 + $0x19a0] sm:$0xff]  ;;  %v8288_v49 = vld [vmem:[#allocation18 + $0x1988] sm:$0xff] }
 0x5d7   : > { %v6427_v17 = vpop.f32.mrf.mxu0  ;;  %v6468_v48 = vpop.f32.mrf.mxu1  ;;  %v12733_v16 = vcombine.high %v7714_v47, %v7718_v50  ;;  %v12699_v33 = vcombine.high %v7681_v26, %v7685_v35  ;;  %v12701_v41 = vcombine.high %v7682_v22, %v7686_v24  ;;  %v12700_v28 = vcombine.low %v7682_v22, %v7686_v24  ;;  %v8292_v47 = vld [vmem:[#allocation18 + $0x19a8] sm:$0xff]  ;;  %v8255_v22 = vld [vmem:[#allocation18 + $0x1880] sm:$0xff] }
 0x5d8   : > { %8151 = vmatpush1.bf16.msra.mxu0 %v12746_v39  ;;  %8192 = vmatpush1.bf16.msra.mxu1 %v12748_v43  ;;  %v8300_v39 = vld [vmem:[#allocation18 + $0x19e8] sm:$0xff]  ;;  %v12698_v43 = vcombine.low %v7681_v26, %v7685_v35  ;;  %v12815_v44 = vcombine.high %v8295_v57, %v8299_v36  ;;  %v12814_v50 = vcombine.low %v8295_v57, %v8299_v36  ;;  %v8259_v24 = vld [vmem:[#allocation18 + $0x18a0] sm:$0xff] }
 0x5d9   : > { %v6428_v59 = vpop.f32.mrf.mxu0  ;;  %v6469_v53 = vpop.f32.mrf.mxu1  ;;  %8152 = vmatprep.subr.bf16.mxu0 %v12739_v42  ;;  %8193 = vmatprep.subr.bf16.mxu1 %v12741_v29  ;;  %v12817_v42 = vcombine.high %v8296_v37, %v8300_v39  ;;  %v8287_v29 = vld [vmem:[#allocation18 + $0x1980] sm:$0xff]  ;;  %v12816_v17 = vcombine.low %v8296_v37, %v8300_v39  ;;  %v12783_v26 = vcombine.high %v8263_v15, %v8267_v12 }
 0x5da   : > { %v12807_v48 = vcombine.high %v8287_v29, %v8291_v45  ;;  %v8283_v59 = vld [vmem:[#allocation18 + $0x1960] sm:$0xff]  ;;  %v8280_v53 = vld [vmem:[#allocation18 + $0x1948] sm:$0xff]  ;;  %v12806_v58 = vcombine.low %v8287_v29, %v8291_v45  ;;  %v12775_v57 = vcombine.high %v8255_v22, %v8259_v24 }
 0x5db   : > { %v8247_v37 = vld [vmem:[#allocation18 + $0x1840] sm:$0xff] }
 0x5dc   : > { %8153 = vmatpush1.bf16.msra.mxu0 %v12738_v32  ;;  %8194 = vmatpush1.bf16.msra.mxu1 %v12740_v46  ;;  %v12809_v32 = vcombine.high %v8288_v49, %v8292_v47  ;;  %v8279_v46 = vld [vmem:[#allocation18 + $0x1940] sm:$0xff] }
 0x5dd   : > { %8154 = vmatprep.subr.bf16.mxu0 %v12731_v55  ;;  %8195 = vmatprep.subr.bf16.mxu1 %v12733_v16  ;;  %v8284_v55 = vld [vmem:[#allocation18 + $0x1968] sm:$0xff]  ;;  %v8251_v39 = vld [vmem:[#allocation18 + $0x1860] sm:$0xff] }
 0x5de   : > { %v12801_v54 = vcombine.high %v8280_v53, %v8284_v55  ;;  %v12767_v29 = vcombine.high %v8247_v37, %v8251_v39 }
 0x5e0   : > { %8155 = vmatpush1.bf16.msra.mxu0 %v12730_v62  ;;  %8196 = vmatpush1.bf16.msra.mxu1 %v12732_v0  ;;  %v12808_v62 = vcombine.low %v8288_v49, %v8292_v47  ;;  %v8239_v49 = vld [vmem:[#allocation18 + $0x1800] sm:$0xff] }
 0x5e1   : > { %8156 = vmatprep.subr.bf16.mxu0 %v12723_v25  ;;  %8197 = vmatprep.subr.bf16.mxu1 %v12725_v60  ;;  %v12799_v60 = vcombine.high %v8279_v46, %v8283_v59  ;;  %v8243_v47 = vld [vmem:[#allocation18 + $0x1820] sm:$0xff] }
 0x5e4   : > { %8157 = vmatpush1.bf16.msra.mxu0 %v12722_v63  ;;  %8198 = vmatpush1.bf16.msra.mxu1 %v12724_v9 }
 0x5e5   : > { %8158 = vmatprep.subr.bf16.mxu0 %v12715_v10  ;;  %8199 = vmatprep.subr.bf16.mxu1 %v12717_v6  ;;  %v12798_v10 = vcombine.low %v8279_v46, %v8283_v59  ;;  %v12800_v6 = vcombine.low %v8280_v53, %v8284_v55  ;;  %v12759_v46 = vcombine.high %v8239_v49, %v8243_v47  ;;  %v8297_v53 = vld [vmem:[#allocation18 + $0x19d0] sm:$0xff] }
 0x5e6   : > { %v8301_v55 = vld [vmem:[#allocation18 + $0x19f0] sm:$0xff] }
 0x5e8   : > { %8159 = vmatpush1.bf16.msra.mxu0 %v12714_v14  ;;  %8200 = vmatpush1.bf16.msra.mxu1 %v12716_v19  ;;  %v8264_v14 = vld [vmem:[#allocation18 + $0x18c8] sm:$0xff] }
 0x5e9   : > { %8160 = vmatprep.subr.bf16.mxu0 %v12707_v18  ;;  %8201 = vmatprep.subr.bf16.mxu1 %v12709_v52  ;;  %v8268_v19 = vld [vmem:[#allocation18 + $0x18e8] sm:$0xff] }
 0x5ea   : > { %v12785_v35 = vcombine.high %v8264_v14, %v8268_v19 }
 0x5ec   : > { %8161 = vmatpush1.bf16.msra.mxu0 %v12706_v34  ;;  %8202 = vmatpush1.bf16.msra.mxu1 %v12708_v27  ;;  %v8256_v34 = vld [vmem:[#allocation18 + $0x1888] sm:$0xff] }
 0x5ed   : > { %8162 = vmatprep.subr.bf16.mxu0 %v12699_v33  ;;  %8203 = vmatprep.subr.bf16.mxu1 %v12701_v41  ;;  %v8260_v27 = vld [vmem:[#allocation18 + $0x18a8] sm:$0xff]  ;;  %v12782_v33 = vcombine.low %v8263_v15, %v8267_v12  ;;  %v12784_v41 = vcombine.low %v8264_v14, %v8268_v19 }
 0x5ee   : > { %v12777_v36 = vcombine.high %v8256_v34, %v8260_v27 }
 0x5f0   : > { %8163 = vmatpush1.bf16.msra.mxu0 %v12698_v43  ;;  %8204 = vmatpush1.bf16.msra.mxu1 %v12700_v28  ;;  %v8248_v43 = vld [vmem:[#allocation18 + $0x1848] sm:$0xff] }
 0x5f1   : > { %8623 = vmatprep.subr.bf16.mxu0 %v12815_v44  ;;  %8664 = vmatprep.subr.bf16.mxu1 %v12817_v42  ;;  %v8252_v28 = vld [vmem:[#allocation18 + $0x1868] sm:$0xff]  ;;  %v12774_v44 = vcombine.low %v8255_v22, %v8259_v24  ;;  %v12776_v42 = vcombine.low %v8256_v34, %v8260_v27  ;;  %v8273_v22 = vld [vmem:[#allocation18 + $0x1910] sm:$0xff]  ;;  %v8274_v27 = vld [vmem:[#allocation18 + $0x1918] sm:$0xff] }
 0x5f2   : > { %v12769_v45 = vcombine.high %v8248_v43, %v8252_v28 }
 0x5f3   : > { %v6505_v16 = vpop.f32.mrf.mxu0  ;;  %v6546_v51 = vpop.f32.mrf.mxu1  ;;  %8181 = vmatmul.mubr.bf16.vlgmr.msra.gmra.mxu0 %v15731_v21  ;;  %8222 = vmatmul.mubr.bf16.vlgmr.msra.gmra.mxu1 %v15731_v21 }
 0x5f4   : > { %v15752_v1 = vadd.f32 %v6505_v16, %v15717_v8  ;;  %v15755_v4 = vadd.f32 %v6546_v51, %v15720_v13  ;;  %8624 = vmatpush1.bf16.msra.mxu0 %v12814_v50  ;;  %8665 = vmatpush1.bf16.msra.mxu1 %v12816_v17  ;;  %v8275_v8 = vld [vmem:[#allocation18 + $0x1920] sm:$0xff]  ;;  %v8276_v13 = vld [vmem:[#allocation18 + $0x1928] sm:$0xff]  ;;  %v8298_v16 = vld [vmem:[#allocation18 + $0x19d8] sm:$0xff] }
 0x5f5   : > { %v6507_v0 = vpop.f32.mrf.mxu0  ;;  %v6548_v25 = vpop.f32.mrf.mxu1  ;;  %8625 = vmatprep.subr.bf16.mxu0 %v12807_v48  ;;  %8666 = vmatprep.subr.bf16.mxu1 %v12809_v32  ;;  %v12790_v18 = vcombine.low %v8271_v56, %v8275_v8  ;;  %v12792_v52 = vcombine.low %v8272_v11, %v8276_v13  ;;  %v8240_v50 = vld [vmem:[#allocation18 + $0x1808] sm:$0xff]  ;;  %v12766_v48 = vcombine.low %v8247_v37, %v8251_v39  ;;  %v8302_v51 = vld [vmem:[#allocation18 + $0x19f8] sm:$0xff] }
 0x5f6   : > { %v15758_v2 = vadd.f32 %v6507_v0, %v15723_v61  ;;  %v15761_v21 = vadd.f32 %v6548_v25, %v15726_v38  ;;  %8655 = vmatprep.mubr.bf16.mxu0 %v14785_v20  ;;  %8696 = vmatprep.mubr.bf16.mxu1 %v14785_v20  ;;  %v12791_v61 = vcombine.high %v8271_v56, %v8275_v8  ;;  %v8244_v17 = vld [vmem:[#allocation18 + $0x1828] sm:$0xff]  ;;  %v8290_v56 = vld [vmem:[#allocation18 + $0x1998] sm:$0xff] }
 0x5f7   : > { %v6509_v63 = vpop.f32.mrf.mxu0  ;;  %v6550_v9 = vpop.f32.mrf.mxu1  ;;  %v12793_v38 = vcombine.high %v8272_v11, %v8276_v13  ;;  %v12768_v32 = vcombine.low %v8248_v43, %v8252_v28  ;;  %v12761_v59 = vcombine.high %v8240_v50, %v8244_v17  ;;  %v12819_v0 = vcombine.high %v8297_v53, %v8301_v55  ;;  %v8294_v8 = vld [vmem:[#allocation18 + $0x19b8] sm:$0xff]  ;;  %v8265_v43 = vld [vmem:[#allocation18 + $0x18d0] sm:$0xff] }
 0x5f8   : > { %8626 = vmatpush1.bf16.msra.mxu0 %v12806_v58  ;;  %8667 = vmatpush1.bf16.msra.mxu1 %v12808_v62  ;;  %v12758_v58 = vcombine.low %v8239_v49, %v8243_v47  ;;  %v12760_v62 = vcombine.low %v8240_v50, %v8244_v17  ;;  %v12821_v25 = vcombine.high %v8298_v16, %v8302_v51  ;;  %v8269_v28 = vld [vmem:[#allocation18 + $0x18f0] sm:$0xff]  ;;  %v8258_v17 = vld [vmem:[#allocation18 + $0x1898] sm:$0xff] }
 0x5f9   : > { %v6510_v5 = vpop.f32.mrf.mxu0  ;;  %v6551_v7 = vpop.f32.mrf.mxu1  ;;  %8627 = vmatprep.subr.bf16.mxu0 %v12799_v60  ;;  %8668 = vmatprep.subr.bf16.mxu1 %v12801_v54  ;;  %v8289_v60 = vld [vmem:[#allocation18 + $0x1990] sm:$0xff]  ;;  %v12818_v11 = vcombine.low %v8297_v53, %v8301_v55  ;;  %v12820_v13 = vcombine.low %v8298_v16, %v8302_v51  ;;  %v15767_v63 = vpack.c.bf16 %v15452_v3, %v15452_v3  ;;  %v8250_v51 = vld [vmem:[#allocation18 + $0x1858] sm:$0xff] }
 0x5fa   : > { %v8293_v54 = vld [vmem:[#allocation18 + $0x19b0] sm:$0xff]  ;;  %v8282_v7 = vld [vmem:[#allocation18 + $0x1958] sm:$0xff]  ;;  %v12812_v19 = vcombine.low %v8290_v56, %v8294_v8 }
 0x5fb   : > { %v12811_v9 = vcombine.high %v8289_v60, %v8293_v54  ;;  %v8285_v5 = vld [vmem:[#allocation18 + $0x1970] sm:$0xff]  ;;  %v12810_v12 = vcombine.low %v8289_v60, %v8293_v54 }
 0x5fc   : > { %8628 = vmatpush1.bf16.msra.mxu0 %v12798_v10  ;;  %8669 = vmatpush1.bf16.msra.mxu1 %v12800_v6  ;;  %v12813_v10 = vcombine.high %v8290_v56, %v8294_v8  ;;  %v8281_v6 = vld [vmem:[#allocation18 + $0x1950] sm:$0xff]  ;;  %v8242_v8 = vld [vmem:[#allocation18 + $0x1818] sm:$0xff] }
 0x5fd   : > { %8629 = vmatprep.subr.bf16.mxu0 %v12791_v61  ;;  %8670 = vmatprep.subr.bf16.mxu1 %v12793_v38  ;;  %v8286_v61 = vld [vmem:[#allocation18 + $0x1978] sm:$0xff]  ;;  %v8257_v47 = vld [vmem:[#allocation18 + $0x1890] sm:$0xff] }
 0x5fe   : > { %v8261_v50 = vld [vmem:[#allocation18 + $0x18b0] sm:$0xff] }
 0x5ff   : > { %v8249_v55 = vld [vmem:[#allocation18 + $0x1850] sm:$0xff] }
 0x600   : > { %8630 = vmatpush1.bf16.msra.mxu0 %v12790_v18  ;;  %8671 = vmatpush1.bf16.msra.mxu1 %v12792_v52  ;;  %v8253_v16 = vld [vmem:[#allocation18 + $0x1870] sm:$0xff] }
 0x601   : > { %8631 = vmatprep.subr.bf16.mxu0 %v12783_v26  ;;  %8672 = vmatprep.subr.bf16.mxu1 %v12785_v35  ;;  %v12803_v26 = vcombine.high %v8281_v6, %v8285_v5  ;;  %v12805_v35 = vcombine.high %v8282_v7, %v8286_v61  ;;  %v8241_v54 = vld [vmem:[#allocation18 + $0x1810] sm:$0xff] }
 0x602   : > { %v8245_v56 = vld [vmem:[#allocation18 + $0x1830] sm:$0xff] }
 0x604   : > { %8632 = vmatpush1.bf16.msra.mxu0 %v12782_v33  ;;  %8673 = vmatpush1.bf16.msra.mxu1 %v12784_v41 }
 0x605   : > { %8633 = vmatprep.subr.bf16.mxu0 %v12775_v57  ;;  %8674 = vmatprep.subr.bf16.mxu1 %v12777_v36  ;;  %v12802_v57 = vcombine.low %v8281_v6, %v8285_v5  ;;  %v12804_v36 = vcombine.low %v8282_v7, %v8286_v61  ;;  %v12762_v5 = vcombine.low %v8241_v54, %v8245_v56  ;;  %v13560_v61 = vld [vmem:[#allocation24 + $0xe4] ss:$16 sps:$4 sm:$0xff]  }
 0x608   : > { %8634 = vmatpush1.bf16.msra.mxu0 %v12774_v44  ;;  %8675 = vmatpush1.bf16.msra.mxu1 %v12776_v42  ;;  %v8266_v44 = vld [vmem:[#allocation18 + $0x18d8] sm:$0xff] }
 0x609   : > { %8635 = vmatprep.subr.bf16.mxu0 %v12767_v29  ;;  %8676 = vmatprep.subr.bf16.mxu1 %v12769_v45  ;;  %v8270_v42 = vld [vmem:[#allocation18 + $0x18f8] sm:$0xff]  ;;  %v12787_v45 = vcombine.high %v8265_v43, %v8269_v28 }
 0x60a   : > { %v12789_v49 = vcombine.high %v8266_v44, %v8270_v42 }
 0x60c   : > { %8636 = vmatpush1.bf16.msra.mxu0 %v12766_v48  ;;  %8677 = vmatpush1.bf16.msra.mxu1 %v12768_v32  ;;  %v8262_v48 = vld [vmem:[#allocation18 + $0x18b8] sm:$0xff]  ;;  %v12786_v32 = vcombine.low %v8265_v43, %v8269_v28 }
 0x60d   : > { %8637 = vmatprep.subr.bf16.mxu0 %v12759_v46  ;;  %8678 = vmatprep.subr.bf16.mxu1 %v12761_v59  ;;  %v12788_v46 = vcombine.low %v8266_v44, %v8270_v42  ;;  %v12779_v59 = vcombine.high %v8257_v47, %v8261_v50  ;;  %v12781_v53 = vcombine.high %v8258_v17, %v8262_v48  ;;  %v13578_v43 = vld [vmem:[#allocation24 + $0x84] ss:$16 sps:$4 sm:$0xff]   ;;  %v13576_v44 = vld [vmem:[#allocation24 + $0x80] ss:$16 sps:$4 sm:$0xff]  }
 0x60e   : > { %v13581_v28 = vld [vmem:[#allocation24 + $0x284] ss:$16 sps:$4 sm:$0xff]  }
 0x60f   : > { %v13587_v42 = vld [vmem:[#allocation24 + $0x264] ss:$16 sps:$4 sm:$0xff]  }
 0x610   : > { %8638 = vmatpush1.bf16.msra.mxu0 %v12758_v58  ;;  %8679 = vmatpush1.bf16.msra.mxu1 %v12760_v62  ;;  %v8254_v58 = vld [vmem:[#allocation18 + $0x1878] sm:$0xff]  ;;  %v12778_v62 = vcombine.low %v8257_v47, %v8261_v50 }
 0x611   : > { %8705 = vmatprep.subr.bf16.mxu0 %v12819_v0  ;;  %8746 = vmatprep.subr.bf16.mxu1 %v12821_v25  ;;  %v12780_v0 = vcombine.low %v8258_v17, %v8262_v48  ;;  %v12771_v25 = vcombine.high %v8249_v55, %v8253_v16  ;;  %v12773_v60 = vcombine.high %v8250_v51, %v8254_v58  ;;  %v13588_v47 = vld [vmem:[#allocation24 + $0x40] ss:$16 sps:$4 sm:$0xff]   ;;  %v13596_v17 = vld [vmem:[#allocation24 + $0x24] ss:$16 sps:$4 sm:$0xff]  }
 0x612   : > { %v13591_v50 = vld [vmem:[#allocation24 + $0x240] ss:$16 sps:$4 sm:$0xff]   ;;  %v13599_v48 = vld [vmem:[#allocation24 + $0x224] ss:$16 sps:$4 sm:$0xff]  }
 0x613   : > { %v6983_v38 = vpop.f32.mrf.mxu0  ;;  %v7024_v15 = vpop.f32.mrf.mxu1  ;;  %8656 = vmatmul.mubr.bf16.vlgmr.msra.gmra.mxu0 %v15767_v63  ;;  %8697 = vmatmul.mubr.bf16.vlgmr.msra.gmra.mxu1 %v15767_v63 }
 0x614   : > { %v15772_v14 = vadd.f32 %v6983_v38, %v15736_v40  ;;  %v15775_v3 = vadd.f32 %v7024_v15, %v15739_v23  ;;  %8706 = vmatpush1.bf16.msra.mxu0 %v12818_v11  ;;  %8747 = vmatpush1.bf16.msra.mxu1 %v12820_v13  ;;  %v8277_v40 = vld [vmem:[#allocation18 + $0x1930] sm:$0xff]  ;;  %v8278_v23 = vld [vmem:[#allocation18 + $0x1938] sm:$0xff]  ;;  %v12770_v13 = vcombine.low %v8249_v55, %v8253_v16 }
 0x615   : > { %v6985_v18 = vpop.f32.mrf.mxu0  ;;  %v7026_v52 = vpop.f32.mrf.mxu1  ;;  %8707 = vmatprep.subr.bf16.mxu0 %v12811_v9  ;;  %8748 = vmatprep.subr.bf16.mxu1 %v12813_v10  ;;  %v12794_v29 = vcombine.low %v8273_v22, %v8277_v40  ;;  %v8246_v11 = vld [vmem:[#allocation18 + $0x1838] sm:$0xff]  ;;  %v12772_v9 = vcombine.low %v8250_v51, %v8254_v58  ;;  %v12763_v10 = vcombine.high %v8241_v54, %v8245_v56 }
 0x616   : > { %v15778_v24 = vadd.f32 %v6985_v18, %v15742_v30  ;;  %v15781_v34 = vadd.f32 %v7026_v52, %v15745_v31  ;;  %8737 = vmatprep.mubr.bf16.mxu0 %v14785_v20  ;;  %8778 = vmatprep.mubr.bf16.mxu1 %v14785_v20  ;;  %v12795_v30 = vcombine.high %v8273_v22, %v8277_v40  ;;  %v13563_v38 = vld [vmem:[#allocation24 + $0x2e4] ss:$16 sps:$4 sm:$0xff]   ;;  %v13558_v15 = vld [vmem:[#allocation24 + $0xe0] ss:$16 sps:$4 sm:$0xff]  }
 0x617   : > { %v6987_v33 = vpop.f32.mrf.mxu0  ;;  %v7028_v41 = vpop.f32.mrf.mxu1  ;;  %v12797_v31 = vcombine.high %v8274_v27, %v8278_v23  ;;  %v12796_v20 = vcombine.low %v8274_v27, %v8278_v23  ;;  %v12765_v6 = vcombine.high %v8242_v8, %v8246_v11  ;;  %v12764_v7 = vcombine.low %v8242_v8, %v8246_v11  ;;  %v13569_v18 = vld [vmem:[#allocation24 + $0x2c4] ss:$16 sps:$4 sm:$0xff]   ;;  %v13564_v40 = vld [vmem:[#allocation24 + $0xc0] ss:$16 sps:$4 sm:$0xff]  }
 0x618   : > { %8708 = vmatpush1.bf16.msra.mxu0 %v12810_v12  ;;  %8749 = vmatpush1.bf16.msra.mxu1 %v12812_v19  ;;  %v13561_v12 = vld [vmem:[#allocation24 + $0x2e0] ss:$16 sps:$4 sm:$0xff]   ;;  %v13566_v19 = vld [vmem:[#allocation24 + $0xc4] ss:$16 sps:$4 sm:$0xff]  }
 0x619   : > { %v6988_v37 = vpop.f32.mrf.mxu0  ;;  %v7029_v39 = vpop.f32.mrf.mxu1  ;;  %8709 = vmatprep.subr.bf16.mxu0 %v12803_v26  ;;  %8750 = vmatprep.subr.bf16.mxu1 %v12805_v35  ;;  %v13567_v27 = vld [vmem:[#allocation24 + $0x2c0] ss:$16 sps:$4 sm:$0xff]   ;;  %v13572_v41 = vld [vmem:[#allocation24 + $0xa4] ss:$16 sps:$4 sm:$0xff]  }
 0x61a   : > { %v13573_v39 = vld [vmem:[#allocation24 + $0x2a0] ss:$16 sps:$4 sm:$0xff]   ;;  %v13608_v51 = vld [vmem:[#allocation24 + $0x1e4] ss:$16 sps:$4 sm:$0xff]  }
 0x61b   : > { %v13600_v55 = vld [vmem:[#allocation24] ss:$16 sps:$4 sm:$0xff]   ;;  %v13611_v58 = vld [vmem:[#allocation24 + $0x3e4] ss:$16 sps:$4 sm:$0xff]  }
 0x61c   : > { %8710 = vmatpush1.bf16.msra.mxu0 %v12802_v57  ;;  %8751 = vmatpush1.bf16.msra.mxu1 %v12804_v36  ;;  %v13575_v57 = vld [vmem:[#allocation24 + $0x2a4] ss:$16 sps:$4 sm:$0xff]   ;;  %v13603_v16 = vld [vmem:[#allocation24 + $0x200] ss:$16 sps:$4 sm:$0xff]  }
 0x61d   : > { %8711 = vmatprep.subr.bf16.mxu0 %v12795_v30  ;;  %8752 = vmatprep.subr.bf16.mxu1 %v12797_v31 }
 0x620   : > { %8712 = vmatpush1.bf16.msra.mxu0 %v12794_v29  ;;  %8753 = vmatpush1.bf16.msra.mxu1 %v12796_v20  ;;  %v13582_v29 = vld [vmem:[#allocation24 + $0x60] ss:$16 sps:$4 sm:$0xff]  }
 0x621   : > { %8713 = vmatprep.subr.bf16.mxu0 %v12787_v45  ;;  %8754 = vmatprep.subr.bf16.mxu1 %v12789_v49  ;;  %v13585_v20 = vld [vmem:[#allocation24 + $0x260] ss:$16 sps:$4 sm:$0xff]   ;;  %v13590_v45 = vld [vmem:[#allocation24 + $0x44] ss:$16 sps:$4 sm:$0xff]  }
 0x622   : > { %v13593_v49 = vld [vmem:[#allocation24 + $0x244] ss:$16 sps:$4 sm:$0xff]  }
 0x624   : > { %8714 = vmatpush1.bf16.msra.mxu0 %v12786_v32  ;;  %8755 = vmatpush1.bf16.msra.mxu1 %v12788_v46  ;;  %v13594_v32 = vld [vmem:[#allocation24 + $0x20] ss:$16 sps:$4 sm:$0xff]  }
 0x625   : > { %8715 = vmatprep.subr.bf16.mxu0 %v12779_v59  ;;  %8756 = vmatprep.subr.bf16.mxu1 %v12781_v53  ;;  %v13597_v46 = vld [vmem:[#allocation24 + $0x220] ss:$16 sps:$4 sm:$0xff]   ;;  %v13602_v59 = vld [vmem:[#allocation24 + $0x4] ss:$16 sps:$4 sm:$0xff]  }
 0x626   : > { %v13605_v53 = vld [vmem:[#allocation24 + $0x204] ss:$16 sps:$4 sm:$0xff]  }
 0x628   : > { %8716 = vmatpush1.bf16.msra.mxu0 %v12778_v62  ;;  %8757 = vmatpush1.bf16.msra.mxu1 %v12780_v0  ;;  %v13606_v62 = vld [vmem:[#allocation24 + $0x1e0] ss:$16 sps:$4 sm:$0xff]  }
 0x629   : > { %8717 = vmatprep.subr.bf16.mxu0 %v12771_v25  ;;  %8758 = vmatprep.subr.bf16.mxu1 %v12773_v60  ;;  %v13609_v0 = vld [vmem:[#allocation24 + $0x3e0] ss:$16 sps:$4 sm:$0xff]   ;;  %v13614_v25 = vld [vmem:[#allocation24 + $0x1c4] ss:$16 sps:$4 sm:$0xff]  }
 0x62a   : > { %v13617_v60 = vld [vmem:[#allocation24 + $0x3c4] ss:$16 sps:$4 sm:$0xff]  }
 0x62c   : > { %8718 = vmatpush1.bf16.msra.mxu0 %v12770_v13  ;;  %8759 = vmatpush1.bf16.msra.mxu1 %v12772_v9  ;;  %v13612_v13 = vld [vmem:[#allocation24 + $0x1c0] ss:$16 sps:$4 sm:$0xff]  }
 0x62d   : > { %8719 = vmatprep.subr.bf16.mxu0 %v12763_v10  ;;  %8760 = vmatprep.subr.bf16.mxu1 %v12765_v6  ;;  %v13615_v9 = vld [vmem:[#allocation24 + $0x3c0] ss:$16 sps:$4 sm:$0xff]  }
 0x630   : > { %8720 = vmatpush1.bf16.msra.mxu0 %v12762_v5  ;;  %8761 = vmatpush1.bf16.msra.mxu1 %v12764_v7  ;;  %v13620_v5 = vld [vmem:[#allocation24 + $0x1a4] ss:$16 sps:$4 sm:$0xff]  }
 0x631   : > { %10511 = vmatprep.subr.bf16.mxu0 %v13560_v61  ;;  %10552 = vmatprep.subr.bf16.mxu1 %v13563_v38  ;;  %v13623_v7 = vld [vmem:[#allocation24 + $0x3a4] ss:$16 sps:$4 sm:$0xff]  }
 0x633   : > { %v7065_v52 = vpop.f32.mrf.mxu0  ;;  %v7106_v26 = vpop.f32.mrf.mxu1  ;;  %8738 = vmatmul.mubr.bf16.vlgmr.msra.gmra.mxu0 %v15767_v63  ;;  %8779 = vmatmul.mubr.bf16.vlgmr.msra.gmra.mxu1 %v15767_v63 }
 0x634   : > { %v15788_v35 = vadd.f32 %v7065_v52, %v15752_v1  ;;  %v15791_v22 = vadd.f32 %v7106_v26, %v15755_v4  ;;  %10512 = vmatpush1.bf16.msra.mxu0 %v13558_v15  ;;  %10553 = vmatpush1.bf16.msra.mxu1 %v13561_v12  ;;  %v13570_v4 = vld [vmem:[#allocation24 + $0xa0] ss:$16 sps:$4 sm:$0xff]   ;;  %v13626_v52 = vld [vmem:[#allocation24 + $0x184] ss:$16 sps:$4 sm:$0xff]  }
 0x635   : > { %v7067_v23 = vpop.f32.mrf.mxu0  ;;  %v7108_v33 = vpop.f32.mrf.mxu1  ;;  %10513 = vmatprep.subr.bf16.mxu0 %v13566_v19  ;;  %10554 = vmatprep.subr.bf16.mxu1 %v13569_v18  ;;  %v13621_v12 = vld [vmem:[#allocation24 + $0x3a0] ss:$16 sps:$4 sm:$0xff]   ;;  %v13629_v26 = vld [vmem:[#allocation24 + $0x384] ss:$16 sps:$4 sm:$0xff]  }
 0x636   : > { %v15794_v36 = vadd.f32 %v7067_v23, %v15758_v2  ;;  %v15797_v63 = vadd.f32 %v7108_v33, %v15761_v21  ;;  %v13579_v2 = vld [vmem:[#allocation24 + $0x280] ss:$16 sps:$4 sm:$0xff]   ;;  %v13584_v21 = vld [vmem:[#allocation24 + $0x64] ss:$16 sps:$4 sm:$0xff]  }
 0x637   : > { %v7069_v1 = vpop.f32.mrf.mxu0  ;;  %v7110_v37 = vpop.f32.mrf.mxu1  ;;  %v13630_v23 = vld [vmem:[#allocation24 + $0x160] ss:$16 sps:$4 sm:$0xff]  }
 0x638   : > { %10514 = vmatpush1.bf16.msra.mxu0 %v13564_v40  ;;  %10555 = vmatpush1.bf16.msra.mxu1 %v13567_v27  ;;  %v13624_v40 = vld [vmem:[#allocation24 + $0x180] ss:$16 sps:$4 sm:$0xff]   ;;  %v13635_v27 = vld [vmem:[#allocation24 + $0x364] ss:$16 sps:$4 sm:$0xff]  }
 0x639   : > { %v7070_v30 = vpop.f32.mrf.mxu0  ;;  %v7111_v31 = vpop.f32.mrf.mxu1  ;;  %10515 = vmatprep.subr.bf16.mxu0 %v13572_v41  ;;  %10556 = vmatprep.subr.bf16.mxu1 %v13575_v57  ;;  %v13633_v33 = vld [vmem:[#allocation24 + $0x360] ss:$16 sps:$4 sm:$0xff]   ;;  %v13638_v41 = vld [vmem:[#allocation24 + $0x144] ss:$16 sps:$4 sm:$0xff]  }
 0x63a   : > { %v13641_v57 = vld [vmem:[#allocation24 + $0x344] ss:$16 sps:$4 sm:$0xff]   ;;  %v13636_v1 = vld [vmem:[#allocation24 + $0x140] ss:$16 sps:$4 sm:$0xff]  }
 0x63b   : > { %v13639_v37 = vld [vmem:[#allocation24 + $0x340] ss:$16 sps:$4 sm:$0xff]  }
 0x63c   : > { %10516 = vmatpush1.bf16.msra.mxu0 %v13570_v4  ;;  %10557 = vmatpush1.bf16.msra.mxu1 %v13573_v39  ;;  %v13644_v4 = vld [vmem:[#allocation24 + $0x124] ss:$16 sps:$4 sm:$0xff]   ;;  %v13642_v30 = vld [vmem:[#allocation24 + $0x120] ss:$16 sps:$4 sm:$0xff]  }
 0x63d   : > { %10517 = vmatprep.subr.bf16.mxu0 %v13578_v43  ;;  %10558 = vmatprep.subr.bf16.mxu1 %v13581_v28  ;;  %v13647_v39 = vld [vmem:[#allocation24 + $0x324] ss:$16 sps:$4 sm:$0xff]   ;;  %v13645_v31 = vld [vmem:[#allocation24 + $0x320] ss:$16 sps:$4 sm:$0xff]  }
 0x63e   : > { %v13650_v43 = vld [vmem:[#allocation24 + $0x104] ss:$16 sps:$4 sm:$0xff]  }
 0x63f   : > { %v13653_v28 = vld [vmem:[#allocation24 + $0x304] ss:$16 sps:$4 sm:$0xff]  }
 0x640   : > { %10518 = vmatpush1.bf16.msra.mxu0 %v13576_v44  ;;  %10559 = vmatpush1.bf16.msra.mxu1 %v13579_v2  ;;  %v13648_v44 = vld [vmem:[#allocation24 + $0x100] ss:$16 sps:$4 sm:$0xff]  }
 0x641   : > { %10519 = vmatprep.subr.bf16.mxu0 %v13584_v21  ;;  %10560 = vmatprep.subr.bf16.mxu1 %v13587_v42  ;;  %v13651_v2 = vld [vmem:[#allocation24 + $0x300] ss:$16 sps:$4 sm:$0xff]   ;;  %v8797_v21 = vlaneseq  ;;  %v13656_v42 = vld [vmem:[#allocation24 + $0x4e4] ss:$16 sps:$4 sm:$0xff]  }
 0x644   : > { %10520 = vmatpush1.bf16.msra.mxu0 %v13582_v29  ;;  %10561 = vmatpush1.bf16.msra.mxu1 %v13585_v20  ;;  %v13659_v29 = vld [vmem:[#allocation24 + $0x6e4] ss:$16 sps:$4 sm:$0xff]   ;;  %v15811_v20 = vshrl.u32 %v8797_v21, 7 }
 0x645   : > { %10521 = vmatprep.subr.bf16.mxu0 %v13590_v45  ;;  %10562 = vmatprep.subr.bf16.mxu1 %v13593_v49 }
 0x648   : > { %10522 = vmatpush1.bf16.msra.mxu0 %v13588_v47  ;;  %10563 = vmatpush1.bf16.msra.mxu1 %v13591_v50  ;;  %v15814_v47 = vsub.s32 4, %v15811_v20  ;;  %v15817_v50 = vsub.s32 6, %v15811_v20 }
 0x649   : > { %10523 = vmatprep.subr.bf16.mxu0 %v13596_v17  ;;  %10564 = vmatprep.subr.bf16.mxu1 %v13599_v48 }
 0x64c   : > { %10524 = vmatpush1.bf16.msra.mxu0 %v13594_v32  ;;  %10565 = vmatpush1.bf16.msra.mxu1 %v13597_v46  ;;  %v15821_v32 = vld [vmem:[#allocation19] sm:$0xff] }
 0x64d   : > { %10525 = vmatprep.subr.bf16.mxu0 %v13602_v59  ;;  %10566 = vmatprep.subr.bf16.mxu1 %v13605_v53  ;;  %v15823_v53 = vld [vmem:[#allocation21] sm:$0xff] }
 0x650   : > { %10526 = vmatpush1.bf16.msra.mxu0 %v13600_v55  ;;  %10567 = vmatpush1.bf16.msra.mxu1 %v13603_v16  ;;  %v8816_v55 = vrot.slane %v15821_v32, %v15814_v47  ;;  %v8824_v16 = vrot.slane %v15821_v32, %v15817_v50 }
 0x651   : > { %10527 = vmatprep.subr.bf16.mxu0 %v13608_v51  ;;  %10568 = vmatprep.subr.bf16.mxu1 %v13611_v58 }
 0x653   : > { %v7540_v54 = vpop.f32.mrf.mxu0  ;;  %v7581_v56 = vpop.f32.mrf.mxu1 }
 0x654   : > { %v15800_v8 = vadd.f32 %v7540_v54, %v15772_v14  ;;  %v15803_v11 = vadd.f32 %v7581_v56, %v15775_v3  ;;  %10528 = vmatpush2.bf16.msra.mxu0 %v13606_v62  ;;  %10569 = vmatpush2.bf16.msra.mxu1 %v13609_v0  ;;  %v13618_v3 = vld [vmem:[#allocation24 + $0x1a0] ss:$16 sps:$4 sm:$0xff]   ;;  %v15837_v0 = vld [vmem:[#allocation22] sm:$0xff] }
 0x655   : > { %v7542_v10 = vpop.f32.mrf.mxu0  ;;  %v7583_v6 = vpop.f32.mrf.mxu1  ;;  %10529 = vmatprep.subr.bf16.mxu0 %v13614_v25  ;;  %10570 = vmatprep.subr.bf16.mxu1 %v13617_v60  ;;  %v8874_v25 = vrot.slane %v15823_v53, %v15817_v50  ;;  %v8916_v60 = vrot.slane %v15837_v0, %v15814_v47 }
 0x656   : > { %v15806_v61 = vadd.f32 %v7542_v10, %v15778_v24  ;;  %v15809_v38 = vadd.f32 %v7583_v6, %v15781_v34  ;;  %v13627_v24 = vld [vmem:[#allocation24 + $0x380] ss:$16 sps:$4 sm:$0xff]   ;;  %v13632_v34 = vld [vmem:[#allocation24 + $0x164] ss:$16 sps:$4 sm:$0xff]  }
 0x657   : > { %v7544_v14 = vpop.f32.mrf.mxu0  ;;  %v7585_v15 = vpop.f32.mrf.mxu1 }
 0x658   : > { %10530 = vmatpush2.bf16.msra.mxu0 %v13612_v13  ;;  %10571 = vmatpush2.bf16.msra.mxu1 %v13615_v9 }
 0x659   : > { %v7545_v19 = vpop.f32.mrf.mxu0  ;;  %v7586_v18 = vpop.f32.mrf.mxu1  ;;  %10531 = vmatprep.subr.bf16.mxu0 %v13620_v5  ;;  %10572 = vmatprep.subr.bf16.mxu1 %v13623_v7 }
 0x65c   : > { %10532 = vmatpush2.bf16.msra.mxu0 %v13618_v3  ;;  %10573 = vmatpush2.bf16.msra.mxu1 %v13621_v12 }
 0x65d   : > { %10533 = vmatprep.subr.bf16.mxu0 %v13626_v52  ;;  %10574 = vmatprep.subr.bf16.mxu1 %v13629_v26 }
 0x660   : > { %10534 = vmatpush2.bf16.msra.mxu0 %v13624_v40  ;;  %10575 = vmatpush2.bf16.msra.mxu1 %v13627_v24 }
 0x661   : > { %10535 = vmatprep.subr.bf16.mxu0 %v13632_v34  ;;  %10576 = vmatprep.subr.bf16.mxu1 %v13635_v27  ;;  %v15856_v27 = vsub.s32 0, %v15811_v20 }
 0x664   : > { %10536 = vmatpush2.bf16.msra.mxu0 %v13630_v23  ;;  %10577 = vmatpush2.bf16.msra.mxu1 %v13633_v33  ;;  %v15859_v23 = vsub.s32 2, %v15811_v20  ;;  %v15862_v33 = vsub.s32 1, %v15811_v20 }
 0x665   : > { %10537 = vmatprep.subr.bf16.mxu0 %v13638_v41  ;;  %10578 = vmatprep.subr.bf16.mxu1 %v13641_v57  ;;  %v15865_v41 = vsub.s32 3, %v15811_v20  ;;  %v8800_v57 = vrot.slane %v15821_v32, %v15856_v27 }
 0x668   : > { %10538 = vmatpush2.bf16.msra.mxu0 %v13636_v1  ;;  %10579 = vmatpush2.bf16.msra.mxu1 %v13639_v37  ;;  %v8808_v1 = vrot.slane %v15821_v32, %v15859_v23 }
 0x669   : > { %10539 = vmatprep.subr.bf16.mxu0 %v13644_v4  ;;  %10580 = vmatprep.subr.bf16.mxu1 %v13647_v39  ;;  %v8850_v4 = vrot.slane %v15823_v53, %v15856_v27 }
 0x66c   : > { %10540 = vmatpush2.bf16.msra.mxu0 %v13642_v30  ;;  %10581 = vmatpush2.bf16.msra.mxu1 %v13645_v31  ;;  %v8858_v30 = vrot.slane %v15823_v53, %v15859_v23  ;;  %v8804_v31 = vrot.slane %v15821_v32, %v15862_v33 }
 0x66d   : > { %10541 = vmatprep.subr.bf16.mxu0 %v13650_v43  ;;  %10582 = vmatprep.subr.bf16.mxu1 %v13653_v28  ;;  %v8812_v43 = vrot.slane %v15821_v32, %v15865_v41 }
 0x670   : > { %10542 = vmatpush2.bf16.msra.mxu0 %v13648_v44  ;;  %10583 = vmatpush2.bf16.msra.mxu1 %v13651_v2 }
 0x671   : > { %10593 = vmatprep.subr.bf16.mxu0 %v13656_v42  ;;  %10634 = vmatprep.subr.bf16.mxu1 %v13659_v29  ;;  %v8854_v29 = vrot.slane %v15823_v53, %v15862_v33 }
 0x673   : > { %v7622_v45 = vpop.f32.mrf.mxu0  ;;  %v7663_v49 = vpop.f32.mrf.mxu1 }
 0x674   : > { %v7674_v17 = vadd.f32 %v7622_v45, %v15788_v35  ;;  %v7676_v48 = vadd.f32 %v7663_v49, %v15791_v22  ;;  %v8866_v35 = vrot.slane %v15823_v53, %v15814_v47  ;;  %v8862_v49 = vrot.slane %v15823_v53, %v15865_v41  ;;  %v13702_v47 = vld [vmem:[#allocation24 + $0x5e0] ss:$16 sps:$4 sm:$0xff]  }
 0x675   : > { %v7624_v46 = vpop.f32.mrf.mxu0  ;;  %v7665_v59 = vpop.f32.mrf.mxu1 }
 0x676   : > { %v15830_v51 = vadd.f32 %v7624_v46, %v15794_v36  ;;  %v15833_v58 = vadd.f32 %v7665_v59, %v15797_v63  ;;  %v8924_v36 = vrot.slane %v15837_v0, %v15817_v50  ;;  %v13705_v50 = vld [vmem:[#allocation24 + $0x7e0] ss:$16 sps:$4 sm:$0xff]  }
 0x677   : > { %v7626_v22 = vpop.f32.mrf.mxu0  ;;  %v7667_v62 = vpop.f32.mrf.mxu1 }
 0x678   : > { %v8900_v22 = vrot.slane %v15837_v0, %v15856_v27 }
 0x679   : > { %v7627_v54 = vpop.f32.mrf.mxu0  ;;  %v7668_v56 = vpop.f32.mrf.mxu1 }
 0x67a   : > { %v8904_v54 = vrot.slane %v15837_v0, %v15862_v33  ;;  %v8912_v56 = vrot.slane %v15837_v0, %v15865_v41 }
 0x693   : > { %v8100_v63 = vpop.f32.mrf.mxu0  ;;  %v8141_v13 = vpop.f32.mrf.mxu1 }
 0x694   : > { %v8230_v9 = vadd.f32 %v8100_v63, %v15800_v8  ;;  %v8232_v10 = vadd.f32 %v8141_v13, %v15803_v11 }
 0x695   : > { %v8102_v6 = vpop.f32.mrf.mxu0  ;;  %v8143_v5 = vpop.f32.mrf.mxu1 }
 0x696   : > { %v8231_v28 = vadd.f32 %v8102_v6, %v15806_v61  ;;  %v8233_v44 = vadd.f32 %v8143_v5, %v15809_v38  ;;  %v8908_v61 = vrot.slane %v15837_v0, %v15859_v23 }
 0x697   : > { %v8104_v7 = vpop.f32.mrf.mxu0  ;;  %v8145_v14 = vpop.f32.mrf.mxu1 }
 0x699   : > { %v8105_v15 = vpop.f32.mrf.mxu0  ;;  %v8146_v3 = vpop.f32.mrf.mxu1 }
 0x6b3   : > { %v8182_v12 = vpop.f32.mrf.mxu0  ;;  %v8223_v19 = vpop.f32.mrf.mxu1 }
 0x6b4   : > { %v15847_v18 = vadd.f32 %v8182_v12, %v7674_v17  ;;  %v15849_v52 = vadd.f32 %v8223_v19, %v7676_v48 }
 0x6b5   : > { %v15851_v26 = vpop.f32.mrf.mxu0  ;;  %v15853_v40 = vpop.f32.mrf.mxu1 }
 0x6b7   : > { %v8186_v24 = vpop.f32.mrf.mxu0  ;;  %v8227_v8 = vpop.f32.mrf.mxu1 }
 0x6b9   : > { %v8187_v34 = vpop.f32.mrf.mxu0  ;;  %v8228_v11 = vpop.f32.mrf.mxu1 }
 0x6ba   : > { %v13654_v34 = vld [vmem:[#allocation24 + $0x4e0] ss:$16 sps:$4 sm:$0xff]  }
 0x6bb   : > { %v13657_v11 = vld [vmem:[#allocation24 + $0x6e0] ss:$16 sps:$4 sm:$0xff]  }
 0x6d3   : > { %v8657_v37 = vpop.f32.mrf.mxu0  ;;  %v8698_v39 = vpop.f32.mrf.mxu1 }
 0x6d4   : > { %v8787_v2 = vadd.f32 %v8657_v37, %v8230_v9  ;;  %v8789_v21 = vadd.f32 %v8698_v39, %v8232_v10  ;;  %v13662_v37 = vld [vmem:[#allocation24 + $0x4c4] ss:$16 sps:$4 sm:$0xff]   ;;  %v13660_v39 = vld [vmem:[#allocation24 + $0x4c0] ss:$16 sps:$4 sm:$0xff]  }
 0x6d5   : > { %v8659_v42 = vpop.f32.mrf.mxu0  ;;  %v8700_v45 = vpop.f32.mrf.mxu1 }
 0x6d6   : > { %v8837_v17 = vadd.f32 %v8800_v57, %v8787_v2  ;;  %v8839_v48 = vadd.f32 %v8808_v1, %v8789_v21  ;;  %v8788_v46 = vadd.f32 %v8659_v42, %v8231_v28  ;;  %v8790_v59 = vadd.f32 %v8700_v45, %v8233_v44  ;;  %v13666_v28 = vld [vmem:[#allocation24 + $0x4a0] ss:$16 sps:$4 sm:$0xff]   ;;  %v13674_v2 = vld [vmem:[#allocation24 + $0x484] ss:$16 sps:$4 sm:$0xff]  }
 0x6d7   : > { %v8661_v38 = vpop.f32.mrf.mxu0  ;;  %v8702_v62 = vpop.f32.mrf.mxu1  ;;  %v13669_v44 = vld [vmem:[#allocation24 + $0x6a0] ss:$16 sps:$4 sm:$0xff]   ;;  %v13677_v21 = vld [vmem:[#allocation24 + $0x684] ss:$16 sps:$4 sm:$0xff]  }
 0x6d8   : > { %v8887_v63 = vmul.f32 %v8850_v4, %v8837_v17  ;;  %v8889_v13 = vmul.f32 %v8858_v30, %v8839_v48  ;;  %v8838_v9 = vadd.f32 %v8804_v31, %v8788_v46  ;;  %v8840_v10 = vadd.f32 %v8812_v43, %v8790_v59  ;;  %v13665_v4 = vld [vmem:[#allocation24 + $0x6c4] ss:$16 sps:$4 sm:$0xff]   ;;  %v13663_v30 = vld [vmem:[#allocation24 + $0x6c0] ss:$16 sps:$4 sm:$0xff]  }
 0x6d9   : > { %v8662_v6 = vpop.f32.mrf.mxu0  ;;  %v8703_v5 = vpop.f32.mrf.mxu1  ;;  %v13668_v31 = vld [vmem:[#allocation24 + $0x4a4] ss:$16 sps:$4 sm:$0xff]   ;;  %v13672_v42 = vld [vmem:[#allocation24 + $0x480] ss:$16 sps:$4 sm:$0xff]  }
 0x6da   : > { %v8888_v7 = vmul.f32 %v8854_v29, %v8838_v9  ;;  %v8890_v14 = vmul.f32 %v8862_v49, %v8840_v10  ;;  %v8937_v15 = vadd.f32 %v8900_v22, %v8887_v63  ;;  %v8939_v3 = vadd.f32 %v8908_v61, %v8889_v13  ;;  %v13671_v43 = vld [vmem:[#allocation24 + $0x6a4] ss:$16 sps:$4 sm:$0xff]   ;;  %v13675_v29 = vld [vmem:[#allocation24 + $0x680] ss:$16 sps:$4 sm:$0xff]  }
 0x6db   : > { %v13680_v45 = vld [vmem:[#allocation24 + $0x464] ss:$16 sps:$4 sm:$0xff]   ;;  %v13678_v17 = vld [vmem:[#allocation24 + $0x460] ss:$16 sps:$4 sm:$0xff]   ;;  %v8819_v22 = vsub.s32 5, %v15811_v20  ;;  %v8827_v61 = vsub.s32 7, %v15811_v20  ;;  %v8235_v10 = vadd.f32 %v15851_v26, %v15830_v51  ;;  %v8237_v6 = vadd.f32 %v15853_v40, %v15833_v58 }
 0x6dc   : > { %v8938_v12 = vadd.f32 %v8904_v54, %v8888_v7  ;;  %v8940_v19 = vadd.f32 %v8912_v56, %v8890_v14  ;;  %v15897_v57 = vpack.c.bf16 %v8937_v15, %v8937_v15  ;;  %v15899_v1 = vpack.c.bf16 %v8939_v3, %v8939_v3  ;;  %v13683_v49 = vld [vmem:[#allocation24 + $0x664] ss:$16 sps:$4 sm:$0xff]   ;;  %v13681_v48 = vld [vmem:[#allocation24 + $0x660] ss:$16 sps:$4 sm:$0xff]  }
 0x6dd   : > { %v13686_v46 = vld [vmem:[#allocation24 + $0x444] ss:$16 sps:$4 sm:$0xff]   ;;  %v13684_v38 = vld [vmem:[#allocation24 + $0x440] ss:$16 sps:$4 sm:$0xff]   ;;  %v8820_v63 = vrot.slane %v15821_v32, %v8819_v22  ;;  %v8828_v13 = vrot.slane %v15821_v32, %v8827_v61  ;;  %v8870_v15 = vrot.slane %v15823_v53, %v8819_v22 }
 0x6de   : > { %v15893_v24 = vpack.c.bf16 %v8938_v12, %v8938_v12  ;;  %v15895_v8 = vpack.c.bf16 %v8940_v19, %v8940_v19  ;;  %v13689_v59 = vld [vmem:[#allocation24 + $0x644] ss:$16 sps:$4 sm:$0xff]   ;;  %v13687_v56 = vld [vmem:[#allocation24 + $0x640] ss:$16 sps:$4 sm:$0xff]   ;;  %v8878_v12 = vrot.slane %v15823_v53, %v8827_v61 }
 0x6df   : > { %v13692_v9 = vld [vmem:[#allocation24 + $0x424] ss:$16 sps:$4 sm:$0xff]   ;;  %v13696_v53 = vld [vmem:[#allocation24 + $0x400] ss:$16 sps:$4 sm:$0xff]  }
 0x6e0   : > { %10543 = vmatprep.mubr.bf16.mxu0 %v15893_v24  ;;  %10584 = vmatprep.mubr.bf16.mxu1 %v15895_v8  ;;  %v13695_v7 = vld [vmem:[#allocation24 + $0x624] ss:$16 sps:$4 sm:$0xff]  }
 0x6e1   : > { %10544 = vmatmul.mubr.bf16.vlgmr.msra.gmra.mxu0 %v15897_v57  ;;  %10585 = vmatmul.mubr.bf16.vlgmr.msra.gmra.mxu1 %v15899_v1 }
 0x6e2   : > { %10594 = vmatpush1.bf16.msra.mxu0 %v13654_v34  ;;  %10635 = vmatpush1.bf16.msra.mxu1 %v13657_v11  ;;  %v13693_v34 = vld [vmem:[#allocation24 + $0x620] ss:$16 sps:$4 sm:$0xff]   ;;  %v13698_v11 = vld [vmem:[#allocation24 + $0x404] ss:$16 sps:$4 sm:$0xff]  }
 0x6e3   : > { %10595 = vmatprep.subr.bf16.mxu0 %v13662_v37  ;;  %10636 = vmatprep.subr.bf16.mxu1 %v13665_v4  ;;  %v8920_v37 = vrot.slane %v15837_v0, %v8819_v22  ;;  %v8928_v4 = vrot.slane %v15837_v0, %v8827_v61  ;;  %v13710_v0 = vld [vmem:[#allocation24 + $0x5c4] ss:$16 sps:$4 sm:$0xff]   ;;  %v13714_v22 = vld [vmem:[#allocation24 + $0x5a0] ss:$16 sps:$4 sm:$0xff]  }
 0x6e4   : > { %v13717_v61 = vld [vmem:[#allocation24 + $0x7a0] ss:$16 sps:$4 sm:$0xff]  }
 0x6e6   : > { %10596 = vmatpush1.bf16.msra.mxu0 %v13660_v39  ;;  %10637 = vmatpush1.bf16.msra.mxu1 %v13663_v30  ;;  %v13701_v30 = vld [vmem:[#allocation24 + $0x604] ss:$16 sps:$4 sm:$0xff]  }
 0x6e7   : > { %10597 = vmatprep.subr.bf16.mxu0 %v13668_v31  ;;  %10638 = vmatprep.subr.bf16.mxu1 %v13671_v43 }
 0x6ea   : > { %10598 = vmatpush1.bf16.msra.mxu0 %v13666_v28  ;;  %10639 = vmatpush1.bf16.msra.mxu1 %v13669_v44 }
 0x6eb   : > { %10599 = vmatprep.subr.bf16.mxu0 %v13674_v2  ;;  %10640 = vmatprep.subr.bf16.mxu1 %v13677_v21  ;;  %v13704_v21 = vld [vmem:[#allocation24 + $0x5e4] ss:$16 sps:$4 sm:$0xff]  }
 0x6ee   : > { %10600 = vmatpush1.bf16.msra.mxu0 %v13672_v42  ;;  %10641 = vmatpush1.bf16.msra.mxu1 %v13675_v29  ;;  %v13707_v29 = vld [vmem:[#allocation24 + $0x7e4] ss:$16 sps:$4 sm:$0xff]  }
 0x6ef   : > { %10601 = vmatprep.subr.bf16.mxu0 %v13680_v45  ;;  %10642 = vmatprep.subr.bf16.mxu1 %v13683_v49 }
 0x6f2   : > { %10602 = vmatpush1.bf16.msra.mxu0 %v13678_v17  ;;  %10643 = vmatpush1.bf16.msra.mxu1 %v13681_v48  ;;  %v13708_v17 = vld [vmem:[#allocation24 + $0x5c0] ss:$16 sps:$4 sm:$0xff]  }
 0x6f3   : > { %v8739_v62 = vpop.f32.mrf.mxu0  ;;  %v8780_v54 = vpop.f32.mrf.mxu1  ;;  %10603 = vmatprep.subr.bf16.mxu0 %v13686_v46  ;;  %10644 = vmatprep.subr.bf16.mxu1 %v13689_v59  ;;  %v13711_v48 = vld [vmem:[#allocation24 + $0x7c0] ss:$16 sps:$4 sm:$0xff]   ;;  %v13716_v46 = vld [vmem:[#allocation24 + $0x5a4] ss:$16 sps:$4 sm:$0xff]  }
 0x6f4   : > { %v8791_v20 = vadd.f32 %v8739_v62, %v15847_v18  ;;  %v8793_v5 = vadd.f32 %v8780_v54, %v15849_v52  ;;  %v13690_v18 = vld [vmem:[#allocation24 + $0x420] ss:$16 sps:$4 sm:$0xff]   ;;  %v13719_v59 = vld [vmem:[#allocation24 + $0x7a4] ss:$16 sps:$4 sm:$0xff]  }
 0x6f5   : > { %v8741_v14 = vpop.f32.mrf.mxu0  ;;  %v8782_v3 = vpop.f32.mrf.mxu1  ;;  %v13725_v62 = vld [vmem:[#allocation24 + $0x784] ss:$16 sps:$4 sm:$0xff]   ;;  %v13720_v54 = vld [vmem:[#allocation24 + $0x580] ss:$16 sps:$4 sm:$0xff]  }
 0x6f6   : > { %v8841_v19 = vadd.f32 %v8816_v55, %v8791_v20  ;;  %v8843_v51 = vadd.f32 %v8824_v16, %v8793_v5  ;;  %v8792_v58 = vadd.f32 %v8741_v14, %v8235_v10  ;;  %v8794_v26 = vadd.f32 %v8782_v3, %v8237_v6  ;;  %10604 = vmatpush1.bf16.msra.mxu0 %v13684_v38  ;;  %v13722_v38 = vld [vmem:[#allocation24 + $0x584] ss:$16 sps:$4 sm:$0xff]   ;;  %v13729_v10 = vld [vmem:[#allocation24 + $0x760] ss:$16 sps:$4 sm:$0xff]  }
 0x6f7   : > { %10645 = vmatpush1.bf16.msra.mxu1 %v13687_v56  ;;  %v8743_v52 = vpop.f32.mrf.mxu0  ;;  %v8784_v40 = vpop.f32.mrf.mxu1  ;;  %10605 = vmatprep.subr.bf16.mxu0 %v13692_v9  ;;  %v13723_v56 = vld [vmem:[#allocation24 + $0x780] ss:$16 sps:$4 sm:$0xff]   ;;  %v13734_v6 = vld [vmem:[#allocation24 + $0x544] ss:$16 sps:$4 sm:$0xff]  }
 0x6f8   : > { %v8891_v55 = vmul.f32 %v8866_v35, %v8841_v19  ;;  %v8893_v32 = vmul.f32 %v8874_v25, %v8843_v51  ;;  %v8842_v16 = vadd.f32 %v8820_v63, %v8792_v58  ;;  %v8844_v39 = vadd.f32 %v8828_v13, %v8794_v26  ;;  %10646 = vmatprep.subr.bf16.mxu1 %v13695_v7  ;;  %v13699_v25 = vld [vmem:[#allocation24 + $0x600] ss:$16 sps:$4 sm:$0xff]   ;;  %v13728_v63 = vld [vmem:[#allocation24 + $0x564] ss:$16 sps:$4 sm:$0xff]   ;;  %v13755_v52 = vld [vmem:[#allocation24 + $0x2ec] ss:$16 sps:$4 sm:$0xff]  }
 0x6f9   : > { %v8744_v31 = vpop.f32.mrf.mxu0  ;;  %v8785_v43 = vpop.f32.mrf.mxu1  ;;  %v13731_v13 = vld [vmem:[#allocation24 + $0x764] ss:$16 sps:$4 sm:$0xff]   ;;  %v13726_v9 = vld [vmem:[#allocation24 + $0x560] ss:$16 sps:$4 sm:$0xff]   ;;  %v13750_v40 = vld [vmem:[#allocation24 + $0xe8] ss:$16 sps:$4 sm:$0xff]  }
 0x6fa   : > { %v15934_v28 = vadd.f32 %v8916_v60, %v8891_v55  ;;  %v15939_v44 = vadd.f32 %v8924_v36, %v8893_v32  ;;  %v8892_v35 = vmul.f32 %v8870_v15, %v8842_v16  ;;  %v8894_v2 = vmul.f32 %v8878_v12, %v8844_v39  ;;  %10606 = vmatpush1.bf16.msra.mxu0 %v13690_v18  ;;  %v13713_v36 = vld [vmem:[#allocation24 + $0x7c4] ss:$16 sps:$4 sm:$0xff]   ;;  %v13732_v5 = vld [vmem:[#allocation24 + $0x540] ss:$16 sps:$4 sm:$0xff]   ;;  %v13752_v18 = vld [vmem:[#allocation24 + $0xec] ss:$16 sps:$4 sm:$0xff]  }
 0x6fb   : > { %10647 = vmatpush1.bf16.msra.mxu1 %v13693_v34  ;;  %10607 = vmatprep.subr.bf16.mxu0 %v13698_v11  ;;  %v13737_v20 = vld [vmem:[#allocation24 + $0x744] ss:$16 sps:$4 sm:$0xff]   ;;  %v13735_v7 = vld [vmem:[#allocation24 + $0x740] ss:$16 sps:$4 sm:$0xff]   ;;  %v13753_v11 = vld [vmem:[#allocation24 + $0x2e8] ss:$16 sps:$4 sm:$0xff]  }
 0x6fc   : > { %10648 = vmatprep.subr.bf16.mxu1 %v13701_v30  ;;  %v8942_v42 = vadd.f32 %v8920_v37, %v8892_v35  ;;  %v8944_v45 = vadd.f32 %v8928_v4, %v8894_v2  ;;  %v13740_v14 = vld [vmem:[#allocation24 + $0x524] ss:$16 sps:$4 sm:$0xff]   ;;  %v13738_v3 = vld [vmem:[#allocation24 + $0x520] ss:$16 sps:$4 sm:$0xff]   ;;  %v15949_v34 = vpack.c.bf16 %v15934_v28, %v15934_v28  ;;  %v15953_v37 = vpack.c.bf16 %v15939_v44, %v15939_v44  ;;  %v13758_v4 = vld [vmem:[#allocation24 + $0xcc] ss:$16 sps:$4 sm:$0xff]  }
 0x6fd   : > { %v13743_v15 = vld [vmem:[#allocation24 + $0x724] ss:$16 sps:$4 sm:$0xff]   ;;  %v13741_v12 = vld [vmem:[#allocation24 + $0x720] ss:$16 sps:$4 sm:$0xff]   ;;  %v13761_v55 = vld [vmem:[#allocation24 + $0x2cc] ss:$16 sps:$4 sm:$0xff]  }
 0x6fe   : > { %10608 = vmatpush1.bf16.msra.mxu0 %v13696_v53  ;;  %v15941_v60 = vpack.c.bf16 %v8942_v42, %v8942_v42  ;;  %v15943_v49 = vpack.c.bf16 %v8944_v45, %v8944_v45  ;;  %v13746_v19 = vld [vmem:[#allocation24 + $0x504] ss:$16 sps:$4 sm:$0xff]   ;;  %v13744_v58 = vld [vmem:[#allocation24 + $0x500] ss:$16 sps:$4 sm:$0xff]   ;;  %v13756_v32 = vld [vmem:[#allocation24 + $0xc8] ss:$16 sps:$4 sm:$0xff]  }
 0x6ff   : > { %10649 = vmatpush1.bf16.msra.mxu1 %v13699_v25  ;;  %10609 = vmatprep.subr.bf16.mxu0 %v13704_v21  ;;  %v13749_v51 = vld [vmem:[#allocation24 + $0x704] ss:$16 sps:$4 sm:$0xff]   ;;  %v13747_v26 = vld [vmem:[#allocation24 + $0x700] ss:$16 sps:$4 sm:$0xff]   ;;  %v13759_v16 = vld [vmem:[#allocation24 + $0x2c8] ss:$16 sps:$4 sm:$0xff]  }
 0x700   : > { %10625 = vmatprep.mubr.bf16.mxu0 %v15941_v60  ;;  %10650 = vmatprep.subr.bf16.mxu1 %v13707_v29  ;;  %v13764_v39 = vld [vmem:[#allocation24 + $0xac] ss:$16 sps:$4 sm:$0xff]   ;;  %v13762_v31 = vld [vmem:[#allocation24 + $0xa8] ss:$16 sps:$4 sm:$0xff]  }
 0x701   : > { %10666 = vmatprep.mubr.bf16.mxu1 %v15943_v49  ;;  %v13767_v30 = vld [vmem:[#allocation24 + $0x2ac] ss:$16 sps:$4 sm:$0xff]   ;;  %v13765_v43 = vld [vmem:[#allocation24 + $0x2a8] ss:$16 sps:$4 sm:$0xff]  }
 0x702   : > { %10610 = vmatpush2.bf16.msra.mxu0 %v13702_v47  ;;  %v13770_v28 = vld [vmem:[#allocation24 + $0x8c] ss:$16 sps:$4 sm:$0xff]   ;;  %v13768_v35 = vld [vmem:[#allocation24 + $0x88] ss:$16 sps:$4 sm:$0xff]  }
 0x703   : > { %10651 = vmatpush2.bf16.msra.mxu1 %v13705_v50  ;;  %10611 = vmatprep.subr.bf16.mxu0 %v13710_v0  ;;  %v13773_v44 = vld [vmem:[#allocation24 + $0x28c] ss:$16 sps:$4 sm:$0xff]   ;;  %v13777_v25 = vld [vmem:[#allocation24 + $0x268] ss:$16 sps:$4 sm:$0xff]  }
 0x704   : > { %10652 = vmatprep.subr.bf16.mxu1 %v13713_v36  ;;  %v13776_v2 = vld [vmem:[#allocation24 + $0x6c] ss:$16 sps:$4 sm:$0xff]   ;;  %v13780_v29 = vld [vmem:[#allocation24 + $0x48] ss:$16 sps:$4 sm:$0xff]  }
 0x705   : > { %v13779_v53 = vld [vmem:[#allocation24 + $0x26c] ss:$16 sps:$4 sm:$0xff]   ;;  %v13783_v45 = vld [vmem:[#allocation24 + $0x248] ss:$16 sps:$4 sm:$0xff]  }
 0x706   : > { %10612 = vmatpush2.bf16.msra.mxu0 %v13708_v17  ;;  %v13782_v21 = vld [vmem:[#allocation24 + $0x4c] ss:$16 sps:$4 sm:$0xff]   ;;  %v13786_v0 = vld [vmem:[#allocation24 + $0x28] ss:$16 sps:$4 sm:$0xff]  }
 0x707   : > { %10653 = vmatpush2.bf16.msra.mxu1 %v13711_v48  ;;  %10613 = vmatprep.subr.bf16.mxu0 %v13716_v46  ;;  %v13785_v42 = vld [vmem:[#allocation24 + $0x24c] ss:$16 sps:$4 sm:$0xff]   ;;  %v13789_v36 = vld [vmem:[#allocation24 + $0x228] ss:$16 sps:$4 sm:$0xff]  }
 0x708   : > { %10654 = vmatprep.subr.bf16.mxu1 %v13719_v59  ;;  %v13788_v47 = vld [vmem:[#allocation24 + $0x2c] ss:$16 sps:$4 sm:$0xff]   ;;  %v13792_v46 = vld [vmem:[#allocation24 + $0x8] ss:$16 sps:$4 sm:$0xff]  }
 0x709   : > { %v13791_v50 = vld [vmem:[#allocation24 + $0x22c] ss:$16 sps:$4 sm:$0xff]   ;;  %v13795_v59 = vld [vmem:[#allocation24 + $0x208] ss:$16 sps:$4 sm:$0xff]  }
 0x70a   : > { %10614 = vmatpush2.bf16.msra.mxu0 %v13714_v22  ;;  %v13794_v17 = vld [vmem:[#allocation24 + $0xc] ss:$16 sps:$4 sm:$0xff]  }
 0x70b   : > { %10655 = vmatpush2.bf16.msra.mxu1 %v13717_v61  ;;  %10615 = vmatprep.subr.bf16.mxu0 %v13722_v38  ;;  %v13797_v48 = vld [vmem:[#allocation24 + $0x20c] ss:$16 sps:$4 sm:$0xff]   ;;  %v13798_v38 = vld [vmem:[#allocation24 + $0x1e8] ss:$16 sps:$4 sm:$0xff]  }
 0x70c   : > { %10656 = vmatprep.subr.bf16.mxu1 %v13725_v62  ;;  %v13800_v22 = vld [vmem:[#allocation24 + $0x1ec] ss:$16 sps:$4 sm:$0xff]   ;;  %v13801_v62 = vld [vmem:[#allocation24 + $0x3e8] ss:$16 sps:$4 sm:$0xff]  }
 0x70d   : > { %v13803_v61 = vld [vmem:[#allocation24 + $0x3ec] ss:$16 sps:$4 sm:$0xff]  }
 0x70e   : > { %10616 = vmatpush2.bf16.msra.mxu0 %v13720_v54  ;;  %v13806_v54 = vld [vmem:[#allocation24 + $0x1cc] ss:$16 sps:$4 sm:$0xff]  }
 0x70f   : > { %10657 = vmatpush2.bf16.msra.mxu1 %v13723_v56  ;;  %10617 = vmatprep.subr.bf16.mxu0 %v13728_v63  ;;  %v13809_v56 = vld [vmem:[#allocation24 + $0x3cc] ss:$16 sps:$4 sm:$0xff]   ;;  %v13804_v63 = vld [vmem:[#allocation24 + $0x1c8] ss:$16 sps:$4 sm:$0xff]  }
 0x710   : > { %10658 = vmatprep.subr.bf16.mxu1 %v13731_v13  ;;  %v13807_v13 = vld [vmem:[#allocation24 + $0x3c8] ss:$16 sps:$4 sm:$0xff]  }
 0x712   : > { %10618 = vmatpush2.bf16.msra.mxu0 %v13726_v9  ;;  %v13812_v9 = vld [vmem:[#allocation24 + $0x1ac] ss:$16 sps:$4 sm:$0xff]  }
 0x713   : > { %10659 = vmatpush2.bf16.msra.mxu1 %v13729_v10  ;;  %10619 = vmatprep.subr.bf16.mxu0 %v13734_v6  ;;  %v13815_v10 = vld [vmem:[#allocation24 + $0x3ac] ss:$16 sps:$4 sm:$0xff]   ;;  %v13810_v6 = vld [vmem:[#allocation24 + $0x1a8] ss:$16 sps:$4 sm:$0xff]  }
 0x714   : > { %10660 = vmatprep.subr.bf16.mxu1 %v13737_v20  ;;  %v13813_v20 = vld [vmem:[#allocation24 + $0x3a8] ss:$16 sps:$4 sm:$0xff]  }
 0x716   : > { %10620 = vmatpush2.bf16.msra.mxu0 %v13732_v5  ;;  %v13818_v5 = vld [vmem:[#allocation24 + $0x18c] ss:$16 sps:$4 sm:$0xff]  }
 0x717   : > { %10661 = vmatpush2.bf16.msra.mxu1 %v13735_v7  ;;  %10621 = vmatprep.subr.bf16.mxu0 %v13740_v14  ;;  %v13821_v7 = vld [vmem:[#allocation24 + $0x38c] ss:$16 sps:$4 sm:$0xff]   ;;  %v13816_v14 = vld [vmem:[#allocation24 + $0x188] ss:$16 sps:$4 sm:$0xff]  }
 0x718   : > { %10662 = vmatprep.subr.bf16.mxu1 %v13743_v15  ;;  %v13819_v15 = vld [vmem:[#allocation24 + $0x388] ss:$16 sps:$4 sm:$0xff]  }
 0x71a   : > { %10622 = vmatpush2.bf16.msra.mxu0 %v13738_v3  ;;  %v13824_v3 = vld [vmem:[#allocation24 + $0x16c] ss:$16 sps:$4 sm:$0xff]  }
 0x71b   : > { %10663 = vmatpush2.bf16.msra.mxu1 %v13741_v12  ;;  %10623 = vmatprep.subr.bf16.mxu0 %v13746_v19  ;;  %v13827_v12 = vld [vmem:[#allocation24 + $0x36c] ss:$16 sps:$4 sm:$0xff]   ;;  %v13822_v19 = vld [vmem:[#allocation24 + $0x168] ss:$16 sps:$4 sm:$0xff]  }
 0x71c   : > { %10664 = vmatprep.subr.bf16.mxu1 %v13749_v51  ;;  %v13825_v51 = vld [vmem:[#allocation24 + $0x368] ss:$16 sps:$4 sm:$0xff]  }
 0x71e   : > { %10624 = vmatpush2.bf16.msra.mxu0 %v13744_v58  ;;  %v13830_v58 = vld [vmem:[#allocation24 + $0x14c] ss:$16 sps:$4 sm:$0xff]  }
 0x71f   : > { %10665 = vmatpush2.bf16.msra.mxu1 %v13747_v26  ;;  %10675 = vmatprep.subr.bf16.mxu0 %v13752_v18  ;;  %v13833_v26 = vld [vmem:[#allocation24 + $0x34c] ss:$16 sps:$4 sm:$0xff]   ;;  %v13828_v18 = vld [vmem:[#allocation24 + $0x148] ss:$16 sps:$4 sm:$0xff]  }
 0x720   : > { %10716 = vmatprep.subr.bf16.mxu1 %v13755_v52  ;;  %v13831_v52 = vld [vmem:[#allocation24 + $0x348] ss:$16 sps:$4 sm:$0xff]  }
 0x721   : > { %10626 = vmatmul.mubr.bf16.vlgmr.msra.gmra.mxu0 %v15949_v34 }
 0x722   : > { %10667 = vmatmul.mubr.bf16.vlgmr.msra.gmra.mxu1 %v15953_v37  ;;  %10676 = vmatpush1.bf16.msra.mxu0 %v13750_v40  ;;  %v13836_v40 = vld [vmem:[#allocation24 + $0x12c] ss:$16 sps:$4 sm:$0xff]  }
 0x723   : > { %10707 = vmatprep.mubr.bf16.mxu0 %v15893_v24  ;;  %10717 = vmatpush1.bf16.msra.mxu1 %v13753_v11  ;;  %v13771_v24 = vld [vmem:[#allocation24 + $0x288] ss:$16 sps:$4 sm:$0xff]   ;;  %v13839_v11 = vld [vmem:[#allocation24 + $0x32c] ss:$16 sps:$4 sm:$0xff]  }
 0x724   : > { %10748 = vmatprep.mubr.bf16.mxu1 %v15895_v8  ;;  %10677 = vmatprep.subr.bf16.mxu0 %v13758_v4  ;;  %v13774_v8 = vld [vmem:[#allocation24 + $0x68] ss:$16 sps:$4 sm:$0xff]  }
 0x725   : > { %10718 = vmatprep.subr.bf16.mxu1 %v13761_v55  ;;  %v13834_v4 = vld [vmem:[#allocation24 + $0x128] ss:$16 sps:$4 sm:$0xff]  }
 0x726   : > { %10678 = vmatpush1.bf16.msra.mxu0 %v13756_v32  ;;  %v13837_v55 = vld [vmem:[#allocation24 + $0x328] ss:$16 sps:$4 sm:$0xff]   ;;  %v13842_v32 = vld [vmem:[#allocation24 + $0x10c] ss:$16 sps:$4 sm:$0xff]  }
 0x727   : > { %10719 = vmatpush1.bf16.msra.mxu1 %v13759_v16  ;;  %10679 = vmatprep.subr.bf16.mxu0 %v13764_v39  ;;  %v13845_v16 = vld [vmem:[#allocation24 + $0x30c] ss:$16 sps:$4 sm:$0xff]   ;;  %v13840_v39 = vld [vmem:[#allocation24 + $0x108] ss:$16 sps:$4 sm:$0xff]  }
 0x728   : > { %10720 = vmatprep.subr.bf16.mxu1 %v13767_v30  ;;  %v13843_v30 = vld [vmem:[#allocation24 + $0x308] ss:$16 sps:$4 sm:$0xff]  }
 0x72a   : > { %10680 = vmatpush1.bf16.msra.mxu0 %v13762_v31  ;;  %v13848_v31 = vld [vmem:[#allocation24 + $0x4ec] ss:$16 sps:$4 sm:$0xff]  }
 0x72b   : > { %10721 = vmatpush1.bf16.msra.mxu1 %v13765_v43  ;;  %10681 = vmatprep.subr.bf16.mxu0 %v13770_v28  ;;  %v13851_v43 = vld [vmem:[#allocation24 + $0x6ec] ss:$16 sps:$4 sm:$0xff]   ;;  %v13846_v28 = vld [vmem:[#allocation24 + $0x4e8] ss:$16 sps:$4 sm:$0xff]  }
 0x72c   : > { %10722 = vmatprep.subr.bf16.mxu1 %v13773_v44  ;;  %v13849_v44 = vld [vmem:[#allocation24 + $0x6e8] ss:$16 sps:$4 sm:$0xff]  }
 0x72e   : > { %10682 = vmatpush1.bf16.msra.mxu0 %v13768_v35  ;;  %v13854_v35 = vld [vmem:[#allocation24 + $0x4cc] ss:$16 sps:$4 sm:$0xff]  }
 0x72f   : > { %10723 = vmatpush1.bf16.msra.mxu1 %v13771_v24  ;;  %10683 = vmatprep.subr.bf16.mxu0 %v13776_v2  ;;  %v13857_v24 = vld [vmem:[#allocation24 + $0x6cc] ss:$16 sps:$4 sm:$0xff]   ;;  %v13852_v2 = vld [vmem:[#allocation24 + $0x4c8] ss:$16 sps:$4 sm:$0xff]  }
 0x730   : > { %10724 = vmatprep.subr.bf16.mxu1 %v13779_v53  ;;  %v13855_v53 = vld [vmem:[#allocation24 + $0x6c8] ss:$16 sps:$4 sm:$0xff]  }
 0x732   : > { %10684 = vmatpush1.bf16.msra.mxu0 %v13774_v8  ;;  %v13860_v8 = vld [vmem:[#allocation24 + $0x4ac] ss:$16 sps:$4 sm:$0xff]  }
 0x733   : > { %10725 = vmatpush1.bf16.msra.mxu1 %v13777_v25  ;;  %10685 = vmatprep.subr.bf16.mxu0 %v13782_v21  ;;  %v13863_v25 = vld [vmem:[#allocation24 + $0x6ac] ss:$16 sps:$4 sm:$0xff]   ;;  %v13858_v21 = vld [vmem:[#allocation24 + $0x4a8] ss:$16 sps:$4 sm:$0xff]  }
 0x734   : > { %10726 = vmatprep.subr.bf16.mxu1 %v13785_v42  ;;  %v13866_v42 = vld [vmem:[#allocation24 + $0x48c] ss:$16 sps:$4 sm:$0xff]  }
 0x736   : > { %10686 = vmatpush1.bf16.msra.mxu0 %v13780_v29  ;;  %v13864_v29 = vld [vmem:[#allocation24 + $0x488] ss:$16 sps:$4 sm:$0xff]  }
 0x737   : > { %10727 = vmatpush1.bf16.msra.mxu1 %v13783_v45  ;;  %10687 = vmatprep.subr.bf16.mxu0 %v13788_v47  ;;  %v13872_v45 = vld [vmem:[#allocation24 + $0x46c] ss:$16 sps:$4 sm:$0xff]  }
 0x738   : > { %10728 = vmatprep.subr.bf16.mxu1 %v13791_v50  ;;  %v13875_v47 = vld [vmem:[#allocation24 + $0x66c] ss:$16 sps:$4 sm:$0xff]   ;;  %v13873_v50 = vld [vmem:[#allocation24 + $0x668] ss:$16 sps:$4 sm:$0xff]  }
 0x73a   : > { %10688 = vmatpush1.bf16.msra.mxu0 %v13786_v0  ;;  %v13878_v0 = vld [vmem:[#allocation24 + $0x44c] ss:$16 sps:$4 sm:$0xff]  }
 0x73b   : > { %10729 = vmatpush1.bf16.msra.mxu1 %v13789_v36  ;;  %10689 = vmatprep.subr.bf16.mxu0 %v13794_v17  ;;  %v13881_v36 = vld [vmem:[#allocation24 + $0x64c] ss:$16 sps:$4 sm:$0xff]   ;;  %v13876_v17 = vld [vmem:[#allocation24 + $0x448] ss:$16 sps:$4 sm:$0xff]  }
 0x73c   : > { %10730 = vmatprep.subr.bf16.mxu1 %v13797_v48  ;;  %v13879_v48 = vld [vmem:[#allocation24 + $0x648] ss:$16 sps:$4 sm:$0xff]  }
 0x73e   : > { %10690 = vmatpush1.bf16.msra.mxu0 %v13792_v46  ;;  %v13884_v46 = vld [vmem:[#allocation24 + $0x42c] ss:$16 sps:$4 sm:$0xff]  }
 0x73f   : > { %10731 = vmatpush1.bf16.msra.mxu1 %v13795_v59  ;;  %10691 = vmatprep.subr.bf16.mxu0 %v13800_v22  ;;  %v13887_v59 = vld [vmem:[#allocation24 + $0x62c] ss:$16 sps:$4 sm:$0xff]   ;;  %v13882_v22 = vld [vmem:[#allocation24 + $0x428] ss:$16 sps:$4 sm:$0xff]  }
 0x740   : > { %10732 = vmatprep.subr.bf16.mxu1 %v13803_v61  ;;  %v13885_v61 = vld [vmem:[#allocation24 + $0x628] ss:$16 sps:$4 sm:$0xff]  }
 0x742   : > { %10692 = vmatpush2.bf16.msra.mxu0 %v13798_v38  ;;  %v13890_v38 = vld [vmem:[#allocation24 + $0x40c] ss:$16 sps:$4 sm:$0xff]  }
 0x743   : > { %10733 = vmatpush2.bf16.msra.mxu1 %v13801_v62  ;;  %10693 = vmatprep.subr.bf16.mxu0 %v13806_v54  ;;  %v13893_v62 = vld [vmem:[#allocation24 + $0x60c] ss:$16 sps:$4 sm:$0xff]   ;;  %v13888_v54 = vld [vmem:[#allocation24 + $0x408] ss:$16 sps:$4 sm:$0xff]  }
 0x744   : > { %10734 = vmatprep.subr.bf16.mxu1 %v13809_v56  ;;  %v13891_v56 = vld [vmem:[#allocation24 + $0x608] ss:$16 sps:$4 sm:$0xff]  }
 0x746   : > { %10694 = vmatpush2.bf16.msra.mxu0 %v13804_v63  ;;  %v13896_v63 = vld [vmem:[#allocation24 + $0x5ec] ss:$16 sps:$4 sm:$0xff]  }
 0x747   : > { %10735 = vmatpush2.bf16.msra.mxu1 %v13807_v13  ;;  %10695 = vmatprep.subr.bf16.mxu0 %v13812_v9  ;;  %v13899_v13 = vld [vmem:[#allocation24 + $0x7ec] ss:$16 sps:$4 sm:$0xff]   ;;  %v13894_v9 = vld [vmem:[#allocation24 + $0x5e8] ss:$16 sps:$4 sm:$0xff]  }
 0x748   : > { %10736 = vmatprep.subr.bf16.mxu1 %v13815_v10  ;;  %v13897_v10 = vld [vmem:[#allocation24 + $0x7e8] ss:$16 sps:$4 sm:$0xff]  }
 0x74a   : > { %10696 = vmatpush2.bf16.msra.mxu0 %v13810_v6  ;;  %v13902_v6 = vld [vmem:[#allocation24 + $0x5cc] ss:$16 sps:$4 sm:$0xff]  }
 0x74b   : > { %10737 = vmatpush2.bf16.msra.mxu1 %v13813_v20  ;;  %10697 = vmatprep.subr.bf16.mxu0 %v13818_v5  ;;  %v13905_v20 = vld [vmem:[#allocation24 + $0x7cc] ss:$16 sps:$4 sm:$0xff]   ;;  %v13900_v5 = vld [vmem:[#allocation24 + $0x5c8] ss:$16 sps:$4 sm:$0xff]  }
 0x74c   : > { %10738 = vmatprep.subr.bf16.mxu1 %v13821_v7  ;;  %v13903_v7 = vld [vmem:[#allocation24 + $0x7c8] ss:$16 sps:$4 sm:$0xff]  }
 0x74e   : > { %10698 = vmatpush2.bf16.msra.mxu0 %v13816_v14  ;;  %v13908_v14 = vld [vmem:[#allocation24 + $0x5ac] ss:$16 sps:$4 sm:$0xff]  }
 0x74f   : > { %10739 = vmatpush2.bf16.msra.mxu1 %v13819_v15  ;;  %10699 = vmatprep.subr.bf16.mxu0 %v13824_v3  ;;  %v13911_v15 = vld [vmem:[#allocation24 + $0x7ac] ss:$16 sps:$4 sm:$0xff]   ;;  %v13906_v3 = vld [vmem:[#allocation24 + $0x5a8] ss:$16 sps:$4 sm:$0xff]  }
 0x750   : > { %10740 = vmatprep.subr.bf16.mxu1 %v13827_v12  ;;  %v13909_v12 = vld [vmem:[#allocation24 + $0x7a8] ss:$16 sps:$4 sm:$0xff]  }
 0x752   : > { %10700 = vmatpush2.bf16.msra.mxu0 %v13822_v19  ;;  %v13914_v19 = vld [vmem:[#allocation24 + $0x58c] ss:$16 sps:$4 sm:$0xff]  }
 0x753   : > { %10741 = vmatpush2.bf16.msra.mxu1 %v13825_v51  ;;  %10701 = vmatprep.subr.bf16.mxu0 %v13830_v58  ;;  %v13917_v51 = vld [vmem:[#allocation24 + $0x78c] ss:$16 sps:$4 sm:$0xff]   ;;  %v13912_v58 = vld [vmem:[#allocation24 + $0x588] ss:$16 sps:$4 sm:$0xff]  }
 0x754   : > { %10742 = vmatprep.subr.bf16.mxu1 %v13833_v26  ;;  %v13915_v26 = vld [vmem:[#allocation24 + $0x788] ss:$16 sps:$4 sm:$0xff]  }
 0x756   : > { %10702 = vmatpush2.bf16.msra.mxu0 %v13828_v18  ;;  %v13920_v18 = vld [vmem:[#allocation24 + $0x56c] ss:$16 sps:$4 sm:$0xff]  }
 0x757   : > { %10743 = vmatpush2.bf16.msra.mxu1 %v13831_v52  ;;  %10703 = vmatprep.subr.bf16.mxu0 %v13836_v40  ;;  %v13923_v52 = vld [vmem:[#allocation24 + $0x76c] ss:$16 sps:$4 sm:$0xff]   ;;  %v13918_v40 = vld [vmem:[#allocation24 + $0x568] ss:$16 sps:$4 sm:$0xff]  }
 0x758   : > { %10744 = vmatprep.subr.bf16.mxu1 %v13839_v11  ;;  %v13921_v11 = vld [vmem:[#allocation24 + $0x768] ss:$16 sps:$4 sm:$0xff]  }
 0x75a   : > { %10704 = vmatpush2.bf16.msra.mxu0 %v13834_v4  ;;  %v13926_v4 = vld [vmem:[#allocation24 + $0x54c] ss:$16 sps:$4 sm:$0xff]  }
 0x75b   : > { %10745 = vmatpush2.bf16.msra.mxu1 %v13837_v55  ;;  %10705 = vmatprep.subr.bf16.mxu0 %v13842_v32  ;;  %v13929_v55 = vld [vmem:[#allocation24 + $0x74c] ss:$16 sps:$4 sm:$0xff]   ;;  %v13924_v32 = vld [vmem:[#allocation24 + $0x548] ss:$16 sps:$4 sm:$0xff]  }
 0x75c   : > { %10746 = vmatprep.subr.bf16.mxu1 %v13845_v16  ;;  %v13927_v16 = vld [vmem:[#allocation24 + $0x748] ss:$16 sps:$4 sm:$0xff]  }
 0x75e   : > { %10706 = vmatpush2.bf16.msra.mxu0 %v13840_v39  ;;  %v13932_v39 = vld [vmem:[#allocation24 + $0x52c] ss:$16 sps:$4 sm:$0xff]  }
 0x75f   : > { %10747 = vmatpush2.bf16.msra.mxu1 %v13843_v30  ;;  %10757 = vmatprep.subr.bf16.mxu0 %v13848_v31  ;;  %v13935_v30 = vld [vmem:[#allocation24 + $0x72c] ss:$16 sps:$4 sm:$0xff]   ;;  %v13930_v31 = vld [vmem:[#allocation24 + $0x528] ss:$16 sps:$4 sm:$0xff]  }
 0x760   : > { %10798 = vmatprep.subr.bf16.mxu1 %v13851_v43  ;;  %v13933_v43 = vld [vmem:[#allocation24 + $0x728] ss:$16 sps:$4 sm:$0xff]  }
 0x761   : > { %10708 = vmatmul.mubr.bf16.vlgmr.msra.gmra.mxu0 %v15897_v57  ;;  %v13861_v57 = vld [vmem:[#allocation24 + $0x6a8] ss:$16 sps:$4 sm:$0xff]  }
 0x762   : > { %10749 = vmatmul.mubr.bf16.vlgmr.msra.gmra.mxu1 %v15899_v1  ;;  %10758 = vmatpush1.bf16.msra.mxu0 %v13846_v28  ;;  %v13869_v1 = vld [vmem:[#allocation24 + $0x68c] ss:$16 sps:$4 sm:$0xff]  }
 0x763   : > { %10789 = vmatprep.mubr.bf16.mxu0 %v15941_v60  ;;  %10799 = vmatpush1.bf16.msra.mxu1 %v13849_v44  ;;  %v13867_v60 = vld [vmem:[#allocation24 + $0x688] ss:$16 sps:$4 sm:$0xff]   ;;  %v13938_v28 = vld [vmem:[#allocation24 + $0x50c] ss:$16 sps:$4 sm:$0xff]  }
 0x764   : > { %10830 = vmatprep.mubr.bf16.mxu1 %v15943_v49  ;;  %10759 = vmatprep.subr.bf16.mxu0 %v13854_v35  ;;  %v13870_v49 = vld [vmem:[#allocation24 + $0x468] ss:$16 sps:$4 sm:$0xff]   ;;  %v13941_v44 = vld [vmem:[#allocation24 + $0x70c] ss:$16 sps:$4 sm:$0xff]  }
 0x765   : > { %10800 = vmatprep.subr.bf16.mxu1 %v13857_v24  ;;  %v13936_v35 = vld [vmem:[#allocation24 + $0x508] ss:$16 sps:$4 sm:$0xff]  }
 0x766   : > { %10760 = vmatpush1.bf16.msra.mxu0 %v13852_v2  ;;  %v13939_v24 = vld [vmem:[#allocation24 + $0x708] ss:$16 sps:$4 sm:$0xff]  }
 0x767   : > { %10801 = vmatpush1.bf16.msra.mxu1 %v13855_v53  ;;  %10761 = vmatprep.subr.bf16.mxu0 %v13860_v8  ;;  %v13944_v2 = vld [vmem:[#allocation30 + $0x74] ss:$8 sps:$4 sm:$0xff]   ;;  %v13942_v53 = vld [vmem:[#allocation30 + $0x70] ss:$8 sps:$4 sm:$0xff]   ;;  %v13947_v8 = vld [vmem:[#allocation30 + $0x64] ss:$8 sps:$4 sm:$0xff]  }
 0x768   : > { %10802 = vmatprep.subr.bf16.mxu1 %v13863_v25 }
 0x76a   : > { %10762 = vmatpush1.bf16.msra.mxu0 %v13858_v21 }
 0x76b   : > { %10803 = vmatpush1.bf16.msra.mxu1 %v13861_v57  ;;  %10763 = vmatprep.subr.bf16.mxu0 %v13866_v42  ;;  %v13945_v57 = vld [vmem:[#allocation30 + $0x60] ss:$8 sps:$4 sm:$0xff]  }
 0x76c   : > { %10804 = vmatprep.subr.bf16.mxu1 %v13869_v1 }
 0x76e   : > { %10764 = vmatpush1.bf16.msra.mxu0 %v13864_v29  ;;  %v13950_v29 = vld [vmem:[#allocation30 + $0x54] ss:$8 sps:$4 sm:$0xff]  }
 0x76f   : > { %10805 = vmatpush1.bf16.msra.mxu1 %v13867_v60  ;;  %10765 = vmatprep.subr.bf16.mxu0 %v13872_v45 }
 0x770   : > { %10806 = vmatprep.subr.bf16.mxu1 %v13875_v47  ;;  %v13948_v47 = vld [vmem:[#allocation30 + $0x50] ss:$8 sps:$4 sm:$0xff]  }
 0x772   : > { %10766 = vmatpush1.bf16.msra.mxu0 %v13870_v49 }
 0x773   : > { %10807 = vmatpush1.bf16.msra.mxu1 %v13873_v50  ;;  %10767 = vmatprep.subr.bf16.mxu0 %v13878_v0  ;;  %v13953_v50 = vld [vmem:[#allocation30 + $0x44] ss:$8 sps:$4 sm:$0xff]   ;;  %v13990_v0 = vld [vmem:[#allocation30 + $0x170] ss:$8 sps:$4 sm:$0xff]  }
 0x774   : > { %10808 = vmatprep.subr.bf16.mxu1 %v13881_v36  ;;  %v13992_v36 = vld [vmem:[#allocation30 + $0x174] ss:$8 sps:$4 sm:$0xff]  }
 0x776   : > { %10768 = vmatpush1.bf16.msra.mxu0 %v13876_v17  ;;  %v13995_v17 = vld [vmem:[#allocation30 + $0x164] ss:$8 sps:$4 sm:$0xff]  }
 0x777   : > { %10809 = vmatpush1.bf16.msra.mxu1 %v13879_v48  ;;  %10769 = vmatprep.subr.bf16.mxu0 %v13884_v46  ;;  %v13956_v48 = vld [vmem:[#allocation30 + $0x34] ss:$8 sps:$4 sm:$0xff]   ;;  %v13993_v46 = vld [vmem:[#allocation30 + $0x160] ss:$8 sps:$4 sm:$0xff]  }
 0x778   : > { %10810 = vmatprep.subr.bf16.mxu1 %v13887_v59  ;;  %v13998_v59 = vld [vmem:[#allocation30 + $0x154] ss:$8 sps:$4 sm:$0xff]  }
 0x77a   : > { %10770 = vmatpush1.bf16.msra.mxu0 %v13882_v22  ;;  %v13954_v22 = vld [vmem:[#allocation30 + $0x30] ss:$8 sps:$4 sm:$0xff]  }
 0x77b   : > { %10811 = vmatpush1.bf16.msra.mxu1 %v13885_v61  ;;  %10771 = vmatprep.subr.bf16.mxu0 %v13890_v38  ;;  %v13959_v61 = vld [vmem:[#allocation30 + $0x24] ss:$8 sps:$4 sm:$0xff]   ;;  %v13996_v38 = vld [vmem:[#allocation30 + $0x150] ss:$8 sps:$4 sm:$0xff]  }
 0x77c   : > { %10812 = vmatprep.subr.bf16.mxu1 %v13893_v62  ;;  %v14001_v62 = vld [vmem:[#allocation30 + $0x144] ss:$8 sps:$4 sm:$0xff]  }
 0x77e   : > { %10772 = vmatpush1.bf16.msra.mxu0 %v13888_v54  ;;  %v13957_v54 = vld [vmem:[#allocation30 + $0x20] ss:$8 sps:$4 sm:$0xff]  }
 0x77f   : > { %10813 = vmatpush1.bf16.msra.mxu1 %v13891_v56  ;;  %10773 = vmatprep.subr.bf16.mxu0 %v13896_v63  ;;  %v13962_v56 = vld [vmem:[#allocation30 + $0x14] ss:$8 sps:$4 sm:$0xff]   ;;  %v13999_v63 = vld [vmem:[#allocation30 + $0x140] ss:$8 sps:$4 sm:$0xff]  }
 0x780   : > { %10814 = vmatprep.subr.bf16.mxu1 %v13899_v13  ;;  %v14004_v13 = vld [vmem:[#allocation30 + $0x134] ss:$8 sps:$4 sm:$0xff]  }
 0x782   : > { %10774 = vmatpush2.bf16.msra.mxu0 %v13894_v9  ;;  %v13960_v9 = vld [vmem:[#allocation30 + $0x10] ss:$8 sps:$4 sm:$0xff]  }
 0x783   : > { %10815 = vmatpush2.bf16.msra.mxu1 %v13897_v10  ;;  %10775 = vmatprep.subr.bf16.mxu0 %v13902_v6  ;;  %v13965_v10 = vld [vmem:[#allocation30 + $0x4] ss:$8 sps:$4 sm:$0xff]   ;;  %v14002_v6 = vld [vmem:[#allocation30 + $0x130] ss:$8 sps:$4 sm:$0xff]  }
 0x784   : > { %10816 = vmatprep.subr.bf16.mxu1 %v13905_v20  ;;  %v14007_v20 = vld [vmem:[#allocation30 + $0x124] ss:$8 sps:$4 sm:$0xff]  }
 0x786   : > { %10776 = vmatpush2.bf16.msra.mxu0 %v13900_v5  ;;  %v13963_v5 = vld [vmem:[#allocation30] ss:$8 sps:$4 sm:$0xff]  }
 0x787   : > { %10817 = vmatpush2.bf16.msra.mxu1 %v13903_v7  ;;  %10777 = vmatprep.subr.bf16.mxu0 %v13908_v14  ;;  %v13968_v7 = vld [vmem:[#allocation30 + $0xf4] ss:$8 sps:$4 sm:$0xff]   ;;  %v14005_v14 = vld [vmem:[#allocation30 + $0x120] ss:$8 sps:$4 sm:$0xff]  }
 0x788   : > { %10818 = vmatprep.subr.bf16.mxu1 %v13911_v15  ;;  %v14010_v15 = vld [vmem:[#allocation30 + $0x114] ss:$8 sps:$4 sm:$0xff]  }
 0x78a   : > { %10778 = vmatpush2.bf16.msra.mxu0 %v13906_v3  ;;  %v13966_v3 = vld [vmem:[#allocation30 + $0xf0] ss:$8 sps:$4 sm:$0xff]  }
 0x78b   : > { %10819 = vmatpush2.bf16.msra.mxu1 %v13909_v12  ;;  %10779 = vmatprep.subr.bf16.mxu0 %v13914_v19  ;;  %v13971_v12 = vld [vmem:[#allocation30 + $0xe4] ss:$8 sps:$4 sm:$0xff]   ;;  %v14008_v19 = vld [vmem:[#allocation30 + $0x110] ss:$8 sps:$4 sm:$0xff]  }
 0x78c   : > { %10820 = vmatprep.subr.bf16.mxu1 %v13917_v51  ;;  %v14013_v51 = vld [vmem:[#allocation30 + $0x104] ss:$8 sps:$4 sm:$0xff]  }
 0x78e   : > { %10780 = vmatpush2.bf16.msra.mxu0 %v13912_v58  ;;  %v13969_v58 = vld [vmem:[#allocation30 + $0xe0] ss:$8 sps:$4 sm:$0xff]  }
 0x78f   : > { %10821 = vmatpush2.bf16.msra.mxu1 %v13915_v26  ;;  %10781 = vmatprep.subr.bf16.mxu0 %v13920_v18  ;;  %v13974_v26 = vld [vmem:[#allocation30 + $0xd4] ss:$8 sps:$4 sm:$0xff]   ;;  %v14011_v18 = vld [vmem:[#allocation30 + $0x100] ss:$8 sps:$4 sm:$0xff]  }
 0x790   : > { %10822 = vmatprep.subr.bf16.mxu1 %v13923_v52  ;;  %v14016_v52 = vld [vmem:[#allocation30 + $0x1f4] ss:$8 sps:$4 sm:$0xff]  }
 0x792   : > { %10782 = vmatpush2.bf16.msra.mxu0 %v13918_v40  ;;  %v13972_v40 = vld [vmem:[#allocation30 + $0xd0] ss:$8 sps:$4 sm:$0xff]  }
 0x793   : > { %10823 = vmatpush2.bf16.msra.mxu1 %v13921_v11  ;;  %10783 = vmatprep.subr.bf16.mxu0 %v13926_v4  ;;  %v13977_v11 = vld [vmem:[#allocation30 + $0xc4] ss:$8 sps:$4 sm:$0xff]   ;;  %v14014_v4 = vld [vmem:[#allocation30 + $0x1f0] ss:$8 sps:$4 sm:$0xff]  }
 0x794   : > { %10824 = vmatprep.subr.bf16.mxu1 %v13929_v55  ;;  %v14019_v55 = vld [vmem:[#allocation30 + $0x1e4] ss:$8 sps:$4 sm:$0xff]  }
 0x796   : > { %10784 = vmatpush2.bf16.msra.mxu0 %v13924_v32  ;;  %v13975_v32 = vld [vmem:[#allocation30 + $0xc0] ss:$8 sps:$4 sm:$0xff]  }
 0x797   : > { %10825 = vmatpush2.bf16.msra.mxu1 %v13927_v16  ;;  %10785 = vmatprep.subr.bf16.mxu0 %v13932_v39  ;;  %v13980_v16 = vld [vmem:[#allocation30 + $0xb4] ss:$8 sps:$4 sm:$0xff]   ;;  %v14017_v39 = vld [vmem:[#allocation30 + $0x1e0] ss:$8 sps:$4 sm:$0xff]  }
 0x798   : > { %10826 = vmatprep.subr.bf16.mxu1 %v13935_v30  ;;  %v14022_v30 = vld [vmem:[#allocation30 + $0x1d4] ss:$8 sps:$4 sm:$0xff]  }
 0x79a   : > { %10786 = vmatpush2.bf16.msra.mxu0 %v13930_v31  ;;  %v13978_v31 = vld [vmem:[#allocation30 + $0xb0] ss:$8 sps:$4 sm:$0xff]  }
 0x79b   : > { %10827 = vmatpush2.bf16.msra.mxu1 %v13933_v43  ;;  %10787 = vmatprep.subr.bf16.mxu0 %v13938_v28  ;;  %v13983_v43 = vld [vmem:[#allocation30 + $0xa4] ss:$8 sps:$4 sm:$0xff]   ;;  %v14020_v28 = vld [vmem:[#allocation30 + $0x1d0] ss:$8 sps:$4 sm:$0xff]  }
 0x79c   : > { %10828 = vmatprep.subr.bf16.mxu1 %v13941_v44  ;;  %v14025_v44 = vld [vmem:[#allocation30 + $0x1c4] ss:$8 sps:$4 sm:$0xff]  }
 0x79e   : > { %10788 = vmatpush2.bf16.msra.mxu0 %v13936_v35  ;;  %v13981_v35 = vld [vmem:[#allocation30 + $0xa0] ss:$8 sps:$4 sm:$0xff]  }
 0x79f   : > { %10829 = vmatpush2.bf16.msra.mxu1 %v13939_v24  ;;  %11304 = vmatprep.subr.bf16.mxu0 %v13944_v2  ;;  %v13986_v24 = vld [vmem:[#allocation30 + $0x94] ss:$8 sps:$4 sm:$0xff]   ;;  %v14023_v2 = vld [vmem:[#allocation30 + $0x1c0] ss:$8 sps:$4 sm:$0xff]  }
 0x7a0   : > { %11345 = vmatprep.subr.bf16.mxu1 %v13992_v36 }
 0x7a1   : > { %10790 = vmatmul.mubr.bf16.vlgmr.msra.gmra.mxu0 %v15949_v34  ;;  %v15964_v25 = vpop.f32.mrf.mxu0  ;;  %v15966_v21 = vpop.f32.mrf.mxu1 }
 0x7a2   : > { %10831 = vmatmul.mubr.bf16.vlgmr.msra.gmra.mxu1 %v15953_v37  ;;  %11305 = vmatpush1.bf16.msra.mxu0 %v13942_v53  ;;  %v13951_v37 = vld [vmem:[#allocation30 + $0x40] ss:$8 sps:$4 sm:$0xff]   ;;  %v15973_v53 = vld [vmem:[#allocation25] sm:$0xf] }
 0x7a3   : > { %v15969_v42 = vpop.f32.mrf.mxu0  ;;  %v15971_v1 = vpop.f32.mrf.mxu1  ;;  %11306 = vmatprep.subr.bf16.mxu0 %v13947_v8  ;;  %11346 = vmatpush1.bf16.msra.mxu1 %v13990_v0  ;;  %v13984_v8 = vld [vmem:[#allocation30 + $0x90] ss:$8 sps:$4 sm:$0xff]  }
 0x7a4   : > { %11347 = vmatprep.subr.bf16.mxu1 %v13995_v17 }
 0x7a5   : > { %v10549_v60 = vpop.f32.mrf.mxu0  ;;  %v10590_v45 = vpop.f32.mrf.mxu1 }
 0x7a6   : > { %11307 = vmatpush1.bf16.msra.mxu0 %v13945_v57  ;;  %v13989_v57 = vld [vmem:[#allocation30 + $0x84] ss:$8 sps:$4 sm:$0xff]   ;;  %v9218_v60 = vrot.slane %v15973_v53, %v15862_v33  ;;  %v13987_v45 = vld [vmem:[#allocation30 + $0x80] ss:$8 sps:$4 sm:$0xff]  }
 0x7a7   : > { %v10550_v49 = vpop.f32.mrf.mxu0  ;;  %v10591_v34 = vpop.f32.mrf.mxu1  ;;  %11308 = vmatprep.subr.bf16.mxu0 %v13950_v29  ;;  %11348 = vmatpush1.bf16.msra.mxu1 %v13993_v46  ;;  %v9214_v29 = vrot.slane %v15973_v53, %v15856_v27  ;;  %v15985_v46 = vstv %s11964_s10 }
 0x7a8   : > { %11349 = vmatprep.subr.bf16.mxu1 %v13998_v59  ;;  %v10548_v49 = vadd.f32 %v15969_v42, %v9218_v60  ;;  %v14046_v60 = vld [vmem:[#allocation36 + $0x58] sm:$0xff]  }
 0x7aa   : > { %11309 = vmatpush1.bf16.msra.mxu0 %v13948_v47  ;;  %v10546_v47 = vadd.f32 %v15964_v25, %v9214_v29  ;;  %v10589_v0 = vadd.f32 %v15971_v1, %v10548_v49  ;;  %v14045_v29 = vld [vmem:[#allocation36 + $0x20] sm:$0xff]  }
 0x7ab   : > { %11310 = vmatprep.subr.bf16.mxu0 %v13953_v50  ;;  %11350 = vmatpush1.bf16.msra.mxu1 %v13996_v38 }
 0x7ac   : > { %11351 = vmatprep.subr.bf16.mxu1 %v14001_v62  ;;  %v10587_v34 = vadd.f32 %v15966_v21, %v10546_v47  ;;  %v15989_v21 = vld [vmem:[#allocation28] sm:$0xf]  ;;  %v9226_v47 = vrot.slane %v15973_v53, %v15865_v41 }
 0x7ae   : > { %11311 = vmatpush1.bf16.msra.mxu0 %v13951_v37  ;;  %v15983_v37 = vld [vmem:[#allocation27] sm:$0xf] }
 0x7af   : > { %11312 = vmatprep.subr.bf16.mxu0 %v13956_v48  ;;  %11352 = vmatpush1.bf16.msra.mxu1 %v13999_v63  ;;  %v14028_v48 = vld [vmem:[#allocation30 + $0x1b4] ss:$8 sps:$4 sm:$0xff]   ;;  %v10857_v42 = vrot.slane %v15983_v37, %v15856_v27  ;;  %v14031_v63 = vld [vmem:[#allocation30 + $0x1a4] ss:$8 sps:$4 sm:$0xff]  }
 0x7b0   : > { %11353 = vmatprep.subr.bf16.mxu1 %v14004_v13  ;;  %v10861_v13 = vrot.slane %v15983_v37, %v15862_v33 }
 0x7b2   : > { %11313 = vmatpush1.bf16.msra.mxu0 %v13954_v22  ;;  %v14026_v22 = vld [vmem:[#allocation30 + $0x1b0] ss:$8 sps:$4 sm:$0xff]  }
 0x7b3   : > { %11314 = vmatprep.subr.bf16.mxu0 %v13959_v61  ;;  %11354 = vmatpush1.bf16.msra.mxu1 %v14002_v6 }
 0x7b4   : > { %11355 = vmatprep.subr.bf16.mxu1 %v14007_v20  ;;  %v10883_v20 = vrot.slane %v15989_v21, %v15856_v27 }
 0x7b6   : > { %11315 = vmatpush1.bf16.msra.mxu0 %v13957_v54 }
 0x7b7   : > { %11316 = vmatprep.subr.bf16.mxu0 %v13962_v56  ;;  %11356 = vmatpush1.bf16.msra.mxu1 %v14005_v14 }
 0x7b8   : > { %11357 = vmatprep.subr.bf16.mxu1 %v14010_v15  ;;  %v10887_v15 = vrot.slane %v15989_v21, %v15862_v33 }
 0x7ba   : > { %11317 = vmatpush1.bf16.msra.mxu0 %v13960_v9 }
 0x7bb   : > { %11318 = vmatprep.subr.bf16.mxu0 %v13965_v10  ;;  %11358 = vmatpush1.bf16.msra.mxu1 %v14008_v19  ;;  %v14029_v10 = vld [vmem:[#allocation30 + $0x1a0] ss:$8 sps:$4 sm:$0xff]  }
 0x7bc   : > { %11359 = vmatprep.subr.bf16.mxu1 %v14013_v51  ;;  %v14032_v51 = vld [vmem:[#allocation30 + $0x190] ss:$8 sps:$4 sm:$0xff]  }
 0x7be   : > { %11319 = vmatpush1.bf16.msra.mxu0 %v13963_v5 }
 0x7bf   : > { %11320 = vmatprep.subr.bf16.mxu0 %v13968_v7  ;;  %11360 = vmatpush1.bf16.msra.mxu1 %v14011_v18  ;;  %v14035_v18 = vld [vmem:[#allocation30 + $0x180] ss:$8 sps:$4 sm:$0xff]  }
 0x7c0   : > { %11361 = vmatprep.subr.bf16.mxu1 %v14016_v52  ;;  %v14037_v52 = vld [vmem:[#allocation30 + $0x184] ss:$8 sps:$4 sm:$0xff]  }
 0x7c2   : > { %11321 = vmatpush2.bf16.msra.mxu0 %v13966_v3 }
 0x7c3   : > { %11322 = vmatprep.subr.bf16.mxu0 %v13971_v12  ;;  %11362 = vmatpush2.bf16.msra.mxu1 %v14014_v4  ;;  %v14034_v12 = vld [vmem:[#allocation30 + $0x194] ss:$8 sps:$4 sm:$0xff]  }
 0x7c4   : > { %11363 = vmatprep.subr.bf16.mxu1 %v14019_v55 }
 0x7c6   : > { %11323 = vmatpush2.bf16.msra.mxu0 %v13969_v58 }
 0x7c7   : > { %11324 = vmatprep.subr.bf16.mxu0 %v13974_v26  ;;  %11364 = vmatpush2.bf16.msra.mxu1 %v14017_v39 }
 0x7c8   : > { %11365 = vmatprep.subr.bf16.mxu1 %v14022_v30 }
 0x7ca   : > { %11325 = vmatpush2.bf16.msra.mxu0 %v13972_v40 }
 0x7cb   : > { %11326 = vmatprep.subr.bf16.mxu0 %v13977_v11  ;;  %11366 = vmatpush2.bf16.msra.mxu1 %v14020_v28  ;;  %v14038_v28 = vld [vmem:[#allocation36 + $0x78] sm:$0xff]  }
 0x7cc   : > { %11367 = vmatprep.subr.bf16.mxu1 %v14025_v44  ;;  %v14039_v44 = vld [vmem:[#allocation36 + $0x38] sm:$0xff]  }
 0x7ce   : > { %11327 = vmatpush2.bf16.msra.mxu0 %v13975_v32 }
 0x7cf   : > { %11328 = vmatprep.subr.bf16.mxu0 %v13980_v16  ;;  %11368 = vmatpush2.bf16.msra.mxu1 %v14023_v2  ;;  %v14042_v2 = vld [vmem:[#allocation36 + $0x68] sm:$0xff]  }
 0x7d0   : > { %11369 = vmatprep.subr.bf16.mxu1 %v14028_v48 }
 0x7d2   : > { %11329 = vmatpush2.bf16.msra.mxu0 %v13978_v31 }
 0x7d3   : > { %11330 = vmatprep.subr.bf16.mxu0 %v13983_v43  ;;  %11370 = vmatpush2.bf16.msra.mxu1 %v14026_v22 }
 0x7d4   : > { %11371 = vmatprep.subr.bf16.mxu1 %v14031_v63 }
 0x7d6   : > { %11331 = vmatpush2.bf16.msra.mxu0 %v13981_v35  ;;  %v14040_v35 = vld [vmem:[#allocation36 + $0x70] sm:$0xff]  }
 0x7d7   : > { %11332 = vmatprep.subr.bf16.mxu0 %v13986_v24  ;;  %11372 = vmatpush2.bf16.msra.mxu1 %v14029_v10  ;;  %v14041_v24 = vld [vmem:[#allocation36 + $0x30] sm:$0xff]  }
 0x7d8   : > { %11373 = vmatprep.subr.bf16.mxu1 %v14034_v12 }
 0x7da   : > { %11333 = vmatpush2.bf16.msra.mxu0 %v13984_v8  ;;  %v14043_v8 = vld [vmem:[#allocation36 + $0x28] sm:$0xff]  }
 0x7db   : > { %11334 = vmatprep.subr.bf16.mxu0 %v13989_v57  ;;  %11374 = vmatpush2.bf16.msra.mxu1 %v14032_v51  ;;  %v14044_v57 = vld [vmem:[#allocation36 + $0x60] sm:$0xff]  }
 0x7dc   : > { %11375 = vmatprep.subr.bf16.mxu1 %v14037_v52  ;;  %v14053_v52 = vld [vmem:[#allocation36] sm:$0xff]  }
 0x7de   : > { %11335 = vmatpush2.bf16.msra.mxu0 %v13987_v45  ;;  %v9222_v45 = vrot.slane %v15973_v53, %v15859_v23 }
 0x7df   : > { %11376 = vmatpush2.bf16.msra.mxu1 %v14035_v18  ;;  %13182 = vmatprep.subr.bf16.mxu0 %v14038_v28  ;;  %v14050_v18 = vld [vmem:[#allocation36 + $0x48] sm:$0xff]  }
 0x7e1   : > { %v10627_v50 = vpop.f32.mrf.mxu0 }
 0x7e2   : > { %v10628_v36 = vadd.f32 %v10627_v50, %v10587_v34  ;;  %v10668_v17 = vpop.f32.mrf.mxu1 }
 0x7e3   : > { %v10629_v59 = vpop.f32.mrf.mxu0 }
 0x7e4   : > { %v10669_v61 = vadd.f32 %v10668_v17, %v10628_v36  ;;  %v10630_v38 = vadd.f32 %v10629_v59, %v10589_v0  ;;  %v10670_v25 = vpop.f32.mrf.mxu1 }
 0x7e5   : > { %v10631_v62 = vpop.f32.mrf.mxu0 }
 0x7e6   : > { %vm10839_vm15 = vcmp.gt.f32.partialorder %v10669_v61, 0.0  ;;  %v10844_v1 = vmul.f32 %v15985_v46, %v10669_v61  ;;  %v10671_v54 = vadd.f32 %v10670_v25, %v10630_v38  ;;  %v10672_v56 = vpop.f32.mrf.mxu1  ;;  %v10865_v25 = vrot.slane %v15983_v37, %v15859_v23 }
 0x7e7   : > { %v10632_v9 = vpop.f32.mrf.mxu0 }
 0x7e8   : > { %v10848_v6 = vsel %vm10839_vm15, %v10669_v61, %v10844_v1  ;;  %vm10840_vm0 = vcmp.gt.f32.partialorder %v10671_v54, 0.0  ;;  %v10845_v5 = vmul.f32 %v15985_v46, %v10671_v54  ;;  %v10673_v7 = vpop.f32.mrf.mxu1 }
 0x7e9   : > { %v10874_v14 = vmul.f32 %v10857_v42, %v10848_v6 }
 0x7ea   : > { %v10849_v3 = vsel %vm10840_vm0, %v10671_v54, %v10845_v5  ;;  %v10869_v54 = vrot.slane %v15983_v37, %v15865_v41 }
 0x7eb   : > { %v10875_v19 = vmul.f32 %v10861_v13, %v10849_v3  ;;  %v10900_v58 = vadd.f32 %v10883_v20, %v10874_v14  ;;  %v10891_v13 = vrot.slane %v15989_v21, %v15859_v23  ;;  %v10895_v20 = vrot.slane %v15989_v21, %v15865_v41  ;;  %v14048_v23 = vld [vmem:[#allocation36 + $0x50] sm:$0xff]   ;;  %v14051_v41 = vld [vmem:[#allocation36 + $0x8] sm:$0xff]   ;;  %v14052_v21 = vld [vmem:[#allocation36 + $0x40] sm:$0xff]  }
 0x7ed   : > { %v10901_v26 = vadd.f32 %v10887_v15, %v10875_v19  ;;  %v10904_v11 = vpack.c.bf16 %v10900_v58, %v10900_v58  ;;  %v14047_v19 = vld [vmem:[#allocation36 + $0x18] sm:$0xff]  }
 0x7ef   : > { %v10905_v40 = vpack.c.bf16 %v10901_v26, %v10901_v26 }
 0x7f1   : > { %11336 = vmatprep.mubr.bf16.mxu0 %v10905_v40  ;;  %v10972_v40 = vld [vmem:[#allocation31] sm:$0x3] }
 0x7f2   : > { %11337 = vmatmul.mubr.bf16.vlgmr.msra.gmra.mxu0 %v10904_v11  ;;  %v10977_v11 = vrot.slane %v10972_v40, %v15856_v27 }
 0x7f3   : > { %13183 = vmatpush3.bf16.msra.mxu0 %v14039_v44  ;;  %v11407_v44 = vld [vmem:[#allocation34] sm:$0x3] }
 0x7f4   : > { %13184 = vmatprep.subr.bf16.mxu0 %v14040_v35 }
 0x7f7   : > { %13185 = vmatpush3.bf16.msra.mxu0 %v14041_v24 }
 0x7f8   : > { %13186 = vmatprep.subr.bf16.mxu0 %v14042_v2 }
 0x7fb   : > { %13187 = vmatpush3.bf16.msra.mxu0 %v14043_v8 }
 0x7fc   : > { %13188 = vmatprep.subr.bf16.mxu0 %v14044_v57 }
 0x7ff   : > { %13189 = vmatpush3.bf16.msra.mxu0 %v14045_v29 }
 0x800   : > { %13190 = vmatprep.subr.bf16.mxu0 %v14046_v60  ;;  %v11412_v60 = vrot.slane %v11407_v44, %v15856_v27 }
 0x803   : > { %13191 = vmatpush3.bf16.msra.mxu0 %v14047_v19 }
 0x804   : > { %13192 = vmatprep.subr.bf16.mxu0 %v14048_v23 }
 0x821   : > { %v10709_v4 = vpop.f32.mrf.mxu0 }
 0x822   : > { %v10750_v55 = vpop.f32.mrf.mxu1  ;;  %v10710_v49 = vadd.f32 %v10709_v4, %v9222_v45  ;;  %v10981_v4 = vrot.slane %v10972_v40, %v15862_v33 }
 0x823   : > { %v10711_v32 = vpop.f32.mrf.mxu0 }
 0x824   : > { %v10752_v16 = vpop.f32.mrf.mxu1  ;;  %v10712_v34 = vadd.f32 %v10711_v32, %v9226_v47  ;;  %v10751_v50 = vadd.f32 %v10750_v55, %v10710_v49  ;;  %v11393_v32 = vld [vmem:[#allocation33] sm:$0x3]  ;;  %v11416_v49 = vrot.slane %v11407_v44, %v15862_v33 }
 0x825   : > { %v10713_v39 = vpop.f32.mrf.mxu0  ;;  %v11402_v2 = vrot.slane %v11393_v32, %v15862_v33 }
 0x826   : > { %v10754_v30 = vpop.f32.mrf.mxu1  ;;  %v10753_v36 = vadd.f32 %v10752_v16, %v10712_v34  ;;  %v11388_v39 = vstv %s11965_s30  ;;  %s16162_s30 = sld [smem:[#allocation73_spill]] }
 0x827   : > { %v10714_v31 = vpop.f32.mrf.mxu0 }
 0x828   : > { %v10755_v43 = vpop.f32.mrf.mxu1 }
 0x829   : > { %v11398_v43 = vrot.slane %v11393_v32, %v15856_v27  ;;  %v13142_v27 = vld [vmem:[#allocation37] ss:$0 sm:$0xff] }
 0x82c   : > { %s16163_s4 = smov %s16162_s30  ;;  %s11613_s11 = scalar_lea.hbm %s16162_s30, %s13160_s25 }
 0x861   : > { %v10791_v0 = vpop.f32.mrf.mxu0 }
 0x862   : > { %v10792_v17 = vadd.f32 %v10791_v0, %v10751_v50  ;;  %v10832_v48 = vpop.f32.mrf.mxu1 }
 0x863   : > { %v10793_v59 = vpop.f32.mrf.mxu0 }
 0x864   : > { %v10833_v22 = vadd.f32 %v10832_v48, %v10792_v17  ;;  %v10794_v61 = vadd.f32 %v10793_v59, %v10753_v36  ;;  %v10834_v38 = vpop.f32.mrf.mxu1 }
 0x865   : > { %v10795_v42 = vpop.f32.mrf.mxu0 }
 0x866   : > { %vm10841_vm1 = vcmp.gt.f32.partialorder %v10833_v22, 0.0  ;;  %v10846_v62 = vmul.f32 %v15985_v46, %v10833_v22  ;;  %v10835_v1 = vadd.f32 %v10834_v38, %v10794_v61  ;;  %v10836_v53 = vpop.f32.mrf.mxu1  ;;  %v11598_v61 = vld [vmem:[%s1079_s8] sm:$0xff] }
 0x867   : > { %v10796_v56 = vpop.f32.mrf.mxu0 }
 0x868   : > { %v10850_v63 = vsel %vm10841_vm1, %v10833_v22, %v10846_v62  ;;  %vm10842_vm2 = vcmp.gt.f32.partialorder %v10835_v1, 0.0  ;;  %v10847_v9 = vmul.f32 %v15985_v46, %v10835_v1  ;;  %v10837_v10 = vpop.f32.mrf.mxu1  ;;  %v14049_v46 = vld [vmem:[#allocation36 + $0x10] sm:$0xff]  }
 0x869   : > { %v10876_v6 = vmul.f32 %v10865_v25, %v10850_v63  ;;  %13193 = vmatpush3.bf16.msra.mxu0 %v14049_v46 }
 0x86a   : > { %v10851_v5 = vsel %vm10842_vm2, %v10835_v1, %v10847_v9  ;;  %13194 = vmatprep.subr.bf16.mxu0 %v14050_v18 }
 0x86b   : > { %v10877_v7 = vmul.f32 %v10869_v54, %v10851_v5  ;;  %v10902_v14 = vadd.f32 %v10891_v13, %v10876_v6 }
 0x86d   : > { %v10903_v15 = vadd.f32 %v10895_v20, %v10877_v7  ;;  %v10906_v12 = vpack.c.bf16 %v10902_v14, %v10902_v14  ;;  %13195 = vmatpush3.bf16.msra.mxu0 %v14051_v41 }
 0x86e   : > { %13196 = vmatprep.subr.bf16.mxu0 %v14052_v21 }
 0x86f   : > { %v10907_v3 = vpack.c.bf16 %v10903_v15, %v10903_v15 }
 0x871   : > { %11377 = vmatprep.mubr.bf16.mxu1 %v10907_v3  ;;  %13197 = vmatpush3.bf16.msra.mxu0 %v14053_v52 }
 0x872   : > { %11378 = vmatmul.mubr.bf16.vlgmr.msra.gmra.mxu1 %v10906_v12 }
 0x8b2   : > { %v11338_v37 = vpop.f32.mrf.mxu0 }
 0x8b3   : > { %v11339_v55 = vadd.f32 %v11338_v37, %v10977_v11 }
 0x8b4   : > { %v11340_v51 = vpop.f32.mrf.mxu0 }
 0x8b5   : > { %v11341_v30 = vadd.f32 %v11340_v51, %v10981_v4 }
 0x8b6   : > { %v11342_v58 = vpop.f32.mrf.mxu0 }
 0x8b8   : > { %v11343_v26 = vpop.f32.mrf.mxu0 }
 0x932   : > { %v11379_v16 = vpop.f32.mrf.mxu1 }
 0x933   : > { %v11380_v31 = vadd.f32 %v11379_v16, %v11339_v55 }
 0x934   : > { %v11381_v28 = vpop.f32.mrf.mxu1 }
 0x935   : > { %vm11386_vm3 = vcmp.gt.f32.partialorder %v11380_v31, 0.0  ;;  %v11389_v35 = vmul.f32 %v11388_v39, %v11380_v31  ;;  %v11382_v24 = vadd.f32 %v11381_v28, %v11341_v30 }
 0x936   : > { %v11383_v8 = vpop.f32.mrf.mxu1 }
 0x937   : > { %v11391_v57 = vsel %vm11386_vm3, %v11380_v31, %v11389_v35  ;;  %vm11387_vm4 = vcmp.gt.f32.partialorder %v11382_v24, 0.0  ;;  %v11390_v29 = vmul.f32 %v11388_v39, %v11382_v24 }
 0x938   : > { %v11405_v45 = vmul.f32 %v11398_v43, %v11391_v57  ;;  %v11384_v47 = vpop.f32.mrf.mxu1 }
 0x939   : > { %v11392_v34 = vsel %vm11387_vm4, %v11382_v24, %v11390_v29 }
 0x93a   : > { %v11406_v50 = vmul.f32 %v11402_v2, %v11392_v34  ;;  %v11419_v0 = vadd.f32 %v11412_v60, %v11405_v45 }
 0x93c   : > { %v11420_v36 = vadd.f32 %v11416_v49, %v11406_v50  ;;  %v11421_v48 = vpack.c.bf16 %v11419_v0, %v11419_v0 }
 0x93e   : > { %v11422_v17 = vpack.c.bf16 %v11420_v36, %v11420_v36 }
 0x940   : > { %11590 = vmatprep.mubr.bf16.mxu0 %v11422_v17 }
 0x941   : > { %11591 = vmatmul.mubr.bf16.vlgmr.msra.gmra.mxu0 %v11421_v48 }
 0xa01   : > { %v13198_v59 = vpop.f32.mrf.mxu0 }
 0xa03   : > { %v13199_v33 = vpop.f32.mrf.mxu0 }
 0xa04   : > { %v13200_v22 = vadd.f32 %v13199_v33, %v13198_v59 }
 0xa05   : > { %v13201_v38 = vpop.f32.mrf.mxu0 }
 0xa06   : > { %v11593_v25 = vadd.f32 %v13200_v22, %v13142_v27 }
 0xa07   : > { %v13202_v42 = vpop.f32.mrf.mxu0 }
 0xa08   : > { %v11599_v62 = vmul.f32 %v11598_v61, %v11593_v25 }
 0xa0a   : > { %11600 = vst [vmem:[%s1069_s6] sm:$0xff] %v11599_v62 }
 0xa0b   : > { %14650 = shalt.err (!%p14647_p3)
}
 0xa0c   : > { %s14651_s0 = scalar_lea.hbm %s11613_s11, 128  ;;  %s14655_s25 = scalar_lea.hbm %s16163_s4, 256 }
 0xa0d   : > { %p14652_p5 = scmp.ne.s32.totalorder %s11613_s11, %s14651_s0  ;;  %p14656_p4 = scmp.lt.s32.totalorder %s11613_s11, %s16163_s4 }
 0xa0e   : > { %p14657_p7 = scmp.lt.s32.totalorder %s14655_s25, %s14651_s0 }
 0xa0f   : > { %p14653_p6 = pnand %p14652_p5, %p16164_p13 }
 0xa10   : > { %p14658_p8 = por %p14657_p7, %p14656_p4 }
 0xa11   : > { %p14654_p10 = pneg %p14653_p6 }
 0xa13   : > { %p14659_p11 = pnand %p14658_p8, %p14654_p10 }
 0xa15   : > { %14662 = shalt.err (!%p14659_p11)
}
 0xa16   : > { %13364 = dma.vmem_to_hbm [thread:$0]  (%p16164_p13), %s11616_s5, 128, %s11613_s11, %s11602_s27  }
 0xa17 PF: > { %s16165_s10 = sld [smem:[#allocation56_spill]] }
 0xa18   : > { %s16166_s30 = sld [smem:[#allocation54_spill]] }
 0xa19   : > { %s16167_s29 = sld [smem:[#allocation60_spill]] }
 0xa1d   : > { %p13486_p0 = scmp.ge.s32.totalorder %s16165_s10, 2 }
 0xa1e   : > { %s11627_s26 = sand.u32 1, %s16166_s30  }
 0xa1f   : > { %p16168_p1 = scmp.ne.s32.totalorder %s16167_s29, 0  ;;  %s11628_s9 = scalar_lea.sflag [#allocation4], %s11627_s26 }
 0xa21   : > { %p13437_p2 = pnand %p13486_p0, %p16168_p1 }
 0xa23   : > { %p13438_p12 = pneg %p13437_p2 }
 0xa25   : > { %14732 = dma.done.wait (%p13438_p12), %s11628_s9, 128  }
 0xa26   : > { %14734 = vsyncadd (%p13438_p12), %s11628_s9, 4294967168  ;;  %s16169_s30 = sld [smem:[#allocation57_spill]]  ;;  %s16172_s29 = smov %s14741_s2 }
 0xa27   : > { %s16170_s7 = sld [smem:[#allocation55_spill]] }
 0xa28   : > { %s16171_s6 = sld [smem:[#allocation58_spill]] }
 0xa2c   : > { %p48_p9 = scmp.ge.s32.totalorder %s16169_s30, 4  }
 0xa2d   : > { %s16173_s2 = smov %s16170_s7 }
 0xa2e   :  { %50 = sbr.rel (!%p48_p9) target bundleno = 30 (0x1e), region = 264 }
 0xa33   :  { %11633 = vsyncpa [#allocation3], 1 }
 0xa34   :  { %11635 = vsyncpa [#allocation3 + $0x1], 1 }
 0xa35   :  { %11636 = vsyncpa [#allocation8], 1 }
 0xa36   :  { %11637 = vsyncpa [#allocation11], 1 }
 0xa37   :  { %11638 = vsyncpa [#allocation14], 1 }
 0xa38   :  { %11639 = vsyncpa [#allocation17], 1 }
 0xa39   :  { %11640 = vsyncpa [#allocation20], 1 }
 0xa3a   :  { %11641 = vsyncpa [#allocation23], 1 }
 0xa3b   :  { %11642 = vsyncpa [#allocation26], 1 }
 0xa3c   :  { %11643 = vsyncpa [#allocation29], 1 }
 0xa3d   :  { %11644 = vsyncpa [#allocation32], 1 }
 0xa3e   :  { %11645 = vsyncpa [#allocation35], 1 }
 0xa3f   :  { %11646 = vsyncpa [#allocation38], 1 }
 0xa40   :  { %11647 = vsyncpa [#allocation4], 1 }
 0xa41   :  { %11649 = vsyncpa [#allocation4 + $0x1], 1 }
 0xa42   :  { %11650 = vsyncpa [#allocation5], 1 }
 0xa43   :  { %11652 = vsyncpa [#allocation5 + $0x1], 1 }

</bundles_post_ra>
